<compile_context>
chip_gen: v5e
topology: v5e:2x2
jax: 0.10.0
libtpu: 0.0.40
codegen_flags: <defaults>
</compile_context>

<pallas_src>
import jax
import jax.numpy as jnp
from jax.experimental import pallas as pl
from jax.experimental.pallas import tpu as pltpu

H_ENC, H_LAT, H_DEC = 64, 32, 64
HP = 128          # per-gate / per-hidden lane padding (one vreg of lanes)
F_IN_PAD = 128    # lane-padded input feature width
F_OUT_PAD = 128   # lane-padded output feature width


# ----------------------------- kernel ---------------------------------------
def _make_kernel(T, Bp):
    f32 = jnp.float32
    bf16 = jnp.bfloat16

    def activate(gates, c):
        # gates: (Bp, 4*HP) f32, gate k occupies lanes [k*HP, (k+1)*HP) (vreg-aligned)
        i = jax.nn.sigmoid(gates[:, 0 * HP:1 * HP])
        f = jax.nn.sigmoid(gates[:, 1 * HP:2 * HP])
        g = jnp.tanh(gates[:, 2 * HP:3 * HP])
        o = jax.nn.sigmoid(gates[:, 3 * HP:4 * HP])
        c_new = f * c + i * g
        return o * jnp.tanh(c_new), c_new

    def kernel(x_ref,
               wih_e, whh_e, b_e,
               wih_l, b_l,
               w_latdec, b_d, whh_d,
               w_out, b_out,
               out_ref, xp_buf):
        # ---- encoder input projection hoisted out of the serial loop -------
        xp_buf[...] = (jnp.dot(x_ref[...], wih_e[...],
                               preferred_element_type=f32) + b_e[...])

        h = jnp.zeros((Bp, HP), f32)
        c = jnp.zeros((Bp, HP), f32)
        for t in range(T):  # static unroll: recurrence state stays in vregs
            xp = xp_buf[t * Bp:(t + 1) * Bp, :]   # 8-sublane aligned, unmasked
            gates = xp + jnp.dot(h.astype(bf16), whh_e[...],
                                 preferred_element_type=f32)
            h, c = activate(gates, c)
        h_enc = h  # (Bp, HP); lanes >= H_ENC are exactly zero

        # ---- latent input projection is loop-invariant -> compute once -----
        lat_in = (jnp.dot(h_enc.astype(bf16), wih_l[...],
                          preferred_element_type=f32) + b_l[...])
        b_d_b = jnp.broadcast_to(b_d[...], (Bp, 4 * HP))   # hoisted broadcast

        # ---- latent recurrence fused with decoder input projection ---------
        # one (Bp,HP)x(HP,8*HP) matmul per step -> [next latent gates | dec_in]
        gates_l = lat_in          # hl_0 == 0, so step-0 gates are just the input proj
        cl = jnp.zeros((Bp, HP), f32)
        hd = jnp.zeros((Bp, HP), f32)
        cd = jnp.zeros((Bp, HP), f32)
        hd_steps = []
        for t in range(T):
            hl, cl = activate(gates_l, cl)
            fused = jnp.dot(hl.astype(bf16), w_latdec[...],
                            preferred_element_type=f32)        # (Bp, 8*HP)
            gates_l = lat_in + fused[:, :4 * HP]   # latent gates for step t+1 (dead at t==T-1)
            dec_in = fused[:, 4 * HP:] + b_d_b
            gates_d = dec_in + jnp.dot(hd.astype(bf16), whh_d[...],
                                       preferred_element_type=f32)
            hd, cd = activate(gates_d, cd)
            hd_steps.append(hd)

        # ---- output Linear hoisted: one lane-dense matmul, one dense store --
        hd_all = jnp.concatenate(hd_steps, axis=0)             # (T*Bp, HP) f32
        y = (jnp.dot(hd_all.astype(bf16), w_out[...],
                     preferred_element_type=f32) + b_out[...])
        out_ref[...] = y.astype(out_ref.dtype)

    return kernel


# ----------------------------- parameters -----------------------------------
def _pad_gate_cols(w, h, hp):
    """(rows, 4*h) -> (rows, 4*hp): gate k's h real columns lead its hp-wide group."""
    out = jnp.zeros((w.shape[0], 4 * hp), w.dtype)
    for g in range(4):
        out = out.at[:, g * hp:g * hp + h].set(w[:, g * h:(g + 1) * h])
    return out


def _pad_rows(w, rows_pad):
    out = jnp.zeros((rows_pad,) + w.shape[1:], w.dtype)
    return out.at[:w.shape[0]].set(w)


def init_params(key, num_features):
    """PyTorch-shaped synthetic params -> (kernel layout, reference layout)."""
    def lstm_raw(k, in_dim, hidden):
        k1, k2, k3, k4 = jax.random.split(k, 4)
        s = 1.0 / (hidden ** 0.5)
        w_ih = jax.random.uniform(k1, (4 * hidden, in_dim), jnp.float32, -s, s)
        w_hh = jax.random.uniform(k2, (4 * hidden, hidden), jnp.float32, -s, s)
        b_ih = jax.random.uniform(k3, (4 * hidden,), jnp.float32, -s, s)
        b_hh = jax.random.uniform(k4, (4 * hidden,), jnp.float32, -s, s)
        # fused layout: (in, 4H) / (H, 4H) bf16 matmul weights, (1, 4H) f32 bias
        return (w_ih.T.astype(jnp.bfloat16), w_hh.T.astype(jnp.bfloat16),
                (b_ih + b_hh).reshape(1, 4 * hidden))

    ke, kl, kd, ko = jax.random.split(key, 4)
    wih_e, whh_e, b_e = lstm_raw(ke, num_features, H_ENC)
    wih_l, whh_l, b_l = lstm_raw(kl, H_ENC, H_LAT)
    wih_d, whh_d, b_d = lstm_raw(kd, H_LAT, H_DEC)

    s = 1.0 / (H_DEC ** 0.5)
    ko1, ko2 = jax.random.split(ko)
    w_out = jax.random.uniform(ko1, (num_features, H_DEC), jnp.float32, -s, s)
    w_out = w_out.T.astype(jnp.bfloat16)                      # (H_DEC, F)
    b_out = jax.random.uniform(ko2, (num_features,), jnp.float32, -s, s).reshape(1, -1)

    # ----- reference params: same bf16-rounded weights, upcast to f32, unpadded
    ref_params = (
        (wih_e.astype(jnp.float32), whh_e.astype(jnp.float32), b_e),
        (wih_l.astype(jnp.float32), whh_l.astype(jnp.float32), b_l),
        (wih_d.astype(jnp.float32), whh_d.astype(jnp.float32), b_d),
        (w_out.astype(jnp.float32), b_out),
    )

    # ----- kernel params: gate-group + row padded, latent|decoder fused, bf16
    wih_e_p = _pad_rows(_pad_gate_cols(wih_e, H_ENC, HP), F_IN_PAD)   # (128, 512)
    whh_e_p = _pad_rows(_pad_gate_cols(whh_e, H_ENC, HP), HP)         # (128, 512)
    b_e_p = _pad_gate_cols(b_e, H_ENC, HP)                            # (1, 512) f32

    wih_l_p = _pad_rows(_pad_gate_cols(wih_l, H_LAT, HP), HP)         # (128, 512)
    b_l_p = _pad_gate_cols(b_l, H_LAT, HP)                            # (1, 512)

    whh_l_p = _pad_rows(_pad_gate_cols(whh_l, H_LAT, HP), HP)         # (128, 512)
    wih_d_p = _pad_rows(_pad_gate_cols(wih_d, H_DEC, HP), HP)         # (128, 512)
    w_latdec = jnp.concatenate([whh_l_p, wih_d_p], axis=1)            # (128, 1024)
    b_d_p = _pad_gate_cols(b_d, H_DEC, HP)                            # (1, 512)

    whh_d_p = _pad_rows(_pad_gate_cols(whh_d, H_DEC, HP), HP)         # (128, 512)

    w_out_p = _pad_rows(jnp.pad(w_out, ((0, 0), (0, F_OUT_PAD - num_features))), HP)
    b_out_p = jnp.pad(b_out, ((0, 0), (0, F_OUT_PAD - num_features)))

    kernel_params = (wih_e_p, whh_e_p, b_e_p, wih_l_p, b_l_p,
                     w_latdec, b_d_p, whh_d_p, w_out_p, b_out_p)
    return kernel_params, ref_params


# ----------------------------- wrapper ---------------------------------------
@jax.jit
def lstm_autoencoder_forward(x, kernel_params):
    """x: (B, T, num_features) batch-first, like the PyTorch module."""
    B, T, F = x.shape
    Bp = -(-B // 8) * 8   # pad batch to the 8-row sublane tile

    # time-major, batch padded to 8 rows, features lane-padded, bf16 MXU operand
    xt = jnp.transpose(x, (1, 0, 2))                                   # (T, B, F)
    xt = jnp.pad(xt, ((0, 0), (0, Bp - B), (0, F_IN_PAD - F)))
    x2d = xt.reshape(T * Bp, F_IN_PAD).astype(jnp.bfloat16)
    # TODO(synk): at production T*B fold this transpose/pad into the kernel via a
    # (T, B, F) BlockSpec, add a "parallel" batch grid axis (v7x has 2 TensorCores),
    # and size per-block VMEM against v7x's 64 MiB rather than v5e/v6e's 128 MiB.

    vmem = pl.BlockSpec(memory_space=pltpu.MemorySpace.VMEM)
    out2d = pl.pallas_call(
        _make_kernel(T, Bp),
        out_shape=jax.ShapeDtypeStruct((T * Bp, F_OUT_PAD), jnp.float32),
        in_specs=[vmem] * 11,
        out_specs=vmem,
        scratch_shapes=[
            pltpu.VMEM((T * Bp, 4 * HP), jnp.float32),   # hoisted encoder projection
        ],
    )(x2d, *kernel_params)

    out = out2d.reshape(T, Bp, F_OUT_PAD)[:, :B, :F]
    return jnp.transpose(out, (1, 0, 2)).astype(x.dtype)


# ----- pure-JAX reference of the PyTorch forward (for correctness check) -----
def _ref_lstm(x_seq, wih, whh, b):
    B, T, _ = x_seq.shape
    H = whh.shape[0]
    h = jnp.zeros((B, H), jnp.float32)
    c = jnp.zeros((B, H), jnp.float32)
    outs = []
    for t in range(T):
        g = x_seq[:, t] @ wih + h @ whh + b
        i = jax.nn.sigmoid(g[:, :H])
        f = jax.nn.sigmoid(g[:, H:2 * H])
        gg = jnp.tanh(g[:, 2 * H:3 * H])
        o = jax.nn.sigmoid(g[:, 3 * H:])
        c = f * c + i * gg
        h = o * jnp.tanh(c)
        outs.append(h)
    return jnp.stack(outs, axis=1)


def reference_forward(x, ref_params):
    enc, lat, dec, (w_out, b_out) = ref_params
    h = _ref_lstm(x, *enc)
    rep = jnp.repeat(h[:, -1:], x.shape[1], axis=1)
    h = _ref_lstm(rep, *lat)
    h = _ref_lstm(h, *dec)
    return h @ w_out + b_out


if __name__ == "__main__":
    B, T, F = 2, 8, 4  # batch, sequence_length, num_features
    key = jax.random.PRNGKey(0)
    kx, kp = jax.random.split(key)
    x = jax.random.normal(kx, (B, T, F), jnp.float32)
    kernel_params, ref_params = init_params(kp, F)

    out = lstm_autoencoder_forward(x, kernel_params)
    out = jax.block_until_ready(out)
    assert out.shape == (B, T, F), out.shape

    ref = reference_forward(x, ref_params)
    err = float(jnp.max(jnp.abs(out - ref)))
    # bf16 MXU operands in the kernel vs f32 reference -> loosened tolerance
    assert err < 5e-2, f"mismatch vs reference: {err}"
    print("KERNEL_OK")
</pallas_src>

<mosaic_0001>
module attributes {stable_mosaic.version = 11 : i64} {
  func.func @kernel(%arg0: memref<64x128xbf16, #tpu.memory_space<vmem>>, %arg1: memref<128x512xbf16, #tpu.memory_space<vmem>>, %arg2: memref<128x512xbf16, #tpu.memory_space<vmem>>, %arg3: memref<1x512xf32, #tpu.memory_space<vmem>>, %arg4: memref<128x512xbf16, #tpu.memory_space<vmem>>, %arg5: memref<1x512xf32, #tpu.memory_space<vmem>>, %arg6: memref<128x1024xbf16, #tpu.memory_space<vmem>>, %arg7: memref<1x512xf32, #tpu.memory_space<vmem>>, %arg8: memref<128x512xbf16, #tpu.memory_space<vmem>>, %arg9: memref<128x128xbf16, #tpu.memory_space<vmem>>, %arg10: memref<1x128xf32, #tpu.memory_space<vmem>>, %arg11: memref<64x128xf32, #tpu.memory_space<vmem>>, %arg12: memref<64x512xf32, #tpu.memory_space<vmem>>) attributes {dimension_semantics = [], scalar_prefetch = 0 : i64, scratch_operands = 1 : i64, tpu.core_type = #tpu.core_type<tc>} {
    %c0 = arith.constant 0 : index
    %c0_0 = arith.constant 0 : index
    %0 = vector.load %arg0[%c0, %c0_0] : memref<64x128xbf16, #tpu.memory_space<vmem>>, vector<64x128xbf16>
    %c0_1 = arith.constant 0 : index
    %c0_2 = arith.constant 0 : index
    %1 = vector.load %arg1[%c0_1, %c0_2] : memref<128x512xbf16, #tpu.memory_space<vmem>>, vector<128x512xbf16>
    %cst = arith.constant dense<0.000000e+00> : vector<64x512xf32>
    %2 = tpu.matmul %0, %1, %cst {dimension_numbers = #tpu.dot_dimension_numbers<[1], [0], [0], [1], [0, 0, 1, 1], [], []>} : vector<64x128xbf16>, vector<128x512xbf16>, vector<64x512xf32> -> vector<64x512xf32>
    %c0_3 = arith.constant 0 : index
    %c0_4 = arith.constant 0 : index
    %3 = vector.load %arg3[%c0_3, %c0_4] : memref<1x512xf32, #tpu.memory_space<vmem>>, vector<1x512xf32>
    %4 = vector.broadcast %3 : vector<1x512xf32> to vector<64x512xf32>
    %5 = arith.addf %2, %4 : vector<64x512xf32>
    %c0_5 = arith.constant 0 : index
    %c0_6 = arith.constant 0 : index
    %6 = vector.load %arg12[%c0_5, %c0_6] : memref<64x512xf32, #tpu.memory_space<vmem>>, vector<64x512xf32>
    tpu.vector_store %arg12[%c0_5, %c0_6], %5 {strides = array<i32>} : memref<64x512xf32, #tpu.memory_space<vmem>>, vector<64x512xf32>,
    %cst_7 = arith.constant 0.000000e+00 : f32
    %7 = vector.broadcast %cst_7 : f32 to vector<8x128xf32>
    %cst_8 = arith.constant 0.000000e+00 : f32
    %8 = vector.broadcast %cst_8 : f32 to vector<8x128xf32>
    %c0_9 = arith.constant 0 : index
    %c0_10 = arith.constant 0 : index
    %9 = vector.load %arg12[%c0_9, %c0_10] : memref<64x512xf32, #tpu.memory_space<vmem>>, vector<8x512xf32>
    %10 = arith.truncf %7 : vector<8x128xf32> to vector<8x128xbf16>
    %c0_11 = arith.constant 0 : index
    %c0_12 = arith.constant 0 : index
    %11 = vector.load %arg2[%c0_11, %c0_12] : memref<128x512xbf16, #tpu.memory_space<vmem>>, vector<128x512xbf16>
    %cst_13 = arith.constant dense<0.000000e+00> : vector<8x512xf32>
    %12 = tpu.matmul %10, %11, %cst_13 {dimension_numbers = #tpu.dot_dimension_numbers<[1], [0], [0], [1], [0, 0, 1, 1], [], []>} : vector<8x128xbf16>, vector<128x512xbf16>, vector<8x512xf32> -> vector<8x512xf32>
    %13 = arith.addf %9, %12 : vector<8x512xf32>
    %14 = vector.extract_strided_slice %13 {offsets = [0, 0], sizes = [8, 128], strides = [1, 1]} : vector<8x512xf32> to vector<8x128xf32>
    %15 = arith.negf %14 : vector<8x128xf32>
    %16 = math.exp %15 : vector<8x128xf32>
    %cst_14 = arith.constant 1.000000e+00 : f32
    %17 = vector.broadcast %cst_14 : f32 to vector<8x128xf32>
    %18 = arith.addf %17, %16 : vector<8x128xf32>
    %19 = arith.divf %17, %18 : vector<8x128xf32>
    %20 = vector.extract_strided_slice %13 {offsets = [0, 128], sizes = [8, 128], strides = [1, 1]} : vector<8x512xf32> to vector<8x128xf32>
    %21 = arith.negf %20 : vector<8x128xf32>
    %22 = math.exp %21 : vector<8x128xf32>
    %cst_15 = arith.constant 1.000000e+00 : f32
    %23 = vector.broadcast %cst_15 : f32 to vector<8x128xf32>
    %24 = arith.addf %23, %22 : vector<8x128xf32>
    %25 = arith.divf %23, %24 : vector<8x128xf32>
    %26 = vector.extract_strided_slice %13 {offsets = [0, 256], sizes = [8, 128], strides = [1, 1]} : vector<8x512xf32> to vector<8x128xf32>
    %27 = math.tanh %26 : vector<8x128xf32>
    %28 = vector.extract_strided_slice %13 {offsets = [0, 384], sizes = [8, 128], strides = [1, 1]} : vector<8x512xf32> to vector<8x128xf32>
    %29 = arith.negf %28 : vector<8x128xf32>
    %30 = math.exp %29 : vector<8x128xf32>
    %cst_16 = arith.constant 1.000000e+00 : f32
    %31 = vector.broadcast %cst_16 : f32 to vector<8x128xf32>
    %32 = arith.addf %31, %30 : vector<8x128xf32>
    %33 = arith.divf %31, %32 : vector<8x128xf32>
    %34 = arith.mulf %25, %8 : vector<8x128xf32>
    %35 = arith.mulf %19, %27 : vector<8x128xf32>
    %36 = arith.addf %34, %35 : vector<8x128xf32>
    %37 = math.tanh %36 : vector<8x128xf32>
    %38 = arith.mulf %33, %37 : vector<8x128xf32>
    %c8 = arith.constant 8 : index
    %c0_17 = arith.constant 0 : index
    %39 = vector.load %arg12[%c8, %c0_17] : memref<64x512xf32, #tpu.memory_space<vmem>>, vector<8x512xf32>
    %40 = arith.truncf %38 : vector<8x128xf32> to vector<8x128xbf16>
    %c0_18 = arith.constant 0 : index
    %c0_19 = arith.constant 0 : index
    %41 = vector.load %arg2[%c0_18, %c0_19] : memref<128x512xbf16, #tpu.memory_space<vmem>>, vector<128x512xbf16>
    %cst_20 = arith.constant dense<0.000000e+00> : vector<8x512xf32>
    %42 = tpu.matmul %40, %41, %cst_20 {dimension_numbers = #tpu.dot_dimension_numbers<[1], [0], [0], [1], [0, 0, 1, 1], [], []>} : vector<8x128xbf16>, vector<128x512xbf16>, vector<8x512xf32> -> vector<8x512xf32>
    %43 = arith.addf %39, %42 : vector<8x512xf32>
    %44 = vector.extract_strided_slice %43 {offsets = [0, 0], sizes = [8, 128], strides = [1, 1]} : vector<8x512xf32> to vector<8x128xf32>
    %45 = arith.negf %44 : vector<8x128xf32>
    %46 = math.exp %45 : vector<8x128xf32>
    %cst_21 = arith.constant 1.000000e+00 : f32
    %47 = vector.broadcast %cst_21 : f32 to vector<8x128xf32>
    %48 = arith.addf %47, %46 : vector<8x128xf32>
    %49 = arith.divf %47, %48 : vector<8x128xf32>
    %50 = vector.extract_strided_slice %43 {offsets = [0, 128], sizes = [8, 128], strides = [1, 1]} : vector<8x512xf32> to vector<8x128xf32>
    %51 = arith.negf %50 : vector<8x128xf32>
    %52 = math.exp %51 : vector<8x128xf32>
    %cst_22 = arith.constant 1.000000e+00 : f32
    %53 = vector.broadcast %cst_22 : f32 to vector<8x128xf32>
    %54 = arith.addf %53, %52 : vector<8x128xf32>
    %55 = arith.divf %53, %54 : vector<8x128xf32>
    %56 = vector.extract_strided_slice %43 {offsets = [0, 256], sizes = [8, 128], strides = [1, 1]} : vector<8x512xf32> to vector<8x128xf32>
    %57 = math.tanh %56 : vector<8x128xf32>
    %58 = vector.extract_strided_slice %43 {offsets = [0, 384], sizes = [8, 128], strides = [1, 1]} : vector<8x512xf32> to vector<8x128xf32>
    %59 = arith.negf %58 : vector<8x128xf32>
    %60 = math.exp %59 : vector<8x128xf32>
    %cst_23 = arith.constant 1.000000e+00 : f32
    %61 = vector.broadcast %cst_23 : f32 to vector<8x128xf32>
    %62 = arith.addf %61, %60 : vector<8x128xf32>
    %63 = arith.divf %61, %62 : vector<8x128xf32>
    %64 = arith.mulf %55, %36 : vector<8x128xf32>
    %65 = arith.mulf %49, %57 : vector<8x128xf32>
    %66 = arith.addf %64, %65 : vector<8x128xf32>
    %67 = math.tanh %66 : vector<8x128xf32>
    %68 = arith.mulf %63, %67 : vector<8x128xf32>
    %c16 = arith.constant 16 : index
    %c0_24 = arith.constant 0 : index
    %69 = vector.load %arg12[%c16, %c0_24] : memref<64x512xf32, #tpu.memory_space<vmem>>, vector<8x512xf32>
    %70 = arith.truncf %68 : vector<8x128xf32> to vector<8x128xbf16>
    %c0_25 = arith.constant 0 : index
    %c0_26 = arith.constant 0 : index
    %71 = vector.load %arg2[%c0_25, %c0_26] : memref<128x512xbf16, #tpu.memory_space<vmem>>, vector<128x512xbf16>
    %cst_27 = arith.constant dense<0.000000e+00> : vector<8x512xf32>
    %72 = tpu.matmul %70, %71, %cst_27 {dimension_numbers = #tpu.dot_dimension_numbers<[1], [0], [0], [1], [0, 0, 1, 1], [], []>} : vector<8x128xbf16>, vector<128x512xbf16>, vector<8x512xf32> -> vector<8x512xf32>
    %73 = arith.addf %69, %72 : vector<8x512xf32>
    %74 = vector.extract_strided_slice %73 {offsets = [0, 0], sizes = [8, 128], strides = [1, 1]} : vector<8x512xf32> to vector<8x128xf32>
    %75 = arith.negf %74 : vector<8x128xf32>
    %76 = math.exp %75 : vector<8x128xf32>
    %cst_28 = arith.constant 1.000000e+00 : f32
    %77 = vector.broadcast %cst_28 : f32 to vector<8x128xf32>
    %78 = arith.addf %77, %76 : vector<8x128xf32>
    %79 = arith.divf %77, %78 : vector<8x128xf32>
    %80 = vector.extract_strided_slice %73 {offsets = [0, 128], sizes = [8, 128], strides = [1, 1]} : vector<8x512xf32> to vector<8x128xf32>
    %81 = arith.negf %80 : vector<8x128xf32>
    %82 = math.exp %81 : vector<8x128xf32>
    %cst_29 = arith.constant 1.000000e+00 : f32
    %83 = vector.broadcast %cst_29 : f32 to vector<8x128xf32>
    %84 = arith.addf %83, %82 : vector<8x128xf32>
    %85 = arith.divf %83, %84 : vector<8x128xf32>
    %86 = vector.extract_strided_slice %73 {offsets = [0, 256], sizes = [8, 128], strides = [1, 1]} : vector<8x512xf32> to vector<8x128xf32>
    %87 = math.tanh %86 : vector<8x128xf32>
    %88 = vector.extract_strided_slice %73 {offsets = [0, 384], sizes = [8, 128], strides = [1, 1]} : vector<8x512xf32> to vector<8x128xf32>
    %89 = arith.negf %88 : vector<8x128xf32>
    %90 = math.exp %89 : vector<8x128xf32>
    %cst_30 = arith.constant 1.000000e+00 : f32
    %91 = vector.broadcast %cst_30 : f32 to vector<8x128xf32>
    %92 = arith.addf %91, %90 : vector<8x128xf32>
    %93 = arith.divf %91, %92 : vector<8x128xf32>
    %94 = arith.mulf %85, %66 : vector<8x128xf32>
    %95 = arith.mulf %79, %87 : vector<8x128xf32>
    %96 = arith.addf %94, %95 : vector<8x128xf32>
    %97 = math.tanh %96 : vector<8x128xf32>
    %98 = arith.mulf %93, %97 : vector<8x128xf32>
    %c24 = arith.constant 24 : index
    %c0_31 = arith.constant 0 : index
    %99 = vector.load %arg12[%c24, %c0_31] : memref<64x512xf32, #tpu.memory_space<vmem>>, vector<8x512xf32>
    %100 = arith.truncf %98 : vector<8x128xf32> to vector<8x128xbf16>
    %c0_32 = arith.constant 0 : index
    %c0_33 = arith.constant 0 : index
    %101 = vector.load %arg2[%c0_32, %c0_33] : memref<128x512xbf16, #tpu.memory_space<vmem>>, vector<128x512xbf16>
    %cst_34 = arith.constant dense<0.000000e+00> : vector<8x512xf32>
    %102 = tpu.matmul %100, %101, %cst_34 {dimension_numbers = #tpu.dot_dimension_numbers<[1], [0], [0], [1], [0, 0, 1, 1], [], []>} : vector<8x128xbf16>, vector<128x512xbf16>, vector<8x512xf32> -> vector<8x512xf32>
    %103 = arith.addf %99, %102 : vector<8x512xf32>
    %104 = vector.extract_strided_slice %103 {offsets = [0, 0], sizes = [8, 128], strides = [1, 1]} : vector<8x512xf32> to vector<8x128xf32>
    %105 = arith.negf %104 : vector<8x128xf32>
    %106 = math.exp %105 : vector<8x128xf32>
    %cst_35 = arith.constant 1.000000e+00 : f32
    %107 = vector.broadcast %cst_35 : f32 to vector<8x128xf32>
    %108 = arith.addf %107, %106 : vector<8x128xf32>
    %109 = arith.divf %107, %108 : vector<8x128xf32>
    %110 = vector.extract_strided_slice %103 {offsets = [0, 128], sizes = [8, 128], strides = [1, 1]} : vector<8x512xf32> to vector<8x128xf32>
    %111 = arith.negf %110 : vector<8x128xf32>
    %112 = math.exp %111 : vector<8x128xf32>
    %cst_36 = arith.constant 1.000000e+00 : f32
    %113 = vector.broadcast %cst_36 : f32 to vector<8x128xf32>
    %114 = arith.addf %113, %112 : vector<8x128xf32>
    %115 = arith.divf %113, %114 : vector<8x128xf32>
    %116 = vector.extract_strided_slice %103 {offsets = [0, 256], sizes = [8, 128], strides = [1, 1]} : vector<8x512xf32> to vector<8x128xf32>
    %117 = math.tanh %116 : vector<8x128xf32>
    %118 = vector.extract_strided_slice %103 {offsets = [0, 384], sizes = [8, 128], strides = [1, 1]} : vector<8x512xf32> to vector<8x128xf32>
    %119 = arith.negf %118 : vector<8x128xf32>
    %120 = math.exp %119 : vector<8x128xf32>
    %cst_37 = arith.constant 1.000000e+00 : f32
    %121 = vector.broadcast %cst_37 : f32 to vector<8x128xf32>
    %122 = arith.addf %121, %120 : vector<8x128xf32>
    %123 = arith.divf %121, %122 : vector<8x128xf32>
    %124 = arith.mulf %115, %96 : vector<8x128xf32>
    %125 = arith.mulf %109, %117 : vector<8x128xf32>
    %126 = arith.addf %124, %125 : vector<8x128xf32>
    %127 = math.tanh %126 : vector<8x128xf32>
    %128 = arith.mulf %123, %127 : vector<8x128xf32>
    %c32 = arith.constant 32 : index
    %c0_38 = arith.constant 0 : index
    %129 = vector.load %arg12[%c32, %c0_38] : memref<64x512xf32, #tpu.memory_space<vmem>>, vector<8x512xf32>
    %130 = arith.truncf %128 : vector<8x128xf32> to vector<8x128xbf16>
    %c0_39 = arith.constant 0 : index
    %c0_40 = arith.constant 0 : index
    %131 = vector.load %arg2[%c0_39, %c0_40] : memref<128x512xbf16, #tpu.memory_space<vmem>>, vector<128x512xbf16>
    %cst_41 = arith.constant dense<0.000000e+00> : vector<8x512xf32>
    %132 = tpu.matmul %130, %131, %cst_41 {dimension_numbers = #tpu.dot_dimension_numbers<[1], [0], [0], [1], [0, 0, 1, 1], [], []>} : vector<8x128xbf16>, vector<128x512xbf16>, vector<8x512xf32> -> vector<8x512xf32>
    %133 = arith.addf %129, %132 : vector<8x512xf32>
    %134 = vector.extract_strided_slice %133 {offsets = [0, 0], sizes = [8, 128], strides = [1, 1]} : vector<8x512xf32> to vector<8x128xf32>
    %135 = arith.negf %134 : vector<8x128xf32>
    %136 = math.exp %135 : vector<8x128xf32>
    %cst_42 = arith.constant 1.000000e+00 : f32
    %137 = vector.broadcast %cst_42 : f32 to vector<8x128xf32>
    %138 = arith.addf %137, %136 : vector<8x128xf32>
    %139 = arith.divf %137, %138 : vector<8x128xf32>
    %140 = vector.extract_strided_slice %133 {offsets = [0, 128], sizes = [8, 128], strides = [1, 1]} : vector<8x512xf32> to vector<8x128xf32>
    %141 = arith.negf %140 : vector<8x128xf32>
    %142 = math.exp %141 : vector<8x128xf32>
    %cst_43 = arith.constant 1.000000e+00 : f32
    %143 = vector.broadcast %cst_43 : f32 to vector<8x128xf32>
    %144 = arith.addf %143, %142 : vector<8x128xf32>
    %145 = arith.divf %143, %144 : vector<8x128xf32>
    %146 = vector.extract_strided_slice %133 {offsets = [0, 256], sizes = [8, 128], strides = [1, 1]} : vector<8x512xf32> to vector<8x128xf32>
    %147 = math.tanh %146 : vector<8x128xf32>
    %148 = vector.extract_strided_slice %133 {offsets = [0, 384], sizes = [8, 128], strides = [1, 1]} : vector<8x512xf32> to vector<8x128xf32>
    %149 = arith.negf %148 : vector<8x128xf32>
    %150 = math.exp %149 : vector<8x128xf32>
    %cst_44 = arith.constant 1.000000e+00 : f32
    %151 = vector.broadcast %cst_44 : f32 to vector<8x128xf32>
    %152 = arith.addf %151, %150 : vector<8x128xf32>
    %153 = arith.divf %151, %152 : vector<8x128xf32>
    %154 = arith.mulf %145, %126 : vector<8x128xf32>
    %155 = arith.mulf %139, %147 : vector<8x128xf32>
    %156 = arith.addf %154, %155 : vector<8x128xf32>
    %157 = math.tanh %156 : vector<8x128xf32>
    %158 = arith.mulf %153, %157 : vector<8x128xf32>
    %c40 = arith.constant 40 : index
    %c0_45 = arith.constant 0 : index
    %159 = vector.load %arg12[%c40, %c0_45] : memref<64x512xf32, #tpu.memory_space<vmem>>, vector<8x512xf32>
    %160 = arith.truncf %158 : vector<8x128xf32> to vector<8x128xbf16>
    %c0_46 = arith.constant 0 : index
    %c0_47 = arith.constant 0 : index
    %161 = vector.load %arg2[%c0_46, %c0_47] : memref<128x512xbf16, #tpu.memory_space<vmem>>, vector<128x512xbf16>
    %cst_48 = arith.constant dense<0.000000e+00> : vector<8x512xf32>
    %162 = tpu.matmul %160, %161, %cst_48 {dimension_numbers = #tpu.dot_dimension_numbers<[1], [0], [0], [1], [0, 0, 1, 1], [], []>} : vector<8x128xbf16>, vector<128x512xbf16>, vector<8x512xf32> -> vector<8x512xf32>
    %163 = arith.addf %159, %162 : vector<8x512xf32>
    %164 = vector.extract_strided_slice %163 {offsets = [0, 0], sizes = [8, 128], strides = [1, 1]} : vector<8x512xf32> to vector<8x128xf32>
    %165 = arith.negf %164 : vector<8x128xf32>
    %166 = math.exp %165 : vector<8x128xf32>
    %cst_49 = arith.constant 1.000000e+00 : f32
    %167 = vector.broadcast %cst_49 : f32 to vector<8x128xf32>
    %168 = arith.addf %167, %166 : vector<8x128xf32>
    %169 = arith.divf %167, %168 : vector<8x128xf32>
    %170 = vector.extract_strided_slice %163 {offsets = [0, 128], sizes = [8, 128], strides = [1, 1]} : vector<8x512xf32> to vector<8x128xf32>
    %171 = arith.negf %170 : vector<8x128xf32>
    %172 = math.exp %171 : vector<8x128xf32>
    %cst_50 = arith.constant 1.000000e+00 : f32
    %173 = vector.broadcast %cst_50 : f32 to vector<8x128xf32>
    %174 = arith.addf %173, %172 : vector<8x128xf32>
    %175 = arith.divf %173, %174 : vector<8x128xf32>
    %176 = vector.extract_strided_slice %163 {offsets = [0, 256], sizes = [8, 128], strides = [1, 1]} : vector<8x512xf32> to vector<8x128xf32>
    %177 = math.tanh %176 : vector<8x128xf32>
    %178 = vector.extract_strided_slice %163 {offsets = [0, 384], sizes = [8, 128], strides = [1, 1]} : vector<8x512xf32> to vector<8x128xf32>
    %179 = arith.negf %178 : vector<8x128xf32>
    %180 = math.exp %179 : vector<8x128xf32>
    %cst_51 = arith.constant 1.000000e+00 : f32
    %181 = vector.broadcast %cst_51 : f32 to vector<8x128xf32>
    %182 = arith.addf %181, %180 : vector<8x128xf32>
    %183 = arith.divf %181, %182 : vector<8x128xf32>
    %184 = arith.mulf %175, %156 : vector<8x128xf32>
    %185 = arith.mulf %169, %177 : vector<8x128xf32>
    %186 = arith.addf %184, %185 : vector<8x128xf32>
    %187 = math.tanh %186 : vector<8x128xf32>
    %188 = arith.mulf %183, %187 : vector<8x128xf32>
    %c48 = arith.constant 48 : index
    %c0_52 = arith.constant 0 : index
    %189 = vector.load %arg12[%c48, %c0_52] : memref<64x512xf32, #tpu.memory_space<vmem>>, vector<8x512xf32>
    %190 = arith.truncf %188 : vector<8x128xf32> to vector<8x128xbf16>
    %c0_53 = arith.constant 0 : index
    %c0_54 = arith.constant 0 : index
    %191 = vector.load %arg2[%c0_53, %c0_54] : memref<128x512xbf16, #tpu.memory_space<vmem>>, vector<128x512xbf16>
    %cst_55 = arith.constant dense<0.000000e+00> : vector<8x512xf32>
    %192 = tpu.matmul %190, %191, %cst_55 {dimension_numbers = #tpu.dot_dimension_numbers<[1], [0], [0], [1], [0, 0, 1, 1], [], []>} : vector<8x128xbf16>, vector<128x512xbf16>, vector<8x512xf32> -> vector<8x512xf32>
    %193 = arith.addf %189, %192 : vector<8x512xf32>
    %194 = vector.extract_strided_slice %193 {offsets = [0, 0], sizes = [8, 128], strides = [1, 1]} : vector<8x512xf32> to vector<8x128xf32>
    %195 = arith.negf %194 : vector<8x128xf32>
    %196 = math.exp %195 : vector<8x128xf32>
    %cst_56 = arith.constant 1.000000e+00 : f32
    %197 = vector.broadcast %cst_56 : f32 to vector<8x128xf32>
    %198 = arith.addf %197, %196 : vector<8x128xf32>
    %199 = arith.divf %197, %198 : vector<8x128xf32>
    %200 = vector.extract_strided_slice %193 {offsets = [0, 128], sizes = [8, 128], strides = [1, 1]} : vector<8x512xf32> to vector<8x128xf32>
    %201 = arith.negf %200 : vector<8x128xf32>
    %202 = math.exp %201 : vector<8x128xf32>
    %cst_57 = arith.constant 1.000000e+00 : f32
    %203 = vector.broadcast %cst_57 : f32 to vector<8x128xf32>
    %204 = arith.addf %203, %202 : vector<8x128xf32>
    %205 = arith.divf %203, %204 : vector<8x128xf32>
    %206 = vector.extract_strided_slice %193 {offsets = [0, 256], sizes = [8, 128], strides = [1, 1]} : vector<8x512xf32> to vector<8x128xf32>
    %207 = math.tanh %206 : vector<8x128xf32>
    %208 = vector.extract_strided_slice %193 {offsets = [0, 384], sizes = [8, 128], strides = [1, 1]} : vector<8x512xf32> to vector<8x128xf32>
    %209 = arith.negf %208 : vector<8x128xf32>
    %210 = math.exp %209 : vector<8x128xf32>
    %cst_58 = arith.constant 1.000000e+00 : f32
    %211 = vector.broadcast %cst_58 : f32 to vector<8x128xf32>
    %212 = arith.addf %211, %210 : vector<8x128xf32>
    %213 = arith.divf %211, %212 : vector<8x128xf32>
    %214 = arith.mulf %205, %186 : vector<8x128xf32>
    %215 = arith.mulf %199, %207 : vector<8x128xf32>
    %216 = arith.addf %214, %215 : vector<8x128xf32>
    %217 = math.tanh %216 : vector<8x128xf32>
    %218 = arith.mulf %213, %217 : vector<8x128xf32>
    %c56 = arith.constant 56 : index
    %c0_59 = arith.constant 0 : index
    %219 = vector.load %arg12[%c56, %c0_59] : memref<64x512xf32, #tpu.memory_space<vmem>>, vector<8x512xf32>
    %220 = arith.truncf %218 : vector<8x128xf32> to vector<8x128xbf16>
    %c0_60 = arith.constant 0 : index
    %c0_61 = arith.constant 0 : index
    %221 = vector.load %arg2[%c0_60, %c0_61] : memref<128x512xbf16, #tpu.memory_space<vmem>>, vector<128x512xbf16>
    %cst_62 = arith.constant dense<0.000000e+00> : vector<8x512xf32>
    %222 = tpu.matmul %220, %221, %cst_62 {dimension_numbers = #tpu.dot_dimension_numbers<[1], [0], [0], [1], [0, 0, 1, 1], [], []>} : vector<8x128xbf16>, vector<128x512xbf16>, vector<8x512xf32> -> vector<8x512xf32>
    %223 = arith.addf %219, %222 : vector<8x512xf32>
    %224 = vector.extract_strided_slice %223 {offsets = [0, 0], sizes = [8, 128], strides = [1, 1]} : vector<8x512xf32> to vector<8x128xf32>
    %225 = arith.negf %224 : vector<8x128xf32>
    %226 = math.exp %225 : vector<8x128xf32>
    %cst_63 = arith.constant 1.000000e+00 : f32
    %227 = vector.broadcast %cst_63 : f32 to vector<8x128xf32>
    %228 = arith.addf %227, %226 : vector<8x128xf32>
    %229 = arith.divf %227, %228 : vector<8x128xf32>
    %230 = vector.extract_strided_slice %223 {offsets = [0, 128], sizes = [8, 128], strides = [1, 1]} : vector<8x512xf32> to vector<8x128xf32>
    %231 = arith.negf %230 : vector<8x128xf32>
    %232 = math.exp %231 : vector<8x128xf32>
    %cst_64 = arith.constant 1.000000e+00 : f32
    %233 = vector.broadcast %cst_64 : f32 to vector<8x128xf32>
    %234 = arith.addf %233, %232 : vector<8x128xf32>
    %235 = arith.divf %233, %234 : vector<8x128xf32>
    %236 = vector.extract_strided_slice %223 {offsets = [0, 256], sizes = [8, 128], strides = [1, 1]} : vector<8x512xf32> to vector<8x128xf32>
    %237 = math.tanh %236 : vector<8x128xf32>
    %238 = vector.extract_strided_slice %223 {offsets = [0, 384], sizes = [8, 128], strides = [1, 1]} : vector<8x512xf32> to vector<8x128xf32>
    %239 = arith.negf %238 : vector<8x128xf32>
    %240 = math.exp %239 : vector<8x128xf32>
    %cst_65 = arith.constant 1.000000e+00 : f32
    %241 = vector.broadcast %cst_65 : f32 to vector<8x128xf32>
    %242 = arith.addf %241, %240 : vector<8x128xf32>
    %243 = arith.divf %241, %242 : vector<8x128xf32>
    %244 = arith.mulf %235, %216 : vector<8x128xf32>
    %245 = arith.mulf %229, %237 : vector<8x128xf32>
    %246 = arith.addf %244, %245 : vector<8x128xf32>
    %247 = math.tanh %246 : vector<8x128xf32>
    %248 = arith.mulf %243, %247 : vector<8x128xf32>
    %249 = arith.truncf %248 : vector<8x128xf32> to vector<8x128xbf16>
    %c0_66 = arith.constant 0 : index
    %c0_67 = arith.constant 0 : index
    %250 = vector.load %arg4[%c0_66, %c0_67] : memref<128x512xbf16, #tpu.memory_space<vmem>>, vector<128x512xbf16>
    %cst_68 = arith.constant dense<0.000000e+00> : vector<8x512xf32>
    %251 = tpu.matmul %249, %250, %cst_68 {dimension_numbers = #tpu.dot_dimension_numbers<[1], [0], [0], [1], [0, 0, 1, 1], [], []>} : vector<8x128xbf16>, vector<128x512xbf16>, vector<8x512xf32> -> vector<8x512xf32>
    %c0_69 = arith.constant 0 : index
    %c0_70 = arith.constant 0 : index
    %252 = vector.load %arg5[%c0_69, %c0_70] : memref<1x512xf32, #tpu.memory_space<vmem>>, vector<1x512xf32>
    %253 = vector.broadcast %252 : vector<1x512xf32> to vector<8x512xf32>
    %254 = arith.addf %251, %253 : vector<8x512xf32>
    %c0_71 = arith.constant 0 : index
    %c0_72 = arith.constant 0 : index
    %255 = vector.load %arg7[%c0_71, %c0_72] : memref<1x512xf32, #tpu.memory_space<vmem>>, vector<1x512xf32>
    %256 = vector.shape_cast %255 : vector<1x512xf32> to vector<1x512xf32>
    %257 = vector.broadcast %256 : vector<1x512xf32> to vector<8x512xf32>
    %cst_73 = arith.constant 0.000000e+00 : f32
    %258 = vector.broadcast %cst_73 : f32 to vector<8x128xf32>
    %cst_74 = arith.constant 0.000000e+00 : f32
    %259 = vector.broadcast %cst_74 : f32 to vector<8x128xf32>
    %cst_75 = arith.constant 0.000000e+00 : f32
    %260 = vector.broadcast %cst_75 : f32 to vector<8x128xf32>
    %261 = vector.extract_strided_slice %254 {offsets = [0, 0], sizes = [8, 128], strides = [1, 1]} : vector<8x512xf32> to vector<8x128xf32>
    %262 = arith.negf %261 : vector<8x128xf32>
    %263 = math.exp %262 : vector<8x128xf32>
    %cst_76 = arith.constant 1.000000e+00 : f32
    %264 = vector.broadcast %cst_76 : f32 to vector<8x128xf32>
    %265 = arith.addf %264, %263 : vector<8x128xf32>
    %266 = arith.divf %264, %265 : vector<8x128xf32>
    %267 = vector.extract_strided_slice %254 {offsets = [0, 128], sizes = [8, 128], strides = [1, 1]} : vector<8x512xf32> to vector<8x128xf32>
    %268 = arith.negf %267 : vector<8x128xf32>
    %269 = math.exp %268 : vector<8x128xf32>
    %cst_77 = arith.constant 1.000000e+00 : f32
    %270 = vector.broadcast %cst_77 : f32 to vector<8x128xf32>
    %271 = arith.addf %270, %269 : vector<8x128xf32>
    %272 = arith.divf %270, %271 : vector<8x128xf32>
    %273 = vector.extract_strided_slice %254 {offsets = [0, 256], sizes = [8, 128], strides = [1, 1]} : vector<8x512xf32> to vector<8x128xf32>
    %274 = math.tanh %273 : vector<8x128xf32>
    %275 = vector.extract_strided_slice %254 {offsets = [0, 384], sizes = [8, 128], strides = [1, 1]} : vector<8x512xf32> to vector<8x128xf32>
    %276 = arith.negf %275 : vector<8x128xf32>
    %277 = math.exp %276 : vector<8x128xf32>
    %cst_78 = arith.constant 1.000000e+00 : f32
    %278 = vector.broadcast %cst_78 : f32 to vector<8x128xf32>
    %279 = arith.addf %278, %277 : vector<8x128xf32>
    %280 = arith.divf %278, %279 : vector<8x128xf32>
    %281 = arith.mulf %272, %258 : vector<8x128xf32>
    %282 = arith.mulf %266, %274 : vector<8x128xf32>
    %283 = arith.addf %281, %282 : vector<8x128xf32>
    %284 = math.tanh %283 : vector<8x128xf32>
    %285 = arith.mulf %280, %284 : vector<8x128xf32>
    %286 = arith.truncf %285 : vector<8x128xf32> to vector<8x128xbf16>
    %c0_79 = arith.constant 0 : index
    %c0_80 = arith.constant 0 : index
    %287 = vector.load %arg6[%c0_79, %c0_80] : memref<128x1024xbf16, #tpu.memory_space<vmem>>, vector<128x1024xbf16>
    %cst_81 = arith.constant dense<0.000000e+00> : vector<8x1024xf32>
    %288 = tpu.matmul %286, %287, %cst_81 {dimension_numbers = #tpu.dot_dimension_numbers<[1], [0], [0], [1], [0, 0, 1, 1], [], []>} : vector<8x128xbf16>, vector<128x1024xbf16>, vector<8x1024xf32> -> vector<8x1024xf32>
    %289 = vector.extract_strided_slice %288 {offsets = [0, 0], sizes = [8, 512], strides = [1, 1]} : vector<8x1024xf32> to vector<8x512xf32>
    %290 = arith.addf %254, %289 : vector<8x512xf32>
    %291 = vector.extract_strided_slice %288 {offsets = [0, 512], sizes = [8, 512], strides = [1, 1]} : vector<8x1024xf32> to vector<8x512xf32>
    %292 = arith.addf %291, %257 : vector<8x512xf32>
    %293 = arith.truncf %259 : vector<8x128xf32> to vector<8x128xbf16>
    %c0_82 = arith.constant 0 : index
    %c0_83 = arith.constant 0 : index
    %294 = vector.load %arg8[%c0_82, %c0_83] : memref<128x512xbf16, #tpu.memory_space<vmem>>, vector<128x512xbf16>
    %cst_84 = arith.constant dense<0.000000e+00> : vector<8x512xf32>
    %295 = tpu.matmul %293, %294, %cst_84 {dimension_numbers = #tpu.dot_dimension_numbers<[1], [0], [0], [1], [0, 0, 1, 1], [], []>} : vector<8x128xbf16>, vector<128x512xbf16>, vector<8x512xf32> -> vector<8x512xf32>
    %296 = arith.addf %292, %295 : vector<8x512xf32>
    %297 = vector.extract_strided_slice %296 {offsets = [0, 0], sizes = [8, 128], strides = [1, 1]} : vector<8x512xf32> to vector<8x128xf32>
    %298 = arith.negf %297 : vector<8x128xf32>
    %299 = math.exp %298 : vector<8x128xf32>
    %cst_85 = arith.constant 1.000000e+00 : f32
    %300 = vector.broadcast %cst_85 : f32 to vector<8x128xf32>
    %301 = arith.addf %300, %299 : vector<8x128xf32>
    %302 = arith.divf %300, %301 : vector<8x128xf32>
    %303 = vector.extract_strided_slice %296 {offsets = [0, 128], sizes = [8, 128], strides = [1, 1]} : vector<8x512xf32> to vector<8x128xf32>
    %304 = arith.negf %303 : vector<8x128xf32>
    %305 = math.exp %304 : vector<8x128xf32>
    %cst_86 = arith.constant 1.000000e+00 : f32
    %306 = vector.broadcast %cst_86 : f32 to vector<8x128xf32>
    %307 = arith.addf %306, %305 : vector<8x128xf32>
    %308 = arith.divf %306, %307 : vector<8x128xf32>
    %309 = vector.extract_strided_slice %296 {offsets = [0, 256], sizes = [8, 128], strides = [1, 1]} : vector<8x512xf32> to vector<8x128xf32>
    %310 = math.tanh %309 : vector<8x128xf32>
    %311 = vector.extract_strided_slice %296 {offsets = [0, 384], sizes = [8, 128], strides = [1, 1]} : vector<8x512xf32> to vector<8x128xf32>
    %312 = arith.negf %311 : vector<8x128xf32>
    %313 = math.exp %312 : vector<8x128xf32>
    %cst_87 = arith.constant 1.000000e+00 : f32
    %314 = vector.broadcast %cst_87 : f32 to vector<8x128xf32>
    %315 = arith.addf %314, %313 : vector<8x128xf32>
    %316 = arith.divf %314, %315 : vector<8x128xf32>
    %317 = arith.mulf %308, %260 : vector<8x128xf32>
    %318 = arith.mulf %302, %310 : vector<8x128xf32>
    %319 = arith.addf %317, %318 : vector<8x128xf32>
    %320 = math.tanh %319 : vector<8x128xf32>
    %321 = arith.mulf %316, %320 : vector<8x128xf32>
    %322 = vector.extract_strided_slice %290 {offsets = [0, 0], sizes = [8, 128], strides = [1, 1]} : vector<8x512xf32> to vector<8x128xf32>
    %323 = arith.negf %322 : vector<8x128xf32>
    %324 = math.exp %323 : vector<8x128xf32>
    %cst_88 = arith.constant 1.000000e+00 : f32
    %325 = vector.broadcast %cst_88 : f32 to vector<8x128xf32>
    %326 = arith.addf %325, %324 : vector<8x128xf32>
    %327 = arith.divf %325, %326 : vector<8x128xf32>
    %328 = vector.extract_strided_slice %290 {offsets = [0, 128], sizes = [8, 128], strides = [1, 1]} : vector<8x512xf32> to vector<8x128xf32>
    %329 = arith.negf %328 : vector<8x128xf32>
    %330 = math.exp %329 : vector<8x128xf32>
    %cst_89 = arith.constant 1.000000e+00 : f32
    %331 = vector.broadcast %cst_89 : f32 to vector<8x128xf32>
    %332 = arith.addf %331, %330 : vector<8x128xf32>
    %333 = arith.divf %331, %332 : vector<8x128xf32>
    %334 = vector.extract_strided_slice %290 {offsets = [0, 256], sizes = [8, 128], strides = [1, 1]} : vector<8x512xf32> to vector<8x128xf32>
    %335 = math.tanh %334 : vector<8x128xf32>
    %336 = vector.extract_strided_slice %290 {offsets = [0, 384], sizes = [8, 128], strides = [1, 1]} : vector<8x512xf32> to vector<8x128xf32>
    %337 = arith.negf %336 : vector<8x128xf32>
    %338 = math.exp %337 : vector<8x128xf32>
    %cst_90 = arith.constant 1.000000e+00 : f32
    %339 = vector.broadcast %cst_90 : f32 to vector<8x128xf32>
    %340 = arith.addf %339, %338 : vector<8x128xf32>
    %341 = arith.divf %339, %340 : vector<8x128xf32>
    %342 = arith.mulf %333, %283 : vector<8x128xf32>
    %343 = arith.mulf %327, %335 : vector<8x128xf32>
    %344 = arith.addf %342, %343 : vector<8x128xf32>
    %345 = math.tanh %344 : vector<8x128xf32>
    %346 = arith.mulf %341, %345 : vector<8x128xf32>
    %347 = arith.truncf %346 : vector<8x128xf32> to vector<8x128xbf16>
    %c0_91 = arith.constant 0 : index
    %c0_92 = arith.constant 0 : index
    %348 = vector.load %arg6[%c0_91, %c0_92] : memref<128x1024xbf16, #tpu.memory_space<vmem>>, vector<128x1024xbf16>
    %cst_93 = arith.constant dense<0.000000e+00> : vector<8x1024xf32>
    %349 = tpu.matmul %347, %348, %cst_93 {dimension_numbers = #tpu.dot_dimension_numbers<[1], [0], [0], [1], [0, 0, 1, 1], [], []>} : vector<8x128xbf16>, vector<128x1024xbf16>, vector<8x1024xf32> -> vector<8x1024xf32>
    %350 = vector.extract_strided_slice %349 {offsets = [0, 0], sizes = [8, 512], strides = [1, 1]} : vector<8x1024xf32> to vector<8x512xf32>
    %351 = arith.addf %254, %350 : vector<8x512xf32>
    %352 = vector.extract_strided_slice %349 {offsets = [0, 512], sizes = [8, 512], strides = [1, 1]} : vector<8x1024xf32> to vector<8x512xf32>
    %353 = arith.addf %352, %257 : vector<8x512xf32>
    %354 = arith.truncf %321 : vector<8x128xf32> to vector<8x128xbf16>
    %c0_94 = arith.constant 0 : index
    %c0_95 = arith.constant 0 : index
    %355 = vector.load %arg8[%c0_94, %c0_95] : memref<128x512xbf16, #tpu.memory_space<vmem>>, vector<128x512xbf16>
    %cst_96 = arith.constant dense<0.000000e+00> : vector<8x512xf32>
    %356 = tpu.matmul %354, %355, %cst_96 {dimension_numbers = #tpu.dot_dimension_numbers<[1], [0], [0], [1], [0, 0, 1, 1], [], []>} : vector<8x128xbf16>, vector<128x512xbf16>, vector<8x512xf32> -> vector<8x512xf32>
    %357 = arith.addf %353, %356 : vector<8x512xf32>
    %358 = vector.extract_strided_slice %357 {offsets = [0, 0], sizes = [8, 128], strides = [1, 1]} : vector<8x512xf32> to vector<8x128xf32>
    %359 = arith.negf %358 : vector<8x128xf32>
    %360 = math.exp %359 : vector<8x128xf32>
    %cst_97 = arith.constant 1.000000e+00 : f32
    %361 = vector.broadcast %cst_97 : f32 to vector<8x128xf32>
    %362 = arith.addf %361, %360 : vector<8x128xf32>
    %363 = arith.divf %361, %362 : vector<8x128xf32>
    %364 = vector.extract_strided_slice %357 {offsets = [0, 128], sizes = [8, 128], strides = [1, 1]} : vector<8x512xf32> to vector<8x128xf32>
    %365 = arith.negf %364 : vector<8x128xf32>
    %366 = math.exp %365 : vector<8x128xf32>
    %cst_98 = arith.constant 1.000000e+00 : f32
    %367 = vector.broadcast %cst_98 : f32 to vector<8x128xf32>
    %368 = arith.addf %367, %366 : vector<8x128xf32>
    %369 = arith.divf %367, %368 : vector<8x128xf32>
    %370 = vector.extract_strided_slice %357 {offsets = [0, 256], sizes = [8, 128], strides = [1, 1]} : vector<8x512xf32> to vector<8x128xf32>
    %371 = math.tanh %370 : vector<8x128xf32>
    %372 = vector.extract_strided_slice %357 {offsets = [0, 384], sizes = [8, 128], strides = [1, 1]} : vector<8x512xf32> to vector<8x128xf32>
    %373 = arith.negf %372 : vector<8x128xf32>
    %374 = math.exp %373 : vector<8x128xf32>
    %cst_99 = arith.constant 1.000000e+00 : f32
    %375 = vector.broadcast %cst_99 : f32 to vector<8x128xf32>
    %376 = arith.addf %375, %374 : vector<8x128xf32>
    %377 = arith.divf %375, %376 : vector<8x128xf32>
    %378 = arith.mulf %369, %319 : vector<8x128xf32>
    %379 = arith.mulf %363, %371 : vector<8x128xf32>
    %380 = arith.addf %378, %379 : vector<8x128xf32>
    %381 = math.tanh %380 : vector<8x128xf32>
    %382 = arith.mulf %377, %381 : vector<8x128xf32>
    %383 = vector.extract_strided_slice %351 {offsets = [0, 0], sizes = [8, 128], strides = [1, 1]} : vector<8x512xf32> to vector<8x128xf32>
    %384 = arith.negf %383 : vector<8x128xf32>
    %385 = math.exp %384 : vector<8x128xf32>
    %cst_100 = arith.constant 1.000000e+00 : f32
    %386 = vector.broadcast %cst_100 : f32 to vector<8x128xf32>
    %387 = arith.addf %386, %385 : vector<8x128xf32>
    %388 = arith.divf %386, %387 : vector<8x128xf32>
    %389 = vector.extract_strided_slice %351 {offsets = [0, 128], sizes = [8, 128], strides = [1, 1]} : vector<8x512xf32> to vector<8x128xf32>
    %390 = arith.negf %389 : vector<8x128xf32>
    %391 = math.exp %390 : vector<8x128xf32>
    %cst_101 = arith.constant 1.000000e+00 : f32
    %392 = vector.broadcast %cst_101 : f32 to vector<8x128xf32>
    %393 = arith.addf %392, %391 : vector<8x128xf32>
    %394 = arith.divf %392, %393 : vector<8x128xf32>
    %395 = vector.extract_strided_slice %351 {offsets = [0, 256], sizes = [8, 128], strides = [1, 1]} : vector<8x512xf32> to vector<8x128xf32>
    %396 = math.tanh %395 : vector<8x128xf32>
    %397 = vector.extract_strided_slice %351 {offsets = [0, 384], sizes = [8, 128], strides = [1, 1]} : vector<8x512xf32> to vector<8x128xf32>
    %398 = arith.negf %397 : vector<8x128xf32>
    %399 = math.exp %398 : vector<8x128xf32>
    %cst_102 = arith.constant 1.000000e+00 : f32
    %400 = vector.broadcast %cst_102 : f32 to vector<8x128xf32>
    %401 = arith.addf %400, %399 : vector<8x128xf32>
    %402 = arith.divf %400, %401 : vector<8x128xf32>
    %403 = arith.mulf %394, %344 : vector<8x128xf32>
    %404 = arith.mulf %388, %396 : vector<8x128xf32>
    %405 = arith.addf %403, %404 : vector<8x128xf32>
    %406 = math.tanh %405 : vector<8x128xf32>
    %407 = arith.mulf %402, %406 : vector<8x128xf32>
    %408 = arith.truncf %407 : vector<8x128xf32> to vector<8x128xbf16>
    %c0_103 = arith.constant 0 : index
    %c0_104 = arith.constant 0 : index
    %409 = vector.load %arg6[%c0_103, %c0_104] : memref<128x1024xbf16, #tpu.memory_space<vmem>>, vector<128x1024xbf16>
    %cst_105 = arith.constant dense<0.000000e+00> : vector<8x1024xf32>
    %410 = tpu.matmul %408, %409, %cst_105 {dimension_numbers = #tpu.dot_dimension_numbers<[1], [0], [0], [1], [0, 0, 1, 1], [], []>} : vector<8x128xbf16>, vector<128x1024xbf16>, vector<8x1024xf32> -> vector<8x1024xf32>
    %411 = vector.extract_strided_slice %410 {offsets = [0, 0], sizes = [8, 512], strides = [1, 1]} : vector<8x1024xf32> to vector<8x512xf32>
    %412 = arith.addf %254, %411 : vector<8x512xf32>
    %413 = vector.extract_strided_slice %410 {offsets = [0, 512], sizes = [8, 512], strides = [1, 1]} : vector<8x1024xf32> to vector<8x512xf32>
    %414 = arith.addf %413, %257 : vector<8x512xf32>
    %415 = arith.truncf %382 : vector<8x128xf32> to vector<8x128xbf16>
    %c0_106 = arith.constant 0 : index
    %c0_107 = arith.constant 0 : index
    %416 = vector.load %arg8[%c0_106, %c0_107] : memref<128x512xbf16, #tpu.memory_space<vmem>>, vector<128x512xbf16>
    %cst_108 = arith.constant dense<0.000000e+00> : vector<8x512xf32>
    %417 = tpu.matmul %415, %416, %cst_108 {dimension_numbers = #tpu.dot_dimension_numbers<[1], [0], [0], [1], [0, 0, 1, 1], [], []>} : vector<8x128xbf16>, vector<128x512xbf16>, vector<8x512xf32> -> vector<8x512xf32>
    %418 = arith.addf %414, %417 : vector<8x512xf32>
    %419 = vector.extract_strided_slice %418 {offsets = [0, 0], sizes = [8, 128], strides = [1, 1]} : vector<8x512xf32> to vector<8x128xf32>
    %420 = arith.negf %419 : vector<8x128xf32>
    %421 = math.exp %420 : vector<8x128xf32>
    %cst_109 = arith.constant 1.000000e+00 : f32
    %422 = vector.broadcast %cst_109 : f32 to vector<8x128xf32>
    %423 = arith.addf %422, %421 : vector<8x128xf32>
    %424 = arith.divf %422, %423 : vector<8x128xf32>
    %425 = vector.extract_strided_slice %418 {offsets = [0, 128], sizes = [8, 128], strides = [1, 1]} : vector<8x512xf32> to vector<8x128xf32>
    %426 = arith.negf %425 : vector<8x128xf32>
    %427 = math.exp %426 : vector<8x128xf32>
    %cst_110 = arith.constant 1.000000e+00 : f32
    %428 = vector.broadcast %cst_110 : f32 to vector<8x128xf32>
    %429 = arith.addf %428, %427 : vector<8x128xf32>
    %430 = arith.divf %428, %429 : vector<8x128xf32>
    %431 = vector.extract_strided_slice %418 {offsets = [0, 256], sizes = [8, 128], strides = [1, 1]} : vector<8x512xf32> to vector<8x128xf32>
    %432 = math.tanh %431 : vector<8x128xf32>
    %433 = vector.extract_strided_slice %418 {offsets = [0, 384], sizes = [8, 128], strides = [1, 1]} : vector<8x512xf32> to vector<8x128xf32>
    %434 = arith.negf %433 : vector<8x128xf32>
    %435 = math.exp %434 : vector<8x128xf32>
    %cst_111 = arith.constant 1.000000e+00 : f32
    %436 = vector.broadcast %cst_111 : f32 to vector<8x128xf32>
    %437 = arith.addf %436, %435 : vector<8x128xf32>
    %438 = arith.divf %436, %437 : vector<8x128xf32>
    %439 = arith.mulf %430, %380 : vector<8x128xf32>
    %440 = arith.mulf %424, %432 : vector<8x128xf32>
    %441 = arith.addf %439, %440 : vector<8x128xf32>
    %442 = math.tanh %441 : vector<8x128xf32>
    %443 = arith.mulf %438, %442 : vector<8x128xf32>
    %444 = vector.extract_strided_slice %412 {offsets = [0, 0], sizes = [8, 128], strides = [1, 1]} : vector<8x512xf32> to vector<8x128xf32>
    %445 = arith.negf %444 : vector<8x128xf32>
    %446 = math.exp %445 : vector<8x128xf32>
    %cst_112 = arith.constant 1.000000e+00 : f32
    %447 = vector.broadcast %cst_112 : f32 to vector<8x128xf32>
    %448 = arith.addf %447, %446 : vector<8x128xf32>
    %449 = arith.divf %447, %448 : vector<8x128xf32>
    %450 = vector.extract_strided_slice %412 {offsets = [0, 128], sizes = [8, 128], strides = [1, 1]} : vector<8x512xf32> to vector<8x128xf32>
    %451 = arith.negf %450 : vector<8x128xf32>
    %452 = math.exp %451 : vector<8x128xf32>
    %cst_113 = arith.constant 1.000000e+00 : f32
    %453 = vector.broadcast %cst_113 : f32 to vector<8x128xf32>
    %454 = arith.addf %453, %452 : vector<8x128xf32>
    %455 = arith.divf %453, %454 : vector<8x128xf32>
    %456 = vector.extract_strided_slice %412 {offsets = [0, 256], sizes = [8, 128], strides = [1, 1]} : vector<8x512xf32> to vector<8x128xf32>
    %457 = math.tanh %456 : vector<8x128xf32>
    %458 = vector.extract_strided_slice %412 {offsets = [0, 384], sizes = [8, 128], strides = [1, 1]} : vector<8x512xf32> to vector<8x128xf32>
    %459 = arith.negf %458 : vector<8x128xf32>
    %460 = math.exp %459 : vector<8x128xf32>
    %cst_114 = arith.constant 1.000000e+00 : f32
    %461 = vector.broadcast %cst_114 : f32 to vector<8x128xf32>
    %462 = arith.addf %461, %460 : vector<8x128xf32>
    %463 = arith.divf %461, %462 : vector<8x128xf32>
    %464 = arith.mulf %455, %405 : vector<8x128xf32>
    %465 = arith.mulf %449, %457 : vector<8x128xf32>
    %466 = arith.addf %464, %465 : vector<8x128xf32>
    %467 = math.tanh %466 : vector<8x128xf32>
    %468 = arith.mulf %463, %467 : vector<8x128xf32>
    %469 = arith.truncf %468 : vector<8x128xf32> to vector<8x128xbf16>
    %c0_115 = arith.constant 0 : index
    %c0_116 = arith.constant 0 : index
    %470 = vector.load %arg6[%c0_115, %c0_116] : memref<128x1024xbf16, #tpu.memory_space<vmem>>, vector<128x1024xbf16>
    %cst_117 = arith.constant dense<0.000000e+00> : vector<8x1024xf32>
    %471 = tpu.matmul %469, %470, %cst_117 {dimension_numbers = #tpu.dot_dimension_numbers<[1], [0], [0], [1], [0, 0, 1, 1], [], []>} : vector<8x128xbf16>, vector<128x1024xbf16>, vector<8x1024xf32> -> vector<8x1024xf32>
    %472 = vector.extract_strided_slice %471 {offsets = [0, 0], sizes = [8, 512], strides = [1, 1]} : vector<8x1024xf32> to vector<8x512xf32>
    %473 = arith.addf %254, %472 : vector<8x512xf32>
    %474 = vector.extract_strided_slice %471 {offsets = [0, 512], sizes = [8, 512], strides = [1, 1]} : vector<8x1024xf32> to vector<8x512xf32>
    %475 = arith.addf %474, %257 : vector<8x512xf32>
    %476 = arith.truncf %443 : vector<8x128xf32> to vector<8x128xbf16>
    %c0_118 = arith.constant 0 : index
    %c0_119 = arith.constant 0 : index
    %477 = vector.load %arg8[%c0_118, %c0_119] : memref<128x512xbf16, #tpu.memory_space<vmem>>, vector<128x512xbf16>
    %cst_120 = arith.constant dense<0.000000e+00> : vector<8x512xf32>
    %478 = tpu.matmul %476, %477, %cst_120 {dimension_numbers = #tpu.dot_dimension_numbers<[1], [0], [0], [1], [0, 0, 1, 1], [], []>} : vector<8x128xbf16>, vector<128x512xbf16>, vector<8x512xf32> -> vector<8x512xf32>
    %479 = arith.addf %475, %478 : vector<8x512xf32>
    %480 = vector.extract_strided_slice %479 {offsets = [0, 0], sizes = [8, 128], strides = [1, 1]} : vector<8x512xf32> to vector<8x128xf32>
    %481 = arith.negf %480 : vector<8x128xf32>
    %482 = math.exp %481 : vector<8x128xf32>
    %cst_121 = arith.constant 1.000000e+00 : f32
    %483 = vector.broadcast %cst_121 : f32 to vector<8x128xf32>
    %484 = arith.addf %483, %482 : vector<8x128xf32>
    %485 = arith.divf %483, %484 : vector<8x128xf32>
    %486 = vector.extract_strided_slice %479 {offsets = [0, 128], sizes = [8, 128], strides = [1, 1]} : vector<8x512xf32> to vector<8x128xf32>
    %487 = arith.negf %486 : vector<8x128xf32>
    %488 = math.exp %487 : vector<8x128xf32>
    %cst_122 = arith.constant 1.000000e+00 : f32
    %489 = vector.broadcast %cst_122 : f32 to vector<8x128xf32>
    %490 = arith.addf %489, %488 : vector<8x128xf32>
    %491 = arith.divf %489, %490 : vector<8x128xf32>
    %492 = vector.extract_strided_slice %479 {offsets = [0, 256], sizes = [8, 128], strides = [1, 1]} : vector<8x512xf32> to vector<8x128xf32>
    %493 = math.tanh %492 : vector<8x128xf32>
    %494 = vector.extract_strided_slice %479 {offsets = [0, 384], sizes = [8, 128], strides = [1, 1]} : vector<8x512xf32> to vector<8x128xf32>
    %495 = arith.negf %494 : vector<8x128xf32>
    %496 = math.exp %495 : vector<8x128xf32>
    %cst_123 = arith.constant 1.000000e+00 : f32
    %497 = vector.broadcast %cst_123 : f32 to vector<8x128xf32>
    %498 = arith.addf %497, %496 : vector<8x128xf32>
    %499 = arith.divf %497, %498 : vector<8x128xf32>
    %500 = arith.mulf %491, %441 : vector<8x128xf32>
    %501 = arith.mulf %485, %493 : vector<8x128xf32>
    %502 = arith.addf %500, %501 : vector<8x128xf32>
    %503 = math.tanh %502 : vector<8x128xf32>
    %504 = arith.mulf %499, %503 : vector<8x128xf32>
    %505 = vector.extract_strided_slice %473 {offsets = [0, 0], sizes = [8, 128], strides = [1, 1]} : vector<8x512xf32> to vector<8x128xf32>
    %506 = arith.negf %505 : vector<8x128xf32>
    %507 = math.exp %506 : vector<8x128xf32>
    %cst_124 = arith.constant 1.000000e+00 : f32
    %508 = vector.broadcast %cst_124 : f32 to vector<8x128xf32>
    %509 = arith.addf %508, %507 : vector<8x128xf32>
    %510 = arith.divf %508, %509 : vector<8x128xf32>
    %511 = vector.extract_strided_slice %473 {offsets = [0, 128], sizes = [8, 128], strides = [1, 1]} : vector<8x512xf32> to vector<8x128xf32>
    %512 = arith.negf %511 : vector<8x128xf32>
    %513 = math.exp %512 : vector<8x128xf32>
    %cst_125 = arith.constant 1.000000e+00 : f32
    %514 = vector.broadcast %cst_125 : f32 to vector<8x128xf32>
    %515 = arith.addf %514, %513 : vector<8x128xf32>
    %516 = arith.divf %514, %515 : vector<8x128xf32>
    %517 = vector.extract_strided_slice %473 {offsets = [0, 256], sizes = [8, 128], strides = [1, 1]} : vector<8x512xf32> to vector<8x128xf32>
    %518 = math.tanh %517 : vector<8x128xf32>
    %519 = vector.extract_strided_slice %473 {offsets = [0, 384], sizes = [8, 128], strides = [1, 1]} : vector<8x512xf32> to vector<8x128xf32>
    %520 = arith.negf %519 : vector<8x128xf32>
    %521 = math.exp %520 : vector<8x128xf32>
    %cst_126 = arith.constant 1.000000e+00 : f32
    %522 = vector.broadcast %cst_126 : f32 to vector<8x128xf32>
    %523 = arith.addf %522, %521 : vector<8x128xf32>
    %524 = arith.divf %522, %523 : vector<8x128xf32>
    %525 = arith.mulf %516, %466 : vector<8x128xf32>
    %526 = arith.mulf %510, %518 : vector<8x128xf32>
    %527 = arith.addf %525, %526 : vector<8x128xf32>
    %528 = math.tanh %527 : vector<8x128xf32>
    %529 = arith.mulf %524, %528 : vector<8x128xf32>
    %530 = arith.truncf %529 : vector<8x128xf32> to vector<8x128xbf16>
    %c0_127 = arith.constant 0 : index
    %c0_128 = arith.constant 0 : index
    %531 = vector.load %arg6[%c0_127, %c0_128] : memref<128x1024xbf16, #tpu.memory_space<vmem>>, vector<128x1024xbf16>
    %cst_129 = arith.constant dense<0.000000e+00> : vector<8x1024xf32>
    %532 = tpu.matmul %530, %531, %cst_129 {dimension_numbers = #tpu.dot_dimension_numbers<[1], [0], [0], [1], [0, 0, 1, 1], [], []>} : vector<8x128xbf16>, vector<128x1024xbf16>, vector<8x1024xf32> -> vector<8x1024xf32>
    %533 = vector.extract_strided_slice %532 {offsets = [0, 0], sizes = [8, 512], strides = [1, 1]} : vector<8x1024xf32> to vector<8x512xf32>
    %534 = arith.addf %254, %533 : vector<8x512xf32>
    %535 = vector.extract_strided_slice %532 {offsets = [0, 512], sizes = [8, 512], strides = [1, 1]} : vector<8x1024xf32> to vector<8x512xf32>
    %536 = arith.addf %535, %257 : vector<8x512xf32>
    %537 = arith.truncf %504 : vector<8x128xf32> to vector<8x128xbf16>
    %c0_130 = arith.constant 0 : index
    %c0_131 = arith.constant 0 : index
    %538 = vector.load %arg8[%c0_130, %c0_131] : memref<128x512xbf16, #tpu.memory_space<vmem>>, vector<128x512xbf16>
    %cst_132 = arith.constant dense<0.000000e+00> : vector<8x512xf32>
    %539 = tpu.matmul %537, %538, %cst_132 {dimension_numbers = #tpu.dot_dimension_numbers<[1], [0], [0], [1], [0, 0, 1, 1], [], []>} : vector<8x128xbf16>, vector<128x512xbf16>, vector<8x512xf32> -> vector<8x512xf32>
    %540 = arith.addf %536, %539 : vector<8x512xf32>
    %541 = vector.extract_strided_slice %540 {offsets = [0, 0], sizes = [8, 128], strides = [1, 1]} : vector<8x512xf32> to vector<8x128xf32>
    %542 = arith.negf %541 : vector<8x128xf32>
    %543 = math.exp %542 : vector<8x128xf32>
    %cst_133 = arith.constant 1.000000e+00 : f32
    %544 = vector.broadcast %cst_133 : f32 to vector<8x128xf32>
    %545 = arith.addf %544, %543 : vector<8x128xf32>
    %546 = arith.divf %544, %545 : vector<8x128xf32>
    %547 = vector.extract_strided_slice %540 {offsets = [0, 128], sizes = [8, 128], strides = [1, 1]} : vector<8x512xf32> to vector<8x128xf32>
    %548 = arith.negf %547 : vector<8x128xf32>
    %549 = math.exp %548 : vector<8x128xf32>
    %cst_134 = arith.constant 1.000000e+00 : f32
    %550 = vector.broadcast %cst_134 : f32 to vector<8x128xf32>
    %551 = arith.addf %550, %549 : vector<8x128xf32>
    %552 = arith.divf %550, %551 : vector<8x128xf32>
    %553 = vector.extract_strided_slice %540 {offsets = [0, 256], sizes = [8, 128], strides = [1, 1]} : vector<8x512xf32> to vector<8x128xf32>
    %554 = math.tanh %553 : vector<8x128xf32>
    %555 = vector.extract_strided_slice %540 {offsets = [0, 384], sizes = [8, 128], strides = [1, 1]} : vector<8x512xf32> to vector<8x128xf32>
    %556 = arith.negf %555 : vector<8x128xf32>
    %557 = math.exp %556 : vector<8x128xf32>
    %cst_135 = arith.constant 1.000000e+00 : f32
    %558 = vector.broadcast %cst_135 : f32 to vector<8x128xf32>
    %559 = arith.addf %558, %557 : vector<8x128xf32>
    %560 = arith.divf %558, %559 : vector<8x128xf32>
    %561 = arith.mulf %552, %502 : vector<8x128xf32>
    %562 = arith.mulf %546, %554 : vector<8x128xf32>
    %563 = arith.addf %561, %562 : vector<8x128xf32>
    %564 = math.tanh %563 : vector<8x128xf32>
    %565 = arith.mulf %560, %564 : vector<8x128xf32>
    %566 = vector.extract_strided_slice %534 {offsets = [0, 0], sizes = [8, 128], strides = [1, 1]} : vector<8x512xf32> to vector<8x128xf32>
    %567 = arith.negf %566 : vector<8x128xf32>
    %568 = math.exp %567 : vector<8x128xf32>
    %cst_136 = arith.constant 1.000000e+00 : f32
    %569 = vector.broadcast %cst_136 : f32 to vector<8x128xf32>
    %570 = arith.addf %569, %568 : vector<8x128xf32>
    %571 = arith.divf %569, %570 : vector<8x128xf32>
    %572 = vector.extract_strided_slice %534 {offsets = [0, 128], sizes = [8, 128], strides = [1, 1]} : vector<8x512xf32> to vector<8x128xf32>
    %573 = arith.negf %572 : vector<8x128xf32>
    %574 = math.exp %573 : vector<8x128xf32>
    %cst_137 = arith.constant 1.000000e+00 : f32
    %575 = vector.broadcast %cst_137 : f32 to vector<8x128xf32>
    %576 = arith.addf %575, %574 : vector<8x128xf32>
    %577 = arith.divf %575, %576 : vector<8x128xf32>
    %578 = vector.extract_strided_slice %534 {offsets = [0, 256], sizes = [8, 128], strides = [1, 1]} : vector<8x512xf32> to vector<8x128xf32>
    %579 = math.tanh %578 : vector<8x128xf32>
    %580 = vector.extract_strided_slice %534 {offsets = [0, 384], sizes = [8, 128], strides = [1, 1]} : vector<8x512xf32> to vector<8x128xf32>
    %581 = arith.negf %580 : vector<8x128xf32>
    %582 = math.exp %581 : vector<8x128xf32>
    %cst_138 = arith.constant 1.000000e+00 : f32
    %583 = vector.broadcast %cst_138 : f32 to vector<8x128xf32>
    %584 = arith.addf %583, %582 : vector<8x128xf32>
    %585 = arith.divf %583, %584 : vector<8x128xf32>
    %586 = arith.mulf %577, %527 : vector<8x128xf32>
    %587 = arith.mulf %571, %579 : vector<8x128xf32>
    %588 = arith.addf %586, %587 : vector<8x128xf32>
    %589 = math.tanh %588 : vector<8x128xf32>
    %590 = arith.mulf %585, %589 : vector<8x128xf32>
    %591 = arith.truncf %590 : vector<8x128xf32> to vector<8x128xbf16>
    %c0_139 = arith.constant 0 : index
    %c0_140 = arith.constant 0 : index
    %592 = vector.load %arg6[%c0_139, %c0_140] : memref<128x1024xbf16, #tpu.memory_space<vmem>>, vector<128x1024xbf16>
    %cst_141 = arith.constant dense<0.000000e+00> : vector<8x1024xf32>
    %593 = tpu.matmul %591, %592, %cst_141 {dimension_numbers = #tpu.dot_dimension_numbers<[1], [0], [0], [1], [0, 0, 1, 1], [], []>} : vector<8x128xbf16>, vector<128x1024xbf16>, vector<8x1024xf32> -> vector<8x1024xf32>
    %594 = vector.extract_strided_slice %593 {offsets = [0, 0], sizes = [8, 512], strides = [1, 1]} : vector<8x1024xf32> to vector<8x512xf32>
    %595 = arith.addf %254, %594 : vector<8x512xf32>
    %596 = vector.extract_strided_slice %593 {offsets = [0, 512], sizes = [8, 512], strides = [1, 1]} : vector<8x1024xf32> to vector<8x512xf32>
    %597 = arith.addf %596, %257 : vector<8x512xf32>
    %598 = arith.truncf %565 : vector<8x128xf32> to vector<8x128xbf16>
    %c0_142 = arith.constant 0 : index
    %c0_143 = arith.constant 0 : index
    %599 = vector.load %arg8[%c0_142, %c0_143] : memref<128x512xbf16, #tpu.memory_space<vmem>>, vector<128x512xbf16>
    %cst_144 = arith.constant dense<0.000000e+00> : vector<8x512xf32>
    %600 = tpu.matmul %598, %599, %cst_144 {dimension_numbers = #tpu.dot_dimension_numbers<[1], [0], [0], [1], [0, 0, 1, 1], [], []>} : vector<8x128xbf16>, vector<128x512xbf16>, vector<8x512xf32> -> vector<8x512xf32>
    %601 = arith.addf %597, %600 : vector<8x512xf32>
    %602 = vector.extract_strided_slice %601 {offsets = [0, 0], sizes = [8, 128], strides = [1, 1]} : vector<8x512xf32> to vector<8x128xf32>
    %603 = arith.negf %602 : vector<8x128xf32>
    %604 = math.exp %603 : vector<8x128xf32>
    %cst_145 = arith.constant 1.000000e+00 : f32
    %605 = vector.broadcast %cst_145 : f32 to vector<8x128xf32>
    %606 = arith.addf %605, %604 : vector<8x128xf32>
    %607 = arith.divf %605, %606 : vector<8x128xf32>
    %608 = vector.extract_strided_slice %601 {offsets = [0, 128], sizes = [8, 128], strides = [1, 1]} : vector<8x512xf32> to vector<8x128xf32>
    %609 = arith.negf %608 : vector<8x128xf32>
    %610 = math.exp %609 : vector<8x128xf32>
    %cst_146 = arith.constant 1.000000e+00 : f32
    %611 = vector.broadcast %cst_146 : f32 to vector<8x128xf32>
    %612 = arith.addf %611, %610 : vector<8x128xf32>
    %613 = arith.divf %611, %612 : vector<8x128xf32>
    %614 = vector.extract_strided_slice %601 {offsets = [0, 256], sizes = [8, 128], strides = [1, 1]} : vector<8x512xf32> to vector<8x128xf32>
    %615 = math.tanh %614 : vector<8x128xf32>
    %616 = vector.extract_strided_slice %601 {offsets = [0, 384], sizes = [8, 128], strides = [1, 1]} : vector<8x512xf32> to vector<8x128xf32>
    %617 = arith.negf %616 : vector<8x128xf32>
    %618 = math.exp %617 : vector<8x128xf32>
    %cst_147 = arith.constant 1.000000e+00 : f32
    %619 = vector.broadcast %cst_147 : f32 to vector<8x128xf32>
    %620 = arith.addf %619, %618 : vector<8x128xf32>
    %621 = arith.divf %619, %620 : vector<8x128xf32>
    %622 = arith.mulf %613, %563 : vector<8x128xf32>
    %623 = arith.mulf %607, %615 : vector<8x128xf32>
    %624 = arith.addf %622, %623 : vector<8x128xf32>
    %625 = math.tanh %624 : vector<8x128xf32>
    %626 = arith.mulf %621, %625 : vector<8x128xf32>
    %627 = vector.extract_strided_slice %595 {offsets = [0, 0], sizes = [8, 128], strides = [1, 1]} : vector<8x512xf32> to vector<8x128xf32>
    %628 = arith.negf %627 : vector<8x128xf32>
    %629 = math.exp %628 : vector<8x128xf32>
    %cst_148 = arith.constant 1.000000e+00 : f32
    %630 = vector.broadcast %cst_148 : f32 to vector<8x128xf32>
    %631 = arith.addf %630, %629 : vector<8x128xf32>
    %632 = arith.divf %630, %631 : vector<8x128xf32>
    %633 = vector.extract_strided_slice %595 {offsets = [0, 128], sizes = [8, 128], strides = [1, 1]} : vector<8x512xf32> to vector<8x128xf32>
    %634 = arith.negf %633 : vector<8x128xf32>
    %635 = math.exp %634 : vector<8x128xf32>
    %cst_149 = arith.constant 1.000000e+00 : f32
    %636 = vector.broadcast %cst_149 : f32 to vector<8x128xf32>
    %637 = arith.addf %636, %635 : vector<8x128xf32>
    %638 = arith.divf %636, %637 : vector<8x128xf32>
    %639 = vector.extract_strided_slice %595 {offsets = [0, 256], sizes = [8, 128], strides = [1, 1]} : vector<8x512xf32> to vector<8x128xf32>
    %640 = math.tanh %639 : vector<8x128xf32>
    %641 = vector.extract_strided_slice %595 {offsets = [0, 384], sizes = [8, 128], strides = [1, 1]} : vector<8x512xf32> to vector<8x128xf32>
    %642 = arith.negf %641 : vector<8x128xf32>
    %643 = math.exp %642 : vector<8x128xf32>
    %cst_150 = arith.constant 1.000000e+00 : f32
    %644 = vector.broadcast %cst_150 : f32 to vector<8x128xf32>
    %645 = arith.addf %644, %643 : vector<8x128xf32>
    %646 = arith.divf %644, %645 : vector<8x128xf32>
    %647 = arith.mulf %638, %588 : vector<8x128xf32>
    %648 = arith.mulf %632, %640 : vector<8x128xf32>
    %649 = arith.addf %647, %648 : vector<8x128xf32>
    %650 = math.tanh %649 : vector<8x128xf32>
    %651 = arith.mulf %646, %650 : vector<8x128xf32>
    %652 = arith.truncf %651 : vector<8x128xf32> to vector<8x128xbf16>
    %c0_151 = arith.constant 0 : index
    %c0_152 = arith.constant 0 : index
    %653 = vector.load %arg6[%c0_151, %c0_152] : memref<128x1024xbf16, #tpu.memory_space<vmem>>, vector<128x1024xbf16>
    %cst_153 = arith.constant dense<0.000000e+00> : vector<8x1024xf32>
    %654 = tpu.matmul %652, %653, %cst_153 {dimension_numbers = #tpu.dot_dimension_numbers<[1], [0], [0], [1], [0, 0, 1, 1], [], []>} : vector<8x128xbf16>, vector<128x1024xbf16>, vector<8x1024xf32> -> vector<8x1024xf32>
    %655 = vector.extract_strided_slice %654 {offsets = [0, 0], sizes = [8, 512], strides = [1, 1]} : vector<8x1024xf32> to vector<8x512xf32>
    %656 = arith.addf %254, %655 : vector<8x512xf32>
    %657 = vector.extract_strided_slice %654 {offsets = [0, 512], sizes = [8, 512], strides = [1, 1]} : vector<8x1024xf32> to vector<8x512xf32>
    %658 = arith.addf %657, %257 : vector<8x512xf32>
    %659 = arith.truncf %626 : vector<8x128xf32> to vector<8x128xbf16>
    %c0_154 = arith.constant 0 : index
    %c0_155 = arith.constant 0 : index
    %660 = vector.load %arg8[%c0_154, %c0_155] : memref<128x512xbf16, #tpu.memory_space<vmem>>, vector<128x512xbf16>
    %cst_156 = arith.constant dense<0.000000e+00> : vector<8x512xf32>
    %661 = tpu.matmul %659, %660, %cst_156 {dimension_numbers = #tpu.dot_dimension_numbers<[1], [0], [0], [1], [0, 0, 1, 1], [], []>} : vector<8x128xbf16>, vector<128x512xbf16>, vector<8x512xf32> -> vector<8x512xf32>
    %662 = arith.addf %658, %661 : vector<8x512xf32>
    %663 = vector.extract_strided_slice %662 {offsets = [0, 0], sizes = [8, 128], strides = [1, 1]} : vector<8x512xf32> to vector<8x128xf32>
    %664 = arith.negf %663 : vector<8x128xf32>
    %665 = math.exp %664 : vector<8x128xf32>
    %cst_157 = arith.constant 1.000000e+00 : f32
    %666 = vector.broadcast %cst_157 : f32 to vector<8x128xf32>
    %667 = arith.addf %666, %665 : vector<8x128xf32>
    %668 = arith.divf %666, %667 : vector<8x128xf32>
    %669 = vector.extract_strided_slice %662 {offsets = [0, 128], sizes = [8, 128], strides = [1, 1]} : vector<8x512xf32> to vector<8x128xf32>
    %670 = arith.negf %669 : vector<8x128xf32>
    %671 = math.exp %670 : vector<8x128xf32>
    %cst_158 = arith.constant 1.000000e+00 : f32
    %672 = vector.broadcast %cst_158 : f32 to vector<8x128xf32>
    %673 = arith.addf %672, %671 : vector<8x128xf32>
    %674 = arith.divf %672, %673 : vector<8x128xf32>
    %675 = vector.extract_strided_slice %662 {offsets = [0, 256], sizes = [8, 128], strides = [1, 1]} : vector<8x512xf32> to vector<8x128xf32>
    %676 = math.tanh %675 : vector<8x128xf32>
    %677 = vector.extract_strided_slice %662 {offsets = [0, 384], sizes = [8, 128], strides = [1, 1]} : vector<8x512xf32> to vector<8x128xf32>
    %678 = arith.negf %677 : vector<8x128xf32>
    %679 = math.exp %678 : vector<8x128xf32>
    %cst_159 = arith.constant 1.000000e+00 : f32
    %680 = vector.broadcast %cst_159 : f32 to vector<8x128xf32>
    %681 = arith.addf %680, %679 : vector<8x128xf32>
    %682 = arith.divf %680, %681 : vector<8x128xf32>
    %683 = arith.mulf %674, %624 : vector<8x128xf32>
    %684 = arith.mulf %668, %676 : vector<8x128xf32>
    %685 = arith.addf %683, %684 : vector<8x128xf32>
    %686 = math.tanh %685 : vector<8x128xf32>
    %687 = arith.mulf %682, %686 : vector<8x128xf32>
    %688 = vector.extract_strided_slice %656 {offsets = [0, 0], sizes = [8, 128], strides = [1, 1]} : vector<8x512xf32> to vector<8x128xf32>
    %689 = arith.negf %688 : vector<8x128xf32>
    %690 = math.exp %689 : vector<8x128xf32>
    %cst_160 = arith.constant 1.000000e+00 : f32
    %691 = vector.broadcast %cst_160 : f32 to vector<8x128xf32>
    %692 = arith.addf %691, %690 : vector<8x128xf32>
    %693 = arith.divf %691, %692 : vector<8x128xf32>
    %694 = vector.extract_strided_slice %656 {offsets = [0, 128], sizes = [8, 128], strides = [1, 1]} : vector<8x512xf32> to vector<8x128xf32>
    %695 = arith.negf %694 : vector<8x128xf32>
    %696 = math.exp %695 : vector<8x128xf32>
    %cst_161 = arith.constant 1.000000e+00 : f32
    %697 = vector.broadcast %cst_161 : f32 to vector<8x128xf32>
    %698 = arith.addf %697, %696 : vector<8x128xf32>
    %699 = arith.divf %697, %698 : vector<8x128xf32>
    %700 = vector.extract_strided_slice %656 {offsets = [0, 256], sizes = [8, 128], strides = [1, 1]} : vector<8x512xf32> to vector<8x128xf32>
    %701 = math.tanh %700 : vector<8x128xf32>
    %702 = vector.extract_strided_slice %656 {offsets = [0, 384], sizes = [8, 128], strides = [1, 1]} : vector<8x512xf32> to vector<8x128xf32>
    %703 = arith.negf %702 : vector<8x128xf32>
    %704 = math.exp %703 : vector<8x128xf32>
    %cst_162 = arith.constant 1.000000e+00 : f32
    %705 = vector.broadcast %cst_162 : f32 to vector<8x128xf32>
    %706 = arith.addf %705, %704 : vector<8x128xf32>
    %707 = arith.divf %705, %706 : vector<8x128xf32>
    %708 = arith.mulf %699, %649 : vector<8x128xf32>
    %709 = arith.mulf %693, %701 : vector<8x128xf32>
    %710 = arith.addf %708, %709 : vector<8x128xf32>
    %711 = math.tanh %710 : vector<8x128xf32>
    %712 = arith.mulf %707, %711 : vector<8x128xf32>
    %713 = arith.truncf %712 : vector<8x128xf32> to vector<8x128xbf16>
    %c0_163 = arith.constant 0 : index
    %c0_164 = arith.constant 0 : index
    %714 = vector.load %arg6[%c0_163, %c0_164] : memref<128x1024xbf16, #tpu.memory_space<vmem>>, vector<128x1024xbf16>
    %cst_165 = arith.constant dense<0.000000e+00> : vector<8x1024xf32>
    %715 = tpu.matmul %713, %714, %cst_165 {dimension_numbers = #tpu.dot_dimension_numbers<[1], [0], [0], [1], [0, 0, 1, 1], [], []>} : vector<8x128xbf16>, vector<128x1024xbf16>, vector<8x1024xf32> -> vector<8x1024xf32>
    %716 = vector.extract_strided_slice %715 {offsets = [0, 512], sizes = [8, 512], strides = [1, 1]} : vector<8x1024xf32> to vector<8x512xf32>
    %717 = arith.addf %716, %257 : vector<8x512xf32>
    %718 = arith.truncf %687 : vector<8x128xf32> to vector<8x128xbf16>
    %c0_166 = arith.constant 0 : index
    %c0_167 = arith.constant 0 : index
    %719 = vector.load %arg8[%c0_166, %c0_167] : memref<128x512xbf16, #tpu.memory_space<vmem>>, vector<128x512xbf16>
    %cst_168 = arith.constant dense<0.000000e+00> : vector<8x512xf32>
    %720 = tpu.matmul %718, %719, %cst_168 {dimension_numbers = #tpu.dot_dimension_numbers<[1], [0], [0], [1], [0, 0, 1, 1], [], []>} : vector<8x128xbf16>, vector<128x512xbf16>, vector<8x512xf32> -> vector<8x512xf32>
    %721 = arith.addf %717, %720 : vector<8x512xf32>
    %722 = vector.extract_strided_slice %721 {offsets = [0, 0], sizes = [8, 128], strides = [1, 1]} : vector<8x512xf32> to vector<8x128xf32>
    %723 = arith.negf %722 : vector<8x128xf32>
    %724 = math.exp %723 : vector<8x128xf32>
    %cst_169 = arith.constant 1.000000e+00 : f32
    %725 = vector.broadcast %cst_169 : f32 to vector<8x128xf32>
    %726 = arith.addf %725, %724 : vector<8x128xf32>
    %727 = arith.divf %725, %726 : vector<8x128xf32>
    %728 = vector.extract_strided_slice %721 {offsets = [0, 128], sizes = [8, 128], strides = [1, 1]} : vector<8x512xf32> to vector<8x128xf32>
    %729 = arith.negf %728 : vector<8x128xf32>
    %730 = math.exp %729 : vector<8x128xf32>
    %cst_170 = arith.constant 1.000000e+00 : f32
    %731 = vector.broadcast %cst_170 : f32 to vector<8x128xf32>
    %732 = arith.addf %731, %730 : vector<8x128xf32>
    %733 = arith.divf %731, %732 : vector<8x128xf32>
    %734 = vector.extract_strided_slice %721 {offsets = [0, 256], sizes = [8, 128], strides = [1, 1]} : vector<8x512xf32> to vector<8x128xf32>
    %735 = math.tanh %734 : vector<8x128xf32>
    %736 = vector.extract_strided_slice %721 {offsets = [0, 384], sizes = [8, 128], strides = [1, 1]} : vector<8x512xf32> to vector<8x128xf32>
    %737 = arith.negf %736 : vector<8x128xf32>
    %738 = math.exp %737 : vector<8x128xf32>
    %cst_171 = arith.constant 1.000000e+00 : f32
    %739 = vector.broadcast %cst_171 : f32 to vector<8x128xf32>
    %740 = arith.addf %739, %738 : vector<8x128xf32>
    %741 = arith.divf %739, %740 : vector<8x128xf32>
    %742 = arith.mulf %733, %685 : vector<8x128xf32>
    %743 = arith.mulf %727, %735 : vector<8x128xf32>
    %744 = arith.addf %742, %743 : vector<8x128xf32>
    %745 = math.tanh %744 : vector<8x128xf32>
    %746 = arith.mulf %741, %745 : vector<8x128xf32>
    %747 = tpu.concatenate %321, %382, %443, %504, %565, %626, %687, %746 in 0 : vector<8x128xf32>, vector<8x128xf32>, vector<8x128xf32>, vector<8x128xf32>, vector<8x128xf32>, vector<8x128xf32>, vector<8x128xf32>, vector<8x128xf32> -> vector<64x128xf32>
    %748 = arith.truncf %747 : vector<64x128xf32> to vector<64x128xbf16>
    %c0_172 = arith.constant 0 : index
    %c0_173 = arith.constant 0 : index
    %749 = vector.load %arg9[%c0_172, %c0_173] : memref<128x128xbf16, #tpu.memory_space<vmem>>, vector<128x128xbf16>
    %cst_174 = arith.constant dense<0.000000e+00> : vector<64x128xf32>
    %750 = tpu.matmul %748, %749, %cst_174 {dimension_numbers = #tpu.dot_dimension_numbers<[1], [0], [0], [1], [0, 0, 1, 1], [], []>} : vector<64x128xbf16>, vector<128x128xbf16>, vector<64x128xf32> -> vector<64x128xf32>
    %c0_175 = arith.constant 0 : index
    %c0_176 = arith.constant 0 : index
    %751 = vector.load %arg10[%c0_175, %c0_176] : memref<1x128xf32, #tpu.memory_space<vmem>>, vector<1x128xf32>
    %752 = vector.broadcast %751 : vector<1x128xf32> to vector<64x128xf32>
    %753 = arith.addf %750, %752 : vector<64x128xf32>
    %c0_177 = arith.constant 0 : index
    %c0_178 = arith.constant 0 : index
    %754 = vector.load %arg11[%c0_177, %c0_178] : memref<64x128xf32, #tpu.memory_space<vmem>>, vector<64x128xf32>
    tpu.vector_store %arg11[%c0_177, %c0_178], %753 {strides = array<i32>} : memref<64x128xf32, #tpu.memory_space<vmem>>, vector<64x128xf32>,
    return
  }
}

</mosaic_0001>

<bundles_post_ra>
// kernel: lstm_autoencoder_forward.1
= control target key start
LH: loop header
LB: loop body
LE: loop exit
PB: predicated region body
PF: predicated region fallthrough
CT: control target
= control target key end

     0   :  { %16 = vsyncpa [#allocation4], 0  ;;  %s8630_s0 = inlined_call_operand.vmem [shape: bf16[64,128], index: 0, kind: input, shape index: {}]   ;;  %s8631_s1 = inlined_call_operand.hbm [shape: bf16[128,512], index: 1, kind: input, shape index: {}]   ;;  %s8632_s2 = inlined_call_operand.hbm [shape: bf16[128,512], index: 2, kind: input, shape index: {}]   ;;  %s8633_s3 = inlined_call_operand.vmem [shape: f32[1,512], index: 3, kind: input, shape index: {}]   ;;  %s8634_s4 = inlined_call_operand.hbm [shape: bf16[128,512], index: 4, kind: input, shape index: {}]   ;;  %s8635_s5 = inlined_call_operand.vmem [shape: f32[1,512], index: 5, kind: input, shape index: {}]   ;;  %s8636_s6 = inlined_call_operand.hbm [shape: bf16[128,1024], index: 6, kind: input, shape index: {}]   ;;  %s8637_s7 = inlined_call_operand.hbm [shape: f32[1,512], index: 7, kind: input, shape index: {}]   ;;  %s8638_s8 = inlined_call_operand.hbm [shape: bf16[128,512], index: 8, kind: input, shape index: {}]   ;;  %s8639_s9 = inlined_call_operand.vmem [shape: bf16[128,128], index: 9, kind: input, shape index: {}]   ;;  %s8640_s10 = inlined_call_operand.vmem [shape: f32[1,128], index: 10, kind: input, shape index: {}]   ;;  %s8641_s11 = inlined_call_operand.vmem [shape: f32[64,128], index: 11, kind: output, shape index: {}]  }
   0x1   :  { %17 = vsyncpa [#allocation6], 0 }
   0x2   :  { %18 = vsyncpa [#allocation9], 0 }
   0x3   :  { %19 = vsyncpa [#allocation12], 0  ;;  %s39_s19 = sshll.u32 %s8632_s2, 4  ;;  %s6613_s20 = smov [#allocation5]   ;;  %s40_s19 = int_to_ptr.hbm [resolvable:$true] %s39_s19 }
   0x4   :  { %s41_s21 = sshll.u32 %s6613_s20, 4  ;;  %s69_s24 = sshll.u32 %s8636_s6, 4  ;;  %s42_s21 = int_to_ptr.vmem [resolvable:$true] %s41_s21  ;;  %s70_s24 = int_to_ptr.hbm [resolvable:$true] %s69_s24 }
   0x5   :  { %s6614_s25 = smov 256   ;;  %s6615_s26 = smov 16  }
   0x6   :  { %47 = dma.hbm_to_vmem [thread:$0]  %s40_s19, 4096, %s42_s21, [#allocation6], %s6614_s25, %s6614_s25, %s6615_s26  }
   0x7   :  { %s6616_s27 = smov [#allocation8]   ;;  %s6617_s29 = smov 512  }
   0x8   :  { %s71_s28 = sshll.u32 %s6616_s27, 4  ;;  %s6618_s2 = smov 32   ;;  %s72_s28 = int_to_ptr.vmem [resolvable:$true] %s71_s28 }
   0x9   :  { %77 = dma.hbm_to_vmem [thread:$0]  %s70_s24, 8192, %s72_s28, [#allocation9], %s6617_s29, %s6617_s29, %s6618_s2  }
   0xa   :  { %s26_s13 = sshll.u32 %s8631_s1, 4  ;;  %s6619_s14 = smov [#allocation3]   ;;  %s27_s13 = int_to_ptr.hbm [resolvable:$true] %s26_s13 }
   0xb   :  { %s28_s6 = sshll.u32 %s6619_s14, 4  ;;  %s54_s17 = sshll.u32 %s8634_s4, 4  ;;  %s29_s6 = int_to_ptr.vmem [resolvable:$true] %s28_s6  ;;  %s55_s17 = int_to_ptr.hbm [resolvable:$true] %s54_s17 }
   0xc   :  { %34 = dma.hbm_to_vmem [thread:$0]  %s27_s13, 4096, %s29_s6, [#allocation4], %s6614_s25, %s6614_s25, %s6615_s26  }
   0xd   :  { %s6620_s18 = smov [#allocation7]   ;;  %s83_s22 = sshll.u32 %s8637_s7, 4  ;;  %s84_s22 = int_to_ptr.hbm [resolvable:$true] %s83_s22 }
   0xe   :  { %s56_s19 = sshll.u32 %s6620_s18, 4  ;;  %s93_s4 = sshll.u32 %s8638_s8, 4  ;;  %s57_s19 = int_to_ptr.vmem [resolvable:$true] %s56_s19  ;;  %s94_s4 = int_to_ptr.hbm [resolvable:$true] %s93_s4 }
   0xf   :  { %62 = dma.hbm_to_vmem [thread:$0]  %s55_s17, 4096, %s57_s19, [#allocation6], %s6614_s25, %s6614_s25, %s6615_s26  }
  0x10   :  { %s6621_s24 = smov [#allocation10]   ;;  %s6622_s28 = smov [#allocation11]  }
  0x11   :  { %s85_s27 = sshll.u32 %s6621_s24, 4  ;;  %s95_s29 = sshll.u32 %s6622_s28, 4  ;;  %s86_s27 = int_to_ptr.vmem [resolvable:$true] %s85_s27  ;;  %s96_s29 = int_to_ptr.vmem [resolvable:$true] %s95_s29 }
  0x12   :  { %88 = dma.hbm_to_vmem [thread:$0]  %s84_s22, 64, %s86_s27, [#allocation9]  }
  0x13   :  { %101 = dma.hbm_to_vmem [thread:$0]  %s94_s4, 4096, %s96_s29, [#allocation12], %s6614_s25, %s6614_s25, %s6615_s26  }
  0x14   :  { %6605 = dma.done.wait [#allocation4], 4096  }
  0x15   :  { %6606 = vsyncadd [#allocation4], 4294963200 }
  0x16   :  { %6607 = dma.done.wait [#allocation6], 8192  }
  0x17   :  { %6608 = vsyncadd [#allocation6], 4294959104 }
  0x18   :  { %6609 = dma.done.wait [#allocation9], 8256  }
  0x19   :  { %6610 = vsyncadd [#allocation9], 4294959040 }
  0x1a   :  { %6611 = dma.done.wait [#allocation12], 4096  }
  0x1b   :  { %6612 = vsyncadd [#allocation12], 4294963200  ;;  %v5095_v0 = vld [vmem:[#allocation3 + $0xe0] sm:$0xf]  ;;  %v5887_v1 = vld [vmem:[#allocation3 + $0xec] sm:$0xf0] }
  0x1c   :  { %v5886_v2 = vld [vmem:[#allocation3 + $0xec] sm:$0xf]  ;;  %v5096_v3 = vor.u32 %v5887_v1, %v5095_v0  ;;  %v5105_v4 = vld [vmem:[#allocation3 + $0xf8] sm:$0xf0]  ;;  %v5223_v5 = vld [vmem:[#allocation5 + $0xe0] sm:$0xf] }
  0x1d   :  { %v5919_v6 = vld [vmem:[#allocation5 + $0xec] sm:$0xf0]  ;;  %v5108_v7 = vor.u32 %v5886_v2, %v5105_v4  ;;  %v5079_v9 = vld [vmem:[#allocation3 + $0xc0] sm:$0xf]  ;;  %v5882_v11 = vld [vmem:[#allocation3 + $0xcc] sm:$0xf] }
  0x1e   :  { %v6714_v8 = vor.u32 %v5919_v6, %v5223_v5  ;;  %v5883_v10 = vld [vmem:[#allocation3 + $0xcc] sm:$0xf0]  ;;  %365 = vmatpush.bf16.msra.mxu1 %v5096_v3  ;;  %6057 = vmatpush.bf16.msra.mxu2 %v5096_v3  ;;  %v5089_v13 = vld [vmem:[#allocation3 + $0xd8] sm:$0xf0]  ;;  %v5207_v14 = vld [vmem:[#allocation5 + $0xc0] sm:$0xf] }
  0x1f   :  { %v5080_v12 = vor.u32 %v5883_v10, %v5079_v9  ;;  %v5915_v15 = vld [vmem:[#allocation5 + $0xcc] sm:$0xf0]  ;;  %452 = vmatpush.bf16.msra.mxu3 %v5108_v7  ;;  %v5092_v16 = vor.u32 %v5882_v11, %v5089_v13  ;;  %v5063_v18 = vld [vmem:[#allocation3 + $0xa0] sm:$0xf]  ;;  %v5878_v20 = vld [vmem:[#allocation3 + $0xac] sm:$0xf] }
  0x20   :  { %709 = vmatpush.bf16.msra.mxu0 %v6714_v8  ;;  %v6717_v17 = vor.u32 %v5915_v15, %v5207_v14  ;;  %v5879_v19 = vld [vmem:[#allocation3 + $0xac] sm:$0xf0]  ;;  %v5073_v21 = vld [vmem:[#allocation3 + $0xb8] sm:$0xf0]  ;;  %v5191_v22 = vld [vmem:[#allocation5 + $0xa0] sm:$0xf] }
  0x21   :  { %v5911_v23 = vld [vmem:[#allocation5 + $0xac] sm:$0xf0]  ;;  %v5064_v24 = vor.u32 %v5879_v19, %v5063_v18  ;;  %v5076_v25 = vor.u32 %v5878_v20, %v5073_v21  ;;  %v5047_v27 = vld [vmem:[#allocation3 + $0x80] sm:$0xf]  ;;  %v5874_v29 = vld [vmem:[#allocation3 + $0x8c] sm:$0xf] }
  0x22   :  { %366 = vmatpush.bf16.msra.mxu1 %v5080_v12  ;;  %6058 = vmatpush.bf16.msra.mxu2 %v5080_v12  ;;  %v6720_v26 = vor.u32 %v5911_v23, %v5191_v22  ;;  %v5875_v28 = vld [vmem:[#allocation3 + $0x8c] sm:$0xf0]  ;;  %v5057_v30 = vld [vmem:[#allocation3 + $0x98] sm:$0xf0]  ;;  %v5175_v31 = vld [vmem:[#allocation5 + $0x80] sm:$0xf] }
  0x23   :  { %453 = vmatpush.bf16.msra.mxu3 %v5092_v16  ;;  %v5907_v32 = vld [vmem:[#allocation5 + $0x8c] sm:$0xf0]  ;;  %v5048_v33 = vor.u32 %v5875_v28, %v5047_v27  ;;  %v5060_v34 = vor.u32 %v5874_v29, %v5057_v30  ;;  %v5031_v36 = vld [vmem:[#allocation3 + $0x60] sm:$0xf]  ;;  %v5870_v38 = vld [vmem:[#allocation3 + $0x6c] sm:$0xf] }
  0x24   :  { %710 = vmatpush.bf16.msra.mxu0 %v6717_v17  ;;  %v6723_v35 = vor.u32 %v5907_v32, %v5175_v31  ;;  %v5871_v37 = vld [vmem:[#allocation3 + $0x6c] sm:$0xf0]  ;;  %v5041_v39 = vld [vmem:[#allocation3 + $0x78] sm:$0xf0]  ;;  %v5159_v40 = vld [vmem:[#allocation5 + $0x60] sm:$0xf] }
  0x25   :  { %v5903_v41 = vld [vmem:[#allocation5 + $0x6c] sm:$0xf0]  ;;  %v5032_v42 = vor.u32 %v5871_v37, %v5031_v36  ;;  %v5044_v43 = vor.u32 %v5870_v38, %v5041_v39  ;;  %v5015_v45 = vld [vmem:[#allocation3 + $0x40] sm:$0xf]  ;;  %v5866_v47 = vld [vmem:[#allocation3 + $0x4c] sm:$0xf] }
  0x26   :  { %367 = vmatpush.bf16.msra.mxu1 %v5064_v24  ;;  %6059 = vmatpush.bf16.msra.mxu2 %v5064_v24  ;;  %v6726_v44 = vor.u32 %v5903_v41, %v5159_v40  ;;  %v5867_v46 = vld [vmem:[#allocation3 + $0x4c] sm:$0xf0]  ;;  %v5025_v48 = vld [vmem:[#allocation3 + $0x58] sm:$0xf0]  ;;  %v5143_v49 = vld [vmem:[#allocation5 + $0x40] sm:$0xf] }
  0x27   :  { %454 = vmatpush.bf16.msra.mxu3 %v5076_v25  ;;  %v5899_v50 = vld [vmem:[#allocation5 + $0x4c] sm:$0xf0]  ;;  %v5016_v51 = vor.u32 %v5867_v46, %v5015_v45  ;;  %v5028_v52 = vor.u32 %v5866_v47, %v5025_v48  ;;  %v4999_v54 = vld [vmem:[#allocation3 + $0x20] sm:$0xf]  ;;  %v5862_v56 = vld [vmem:[#allocation3 + $0x2c] sm:$0xf] }
  0x28   :  { %711 = vmatpush.bf16.msra.mxu0 %v6720_v26  ;;  %v6729_v53 = vor.u32 %v5899_v50, %v5143_v49  ;;  %v5863_v55 = vld [vmem:[#allocation3 + $0x2c] sm:$0xf0]  ;;  %v5009_v57 = vld [vmem:[#allocation3 + $0x38] sm:$0xf0]  ;;  %v5127_v58 = vld [vmem:[#allocation5 + $0x20] sm:$0xf] }
  0x29   :  { %v5895_v59 = vld [vmem:[#allocation5 + $0x2c] sm:$0xf0]  ;;  %v5000_v60 = vor.u32 %v5863_v55, %v4999_v54  ;;  %v4983_v61 = vld [vmem:[#allocation3] sm:$0xf]  ;;  %v5012_v62 = vor.u32 %v5862_v56, %v5009_v57  ;;  %v5858_v1 = vld [vmem:[#allocation3 + $0xc] sm:$0xf] }
  0x2a   :  { %368 = vmatpush.bf16.msra.mxu1 %v5048_v33  ;;  %6060 = vmatpush.bf16.msra.mxu2 %v5048_v33  ;;  %v6732_v63 = vor.u32 %v5895_v59, %v5127_v58  ;;  %v5859_v0 = vld [vmem:[#allocation3 + $0xc] sm:$0xf0]  ;;  %v4993_v2 = vld [vmem:[#allocation3 + $0x18] sm:$0xf0]  ;;  %v5111_v3 = vld [vmem:[#allocation5] sm:$0xf] }
  0x2b   :  { %455 = vmatpush.bf16.msra.mxu3 %v5060_v34  ;;  %v5891_v4 = vld [vmem:[#allocation5 + $0xc] sm:$0xf0]  ;;  %v5885_v5 = vld [vmem:[#allocation3 + $0xe4] sm:$0xf]  ;;  %v5097_v6 = vld [vmem:[#allocation3 + $0xf0] sm:$0xf0]  ;;  %v4984_v10 = vor.u32 %v5859_v0, %v4983_v61  ;;  %v4996_v11 = vor.u32 %v5858_v1, %v4993_v2 }
  0x2c   :  { %712 = vmatpush.bf16.msra.mxu0 %v6723_v35  ;;  %v5103_v7 = vld [vmem:[#allocation3 + $0xe8] sm:$0xf]  ;;  %v5888_v9 = vld [vmem:[#allocation3 + $0xf4] sm:$0xf0]  ;;  %v6735_v12 = vor.u32 %v5891_v4, %v5111_v3  ;;  %v6740_v13 = vld [vmem:[%s8630_s0] sm:$0xff]  ;;  %v5100_v15 = vor.u32 %v5885_v5, %v5097_v6  ;;  %v8642_v32 = vmov 0  }
  0x2d   :  { %v6745_v14 = vld [vmem:[%s8630_s0 + $0x10] sm:$0xff]  ;;  %v5104_v16 = vor.u32 %v5888_v9, %v5103_v7  ;;  %v5881_v18 = vld [vmem:[#allocation3 + $0xc4] sm:$0xf]  ;;  %v5087_v20 = vld [vmem:[#allocation3 + $0xc8] sm:$0xf] }
  0x2e   :  { %369 = vmatpush.bf16.msra.mxu1 %v5032_v42  ;;  %6061 = vmatpush.bf16.msra.mxu2 %v5032_v42  ;;  %v5081_v19 = vld [vmem:[#allocation3 + $0xd0] sm:$0xf0]  ;;  %v5884_v21 = vld [vmem:[#allocation3 + $0xd4] sm:$0xf0]  ;;  %v5877_v24 = vld [vmem:[#allocation3 + $0xa4] sm:$0xf] }
  0x2f   :  { %456 = vmatpush.bf16.msra.mxu3 %v5044_v43  ;;  %v5084_v22 = vor.u32 %v5881_v18, %v5081_v19  ;;  %v5088_v23 = vor.u32 %v5884_v21, %v5087_v20  ;;  %v5918_v25 = vld [vmem:[#allocation5 + $0xec] sm:$0xf]  ;;  %v5233_v27 = vld [vmem:[#allocation5 + $0xf8] sm:$0xf0]  ;;  %v5065_v28 = vld [vmem:[#allocation3 + $0xb0] sm:$0xf0] }
  0x30   :  { %713 = vmatpush.bf16.msra.mxu0 %v6726_v44  ;;  %v5071_v29 = vld [vmem:[#allocation3 + $0xa8] sm:$0xf]  ;;  %v5880_v30 = vld [vmem:[#allocation3 + $0xb4] sm:$0xf0]  ;;  %v6750_v31 = vor.u32 %v5918_v25, %v5233_v27  ;;  %v5914_v33 = vld [vmem:[#allocation5 + $0xcc] sm:$0xf]  ;;  %v5068_v36 = vor.u32 %v5877_v24, %v5065_v28 }
  0x31   :  { %v5217_v34 = vld [vmem:[#allocation5 + $0xd8] sm:$0xf0]  ;;  %v5072_v37 = vor.u32 %v5880_v30, %v5071_v29  ;;  %v5873_v38 = vld [vmem:[#allocation3 + $0x84] sm:$0xf]  ;;  %v5910_v40 = vld [vmem:[#allocation5 + $0xac] sm:$0xf] }
  0x32   :  { %370 = vmatpush.bf16.msra.mxu1 %v5016_v51  ;;  %6062 = vmatpush.bf16.msra.mxu2 %v5016_v51  ;;  %v6756_v39 = vor.u32 %v5914_v33, %v5217_v34  ;;  %v5201_v41 = vld [vmem:[#allocation5 + $0xb8] sm:$0xf0]  ;;  %v5049_v42 = vld [vmem:[#allocation3 + $0x90] sm:$0xf0]  ;;  %v5055_v43 = vld [vmem:[#allocation3 + $0x88] sm:$0xf] }
  0x33   :  { %457 = vmatpush.bf16.msra.mxu3 %v5028_v52  ;;  %v5876_v45 = vld [vmem:[#allocation3 + $0x94] sm:$0xf0]  ;;  %v6759_v46 = vor.u32 %v5910_v40, %v5201_v41  ;;  %v5052_v47 = vor.u32 %v5873_v38, %v5049_v42  ;;  %v5869_v49 = vld [vmem:[#allocation3 + $0x64] sm:$0xf]  ;;  %v5906_v50 = vld [vmem:[#allocation5 + $0x8c] sm:$0xf] }
  0x34   :  { %714 = vmatpush.bf16.msra.mxu0 %v6729_v53  ;;  %v5056_v48 = vor.u32 %v5876_v45, %v5055_v43  ;;  %v5185_v51 = vld [vmem:[#allocation5 + $0x98] sm:$0xf0]  ;;  %v5033_v52 = vld [vmem:[#allocation3 + $0x70] sm:$0xf0]  ;;  %v5039_v54 = vld [vmem:[#allocation3 + $0x68] sm:$0xf] }
  0x35   :  { %v5872_v55 = vld [vmem:[#allocation3 + $0x74] sm:$0xf0]  ;;  %v6763_v56 = vor.u32 %v5906_v50, %v5185_v51  ;;  %v6769_v57 = vld [vmem:[%s8630_s0 + $0x8] sm:$0xff]  ;;  %v5036_v59 = vor.u32 %v5869_v49, %v5033_v52  ;;  %v5865_v61 = vld [vmem:[#allocation3 + $0x44] sm:$0xf] }
  0x36   :  { %371 = vmatpush.bf16.msra.mxu1 %v5000_v60  ;;  %6063 = vmatpush.bf16.msra.mxu2 %v5000_v60  ;;  %v6774_v58 = vld [vmem:[%s8630_s0 + $0x18] sm:$0xff]  ;;  %v5040_v60 = vor.u32 %v5872_v55, %v5039_v54  ;;  %v5023_v0 = vld [vmem:[#allocation3 + $0x48] sm:$0xf]  ;;  %v5861_v4 = vld [vmem:[#allocation3 + $0x24] sm:$0xf] }
  0x37   :  { %458 = vmatpush.bf16.msra.mxu3 %v5012_v62  ;;  %v5017_v62 = vld [vmem:[#allocation3 + $0x50] sm:$0xf0]  ;;  %v5868_v1 = vld [vmem:[#allocation3 + $0x54] sm:$0xf0]  ;;  %v5902_v5 = vld [vmem:[#allocation5 + $0x6c] sm:$0xf] }
  0x38   :  { %715 = vmatpush.bf16.msra.mxu0 %v6732_v63  ;;  %v5020_v2 = vor.u32 %v5865_v61, %v5017_v62  ;;  %v5024_v3 = vor.u32 %v5868_v1, %v5023_v0  ;;  %v5169_v6 = vld [vmem:[#allocation5 + $0x78] sm:$0xf0]  ;;  %v5001_v7 = vld [vmem:[#allocation3 + $0x30] sm:$0xf0]  ;;  %v5007_v9 = vld [vmem:[#allocation3 + $0x28] sm:$0xf] }
  0x39   :  { %v5153_v18 = vld [vmem:[#allocation5 + $0x58] sm:$0xf0]  ;;  %v5004_v19 = vor.u32 %v5861_v4, %v5001_v7  ;;  %v4985_v21 = vld [vmem:[#allocation3 + $0x10] sm:$0xf0]  ;;  %v5894_v24 = vld [vmem:[#allocation5 + $0x2c] sm:$0xf] }
  0x3a   :  { %372 = vmatpush.bf16.msra.mxu1 %v4984_v10  ;;  %6064 = vmatpush.bf16.msra.mxu2 %v4984_v10  ;;  %v5864_v10 = vld [vmem:[#allocation3 + $0x34] sm:$0xf0]  ;;  %v5917_v27 = vld [vmem:[#allocation5 + $0xe4] sm:$0xf]  ;;  %v5137_v28 = vld [vmem:[#allocation5 + $0x38] sm:$0xf0] }
  0x3b   :  { %459 = vmatpush.bf16.msra.mxu3 %v4996_v11  ;;  %v6780_v11 = vor.u32 %v5902_v5, %v5169_v6  ;;  %v5008_v20 = vor.u32 %v5864_v10, %v5007_v9  ;;  %v5860_v25 = vld [vmem:[#allocation3 + $0x14] sm:$0xf0]  ;;  %v5225_v29 = vld [vmem:[#allocation5 + $0xf0] sm:$0xf0]  ;;  %v5231_v30 = vld [vmem:[#allocation5 + $0xe8] sm:$0xf]  ;;  %v6788_v34 = vor.u32 %v5894_v24, %v5137_v28 }
  0x3c   :  { %716 = vmatpush.bf16.msra.mxu0 %v6735_v12  ;;  %v5920_v33 = vld [vmem:[#allocation5 + $0xf4] sm:$0xf0]  ;;  %v5890_v38 = vld [vmem:[#allocation5 + $0xc] sm:$0xf]  ;;  %v5121_v40 = vld [vmem:[#allocation5 + $0x18] sm:$0xf0]  ;;  %v6791_v41 = vor.u32 %v5917_v27, %v5225_v29 }
  0x3d   :  { %373 = vmatmul.bf16.vlgmr.msra.gmra.mxu1 %v6740_v13  ;;  %383 = vmatmul.bf16.vlgmr.msra.gmra.mxu2 %v6745_v14  ;;  %v6793_v42 = vor.u32 %v5920_v33, %v5231_v30  ;;  %v5913_v43 = vld [vmem:[#allocation5 + $0xc4] sm:$0xf]  ;;  %v5209_v45 = vld [vmem:[#allocation5 + $0xd0] sm:$0xf0]  ;;  %v5916_v49 = vld [vmem:[#allocation5 + $0xd4] sm:$0xf0] }
  0x3e   :  { %394 = vmatpush.bf16.msrb.mxu1 %v5100_v15  ;;  %423 = vmatpush.bf16.msrb.mxu2 %v5104_v16  ;;  %v5898_v15 = vld [vmem:[#allocation5 + $0x4c] sm:$0xf]  ;;  %v5857_v16 = vld [vmem:[#allocation3 + $0x4] sm:$0xf]  ;;  %v6801_v50 = vor.u32 %v5913_v43, %v5209_v45  ;;  %v5193_v52 = vld [vmem:[#allocation5 + $0xb0] sm:$0xf0] }
  0x3f   :  { %460 = vmatmul.bf16.vlgmr.msra.gmra.mxu3 %v6740_v13  ;;  %717 = vmatmul.bf16.vlgmr.msra.gmra.mxu0 %v8642_v32  ;;  %v5909_v51 = vld [vmem:[#allocation5 + $0xa4] sm:$0xf]  ;;  %v5199_v55 = vld [vmem:[#allocation5 + $0xa8] sm:$0xf]  ;;  %v5177_v62 = vld [vmem:[#allocation5 + $0x90] sm:$0xf0] }
  0x40   :  { %748 = vmatpush.bf16.msrb.mxu3 %v6750_v31  ;;  %833 = vmatpush.bf16.msrb.mxu0 %v6714_v8  ;;  %v5905_v61 = vld [vmem:[#allocation5 + $0x84] sm:$0xf]  ;;  %v5183_v1 = vld [vmem:[#allocation5 + $0x88] sm:$0xf]  ;;  %v5161_v4 = vld [vmem:[#allocation5 + $0x70] sm:$0xf0] }
  0x41   :  { %v5167_v6 = vld [vmem:[#allocation5 + $0x68] sm:$0xf]  ;;  %v5904_v7 = vld [vmem:[#allocation5 + $0x74] sm:$0xf0]  ;;  %v5897_v10 = vld [vmem:[#allocation5 + $0x44] sm:$0xf] }
  0x42   :  { %395 = vmatpush.bf16.msrb.mxu1 %v5084_v22  ;;  %424 = vmatpush.bf16.msrb.mxu2 %v5088_v23  ;;  %v4991_v22 = vld [vmem:[#allocation3 + $0x8] sm:$0xf]  ;;  %v6785_v23 = vor.u32 %v5898_v15, %v5153_v18  ;;  %v5145_v15 = vld [vmem:[#allocation5 + $0x50] sm:$0xf0]  ;;  %v5900_v24 = vld [vmem:[#allocation5 + $0x54] sm:$0xf0] }
  0x43   :  { %v6837_v18 = vor.u32 %v5897_v10, %v5145_v15  ;;  %v5113_v28 = vld [vmem:[#allocation5 + $0x10] sm:$0xf0]  ;;  %v5135_v29 = vld [vmem:[#allocation5 + $0x28] sm:$0xf]  ;;  %v5896_v30 = vld [vmem:[#allocation5 + $0x34] sm:$0xf0] }
  0x44   :  { %749 = vmatpush.bf16.msrb.mxu3 %v6756_v39  ;;  %834 = vmatpush.bf16.msrb.mxu0 %v6717_v17 }
  0x46   :  { %396 = vmatpush.bf16.msrb.mxu1 %v5068_v36  ;;  %425 = vmatpush.bf16.msrb.mxu2 %v5072_v37  ;;  %v4988_v36 = vor.u32 %v5857_v16, %v4985_v21  ;;  %v4992_v37 = vor.u32 %v5860_v25, %v4991_v22  ;;  %v6832_v16 = vor.u32 %v5904_v7, %v5167_v6  ;;  %v5151_v21 = vld [vmem:[#allocation5 + $0x48] sm:$0xf]  ;;  %v5889_v25 = vld [vmem:[#allocation5 + $0x4] sm:$0xf] }
  0x47   :  { %v6848_v27 = vor.u32 %v5900_v24, %v5151_v21  ;;  %v6856_v33 = vor.u32 %v5889_v25, %v5113_v28 }
  0x48   :  { %750 = vmatpush.bf16.msrb.mxu3 %v6759_v46  ;;  %835 = vmatpush.bf16.msrb.mxu0 %v6720_v26 }
  0x4a   :  { %397 = vmatpush.bf16.msrb.mxu1 %v5052_v47  ;;  %426 = vmatpush.bf16.msrb.mxu2 %v5056_v48  ;;  %v6796_v47 = vor.u32 %v5890_v38, %v5121_v40  ;;  %v5215_v48 = vld [vmem:[#allocation5 + $0xc8] sm:$0xf] }
  0x4b   :  { %v6803_v54 = vor.u32 %v5916_v49, %v5215_v48 }
  0x4c   :  { %751 = vmatpush.bf16.msrb.mxu3 %v6763_v56  ;;  %836 = vmatpush.bf16.msrb.mxu0 %v6723_v35 }
  0x4d   :  { %378 = vmatmul.bf16.gmra.mxu1 %v6769_v57  ;;  %388 = vmatmul.bf16.gmra.mxu2 %v6774_v58 }
  0x4e   :  { %398 = vmatpush.bf16.msrb.mxu1 %v5036_v59  ;;  %427 = vmatpush.bf16.msrb.mxu2 %v5040_v60  ;;  %v5912_v59 = vld [vmem:[#allocation5 + $0xb4] sm:$0xf0]  ;;  %v6813_v60 = vor.u32 %v5909_v51, %v5193_v52 }
  0x4f   :  { %465 = vmatmul.bf16.gmra.mxu3 %v6769_v57  ;;  %v6816_v0 = vor.u32 %v5912_v59, %v5199_v55 }
  0x50   :  { %752 = vmatpush.bf16.msrb.mxu3 %v6780_v11  ;;  %837 = vmatpush.bf16.msrb.mxu0 %v6726_v44 }
  0x52   :  { %399 = vmatpush.bf16.msrb.mxu1 %v5020_v2  ;;  %428 = vmatpush.bf16.msrb.mxu2 %v5024_v3  ;;  %v5908_v2 = vld [vmem:[#allocation5 + $0x94] sm:$0xf0]  ;;  %v5901_v3 = vld [vmem:[#allocation5 + $0x64] sm:$0xf] }
  0x53   :  { %v6824_v5 = vor.u32 %v5908_v2, %v5183_v1  ;;  %v6829_v9 = vor.u32 %v5901_v3, %v5161_v4 }
  0x54   :  { %753 = vmatpush.bf16.msrb.mxu3 %v6785_v23  ;;  %838 = vmatpush.bf16.msrb.mxu0 %v6729_v53 }
  0x56   :  { %400 = vmatpush.bf16.msrb.mxu1 %v5004_v19  ;;  %429 = vmatpush.bf16.msrb.mxu2 %v5008_v20  ;;  %v5893_v19 = vld [vmem:[#allocation5 + $0x24] sm:$0xf]  ;;  %v5129_v20 = vld [vmem:[#allocation5 + $0x30] sm:$0xf0] }
  0x57   :  { %v6846_v22 = vor.u32 %v5893_v19, %v5129_v20 }
  0x58   :  { %754 = vmatpush.bf16.msrb.mxu3 %v6788_v34  ;;  %839 = vmatpush.bf16.msrb.mxu0 %v6732_v63 }
  0x5a   :  { %401 = vmatpush.bf16.msrb.mxu1 %v4988_v36  ;;  %430 = vmatpush.bf16.msrb.mxu2 %v4992_v37  ;;  %v5119_v36 = vld [vmem:[#allocation5 + $0x8] sm:$0xf]  ;;  %v5892_v37 = vld [vmem:[#allocation5 + $0x14] sm:$0xf0] }
  0x5b   :  { %v6861_v38 = vor.u32 %v5892_v37, %v5119_v36 }
  0x5c   :  { %755 = vmatpush.bf16.msrb.mxu3 %v6796_v47  ;;  %840 = vmatpush.bf16.msrb.mxu0 %v6735_v12 }
  0x5d   :  { %402 = vmatmul.bf16.vlgmr.msrb.gmra.mxu1 %v6740_v13  ;;  %431 = vmatmul.bf16.vlgmr.msrb.gmra.mxu2 %v6740_v13  ;;  %v6821_v13 = vor.u32 %v5905_v61, %v5177_v62 }
  0x5e   :  { %722 = vmatpush.bf16.msra.mxu1 %v6791_v41  ;;  %735 = vmatpush.bf16.msra.mxu2 %v6793_v42 }
  0x5f   :  { %470 = vmatmul.bf16.gmra.mxu3 %v6745_v14 }
  0x60   :  { %872 = vmatpush.bf16.msra.mxu3 %v6750_v31  ;;  %957 = vmatpush.bf16.msra.mxu0 %v6714_v8 }
  0x62   :  { %723 = vmatpush.bf16.msra.mxu1 %v6801_v50  ;;  %736 = vmatpush.bf16.msra.mxu2 %v6803_v54 }
  0x64   :  { %873 = vmatpush.bf16.msra.mxu3 %v6756_v39  ;;  %958 = vmatpush.bf16.msra.mxu0 %v6717_v17 }
  0x66   :  { %724 = vmatpush.bf16.msra.mxu1 %v6813_v60  ;;  %737 = vmatpush.bf16.msra.mxu2 %v6816_v0 }
  0x68   :  { %874 = vmatpush.bf16.msra.mxu3 %v6759_v46  ;;  %959 = vmatpush.bf16.msra.mxu0 %v6720_v26 }
  0x6a   :  { %725 = vmatpush.bf16.msra.mxu1 %v6821_v13  ;;  %738 = vmatpush.bf16.msra.mxu2 %v6824_v5 }
  0x6c   :  { %875 = vmatpush.bf16.msra.mxu3 %v6763_v56  ;;  %960 = vmatpush.bf16.msra.mxu0 %v6723_v35 }
  0x6d   :  { %407 = vmatmul.bf16.gmra.mxu1 %v6769_v57  ;;  %436 = vmatmul.bf16.gmra.mxu2 %v6769_v57  ;;  %v6853_v57 = vor.u32 %v5896_v30, %v5135_v29 }
  0x6e   :  { %726 = vmatpush.bf16.msra.mxu1 %v6829_v9  ;;  %739 = vmatpush.bf16.msra.mxu2 %v6832_v16 }
  0x6f   :  { %475 = vmatmul.bf16.gmra.mxu3 %v6774_v58 }
  0x70   :  { %876 = vmatpush.bf16.msra.mxu3 %v6780_v11  ;;  %961 = vmatpush.bf16.msra.mxu0 %v6726_v44 }
  0x72   :  { %727 = vmatpush.bf16.msra.mxu1 %v6837_v18  ;;  %740 = vmatpush.bf16.msra.mxu2 %v6848_v27 }
  0x74   :  { %877 = vmatpush.bf16.msra.mxu3 %v6785_v23  ;;  %962 = vmatpush.bf16.msra.mxu0 %v6729_v53 }
  0x76   :  { %728 = vmatpush.bf16.msra.mxu1 %v6846_v22  ;;  %741 = vmatpush.bf16.msra.mxu2 %v6853_v57 }
  0x78   :  { %878 = vmatpush.bf16.msra.mxu3 %v6788_v34  ;;  %963 = vmatpush.bf16.msra.mxu0 %v6732_v63 }
  0x7a   :  { %729 = vmatpush.bf16.msra.mxu1 %v6856_v33  ;;  %742 = vmatpush.bf16.msra.mxu2 %v6861_v38 }
  0x7c   :  { %879 = vmatpush.bf16.msra.mxu3 %v6796_v47  ;;  %964 = vmatpush.bf16.msra.mxu0 %v6735_v12 }
  0x7d   :  { %412 = vmatmul.bf16.gmra.mxu1 %v6745_v14  ;;  %441 = vmatmul.bf16.gmra.mxu2 %v6745_v14  ;;  %v171_v14 = vld [vmem:[%s8633_s3] sm:$0xf] }
  0x7e   :  { %846 = vmatpush.bf16.msrb.mxu1 %v6791_v41  ;;  %859 = vmatpush.bf16.msrb.mxu2 %v6793_v42  ;;  %v6932_v3 = vperm.slane %v171_v14, 3  ;;  %v6953_v36 = vperm.slane %v171_v14, 1 }
  0x7f   :  { %756 = vmatmul.bf16.vlgmr.msrb.gmra.mxu3 %v8642_v32 }
  0x80   :  { %996 = vmatpush.bf16.msrb.mxu3 %v6750_v31 }
  0x82   :  { %847 = vmatpush.bf16.msrb.mxu1 %v6801_v50  ;;  %860 = vmatpush.bf16.msrb.mxu2 %v6803_v54 }
  0x84   :  { %997 = vmatpush.bf16.msrb.mxu3 %v6756_v39 }
  0x86   :  { %848 = vmatpush.bf16.msrb.mxu1 %v6813_v60  ;;  %861 = vmatpush.bf16.msrb.mxu2 %v6816_v0 }
  0x88   :  { %998 = vmatpush.bf16.msrb.mxu3 %v6759_v46 }
  0x8a   :  { %849 = vmatpush.bf16.msrb.mxu1 %v6821_v13  ;;  %862 = vmatpush.bf16.msrb.mxu2 %v6824_v5 }
  0x8c   :  { %999 = vmatpush.bf16.msrb.mxu3 %v6763_v56 }
  0x8d   :  { %417 = vmatmul.bf16.gmra.mxu1 %v6774_v58  ;;  %446 = vmatmul.bf16.gmra.mxu2 %v6774_v58  ;;  %v6915_v58 = vperm.slane %v171_v14, 0 }
  0x8e   :  { %850 = vmatpush.bf16.msrb.mxu1 %v6829_v9  ;;  %863 = vmatpush.bf16.msrb.mxu2 %v6832_v16 }
  0x90   :  { %1000 = vmatpush.bf16.msrb.mxu3 %v6780_v11 }
  0x92   :  { %851 = vmatpush.bf16.msrb.mxu1 %v6837_v18  ;;  %864 = vmatpush.bf16.msrb.mxu2 %v6848_v27 }
  0x94   :  { %1001 = vmatpush.bf16.msrb.mxu3 %v6785_v23 }
  0x96   :  { %852 = vmatpush.bf16.msrb.mxu1 %v6846_v22  ;;  %865 = vmatpush.bf16.msrb.mxu2 %v6853_v57 }
  0x98   :  { %1002 = vmatpush.bf16.msrb.mxu3 %v6788_v34 }
  0x9a   :  { %853 = vmatpush.bf16.msrb.mxu1 %v6856_v33  ;;  %866 = vmatpush.bf16.msrb.mxu2 %v6861_v38 }
  0x9c   :  { %1003 = vmatpush.bf16.msrb.mxu3 %v6796_v47 }
  0x9d   :  { %730 = vmatmul.bf16.vlgmr.msra.gmra.mxu1 %v8642_v32  ;;  %743 = vmatmul.bf16.vlgmr.msra.gmra.mxu2 %v8642_v32 }
  0x9e   :  { %970 = vmatpush.bf16.msra.mxu1 %v6791_v41  ;;  %983 = vmatpush.bf16.msra.mxu2 %v6793_v42 }
  0xa2   :  { %971 = vmatpush.bf16.msra.mxu1 %v6801_v50  ;;  %984 = vmatpush.bf16.msra.mxu2 %v6803_v54 }
  0xa6   :  { %972 = vmatpush.bf16.msra.mxu1 %v6813_v60  ;;  %985 = vmatpush.bf16.msra.mxu2 %v6816_v0 }
  0xaa   :  { %973 = vmatpush.bf16.msra.mxu1 %v6821_v13  ;;  %986 = vmatpush.bf16.msra.mxu2 %v6824_v5 }
  0xae   :  { %974 = vmatpush.bf16.msra.mxu1 %v6829_v9  ;;  %987 = vmatpush.bf16.msra.mxu2 %v6832_v16 }
  0xb2   :  { %975 = vmatpush.bf16.msra.mxu1 %v6837_v18  ;;  %988 = vmatpush.bf16.msra.mxu2 %v6848_v27 }
  0xb6   :  { %976 = vmatpush.bf16.msra.mxu1 %v6846_v22  ;;  %989 = vmatpush.bf16.msra.mxu2 %v6853_v57 }
  0xba   :  { %v374_v40 = vpop.f32.mrf.mxu1  ;;  %977 = vmatpush.bf16.msra.mxu1 %v6856_v33  ;;  %990 = vmatpush.bf16.msra.mxu2 %v6861_v38 }
  0xbb   :  { %v375_v43 = vadd.f32 %v374_v40, %v6915_v58 }
  0xbc   :  { %v718_v45 = vpop.f32.mrf.mxu0 }
  0xbd   :  { %v761_v48 = vadd.f32 %v718_v45, %v375_v43  ;;  %v6960_v45 = vperm.slane %v171_v14, 2 }
  0xbf   :  { %v5237_v14 = vmul.f32 -1.442695, %v761_v48 }
  0xc0   :  { %v384_v49 = vpop.f32.mrf.mxu2 }
  0xc1   :  { %v6921_v51 = vadd.f32 %v384_v49, %v6915_v58  ;;  %6077 = vpow2.f32 %v5237_v14 }
  0xc2   :  { %v461_v52 = vpop.f32.mrf.mxu3  ;;  %v6923_v55 = vpop.f32.mrf.mxu1 }
  0xc3   :  { %8833 = vst [vmem:[#allocation17_spill] sm:$0xff] %v6921_v51  ;;  %v462_v48 = vadd.f32 %v461_v52, %v6932_v3 }
  0xc4   :  { %v720_v59 = vpop.f32.mrf.mxu0 }
  0xc8   :  { %v6925_v61 = vpop.f32.mrf.mxu2 }
  0xc9   :  { %8834 = vst [vmem:[#allocation18_spill] sm:$0xff] %v6925_v61 }
  0xca   :  { %v6927_v62 = vpop.f32.mrf.mxu3  ;;  %v379_v1 = vpop.f32.mrf.mxu1 }
  0xcb   :  { %v6930_v2 = vadd.f32 %v379_v1, %v6915_v58 }
  0xd0   :  { %v389_v4 = vpop.f32.mrf.mxu2 }
  0xd1   :  { %v6935_v6 = vadd.f32 %v389_v4, %v6915_v58 }
  0xd2   :  { %v466_v7 = vpop.f32.mrf.mxu3  ;;  %v6940_v15 = vpop.f32.mrf.mxu1 }
  0xd3   :  { %8835 = vst [vmem:[#allocation19_spill] sm:$0xff] %v6935_v6  ;;  %v6938_v10 = vadd.f32 %v466_v7, %v6932_v3 }
  0xd4   :  { %8837 = vst [vmem:[#allocation21_spill] sm:$0xff] %v6940_v15 }
  0xd5   :  { %8836 = vst [vmem:[#allocation20_spill] sm:$0xff] %v6938_v10 }
  0xd8   :  { %v6942_v19 = vpop.f32.mrf.mxu2 }
  0xd9   :  { %8838 = vst [vmem:[#allocation22_spill] sm:$0xff] %v6942_v19 }
  0xda   :  { %v6944_v20 = vpop.f32.mrf.mxu3  ;;  %v403_v21 = vpop.f32.mrf.mxu1 }
  0xdb   :  { %8839 = vst [vmem:[#allocation23_spill] sm:$0xff] %v6944_v20 }
  0xe0   :  { %v432_v24 = vpop.f32.mrf.mxu2 }
  0xe1   :  { %v433_v15 = vadd.f32 %v432_v24, %v6960_v45 }
  0xe2   :  { %v471_v25 = vpop.f32.mrf.mxu3  ;;  %v6949_v29 = vpop.f32.mrf.mxu1 }
  0xe3   :  { %v6947_v28 = vadd.f32 %v471_v25, %v6932_v3 }
  0xe5   :  { %8840 = vst [vmem:[#allocation24_spill] sm:$0xff] %v6947_v28 }
  0xe8   :  { %v6951_v30 = vpop.f32.mrf.mxu2 }
  0xea   :  { %v6955_v37 = vpop.f32.mrf.mxu3  ;;  %v408_v40 = vpop.f32.mrf.mxu1 }
  0xeb   :  { %8841 = vst [vmem:[#allocation25_spill] sm:$0xff] %v6955_v37  ;;  %v6958_v43 = vadd.f32 %v408_v40, %v6953_v36 }
  0xf0   :  { %v437_v49 = vpop.f32.mrf.mxu2 }
  0xf1   :  { %v6963_v59 = vadd.f32 %v437_v49, %v6960_v45 }
  0xf2   :  { %v476_v1 = vpop.f32.mrf.mxu3  ;;  %v6968_v7 = vpop.f32.mrf.mxu1 }
  0xf3   :  { %8842 = vst [vmem:[#allocation26_spill] sm:$0xff] %v6963_v59  ;;  %v6966_v4 = vadd.f32 %v476_v1, %v6932_v3  ;;  %v6078_v1 = vpop.eup %6077 }
  0xf4   :  { %8844 = vst [vmem:[#allocation28_spill] sm:$0xff] %v6968_v7  ;;  %v768_v28 = vadd.f32 1.0, %v6078_v1 }
  0xf5   :  { %8843 = vst [vmem:[#allocation27_spill] sm:$0xff] %v6966_v4 }
  0xf6   :  { %6079 = vrcp.f32 %v768_v28  ;;  %v780_v59 = vand.u32 2147483648, %v768_v28  ;;  %vm774_vm1 = vweird.f32 %v768_v28 }
  0xf8   :  { %v6970_v25 = vpop.f32.mrf.mxu2 }
  0xf9   :  { %8845 = vst [vmem:[#allocation29_spill] sm:$0xff] %v6970_v25 }
  0xfa   :  { %v6972_v32 = vpop.f32.mrf.mxu3  ;;  %v413_v19 = vpop.f32.mrf.mxu1 }
  0xfb   :  { %8846 = vst [vmem:[#allocation30_spill] sm:$0xff] %v6972_v32  ;;  %v6975_v40 = vadd.f32 %v413_v19, %v6953_v36 }
  0xfd   :  { %8847 = vst [vmem:[#allocation31_spill] sm:$0xff] %v6975_v40 }
 0x100   :  { %v442_v6 = vpop.f32.mrf.mxu2 }
 0x101   :  { %v6978_v49 = vadd.f32 %v442_v6, %v6960_v45 }
 0x102   :  { %v757_v37 = vpop.f32.mrf.mxu3  ;;  %v6980_v61 = vpop.f32.mrf.mxu1 }
 0x103   :  { %8848 = vst [vmem:[#allocation32_spill] sm:$0xff] %v6978_v49  ;;  %v764_v6 = vadd.f32 %v757_v37, %v462_v48 }
 0x104   :  { %8849 = vst [vmem:[#allocation33_spill] sm:$0xff] %v6980_v61  ;;  %v6080_v61 = vpop.eup %6079 }
 0x105   :  { %v770_v40 = vmul.f32 %v6080_v61, %v768_v28  ;;  %v5239_v20 = vmul.f32 -1.442695, %v764_v6  ;;  %vm775_vm0 = vweird.f32 %v6080_v61 }
 0x106   :  { %vm776_vm2 = vmor %vm774_vm1, %vm775_vm0 }
 0x107   :  { %v771_v1 = vsub.f32 1.0, %v770_v40  ;;  %6081 = vpow2.f32 %v5239_v20 }
 0x108   :  { %v6982_v4 = vpop.f32.mrf.mxu2 }
 0x109   :  { %8850 = vst [vmem:[#allocation34_spill] sm:$0xff] %v6982_v4  ;;  %v772_v52 = vmul.f32 %v6080_v61, %v771_v1 }
 0x10a   :  { %v759_v51 = vpop.f32.mrf.mxu3  ;;  %v418_v25 = vpop.f32.mrf.mxu1 }
 0x10b   :  { %v6985_v32 = vadd.f32 %v418_v25, %v6953_v36  ;;  %v404_v51 = vadd.f32 %v403_v21, %v6953_v36  ;;  %v778_v21 = vand.u32 2147483647, %v768_v28 }
 0x10d   :  { %8851 = vst [vmem:[#allocation35_spill] sm:$0xff] %v6985_v32  ;;  %vm779_vm3 = vcmp.eq.f32.partialorder %v778_v21, 8.507059e+37 }
 0x110   :  { %v447_v19 = vpop.f32.mrf.mxu2 }
 0x111   :  { %v6989_v14 = vadd.f32 %v447_v19, %v6960_v45  ;;  %v6082_v19 = vpop.eup %6081 }
 0x112   :  { %v6991_v49 = vpop.f32.mrf.mxu1  ;;  %v807_v6 = vadd.f32 1.0, %v6082_v19 }
 0x113   :  { %8852 = vst [vmem:[#allocation36_spill] sm:$0xff] %v6989_v14 }
 0x114   :  { %8853 = vst [vmem:[#allocation37_spill] sm:$0xff] %v6991_v49  ;;  %v773_v49 = vadd.f32 %v6080_v61, %v772_v52  ;;  %vm813_vm9 = vweird.f32 %v807_v6 }
 0x118   :  { %v6993_v4 = vpop.f32.mrf.mxu2 }
 0x119   :  { %8854 = vst [vmem:[#allocation38_spill] sm:$0xff] %v6993_v4 }
 0x11a   :  { %v731_v25 = vpop.f32.mrf.mxu1 }
 0x11b   :  { %v762_v32 = vadd.f32 %v731_v25, %v404_v51  ;;  %v777_v51 = vsel %vm776_vm2, %v6080_v61, %v773_v49 }
 0x11d   :  { %v5238_v7 = vmul.f32 -1.442695, %v762_v32  ;;  %v781_v32 = vor.u32 1.1754944e-38, %v780_v59 }
 0x11f   :  { %6083 = vpow2.f32 %v5238_v7  ;;  %v782_v1 = vsel %vm779_vm3, %v781_v32, %v777_v51 }
 0x120   :  { %v744_v37 = vpop.f32.mrf.mxu2 }
 0x121   :  { %v763_v48 = vadd.f32 %v744_v37, %v433_v15 }
 0x122   :  { %v733_v14 = vpop.f32.mrf.mxu1 }
 0x123   :  { %6085 = vtanh.f32 %v763_v48 }
 0x124   :  { %6087 = vrcp.f32 %v807_v6 }
 0x125   :  { %v6084_v40 = vpop.eup %6083 }
 0x126   :  { %v787_v20 = vadd.f32 1.0, %v6084_v40 }
 0x128   :  { %6089 = vrcp.f32 %v787_v20  ;;  %v746_v24 = vpop.f32.mrf.mxu2  ;;  %v799_v48 = vand.u32 2147483648, %v787_v20  ;;  %v797_v28 = vand.u32 2147483647, %v787_v20  ;;  %vm793_vm5 = vweird.f32 %v787_v20 }
 0x129   :  { %v6086_v7 = vpop.eup %6085 }
 0x12a   :  { %v824_v15 = vmul.f32 %v6086_v7, %v782_v1  ;;  %v6088_v25 = vpop.eup %6087  ;;  %v800_v49 = vor.u32 1.1754944e-38, %v799_v48  ;;  %vm798_vm7 = vcmp.eq.f32.partialorder %v797_v28, 8.507059e+37  ;;  %v819_v7 = vand.u32 2147483648, %v807_v6 }
 0x12b   :  { %v809_v19 = vmul.f32 %v6088_v25, %v807_v6  ;;  %vm814_vm8 = vweird.f32 %v6088_v25  ;;  %v817_v1 = vand.u32 2147483647, %v807_v6  ;;  %v406_v6 = vadd.f32 %v6949_v29, %v6953_v36 }
 0x12c   :  { %vm815_vm10 = vmor %vm813_vm9, %vm814_vm8 }
 0x12d   :  { %v810_v10 = vsub.f32 1.0, %v809_v19  ;;  %vm818_vm11 = vcmp.eq.f32.partialorder %v817_v1, 8.507059e+37 }
 0x12e   :  { %v6090_v52 = vpop.eup %6089 }
 0x12f   :  { %v789_v14 = vmul.f32 %v6090_v52, %v787_v20  ;;  %vm794_vm4 = vweird.f32 %v6090_v52  ;;  %v811_v40 = vmul.f32 %v6088_v25, %v810_v10  ;;  %v820_v20 = vor.u32 1.1754944e-38, %v819_v7 }
 0x130   :  { %vm795_vm6 = vmor %vm793_vm5, %vm794_vm4  ;;  %v377_v10 = vadd.f32 %v6923_v55, %v6915_v58 }
 0x131   :  { %v790_v37 = vsub.f32 1.0, %v789_v14  ;;  %v812_v24 = vadd.f32 %v6088_v25, %v811_v40 }
 0x133   :  { %v791_v4 = vmul.f32 %v6090_v52, %v790_v37  ;;  %v816_v14 = vsel %vm815_vm10, %v6088_v25, %v812_v24 }
 0x134   :  { %v821_v19 = vsel %vm818_vm11, %v820_v20, %v816_v14 }
 0x135   :  { %v792_v61 = vadd.f32 %v6090_v52, %v791_v4 }
 0x137   :  { %v796_v59 = vsel %vm795_vm6, %v6090_v52, %v792_v61 }
 0x138   :  { %v801_v21 = vsel %vm798_vm7, %v800_v49, %v796_v59  ;;  %v464_v59 = vadd.f32 %v6927_v62, %v6932_v3  ;;  %v435_v62 = vadd.f32 %v6951_v30, %v6960_v45 }
 0x139   :  { %v823_v51 = vmul.f32 0.0, %v801_v21 }
 0x13b   :  { %v6997_v32 = vadd.f32 %v824_v15, %v823_v51 }
 0x13d   :  { %6091 = vtanh.f32 %v6997_v32 }
 0x143   :  { %v6092_v4 = vpop.eup %6091 }
 0x144   :  { %v827_v52 = vmul.f32 %v6092_v4, %v821_v19 }
 0x146   :  { %v832_v37 = vpack.c.bf16 %v827_v52, %v827_v52 }
 0x148   :  { %841 = vmatmul.bf16.vlgmr.msrb.gmra.mxu0 %v832_v37  ;;  %854 = vmatmul.bf16.vlgmr.msrb.gmra.mxu1 %v832_v37 }
 0x149   :  { %867 = vmatmul.bf16.vlgmr.msrb.gmra.mxu2 %v832_v37  ;;  %880 = vmatmul.bf16.vlgmr.msra.gmra.mxu3 %v832_v37 }
 0x14a   :  { %1081 = vmatpush.bf16.msrb.mxu0 %v6714_v8  ;;  %1094 = vmatpush.bf16.msrb.mxu1 %v6791_v41 }
 0x14b   :  { %1107 = vmatpush.bf16.msrb.mxu2 %v6793_v42  ;;  %1120 = vmatpush.bf16.msra.mxu3 %v6750_v31 }
 0x14e   :  { %1082 = vmatpush.bf16.msrb.mxu0 %v6717_v17  ;;  %1095 = vmatpush.bf16.msrb.mxu1 %v6801_v50 }
 0x14f   :  { %1108 = vmatpush.bf16.msrb.mxu2 %v6803_v54  ;;  %1121 = vmatpush.bf16.msra.mxu3 %v6756_v39 }
 0x152   :  { %1083 = vmatpush.bf16.msrb.mxu0 %v6720_v26  ;;  %1096 = vmatpush.bf16.msrb.mxu1 %v6813_v60 }
 0x153   :  { %1109 = vmatpush.bf16.msrb.mxu2 %v6816_v0  ;;  %1122 = vmatpush.bf16.msra.mxu3 %v6759_v46 }
 0x156   :  { %1084 = vmatpush.bf16.msrb.mxu0 %v6723_v35  ;;  %1097 = vmatpush.bf16.msrb.mxu1 %v6821_v13 }
 0x157   :  { %1110 = vmatpush.bf16.msrb.mxu2 %v6824_v5  ;;  %1123 = vmatpush.bf16.msra.mxu3 %v6763_v56 }
 0x15a   :  { %1085 = vmatpush.bf16.msrb.mxu0 %v6726_v44  ;;  %1098 = vmatpush.bf16.msrb.mxu1 %v6829_v9 }
 0x15b   :  { %1111 = vmatpush.bf16.msrb.mxu2 %v6832_v16  ;;  %1124 = vmatpush.bf16.msra.mxu3 %v6780_v11 }
 0x15e   :  { %1086 = vmatpush.bf16.msrb.mxu0 %v6729_v53  ;;  %1099 = vmatpush.bf16.msrb.mxu1 %v6837_v18 }
 0x15f   :  { %1112 = vmatpush.bf16.msrb.mxu2 %v6848_v27  ;;  %1125 = vmatpush.bf16.msra.mxu3 %v6785_v23 }
 0x162   :  { %1087 = vmatpush.bf16.msrb.mxu0 %v6732_v63  ;;  %1100 = vmatpush.bf16.msrb.mxu1 %v6846_v22 }
 0x163   :  { %1113 = vmatpush.bf16.msrb.mxu2 %v6853_v57  ;;  %1126 = vmatpush.bf16.msra.mxu3 %v6788_v34 }
 0x166   :  { %1088 = vmatpush.bf16.msrb.mxu0 %v6735_v12  ;;  %1101 = vmatpush.bf16.msrb.mxu1 %v6856_v33 }
 0x167   :  { %1114 = vmatpush.bf16.msrb.mxu2 %v6861_v38  ;;  %1127 = vmatpush.bf16.msra.mxu3 %v6796_v47 }
 0x1c5   :  { %v842_v15 = vpop.f32.mrf.mxu0  ;;  %v855_v25 = vpop.f32.mrf.mxu1 }
 0x1c6   :  { %v885_v48 = vadd.f32 %v842_v15, %v377_v10  ;;  %v886_v28 = vadd.f32 %v855_v25, %v406_v6 }
 0x1c8   :  { %v5240_v61 = vmul.f32 -1.442695, %v885_v48  ;;  %v5241_v49 = vmul.f32 -1.442695, %v886_v28 }
 0x1ca   :  { %6093 = vpow2.f32 %v5240_v61 }
 0x1cb   :  { %6095 = vpow2.f32 %v5241_v49 }
 0x1cc   :  { %v868_v21 = vpop.f32.mrf.mxu2  ;;  %v881_v40 = vpop.f32.mrf.mxu3 }
 0x1cd   :  { %v888_v51 = vadd.f32 %v881_v40, %v464_v59  ;;  %v844_v24 = vpop.f32.mrf.mxu0  ;;  %v857_v7 = vpop.f32.mrf.mxu1  ;;  %v887_v6 = vadd.f32 %v868_v21, %v435_v62 }
 0x1cf   :  { %v5242_v55 = vmul.f32 -1.442695, %v888_v51 }
 0x1d0   :  { %v6094_v1 = vpop.eup %6093 }
 0x1d1   :  { %v6096_v14 = vpop.eup %6095  ;;  %v892_v29 = vadd.f32 1.0, %v6094_v1  ;;  %6097 = vpow2.f32 %v5242_v55 }
 0x1d2   :  { %v911_v20 = vadd.f32 1.0, %v6096_v14 }
 0x1d3   :  { %6099 = vrcp.f32 %v892_v29  ;;  %v904_v49 = vand.u32 2147483648, %v892_v29  ;;  %v902_v51 = vand.u32 2147483647, %v892_v29  ;;  %vm898_vm14 = vweird.f32 %v892_v29 }
 0x1d4   :  { %6101 = vrcp.f32 %v911_v20  ;;  %v870_v4 = vpop.f32.mrf.mxu2  ;;  %v883_v19 = vpop.f32.mrf.mxu3  ;;  %v923_v59 = vand.u32 2147483648, %v911_v20  ;;  %v921_v7 = vand.u32 2147483647, %v911_v20  ;;  %vm917_vm15 = vweird.f32 %v911_v20 }
 0x1d5   :  { %v905_v21 = vor.u32 1.1754944e-38, %v904_v49  ;;  %vm903_vm2 = vcmp.eq.f32.partialorder %v902_v51, 8.507059e+37 }
 0x1d6   :  { %v924_v4 = vor.u32 1.1754944e-38, %v923_v59  ;;  %vm922_vm3 = vcmp.eq.f32.partialorder %v921_v7, 8.507059e+37 }
 0x1d7   :  { %v6098_v52 = vpop.eup %6097 }
 0x1d8   :  { %v931_v37 = vadd.f32 1.0, %v6098_v52 }
 0x1d9   :  { %v6100_v10 = vpop.eup %6099 }
 0x1da   :  { %v6102_v15 = vpop.eup %6101  ;;  %v894_v25 = vmul.f32 %v6100_v10, %v892_v29  ;;  %6103 = vrcp.f32 %v931_v37  ;;  %vm899_vm12 = vweird.f32 %v6100_v10  ;;  %v943_v49 = vand.u32 2147483648, %v931_v37 }
 0x1db   :  { %v913_v48 = vmul.f32 %v6102_v15, %v911_v20  ;;  %6105 = vtanh.f32 %v887_v6  ;;  %vm918_vm13 = vweird.f32 %v6102_v15  ;;  %vm900_vm0 = vmor %vm898_vm14, %vm899_vm12  ;;  %vm937_vm5 = vweird.f32 %v931_v37 }
 0x1dc   :  { %v895_v28 = vsub.f32 1.0, %v894_v25  ;;  %vm919_vm1 = vmor %vm917_vm15, %vm918_vm13  ;;  %v944_v51 = vor.u32 1.1754944e-38, %v943_v49 }
 0x1dd   :  { %v914_v61 = vsub.f32 1.0, %v913_v48 }
 0x1de   :  { %v896_v40 = vmul.f32 %v6100_v10, %v895_v28 }
 0x1df   :  { %v915_v24 = vmul.f32 %v6102_v15, %v914_v61 }
 0x1e0   :  { %v6104_v55 = vpop.eup %6103  ;;  %v897_v30 = vadd.f32 %v6100_v10, %v896_v40 }
 0x1e1   :  { %v916_v1 = vadd.f32 %v6102_v15, %v915_v24  ;;  %v933_v14 = vmul.f32 %v6104_v55, %v931_v37  ;;  %v6106_v52 = vpop.eup %6105  ;;  %vm938_vm4 = vweird.f32 %v6104_v55 }
 0x1e2   :  { %v901_v19 = vsel %vm900_vm0, %v6100_v10, %v897_v30  ;;  %v941_v10 = vand.u32 2147483647, %v931_v37  ;;  %vm939_vm6 = vmor %vm937_vm5, %vm938_vm4 }
 0x1e3   :  { %v906_v62 = vsel %vm903_vm2, %v905_v21, %v901_v19  ;;  %v920_v6 = vsel %vm919_vm1, %v6102_v15, %v916_v1  ;;  %v934_v25 = vsub.f32 1.0, %v933_v14 }
 0x1e4   :  { %v925_v48 = vsel %vm922_vm3, %v924_v4, %v920_v6  ;;  %v948_v28 = vmul.f32 %v6106_v52, %v906_v62  ;;  %vm942_vm7 = vcmp.eq.f32.partialorder %v941_v10, 8.507059e+37  ;;  %v8855_v52 = vld [vmem:[#allocation20_spill] sm:$0xff] }
 0x1e5   :  { %v947_v61 = vmul.f32 %v925_v48, %v6997_v32  ;;  %v935_v40 = vmul.f32 %v6104_v55, %v934_v25 }
 0x1e7   :  { %v7041_v29 = vadd.f32 %v948_v28, %v947_v61  ;;  %v936_v20 = vadd.f32 %v6104_v55, %v935_v40 }
 0x1e9   :  { %6107 = vtanh.f32 %v7041_v29  ;;  %v940_v59 = vsel %vm939_vm6, %v6104_v55, %v936_v20 }
 0x1ea   :  { %v945_v24 = vsel %vm942_vm7, %v944_v51, %v940_v59  ;;  %v8856_v51 = vld [vmem:[#allocation26_spill] sm:$0xff] }
 0x1ef   :  { %v6108_v15 = vpop.eup %6107 }
 0x1f0   :  { %v951_v7 = vmul.f32 %v6108_v15, %v945_v24 }
 0x1f2   :  { %v956_v30 = vpack.c.bf16 %v951_v7, %v951_v7 }
 0x1f4   :  { %965 = vmatmul.bf16.vlgmr.msra.gmra.mxu0 %v956_v30  ;;  %978 = vmatmul.bf16.vlgmr.msra.gmra.mxu1 %v956_v30 }
 0x1f5   :  { %991 = vmatmul.bf16.vlgmr.msra.gmra.mxu2 %v956_v30  ;;  %1004 = vmatmul.bf16.vlgmr.msrb.gmra.mxu3 %v956_v30 }
 0x1f6   :  { %1205 = vmatpush.bf16.msra.mxu0 %v6714_v8  ;;  %1218 = vmatpush.bf16.msra.mxu1 %v6791_v41 }
 0x1f7   :  { %1231 = vmatpush.bf16.msra.mxu2 %v6793_v42  ;;  %1244 = vmatpush.bf16.msrb.mxu3 %v6750_v31 }
 0x1fa   :  { %1206 = vmatpush.bf16.msra.mxu0 %v6717_v17  ;;  %1219 = vmatpush.bf16.msra.mxu1 %v6801_v50 }
 0x1fb   :  { %1232 = vmatpush.bf16.msra.mxu2 %v6803_v54  ;;  %1245 = vmatpush.bf16.msrb.mxu3 %v6756_v39 }
 0x1fe   :  { %1207 = vmatpush.bf16.msra.mxu0 %v6720_v26  ;;  %1220 = vmatpush.bf16.msra.mxu1 %v6813_v60 }
 0x1ff   :  { %1233 = vmatpush.bf16.msra.mxu2 %v6816_v0  ;;  %1246 = vmatpush.bf16.msrb.mxu3 %v6759_v46 }
 0x202   :  { %1208 = vmatpush.bf16.msra.mxu0 %v6723_v35  ;;  %1221 = vmatpush.bf16.msra.mxu1 %v6821_v13 }
 0x203   :  { %1234 = vmatpush.bf16.msra.mxu2 %v6824_v5  ;;  %1247 = vmatpush.bf16.msrb.mxu3 %v6763_v56 }
 0x206   :  { %1209 = vmatpush.bf16.msra.mxu0 %v6726_v44  ;;  %1222 = vmatpush.bf16.msra.mxu1 %v6829_v9 }
 0x207   :  { %1235 = vmatpush.bf16.msra.mxu2 %v6832_v16  ;;  %1248 = vmatpush.bf16.msrb.mxu3 %v6780_v11 }
 0x20a   :  { %1210 = vmatpush.bf16.msra.mxu0 %v6729_v53  ;;  %1223 = vmatpush.bf16.msra.mxu1 %v6837_v18 }
 0x20b   :  { %1236 = vmatpush.bf16.msra.mxu2 %v6848_v27  ;;  %1249 = vmatpush.bf16.msrb.mxu3 %v6785_v23 }
 0x20e   :  { %1211 = vmatpush.bf16.msra.mxu0 %v6732_v63  ;;  %1224 = vmatpush.bf16.msra.mxu1 %v6846_v22 }
 0x20f   :  { %1237 = vmatpush.bf16.msra.mxu2 %v6853_v57  ;;  %1250 = vmatpush.bf16.msrb.mxu3 %v6788_v34 }
 0x212   :  { %1212 = vmatpush.bf16.msra.mxu0 %v6735_v12  ;;  %1225 = vmatpush.bf16.msra.mxu1 %v6856_v33 }
 0x213   :  { %1238 = vmatpush.bf16.msra.mxu2 %v6861_v38  ;;  %1251 = vmatpush.bf16.msrb.mxu3 %v6796_v47 }
 0x271   :  { %v966_v32 = vpop.f32.mrf.mxu0  ;;  %v979_v37 = vpop.f32.mrf.mxu1 }
 0x272   :  { %v1009_v55 = vadd.f32 %v966_v32, %v6930_v2  ;;  %v1010_v21 = vadd.f32 %v979_v37, %v6958_v43 }
 0x274   :  { %v5243_v1 = vmul.f32 -1.442695, %v1009_v55  ;;  %v5244_v14 = vmul.f32 -1.442695, %v1010_v21 }
 0x276   :  { %6109 = vpow2.f32 %v5243_v1 }
 0x277   :  { %6111 = vpow2.f32 %v5244_v14 }
 0x278   :  { %v992_v4 = vpop.f32.mrf.mxu2  ;;  %v1005_v19 = vpop.f32.mrf.mxu3 }
 0x279   :  { %v1012_v62 = vadd.f32 %v1005_v19, %v8855_v52  ;;  %v968_v6 = vpop.f32.mrf.mxu0  ;;  %v981_v25 = vpop.f32.mrf.mxu1  ;;  %v1011_v15 = vadd.f32 %v992_v4, %v8856_v51 }
 0x27b   :  { %v5245_v48 = vmul.f32 -1.442695, %v1012_v62 }
 0x27c   :  { %v6110_v28 = vpop.eup %6109 }
 0x27d   :  { %v6112_v61 = vpop.eup %6111  ;;  %v1016_v40 = vadd.f32 1.0, %v6110_v28  ;;  %6113 = vpow2.f32 %v5245_v48 }
 0x27e   :  { %v1035_v20 = vadd.f32 1.0, %v6112_v61 }
 0x27f   :  { %6115 = vrcp.f32 %v1016_v40  ;;  %v1028_v55 = vand.u32 2147483648, %v1016_v40  ;;  %v1026_v14 = vand.u32 2147483647, %v1016_v40  ;;  %vm1022_vm10 = vweird.f32 %v1016_v40 }
 0x280   :  { %6117 = vrcp.f32 %v1035_v20  ;;  %v994_v2 = vpop.f32.mrf.mxu2  ;;  %v1007_v43 = vpop.f32.mrf.mxu3  ;;  %v1047_v21 = vand.u32 2147483648, %v1035_v20  ;;  %v1045_v52 = vand.u32 2147483647, %v1035_v20  ;;  %vm1041_vm11 = vweird.f32 %v1035_v20 }
 0x281   :  { %v1029_v4 = vor.u32 1.1754944e-38, %v1028_v55  ;;  %vm1027_vm14 = vcmp.eq.f32.partialorder %v1026_v14, 8.507059e+37 }
 0x282   :  { %v1048_v28 = vor.u32 1.1754944e-38, %v1047_v21  ;;  %vm1046_vm15 = vcmp.eq.f32.partialorder %v1045_v52, 8.507059e+37  ;;  %v8858_v52 = vld [vmem:[#allocation28_spill] sm:$0xff] }
 0x283   :  { %v6114_v49 = vpop.eup %6113 }
 0x284   :  { %v1055_v10 = vadd.f32 1.0, %v6114_v49 }
 0x285   :  { %v6116_v59 = vpop.eup %6115 }
 0x286   :  { %v6118_v24 = vpop.eup %6117  ;;  %v1018_v7 = vmul.f32 %v6116_v59, %v1016_v40  ;;  %6119 = vrcp.f32 %v1055_v10  ;;  %vm1023_vm8 = vweird.f32 %v6116_v59  ;;  %vm1061_vm1 = vweird.f32 %v1055_v10 }
 0x287   :  { %v1037_v30 = vmul.f32 %v6118_v24, %v1035_v20  ;;  %6121 = vtanh.f32 %v1011_v15  ;;  %vm1042_vm9 = vweird.f32 %v6118_v24  ;;  %vm1024_vm12 = vmor %vm1022_vm10, %vm1023_vm8 }
 0x288   :  { %v1019_v32 = vsub.f32 1.0, %v1018_v7  ;;  %vm1043_vm13 = vmor %vm1041_vm11, %vm1042_vm9 }
 0x289   :  { %v1038_v37 = vsub.f32 1.0, %v1037_v30 }
 0x28a   :  { %v1020_v1 = vmul.f32 %v6116_v59, %v1019_v32 }
 0x28b   :  { %v1039_v19 = vmul.f32 %v6118_v24, %v1038_v37  ;;  %v1067_v37 = vand.u32 2147483648, %v1055_v10 }
 0x28c   :  { %v6120_v62 = vpop.eup %6119  ;;  %v1021_v6 = vadd.f32 %v6116_v59, %v1020_v1 }
 0x28d   :  { %v1040_v25 = vadd.f32 %v6118_v24, %v1039_v19  ;;  %v1057_v48 = vmul.f32 %v6120_v62, %v1055_v10  ;;  %v6122_v2 = vpop.eup %6121  ;;  %vm1062_vm0 = vweird.f32 %v6120_v62  ;;  %v1068_v21 = vor.u32 1.1754944e-38, %v1067_v37 }
 0x28e   :  { %v1025_v61 = vsel %vm1024_vm12, %v6116_v59, %v1021_v6  ;;  %v1065_v59 = vand.u32 2147483647, %v1055_v10  ;;  %vm1063_vm2 = vmor %vm1061_vm1, %vm1062_vm0 }
 0x28f   :  { %v1030_v43 = vsel %vm1027_vm14, %v1029_v4, %v1025_v61  ;;  %v1044_v49 = vsel %vm1043_vm13, %v6118_v24, %v1040_v25  ;;  %v1058_v51 = vsub.f32 1.0, %v1057_v48 }
 0x290   :  { %v1049_v15 = vsel %vm1046_vm15, %v1048_v28, %v1044_v49  ;;  %v1072_v7 = vmul.f32 %v6122_v2, %v1030_v43  ;;  %vm1066_vm3 = vcmp.eq.f32.partialorder %v1065_v59, 8.507059e+37  ;;  %v8859_v2 = vld [vmem:[#allocation23_spill] sm:$0xff] }
 0x291   :  { %v1071_v30 = vmul.f32 %v1049_v15, %v7041_v29  ;;  %v1059_v32 = vmul.f32 %v6120_v62, %v1058_v51  ;;  %v8857_v29 = vld [vmem:[#allocation21_spill] sm:$0xff]  ;;  %v469_v43 = vadd.f32 %v8859_v2, %v6932_v3 }
 0x292   :  { %v382_v10 = vadd.f32 %v8857_v29, %v6915_v58 }
 0x293   :  { %v7081_v40 = vadd.f32 %v1072_v7, %v1071_v30  ;;  %v1060_v20 = vadd.f32 %v6120_v62, %v1059_v32 }
 0x295   :  { %6123 = vtanh.f32 %v7081_v40  ;;  %v1064_v55 = vsel %vm1063_vm2, %v6120_v62, %v1060_v20  ;;  %v411_v62 = vadd.f32 %v8858_v52, %v6953_v36 }
 0x296   :  { %v1069_v1 = vsel %vm1066_vm3, %v1068_v21, %v1064_v55 }
 0x29b   :  { %v6124_v24 = vpop.eup %6123 }
 0x29c   :  { %v1075_v14 = vmul.f32 %v6124_v24, %v1069_v1 }
 0x29e   :  { %v1080_v19 = vpack.c.bf16 %v1075_v14, %v1075_v14  ;;  %v8860_v14 = vld [vmem:[#allocation29_spill] sm:$0xff] }
 0x2a0   :  { %1089 = vmatmul.bf16.vlgmr.msrb.gmra.mxu0 %v1080_v19  ;;  %1102 = vmatmul.bf16.vlgmr.msrb.gmra.mxu1 %v1080_v19 }
 0x2a1   :  { %1115 = vmatmul.bf16.vlgmr.msrb.gmra.mxu2 %v1080_v19  ;;  %1128 = vmatmul.bf16.vlgmr.msra.gmra.mxu3 %v1080_v19  ;;  %v440_v19 = vadd.f32 %v8860_v14, %v6960_v45 }
 0x2a2   :  { %1329 = vmatpush.bf16.msrb.mxu0 %v6714_v8  ;;  %1342 = vmatpush.bf16.msrb.mxu1 %v6791_v41 }
 0x2a3   :  { %1355 = vmatpush.bf16.msrb.mxu2 %v6793_v42  ;;  %1368 = vmatpush.bf16.msra.mxu3 %v6750_v31 }
 0x2a6   :  { %1330 = vmatpush.bf16.msrb.mxu0 %v6717_v17  ;;  %1343 = vmatpush.bf16.msrb.mxu1 %v6801_v50 }
 0x2a7   :  { %1356 = vmatpush.bf16.msrb.mxu2 %v6803_v54  ;;  %1369 = vmatpush.bf16.msra.mxu3 %v6756_v39 }
 0x2aa   :  { %1331 = vmatpush.bf16.msrb.mxu0 %v6720_v26  ;;  %1344 = vmatpush.bf16.msrb.mxu1 %v6813_v60 }
 0x2ab   :  { %1357 = vmatpush.bf16.msrb.mxu2 %v6816_v0  ;;  %1370 = vmatpush.bf16.msra.mxu3 %v6759_v46 }
 0x2ae   :  { %1332 = vmatpush.bf16.msrb.mxu0 %v6723_v35  ;;  %1345 = vmatpush.bf16.msrb.mxu1 %v6821_v13 }
 0x2af   :  { %1358 = vmatpush.bf16.msrb.mxu2 %v6824_v5  ;;  %1371 = vmatpush.bf16.msra.mxu3 %v6763_v56 }
 0x2b2   :  { %1333 = vmatpush.bf16.msrb.mxu0 %v6726_v44  ;;  %1346 = vmatpush.bf16.msrb.mxu1 %v6829_v9 }
 0x2b3   :  { %1359 = vmatpush.bf16.msrb.mxu2 %v6832_v16  ;;  %1372 = vmatpush.bf16.msra.mxu3 %v6780_v11 }
 0x2b6   :  { %1334 = vmatpush.bf16.msrb.mxu0 %v6729_v53  ;;  %1347 = vmatpush.bf16.msrb.mxu1 %v6837_v18 }
 0x2b7   :  { %1360 = vmatpush.bf16.msrb.mxu2 %v6848_v27  ;;  %1373 = vmatpush.bf16.msra.mxu3 %v6785_v23 }
 0x2ba   :  { %1335 = vmatpush.bf16.msrb.mxu0 %v6732_v63  ;;  %1348 = vmatpush.bf16.msrb.mxu1 %v6846_v22 }
 0x2bb   :  { %1361 = vmatpush.bf16.msrb.mxu2 %v6853_v57  ;;  %1374 = vmatpush.bf16.msra.mxu3 %v6788_v34 }
 0x2be   :  { %1336 = vmatpush.bf16.msrb.mxu0 %v6735_v12  ;;  %1349 = vmatpush.bf16.msrb.mxu1 %v6856_v33 }
 0x2bf   :  { %1362 = vmatpush.bf16.msrb.mxu2 %v6861_v38  ;;  %1375 = vmatpush.bf16.msra.mxu3 %v6796_v47 }
 0x31d   :  { %v1090_v6 = vpop.f32.mrf.mxu0  ;;  %v1103_v4 = vpop.f32.mrf.mxu1 }
 0x31e   :  { %v1133_v25 = vadd.f32 %v1090_v6, %v382_v10  ;;  %v1134_v48 = vadd.f32 %v1103_v4, %v411_v62 }
 0x320   :  { %v5246_v28 = vmul.f32 -1.442695, %v1133_v25  ;;  %v5247_v61 = vmul.f32 -1.442695, %v1134_v48 }
 0x322   :  { %6125 = vpow2.f32 %v5246_v28 }
 0x323   :  { %6127 = vpow2.f32 %v5247_v61 }
 0x324   :  { %v1116_v49 = vpop.f32.mrf.mxu2  ;;  %v1129_v51 = vpop.f32.mrf.mxu3 }
 0x325   :  { %v1136_v15 = vadd.f32 %v1129_v51, %v469_v43  ;;  %v1092_v7 = vpop.f32.mrf.mxu0  ;;  %v1105_v30 = vpop.f32.mrf.mxu1  ;;  %v1135_v52 = vadd.f32 %v1116_v49, %v440_v19 }
 0x327   :  { %v5248_v32 = vmul.f32 -1.442695, %v1136_v15 }
 0x328   :  { %v6126_v20 = vpop.eup %6125 }
 0x329   :  { %v6128_v37 = vpop.eup %6127  ;;  %v1140_v59 = vadd.f32 1.0, %v6126_v20  ;;  %6129 = vpow2.f32 %v5248_v32 }
 0x32a   :  { %v1159_v55 = vadd.f32 1.0, %v6128_v37 }
 0x32b   :  { %6131 = vrcp.f32 %v1140_v59  ;;  %v1152_v28 = vand.u32 2147483648, %v1140_v59  ;;  %v1150_v43 = vand.u32 2147483647, %v1140_v59  ;;  %vm1146_vm6 = vweird.f32 %v1140_v59 }
 0x32c   :  { %6133 = vrcp.f32 %v1159_v55  ;;  %v1118_v21 = vpop.f32.mrf.mxu2  ;;  %v1131_v24 = vpop.f32.mrf.mxu3  ;;  %v1171_v61 = vand.u32 2147483648, %v1159_v55  ;;  %v1169_v15 = vand.u32 2147483647, %v1159_v55  ;;  %vm1165_vm7 = vweird.f32 %v1159_v55 }
 0x32d   :  { %v1153_v49 = vor.u32 1.1754944e-38, %v1152_v28  ;;  %vm1151_vm10 = vcmp.eq.f32.partialorder %v1150_v43, 8.507059e+37 }
 0x32e   :  { %v1172_v37 = vor.u32 1.1754944e-38, %v1171_v61  ;;  %vm1170_vm11 = vcmp.eq.f32.partialorder %v1169_v15, 8.507059e+37  ;;  %v8861_v15 = vld [vmem:[#allocation17_spill] sm:$0xff] }
 0x32f   :  { %v6130_v1 = vpop.eup %6129 }
 0x330   :  { %v1179_v29 = vadd.f32 1.0, %v6130_v1 }
 0x331   :  { %v6132_v10 = vpop.eup %6131 }
 0x332   :  { %v6134_v62 = vpop.eup %6133  ;;  %v1142_v6 = vmul.f32 %v6132_v10, %v1140_v59  ;;  %6135 = vrcp.f32 %v1179_v29  ;;  %vm1147_vm4 = vweird.f32 %v6132_v10  ;;  %vm1185_vm13 = vweird.f32 %v1179_v29 }
 0x333   :  { %v1161_v4 = vmul.f32 %v6134_v62, %v1159_v55  ;;  %6137 = vtanh.f32 %v1135_v52  ;;  %vm1166_vm5 = vweird.f32 %v6134_v62  ;;  %vm1148_vm8 = vmor %vm1146_vm6, %vm1147_vm4 }
 0x334   :  { %v1143_v25 = vsub.f32 1.0, %v1142_v6  ;;  %vm1167_vm9 = vmor %vm1165_vm7, %vm1166_vm5 }
 0x335   :  { %v1162_v48 = vsub.f32 1.0, %v1161_v4 }
 0x336   :  { %v1144_v2 = vmul.f32 %v6132_v10, %v1143_v25 }
 0x337   :  { %v1163_v51 = vmul.f32 %v6134_v62, %v1162_v48  ;;  %v1191_v48 = vand.u32 2147483648, %v1179_v29 }
 0x338   :  { %v6136_v7 = vpop.eup %6135  ;;  %v1145_v30 = vadd.f32 %v6132_v10, %v1144_v2 }
 0x339   :  { %v1164_v32 = vadd.f32 %v6134_v62, %v1163_v51  ;;  %v1181_v20 = vmul.f32 %v6136_v7, %v1179_v29  ;;  %v6138_v24 = vpop.eup %6137  ;;  %vm1186_vm12 = vweird.f32 %v6136_v7  ;;  %v1192_v61 = vor.u32 1.1754944e-38, %v1191_v48 }
 0x33a   :  { %v1149_v21 = vsel %vm1148_vm8, %v6132_v10, %v1145_v30  ;;  %v1189_v10 = vand.u32 2147483647, %v1179_v29  ;;  %vm1187_vm14 = vmor %vm1185_vm13, %vm1186_vm12  ;;  %v8862_v30 = vld [vmem:[#allocation31_spill] sm:$0xff] }
 0x33b   :  { %v1154_v1 = vsel %vm1151_vm10, %v1153_v49, %v1149_v21  ;;  %v1168_v14 = vsel %vm1167_vm9, %v6134_v62, %v1164_v32  ;;  %v1182_v19 = vsub.f32 1.0, %v1181_v20 }
 0x33c   :  { %v1173_v52 = vsel %vm1170_vm11, %v1172_v37, %v1168_v14  ;;  %v1196_v6 = vmul.f32 %v6138_v24, %v1154_v1  ;;  %vm1190_vm15 = vcmp.eq.f32.partialorder %v1189_v10, 8.507059e+37  ;;  %v8863_v24 = vld [vmem:[#allocation24_spill] sm:$0xff] }
 0x33d   :  { %v1195_v4 = vmul.f32 %v1173_v52, %v7081_v40  ;;  %v1183_v25 = vmul.f32 %v6136_v7, %v1182_v19 }
 0x33f   :  { %v7125_v59 = vadd.f32 %v1196_v6, %v1195_v4  ;;  %v1184_v55 = vadd.f32 %v6136_v7, %v1183_v25 }
 0x341   :  { %6139 = vtanh.f32 %v7125_v59  ;;  %v1188_v28 = vsel %vm1187_vm14, %v6136_v7, %v1184_v55 }
 0x342   :  { %v1193_v2 = vsel %vm1190_vm15, %v1192_v61, %v1188_v28 }
 0x347   :  { %v6140_v62 = vpop.eup %6139 }
 0x348   :  { %v1199_v43 = vmul.f32 %v6140_v62, %v1193_v2  ;;  %v8864_v2 = vld [vmem:[#allocation32_spill] sm:$0xff] }
 0x34a   :  { %v1204_v51 = vpack.c.bf16 %v1199_v43, %v1199_v43 }
 0x34c   :  { %1213 = vmatmul.bf16.vlgmr.msra.gmra.mxu0 %v1204_v51  ;;  %1226 = vmatmul.bf16.vlgmr.msra.gmra.mxu1 %v1204_v51 }
 0x34d   :  { %1239 = vmatmul.bf16.vlgmr.msra.gmra.mxu2 %v1204_v51  ;;  %1252 = vmatmul.bf16.vlgmr.msrb.gmra.mxu3 %v1204_v51 }
 0x34e   :  { %1453 = vmatpush.bf16.msra.mxu0 %v6714_v8  ;;  %1466 = vmatpush.bf16.msra.mxu1 %v6791_v41 }
 0x34f   :  { %1479 = vmatpush.bf16.msra.mxu2 %v6793_v42  ;;  %1492 = vmatpush.bf16.msrb.mxu3 %v6750_v31 }
 0x352   :  { %1454 = vmatpush.bf16.msra.mxu0 %v6717_v17  ;;  %1467 = vmatpush.bf16.msra.mxu1 %v6801_v50 }
 0x353   :  { %1480 = vmatpush.bf16.msra.mxu2 %v6803_v54  ;;  %1493 = vmatpush.bf16.msrb.mxu3 %v6756_v39 }
 0x356   :  { %1455 = vmatpush.bf16.msra.mxu0 %v6720_v26  ;;  %1468 = vmatpush.bf16.msra.mxu1 %v6813_v60 }
 0x357   :  { %1481 = vmatpush.bf16.msra.mxu2 %v6816_v0  ;;  %1494 = vmatpush.bf16.msrb.mxu3 %v6759_v46 }
 0x35a   :  { %1456 = vmatpush.bf16.msra.mxu0 %v6723_v35  ;;  %1469 = vmatpush.bf16.msra.mxu1 %v6821_v13 }
 0x35b   :  { %1482 = vmatpush.bf16.msra.mxu2 %v6824_v5  ;;  %1495 = vmatpush.bf16.msrb.mxu3 %v6763_v56 }
 0x35e   :  { %1457 = vmatpush.bf16.msra.mxu0 %v6726_v44  ;;  %1470 = vmatpush.bf16.msra.mxu1 %v6829_v9 }
 0x35f   :  { %1483 = vmatpush.bf16.msra.mxu2 %v6832_v16  ;;  %1496 = vmatpush.bf16.msrb.mxu3 %v6780_v11 }
 0x362   :  { %1458 = vmatpush.bf16.msra.mxu0 %v6729_v53  ;;  %1471 = vmatpush.bf16.msra.mxu1 %v6837_v18 }
 0x363   :  { %1484 = vmatpush.bf16.msra.mxu2 %v6848_v27  ;;  %1497 = vmatpush.bf16.msrb.mxu3 %v6785_v23 }
 0x366   :  { %1459 = vmatpush.bf16.msra.mxu0 %v6732_v63  ;;  %1472 = vmatpush.bf16.msra.mxu1 %v6846_v22 }
 0x367   :  { %1485 = vmatpush.bf16.msra.mxu2 %v6853_v57  ;;  %1498 = vmatpush.bf16.msrb.mxu3 %v6788_v34 }
 0x36a   :  { %1460 = vmatpush.bf16.msra.mxu0 %v6735_v12  ;;  %1473 = vmatpush.bf16.msra.mxu1 %v6856_v33 }
 0x36b   :  { %1486 = vmatpush.bf16.msra.mxu2 %v6861_v38  ;;  %1499 = vmatpush.bf16.msrb.mxu3 %v6796_v47 }
 0x3c9   :  { %v1214_v40 = vpop.f32.mrf.mxu0  ;;  %v1227_v29 = vpop.f32.mrf.mxu1 }
 0x3ca   :  { %v1257_v7 = vadd.f32 %v1214_v40, %v8861_v15  ;;  %v1258_v49 = vadd.f32 %v1227_v29, %v8862_v30 }
 0x3cc   :  { %v5249_v32 = vmul.f32 -1.442695, %v1257_v7  ;;  %v5250_v20 = vmul.f32 -1.442695, %v1258_v49 }
 0x3ce   :  { %6141 = vpow2.f32 %v5249_v32 }
 0x3cf   :  { %6143 = vpow2.f32 %v5250_v20 }
 0x3d0   :  { %v1240_v37 = vpop.f32.mrf.mxu2  ;;  %v1253_v21 = vpop.f32.mrf.mxu3 }
 0x3d1   :  { %v1260_v1 = vadd.f32 %v1253_v21, %v8863_v24  ;;  %v1216_v14 = vpop.f32.mrf.mxu0  ;;  %v1229_v19 = vpop.f32.mrf.mxu1  ;;  %v1259_v43 = vadd.f32 %v1240_v37, %v8864_v2 }
 0x3d3   :  { %v5251_v52 = vmul.f32 -1.442695, %v1260_v1 }
 0x3d4   :  { %v6142_v6 = vpop.eup %6141 }
 0x3d5   :  { %v6144_v4 = vpop.eup %6143  ;;  %v1264_v25 = vadd.f32 1.0, %v6142_v6  ;;  %6145 = vpow2.f32 %v5251_v52 }
 0x3d6   :  { %v1283_v55 = vadd.f32 1.0, %v6144_v4 }
 0x3d7   :  { %6147 = vrcp.f32 %v1264_v25  ;;  %v1276_v30 = vand.u32 2147483648, %v1264_v25  ;;  %v1274_v20 = vand.u32 2147483647, %v1264_v25  ;;  %vm1270_vm2 = vweird.f32 %v1264_v25 }
 0x3d8   :  { %6149 = vrcp.f32 %v1283_v55  ;;  %v1242_v48 = vpop.f32.mrf.mxu2  ;;  %v1255_v10 = vpop.f32.mrf.mxu3  ;;  %v1295_v49 = vand.u32 2147483648, %v1283_v55  ;;  %v1293_v24 = vand.u32 2147483647, %v1283_v55  ;;  %vm1289_vm3 = vweird.f32 %v1283_v55 }
 0x3d9   :  { %v1277_v37 = vor.u32 1.1754944e-38, %v1276_v30  ;;  %vm1275_vm6 = vcmp.eq.f32.partialorder %v1274_v20, 8.507059e+37 }
 0x3da   :  { %v1296_v6 = vor.u32 1.1754944e-38, %v1295_v49  ;;  %vm1294_vm7 = vcmp.eq.f32.partialorder %v1293_v24, 8.507059e+37 }
 0x3db   :  { %v6146_v28 = vpop.eup %6145 }
 0x3dc   :  { %v1303_v61 = vadd.f32 1.0, %v6146_v28 }
 0x3dd   :  { %v6148_v62 = vpop.eup %6147 }
 0x3de   :  { %v6150_v51 = vpop.eup %6149  ;;  %v1266_v40 = vmul.f32 %v6148_v62, %v1264_v25  ;;  %6151 = vrcp.f32 %v1303_v61  ;;  %vm1271_vm0 = vweird.f32 %v6148_v62  ;;  %vm1309_vm9 = vweird.f32 %v1303_v61 }
 0x3df   :  { %v1285_v29 = vmul.f32 %v6150_v51, %v1283_v55  ;;  %6153 = vtanh.f32 %v1259_v43  ;;  %vm1290_vm1 = vweird.f32 %v6150_v51  ;;  %vm1272_vm4 = vmor %vm1270_vm2, %vm1271_vm0 }
 0x3e0   :  { %v1267_v15 = vsub.f32 1.0, %v1266_v40  ;;  %vm1291_vm5 = vmor %vm1289_vm3, %vm1290_vm1 }
 0x3e1   :  { %v1286_v7 = vsub.f32 1.0, %v1285_v29 }
 0x3e2   :  { %v1268_v32 = vmul.f32 %v6148_v62, %v1267_v15 }
 0x3e3   :  { %v1287_v21 = vmul.f32 %v6150_v51, %v1286_v7  ;;  %v1315_v7 = vand.u32 2147483648, %v1303_v61 }
 0x3e4   :  { %v6152_v1 = vpop.eup %6151  ;;  %v1269_v14 = vadd.f32 %v6148_v62, %v1268_v32 }
 0x3e5   :  { %v1288_v19 = vadd.f32 %v6150_v51, %v1287_v21  ;;  %v1305_v52 = vmul.f32 %v6152_v1, %v1303_v61  ;;  %v6154_v48 = vpop.eup %6153  ;;  %vm1310_vm8 = vweird.f32 %v6152_v1  ;;  %v1316_v49 = vor.u32 1.1754944e-38, %v1315_v7 }
 0x3e6   :  { %v1273_v4 = vsel %vm1272_vm4, %v6148_v62, %v1269_v14  ;;  %v1313_v62 = vand.u32 2147483647, %v1303_v61  ;;  %vm1311_vm10 = vmor %vm1309_vm9, %vm1310_vm8 }
 0x3e7   :  { %v1278_v10 = vsel %vm1275_vm6, %v1277_v37, %v1273_v4  ;;  %v1292_v28 = vsel %vm1291_vm5, %v6150_v51, %v1288_v19  ;;  %v1306_v2 = vsub.f32 1.0, %v1305_v52 }
 0x3e8   :  { %v1297_v43 = vsel %vm1294_vm7, %v1296_v6, %v1292_v28  ;;  %v1320_v40 = vmul.f32 %v6154_v48, %v1278_v10  ;;  %vm1314_vm11 = vcmp.eq.f32.partialorder %v1313_v62, 8.507059e+37 }
 0x3e9   :  { %v1319_v29 = vmul.f32 %v1297_v43, %v7125_v59  ;;  %v1307_v15 = vmul.f32 %v6152_v1, %v1306_v2 }
 0x3eb   :  { %v7165_v25 = vadd.f32 %v1320_v40, %v1319_v29  ;;  %v1308_v55 = vadd.f32 %v6152_v1, %v1307_v15 }
 0x3ed   :  { %6155 = vtanh.f32 %v7165_v25  ;;  %v1312_v30 = vsel %vm1311_vm10, %v6152_v1, %v1308_v55 }
 0x3ee   :  { %v1317_v32 = vsel %vm1314_vm11, %v1316_v49, %v1312_v30 }
 0x3f3   :  { %v6156_v51 = vpop.eup %6155 }
 0x3f4   :  { %v1323_v20 = vmul.f32 %v6156_v51, %v1317_v32 }
 0x3f6   :  { %v1328_v21 = vpack.c.bf16 %v1323_v20, %v1323_v20 }
 0x3f8   :  { %1337 = vmatmul.bf16.vlgmr.msrb.gmra.mxu0 %v1328_v21  ;;  %1350 = vmatmul.bf16.vlgmr.msrb.gmra.mxu1 %v1328_v21 }
 0x3f9   :  { %1363 = vmatmul.bf16.vlgmr.msrb.gmra.mxu2 %v1328_v21  ;;  %1376 = vmatmul.bf16.vlgmr.msra.gmra.mxu3 %v1328_v21 }
 0x3fa   :  { %1577 = vmatpush.bf16.msrb.mxu0 %v6714_v8  ;;  %1590 = vmatpush.bf16.msrb.mxu1 %v6791_v41  ;;  %v8865_v8 = vld [vmem:[#allocation18_spill] sm:$0xff] }
 0x3fb   :  { %1603 = vmatpush.bf16.msrb.mxu2 %v6793_v42  ;;  %1616 = vmatpush.bf16.msra.mxu3 %v6750_v31 }
 0x3fe   :  { %1578 = vmatpush.bf16.msrb.mxu0 %v6717_v17  ;;  %1591 = vmatpush.bf16.msrb.mxu1 %v6801_v50  ;;  %v387_v17 = vadd.f32 %v8865_v8, %v6915_v58 }
 0x3ff   :  { %1604 = vmatpush.bf16.msrb.mxu2 %v6803_v54  ;;  %1617 = vmatpush.bf16.msra.mxu3 %v6756_v39 }
 0x402   :  { %1579 = vmatpush.bf16.msrb.mxu0 %v6720_v26  ;;  %1592 = vmatpush.bf16.msrb.mxu1 %v6813_v60  ;;  %v8866_v26 = vld [vmem:[#allocation33_spill] sm:$0xff] }
 0x403   :  { %1605 = vmatpush.bf16.msrb.mxu2 %v6816_v0  ;;  %1618 = vmatpush.bf16.msra.mxu3 %v6759_v46 }
 0x406   :  { %1580 = vmatpush.bf16.msrb.mxu0 %v6723_v35  ;;  %1593 = vmatpush.bf16.msrb.mxu1 %v6821_v13  ;;  %v416_v35 = vadd.f32 %v8866_v26, %v6953_v36 }
 0x407   :  { %1606 = vmatpush.bf16.msrb.mxu2 %v6824_v5  ;;  %1619 = vmatpush.bf16.msra.mxu3 %v6763_v56 }
 0x40a   :  { %1581 = vmatpush.bf16.msrb.mxu0 %v6726_v44  ;;  %1594 = vmatpush.bf16.msrb.mxu1 %v6829_v9 }
 0x40b   :  { %1607 = vmatpush.bf16.msrb.mxu2 %v6832_v16  ;;  %1620 = vmatpush.bf16.msra.mxu3 %v6780_v11  ;;  %v8868_v16 = vld [vmem:[#allocation34_spill] sm:$0xff] }
 0x40e   :  { %1582 = vmatpush.bf16.msrb.mxu0 %v6729_v53  ;;  %1595 = vmatpush.bf16.msrb.mxu1 %v6837_v18  ;;  %v445_v18 = vadd.f32 %v8868_v16, %v6960_v45 }
 0x40f   :  { %1608 = vmatpush.bf16.msrb.mxu2 %v6848_v27  ;;  %1621 = vmatpush.bf16.msra.mxu3 %v6785_v23 }
 0x412   :  { %1583 = vmatpush.bf16.msrb.mxu0 %v6732_v63  ;;  %1596 = vmatpush.bf16.msrb.mxu1 %v6846_v22 }
 0x413   :  { %1609 = vmatpush.bf16.msrb.mxu2 %v6853_v57  ;;  %1622 = vmatpush.bf16.msra.mxu3 %v6788_v34 }
 0x416   :  { %1584 = vmatpush.bf16.msrb.mxu0 %v6735_v12  ;;  %1597 = vmatpush.bf16.msrb.mxu1 %v6856_v33  ;;  %v8867_v12 = vld [vmem:[#allocation25_spill] sm:$0xff] }
 0x417   :  { %1610 = vmatpush.bf16.msrb.mxu2 %v6861_v38  ;;  %1623 = vmatpush.bf16.msra.mxu3 %v6796_v47  ;;  %v474_v56 = vadd.f32 %v8867_v12, %v6932_v3  ;;  %v8870_v12 = vld [vmem:[#allocation35_spill] sm:$0xff] }
 0x475   :  { %v1338_v44 = vpop.f32.mrf.mxu0  ;;  %v1351_v53 = vpop.f32.mrf.mxu1 }
 0x476   :  { %v1381_v63 = vadd.f32 %v1338_v44, %v387_v17  ;;  %v1382_v31 = vadd.f32 %v1351_v53, %v416_v35 }
 0x478   :  { %v5252_v39 = vmul.f32 -1.442695, %v1381_v63  ;;  %v5253_v46 = vmul.f32 -1.442695, %v1382_v31 }
 0x47a   :  { %6157 = vpow2.f32 %v5252_v39  ;;  %v8869_v39 = vld [vmem:[#allocation19_spill] sm:$0xff] }
 0x47b   :  { %6159 = vpow2.f32 %v5253_v46 }
 0x47c   :  { %v1364_v11 = vpop.f32.mrf.mxu2  ;;  %v1377_v23 = vpop.f32.mrf.mxu3 }
 0x47d   :  { %v1384_v34 = vadd.f32 %v1377_v23, %v474_v56  ;;  %v1340_v41 = vpop.f32.mrf.mxu0  ;;  %v1353_v42 = vpop.f32.mrf.mxu1  ;;  %v1383_v57 = vadd.f32 %v1364_v11, %v445_v18 }
 0x47e   :  { %v8871_v42 = vld [vmem:[#allocation27_spill] sm:$0xff] }
 0x47f   :  { %v5254_v47 = vmul.f32 -1.442695, %v1384_v34 }
 0x480   :  { %v6158_v50 = vpop.eup %6157 }
 0x481   :  { %v6160_v54 = vpop.eup %6159  ;;  %v1388_v60 = vadd.f32 1.0, %v6158_v50  ;;  %6161 = vpow2.f32 %v5254_v47 }
 0x482   :  { %v1407_v0 = vadd.f32 1.0, %v6160_v54 }
 0x483   :  { %6163 = vrcp.f32 %v1388_v60  ;;  %v1400_v1 = vand.u32 2147483648, %v1388_v60  ;;  %v1398_v19 = vand.u32 2147483647, %v1388_v60  ;;  %vm1394_vm14 = vweird.f32 %v1388_v60 }
 0x484   :  { %6165 = vrcp.f32 %v1407_v0  ;;  %v1366_v13 = vpop.f32.mrf.mxu2  ;;  %v1379_v5 = vpop.f32.mrf.mxu3  ;;  %v1419_v14 = vand.u32 2147483648, %v1407_v0  ;;  %v1417_v6 = vand.u32 2147483647, %v1407_v0  ;;  %vm1413_vm15 = vweird.f32 %v1407_v0 }
 0x485   :  { %v1401_v10 = vor.u32 1.1754944e-38, %v1400_v1  ;;  %vm1399_vm2 = vcmp.eq.f32.partialorder %v1398_v19, 8.507059e+37 }
 0x486   :  { %v1420_v43 = vor.u32 1.1754944e-38, %v1419_v14  ;;  %vm1418_vm3 = vcmp.eq.f32.partialorder %v1417_v6, 8.507059e+37 }
 0x487   :  { %v6162_v9 = vpop.eup %6161 }
 0x488   :  { %v1427_v22 = vadd.f32 1.0, %v6162_v9 }
 0x489   :  { %v6164_v27 = vpop.eup %6163 }
 0x48a   :  { %v6166_v33 = vpop.eup %6165  ;;  %v1390_v38 = vmul.f32 %v6164_v27, %v1388_v60  ;;  %6167 = vrcp.f32 %v1427_v22  ;;  %vm1395_vm12 = vweird.f32 %v6164_v27  ;;  %v1439_v21 = vand.u32 2147483648, %v1427_v22 }
 0x48b   :  { %v1409_v59 = vmul.f32 %v6166_v33, %v1407_v0  ;;  %6169 = vtanh.f32 %v1383_v57  ;;  %vm1414_vm13 = vweird.f32 %v6166_v33  ;;  %vm1396_vm0 = vmor %vm1394_vm14, %vm1395_vm12  ;;  %vm1433_vm5 = vweird.f32 %v1427_v22 }
 0x48c   :  { %v1391_v61 = vsub.f32 1.0, %v1390_v38  ;;  %vm1415_vm1 = vmor %vm1413_vm15, %vm1414_vm13  ;;  %v1437_v8 = vand.u32 2147483647, %v1427_v22  ;;  %v1440_v26 = vor.u32 1.1754944e-38, %v1439_v21 }
 0x48d   :  { %v1410_v24 = vsub.f32 1.0, %v1409_v59 }
 0x48e   :  { %v1392_v37 = vmul.f32 %v6164_v27, %v1391_v61  ;;  %vm1438_vm7 = vcmp.eq.f32.partialorder %v1437_v8, 8.507059e+37 }
 0x48f   :  { %v1411_v52 = vmul.f32 %v6166_v33, %v1410_v24 }
 0x490   :  { %v6168_v4 = vpop.eup %6167  ;;  %v1393_v48 = vadd.f32 %v6164_v27, %v1392_v37 }
 0x491   :  { %v1412_v28 = vadd.f32 %v6166_v33, %v1411_v52  ;;  %v1429_v2 = vmul.f32 %v6168_v4, %v1427_v22  ;;  %v6170_v29 = vpop.eup %6169  ;;  %vm1434_vm4 = vweird.f32 %v6168_v4 }
 0x492   :  { %v1397_v40 = vsel %vm1396_vm0, %v6164_v27, %v1393_v48  ;;  %vm1435_vm6 = vmor %vm1433_vm5, %vm1434_vm4 }
 0x493   :  { %v1402_v15 = vsel %vm1399_vm2, %v1401_v10, %v1397_v40  ;;  %v1416_v55 = vsel %vm1415_vm1, %v6166_v33, %v1412_v28  ;;  %v1430_v7 = vsub.f32 1.0, %v1429_v2  ;;  %v8872_v33 = vld [vmem:[#allocation36_spill] sm:$0xff] }
 0x494   :  { %v1421_v62 = vsel %vm1418_vm3, %v1420_v43, %v1416_v55  ;;  %v1444_v30 = vmul.f32 %v6170_v29, %v1402_v15 }
 0x495   :  { %v1443_v49 = vmul.f32 %v1421_v62, %v7165_v25  ;;  %v1431_v51 = vmul.f32 %v6168_v4, %v1430_v7 }
 0x497   :  { %v7209_v32 = vadd.f32 %v1444_v30, %v1443_v49  ;;  %v1432_v20 = vadd.f32 %v6168_v4, %v1431_v51 }
 0x499   :  { %6171 = vtanh.f32 %v7209_v32  ;;  %v1436_v17 = vsel %vm1435_vm6, %v6168_v4, %v1432_v20 }
 0x49a   :  { %v1441_v44 = vsel %vm1438_vm7, %v1440_v26, %v1436_v17 }
 0x49f   :  { %v6172_v35 = vpop.eup %6171 }
 0x4a0   :  { %v1447_v53 = vmul.f32 %v6172_v35, %v1441_v44 }
 0x4a2   :  { %v1452_v63 = vpack.c.bf16 %v1447_v53, %v1447_v53 }
 0x4a4   :  { %1461 = vmatmul.bf16.vlgmr.msra.gmra.mxu0 %v1452_v63  ;;  %1474 = vmatmul.bf16.vlgmr.msra.gmra.mxu1 %v1452_v63 }
 0x4a5   :  { %1487 = vmatmul.bf16.vlgmr.msra.gmra.mxu2 %v1452_v63  ;;  %1500 = vmatmul.bf16.vlgmr.msrb.gmra.mxu3 %v1452_v63 }
 0x521   :  { %v1462_v25 = vpop.f32.mrf.mxu0  ;;  %v1475_v31 = vpop.f32.mrf.mxu1 }
 0x522   :  { %v1505_v46 = vadd.f32 %v1462_v25, %v8869_v39  ;;  %v1506_v56 = vadd.f32 %v1475_v31, %v8870_v12  ;;  %v5949_v12 = vld [vmem:[#allocation7 + $0xe4] sm:$0xf] }
 0x524   :  { %v5255_v11 = vmul.f32 -1.442695, %v1505_v46  ;;  %v5256_v23 = vmul.f32 -1.442695, %v1506_v56  ;;  %v5951_v46 = vld [vmem:[#allocation7 + $0xec] sm:$0xf0] }
 0x526   :  { %6173 = vpow2.f32 %v5255_v11  ;;  %v5377_v11 = vld [vmem:[#allocation7 + $0xf0] sm:$0xf0] }
 0x527   :  { %6175 = vpow2.f32 %v5256_v23  ;;  %v5383_v23 = vld [vmem:[#allocation7 + $0xe8] sm:$0xf] }
 0x528   :  { %v1488_v34 = vpop.f32.mrf.mxu2  ;;  %v1501_v41 = vpop.f32.mrf.mxu3 }
 0x529   :  { %v1508_v47 = vadd.f32 %v1501_v41, %v8871_v42  ;;  %v1464_v50 = vpop.f32.mrf.mxu0  ;;  %v1477_v54 = vpop.f32.mrf.mxu1  ;;  %v1507_v38 = vadd.f32 %v1488_v34, %v8872_v33  ;;  %v5952_v34 = vld [vmem:[#allocation7 + $0xf4] sm:$0xf0]  ;;  %v5380_v41 = vor.u32 %v5949_v12, %v5377_v11  ;;  %v5369_v33 = vld [vmem:[#allocation7 + $0xd8] sm:$0xf0]  ;;  %v5934_v12 = vld [vmem:[#allocation7 + $0x6c] sm:$0xf] }
 0x52a   :  { %v5384_v42 = vor.u32 %v5952_v34, %v5383_v23  ;;  %v5385_v50 = vld [vmem:[#allocation7 + $0xf8] sm:$0xf0] }
 0x52b   :  { %v5257_v60 = vmul.f32 -1.442695, %v1508_v47  ;;  %v5950_v47 = vld [vmem:[#allocation7 + $0xec] sm:$0xf]  ;;  %1912 = vmatpush.bf16.msra.mxu1 %v5380_v41 }
 0x52c   :  { %v6174_v0 = vpop.eup %6173  ;;  %v5388_v54 = vor.u32 %v5950_v47, %v5385_v50  ;;  %1925 = vmatpush.bf16.msra.mxu2 %v5384_v42  ;;  %v5295_v47 = vld [vmem:[#allocation7 + $0x40] sm:$0xf]  ;;  %v5931_v50 = vld [vmem:[#allocation7 + $0x4c] sm:$0xf0] }
 0x52d   :  { %v6176_v13 = vpop.eup %6175  ;;  %v1512_v5 = vadd.f32 1.0, %v6174_v0  ;;  %6177 = vpow2.f32 %v5257_v60  ;;  %v5359_v60 = vld [vmem:[#allocation7 + $0xc0] sm:$0xf]  ;;  %v5947_v0 = vld [vmem:[#allocation7 + $0xcc] sm:$0xf0] }
 0x52e   :  { %v1531_v9 = vadd.f32 1.0, %v6176_v13  ;;  %v5945_v13 = vld [vmem:[#allocation7 + $0xc4] sm:$0xf]  ;;  %1938 = vmatpush.bf16.msrb.mxu3 %v5388_v54 }
 0x52f   :  { %6179 = vrcp.f32 %v1512_v5  ;;  %v1524_v37 = vand.u32 2147483648, %v1512_v5  ;;  %v1522_v6 = vand.u32 2147483647, %v1512_v5  ;;  %vm1518_vm10 = vweird.f32 %v1512_v5  ;;  %v5929_v54 = vld [vmem:[#allocation7 + $0x44] sm:$0xf] }
 0x530   :  { %6181 = vrcp.f32 %v1531_v9  ;;  %v1490_v16 = vpop.f32.mrf.mxu2  ;;  %v1503_v18 = vpop.f32.mrf.mxu3  ;;  %v1543_v19 = vand.u32 2147483648, %v1531_v9  ;;  %v1541_v48 = vand.u32 2147483647, %v1531_v9  ;;  %vm1537_vm11 = vweird.f32 %v1531_v9 }
 0x531   :  { %v1525_v2 = vor.u32 1.1754944e-38, %v1524_v37  ;;  %vm1523_vm14 = vcmp.eq.f32.partialorder %v1522_v6, 8.507059e+37  ;;  %v5367_v16 = vld [vmem:[#allocation7 + $0xc8] sm:$0xf]  ;;  %v5948_v18 = vld [vmem:[#allocation7 + $0xd4] sm:$0xf0] }
 0x532   :  { %v1544_v29 = vor.u32 1.1754944e-38, %v1543_v19  ;;  %vm1542_vm15 = vcmp.eq.f32.partialorder %v1541_v48, 8.507059e+37  ;;  %v5351_v37 = vld [vmem:[#allocation7 + $0xa8] sm:$0xf]  ;;  %v5944_v19 = vld [vmem:[#allocation7 + $0xb4] sm:$0xf0] }
 0x533   :  { %v6178_v22 = vpop.eup %6177  ;;  %v5352_v6 = vor.u32 %v5944_v19, %v5351_v37  ;;  %v5353_v48 = vld [vmem:[#allocation7 + $0xb8] sm:$0xf0]  ;;  %v5928_v19 = vld [vmem:[#allocation7 + $0x34] sm:$0xf0] }
 0x534   :  { %v1551_v27 = vadd.f32 1.0, %v6178_v22 }
 0x535   :  { %v6180_v57 = vpop.eup %6179 }
 0x536   :  { %v6182_v59 = vpop.eup %6181  ;;  %v1514_v61 = vmul.f32 %v6180_v57, %v1512_v5  ;;  %6183 = vrcp.f32 %v1551_v27  ;;  %vm1519_vm8 = vweird.f32 %v6180_v57  ;;  %v1563_v26 = vand.u32 2147483648, %v1551_v27 }
 0x537   :  { %v1533_v24 = vmul.f32 %v6182_v59, %v1531_v9  ;;  %6185 = vtanh.f32 %v1507_v38  ;;  %vm1538_vm9 = vweird.f32 %v6182_v59  ;;  %vm1520_vm12 = vmor %vm1518_vm10, %vm1519_vm8  ;;  %vm1557_vm1 = vweird.f32 %v1551_v27  ;;  %v5361_v9 = vld [vmem:[#allocation7 + $0xd0] sm:$0xf0] }
 0x538   :  { %v1515_v1 = vsub.f32 1.0, %v1514_v61  ;;  %vm1539_vm13 = vmor %vm1537_vm11, %vm1538_vm9  ;;  %v1561_v35 = vand.u32 2147483647, %v1551_v27  ;;  %v1564_v53 = vor.u32 1.1754944e-38, %v1563_v26  ;;  %v5360_v5 = vor.u32 %v5947_v0, %v5359_v60  ;;  %v5943_v61 = vld [vmem:[#allocation7 + $0xac] sm:$0xf0] }
 0x539   :  { %v1534_v14 = vsub.f32 1.0, %v1533_v24  ;;  %v5364_v22 = vor.u32 %v5945_v13, %v5361_v9  ;;  %v5941_v24 = vld [vmem:[#allocation7 + $0xa4] sm:$0xf]  ;;  %v5297_v60 = vld [vmem:[#allocation7 + $0x50] sm:$0xf0] }
 0x53a   :  { %v1516_v52 = vmul.f32 %v6180_v57, %v1515_v1  ;;  %vm1562_vm3 = vcmp.eq.f32.partialorder %v1561_v35, 8.507059e+37  ;;  %v5313_v35 = vld [vmem:[#allocation7 + $0x70] sm:$0xf0]  ;;  %v5303_v0 = vld [vmem:[#allocation7 + $0x48] sm:$0xf]  ;;  %v5300_v9 = vor.u32 %v5929_v54, %v5297_v60 }
 0x53b   :  { %v1535_v4 = vmul.f32 %v6182_v59, %v1534_v14  ;;  %1913 = vmatpush.bf16.msra.mxu1 %v5364_v22  ;;  %v5345_v14 = vld [vmem:[#allocation7 + $0xb0] sm:$0xf0]  ;;  %v5305_v22 = vld [vmem:[#allocation7 + $0x58] sm:$0xf0]  ;;  %v6010_v54 = vld [vmem:[#allocation8 + $0x1cc] sm:$0xf] }
 0x53c   :  { %v6184_v10 = vpop.eup %6183  ;;  %v1517_v28 = vadd.f32 %v6180_v57, %v1516_v52  ;;  %v5348_v52 = vor.u32 %v5941_v24, %v5345_v14  ;;  %v5287_v24 = vld [vmem:[#allocation7 + $0x28] sm:$0xf] }
 0x53d   :  { %v1536_v43 = vadd.f32 %v6182_v59, %v1535_v4  ;;  %v1553_v40 = vmul.f32 %v6184_v10, %v1551_v27  ;;  %v6186_v55 = vpop.eup %6185  ;;  %vm1558_vm0 = vweird.f32 %v6184_v10  ;;  %v5368_v27 = vor.u32 %v5948_v18, %v5367_v16  ;;  %v5942_v4 = vld [vmem:[#allocation7 + $0xac] sm:$0xf] }
 0x53e   :  { %v1521_v15 = vsel %vm1520_vm12, %v6180_v57, %v1517_v28  ;;  %vm1559_vm2 = vmor %vm1557_vm1, %vm1558_vm0  ;;  %v5946_v57 = vld [vmem:[#allocation7 + $0xcc] sm:$0xf]  ;;  %v5327_v28 = vld [vmem:[#allocation7 + $0x80] sm:$0xf] }
 0x53f   :  { %v1526_v7 = vsel %vm1523_vm14, %v1525_v2, %v1521_v15  ;;  %v1540_v62 = vsel %vm1539_vm13, %v6182_v59, %v1536_v43  ;;  %v1554_v30 = vsub.f32 1.0, %v1553_v40  ;;  %v5372_v38 = vor.u32 %v5946_v57, %v5369_v33  ;;  %1926 = vmatpush.bf16.msra.mxu2 %v5368_v27  ;;  %v5343_v59 = vld [vmem:[#allocation7 + $0xa0] sm:$0xf]  ;;  %1914 = vmatpush.bf16.msra.mxu1 %v5348_v52  ;;  %v5939_v2 = vld [vmem:[#allocation7 + $0x8c] sm:$0xf0] }
 0x540   :  { %v1545_v49 = vsel %vm1542_vm15, %v1544_v29, %v1540_v62  ;;  %v1568_v51 = vmul.f32 %v6186_v55, %v1526_v7  ;;  %v5344_v1 = vor.u32 %v5943_v61, %v5343_v59  ;;  %v5937_v43 = vld [vmem:[#allocation7 + $0x84] sm:$0xf]  ;;  %v5328_v40 = vor.u32 %v5939_v2, %v5327_v28  ;;  %v5329_v29 = vld [vmem:[#allocation7 + $0x90] sm:$0xf0]  ;;  %v5335_v15 = vld [vmem:[#allocation7 + $0x88] sm:$0xf] }
 0x541   :  { %v1567_v20 = vmul.f32 %v1545_v49, %v7209_v32  ;;  %v1555_v21 = vmul.f32 %v6184_v10, %v1554_v30  ;;  %v5375_v32 = vld [vmem:[#allocation7 + $0xe0] sm:$0xf]  ;;  %1939 = vmatpush.bf16.msrb.mxu3 %v5372_v38  ;;  %v5940_v55 = vld [vmem:[#allocation7 + $0x94] sm:$0xf0]  ;;  %v5332_v7 = vor.u32 %v5937_v43, %v5329_v29  ;;  %v5938_v30 = vld [vmem:[#allocation7 + $0x8c] sm:$0xf] }
 0x542   :  { %v5376_v56 = vor.u32 %v5951_v46, %v5375_v32  ;;  %v5336_v62 = vor.u32 %v5940_v55, %v5335_v15  ;;  %v5337_v49 = vld [vmem:[#allocation7 + $0x98] sm:$0xf0]  ;;  %v5930_v18 = vld [vmem:[#allocation7 + $0x4c] sm:$0xf]  ;;  %v5279_v27 = vld [vmem:[#allocation7 + $0x20] sm:$0xf] }
 0x543   :  { %v7217_v8 = vadd.f32 %v1568_v51, %v1567_v20  ;;  %v1556_v17 = vadd.f32 %v6184_v10, %v1555_v21  ;;  %1927 = vmatpush.bf16.msra.mxu2 %v5352_v6  ;;  %v5340_v51 = vor.u32 %v5938_v30, %v5337_v49  ;;  %1915 = vmatpush.bf16.msra.mxu1 %v5332_v7  ;;  %v5311_v20 = vld [vmem:[#allocation7 + $0x60] sm:$0xf]  ;;  %v5935_v21 = vld [vmem:[#allocation7 + $0x6c] sm:$0xf0]  ;;  %v5925_v59 = vld [vmem:[#allocation7 + $0x24] sm:$0xf] }
 0x544   :  { %1899 = vmatpush.bf16.msra.mxu0 %v5376_v56  ;;  %v5312_v26 = vor.u32 %v5935_v21, %v5311_v20  ;;  %v5321_v56 = vld [vmem:[#allocation7 + $0x78] sm:$0xf0]  ;;  %v5927_v57 = vld [vmem:[#allocation7 + $0x2c] sm:$0xf0]  ;;  %v5308_v33 = vor.u32 %v5930_v18, %v5305_v22  ;;  %v5281_v61 = vld [vmem:[#allocation7 + $0x30] sm:$0xf0] }
 0x545   :  { %6187 = vtanh.f32 %v7217_v8  ;;  %v1560_v44 = vsel %vm1559_vm2, %v6184_v10, %v1556_v17  ;;  %v5356_v10 = vor.u32 %v5942_v4, %v5353_v48  ;;  %v5933_v17 = vld [vmem:[#allocation7 + $0x64] sm:$0xf]  ;;  %v5324_v34 = vor.u32 %v5934_v12, %v5321_v56  ;;  %v5926_v52 = vld [vmem:[#allocation7 + $0x2c] sm:$0xf]  ;;  %v5289_v6 = vld [vmem:[#allocation7 + $0x38] sm:$0xf0] }
 0x546   :  { %v1565_v25 = vsel %vm1562_vm3, %v1564_v53, %v1560_v44  ;;  %v5319_v44 = vld [vmem:[#allocation7 + $0x68] sm:$0xf]  ;;  %v5936_v53 = vld [vmem:[#allocation7 + $0x74] sm:$0xf0]  ;;  %v5316_v32 = vor.u32 %v5933_v17, %v5313_v35  ;;  %v5280_v38 = vor.u32 %v5927_v57, %v5279_v27  ;;  %v5284_v37 = vor.u32 %v5925_v59, %v5281_v61  ;;  %v5263_v2 = vld [vmem:[#allocation7] sm:$0xf] }
 0x547   :  { %1940 = vmatpush.bf16.msrb.mxu3 %v5356_v10  ;;  %1928 = vmatpush.bf16.msra.mxu2 %v5336_v62  ;;  %v5320_v46 = vor.u32 %v5936_v53, %v5319_v44  ;;  %v5288_v10 = vor.u32 %v5928_v19, %v5287_v24  ;;  %v5292_v28 = vor.u32 %v5926_v52, %v5289_v6  ;;  %v5923_v43 = vld [vmem:[#allocation7 + $0xc] sm:$0xf0]  ;;  %v5265_v62 = vld [vmem:[#allocation7 + $0x10] sm:$0xf0]  ;;  %v5924_v30 = vld [vmem:[#allocation7 + $0x14] sm:$0xf0] }
 0x548   :  { %1900 = vmatpush.bf16.msra.mxu0 %v5360_v5  ;;  %1916 = vmatpush.bf16.msra.mxu1 %v5316_v32  ;;  %v5264_v7 = vor.u32 %v5923_v43, %v5263_v2  ;;  %v5922_v20 = vld [vmem:[#allocation7 + $0xc] sm:$0xf]  ;;  %v5273_v21 = vld [vmem:[#allocation7 + $0x18] sm:$0xf0]  ;;  %v6013_v12 = vld [vmem:[#allocation8 + $0x1dc] sm:$0xf0] }
 0x549   :  { %v5276_v35 = vor.u32 %v5922_v20, %v5273_v21  ;;  %v5594_v27 = vld [vmem:[#allocation8 + $0x188] sm:$0xf]  ;;  %v5596_v24 = vld [vmem:[#allocation8 + $0x1a8] sm:$0xf0]  ;;  %v5554_v52 = vld [vmem:[#allocation8 + $0x140] sm:$0xf] }
 0x54a   :  { %v6006_v57 = vld [vmem:[#allocation8 + $0x1a4] sm:$0xf0]  ;;  %v5997_v6 = vld [vmem:[#allocation8 + $0x15c] sm:$0xf0]  ;;  %v5993_v2 = vld [vmem:[#allocation8 + $0x144] sm:$0xf] }
 0x54b   :  { %v6188_v63 = vpop.eup %6187  ;;  %1941 = vmatpush.bf16.msrb.mxu3 %v5340_v51  ;;  %1929 = vmatpush.bf16.msra.mxu2 %v5320_v46  ;;  %v5618_v46 = vld [vmem:[#allocation8 + $0x1c0] sm:$0xf]  ;;  %v7263_v19 = vor.u32 %v6006_v57, %v5594_v27  ;;  %v5530_v27 = vld [vmem:[#allocation8 + $0x108] sm:$0xf] }
 0x54c   :  { %v1571_v31 = vmul.f32 %v6188_v63, %v1565_v25  ;;  %1901 = vmatpush.bf16.msra.mxu0 %v5344_v1  ;;  %v8873_v63 = vld [vmem:[#allocation22_spill] sm:$0xff]  ;;  %1917 = vmatpush.bf16.msra.mxu1 %v5300_v9  ;;  %v7234_v56 = vor.u32 %v6013_v12, %v5618_v46  ;;  %v6001_v9 = vld [vmem:[#allocation8 + $0x184] sm:$0xf]  ;;  %v5990_v57 = vld [vmem:[#allocation8 + $0x124] sm:$0xf0] }
 0x54d   :  { %v392_v25 = vadd.f32 %v8873_v63, %v6915_v58  ;;  %v5296_v58 = vor.u32 %v5931_v50, %v5295_v47  ;;  %v8875_v1 = vld [vmem:[#allocation30_spill] sm:$0xff]  ;;  %v5626_v47 = vld [vmem:[#allocation8 + $0x1c8] sm:$0xf]  ;;  %8883 = vst [vmem:[#allocation17_spill] sm:$0xff] %v7263_v19 }
 0x54e   :  { %v1576_v39 = vpack.c.bf16 %v1571_v31, %v1571_v31  ;;  %v8874_v31 = vld [vmem:[#allocation37_spill] sm:$0xff]  ;;  %v479_v14 = vadd.f32 %v8875_v1, %v6932_v3  ;;  %8877 = vst [vmem:[#allocation20_spill] sm:$0xff] %v7234_v56 }
 0x54f   :  { %1942 = vmatpush.bf16.msrb.mxu3 %v5324_v34  ;;  %v5271_v3 = vld [vmem:[#allocation7 + $0x8] sm:$0xf] }
 0x550   :  { %1585 = vmatmul.bf16.vlgmr.msrb.gmra.mxu0 %v1576_v39  ;;  %1598 = vmatmul.bf16.vlgmr.msrb.gmra.mxu1 %v1576_v39  ;;  %v5272_v51 = vor.u32 %v5924_v30, %v5271_v3  ;;  %v6014_v50 = vld [vmem:[#allocation8 + $0x1e4] sm:$0xf0]  ;;  %v5994_v30 = vld [vmem:[#allocation8 + $0x14c] sm:$0xf] }
 0x551   :  { %1611 = vmatmul.bf16.vlgmr.msrb.gmra.mxu2 %v1576_v39  ;;  %1624 = vmatmul.bf16.vlgmr.msra.gmra.mxu3 %v1576_v39  ;;  %v421_v39 = vadd.f32 %v8874_v31, %v6953_v36  ;;  %v5932_v36 = vld [vmem:[#allocation7 + $0x54] sm:$0xf0]  ;;  %v7241_v60 = vor.u32 %v6014_v50, %v5626_v47 }
 0x552   :  { %1902 = vmatpush.bf16.msra.mxu0 %v5328_v40  ;;  %v5304_v16 = vor.u32 %v5932_v36, %v5303_v0  ;;  %v5921_v40 = vld [vmem:[#allocation7 + $0x4] sm:$0xf]  ;;  %1918 = vmatpush.bf16.msra.mxu1 %v5284_v37  ;;  %v5586_v0 = vld [vmem:[#allocation8 + $0x180] sm:$0xf] }
 0x553   :  { %1943 = vmatpush.bf16.msrb.mxu3 %v5308_v33  ;;  %v5268_v49 = vor.u32 %v5921_v40, %v5265_v62  ;;  %8879 = vst [vmem:[#allocation21_spill] sm:$0xff] %v7241_v60  ;;  %v6002_v33 = vld [vmem:[#allocation8 + $0x18c] sm:$0xf]  ;;  %v7273_v40 = vor.u32 %v5997_v6, %v5554_v52  ;;  %v5977_v52 = vld [vmem:[#allocation8 + $0xc4] sm:$0xf] }
 0x554   :  { %1930 = vmatpush.bf16.msra.mxu2 %v5304_v16  ;;  %v5588_v16 = vld [vmem:[#allocation8 + $0x1a0] sm:$0xf0] }
 0x555   :  { %v7261_v37 = vor.u32 %v6001_v9, %v5588_v16  ;;  %8885 = vst [vmem:[#allocation24_spill] sm:$0xff] %v7273_v40  ;;  %v5989_v9 = vld [vmem:[#allocation8 + $0x11c] sm:$0xf0]  ;;  %v5985_v16 = vld [vmem:[#allocation8 + $0x104] sm:$0xf] }
 0x556   :  { %1903 = vmatpush.bf16.msra.mxu0 %v5312_v26  ;;  %1919 = vmatpush.bf16.msra.mxu1 %v5268_v49  ;;  %v5564_v49 = vld [vmem:[#allocation8 + $0x168] sm:$0xf0] }
 0x557   :  { %1944 = vmatpush.bf16.msrb.mxu3 %v5292_v28  ;;  %8882 = vst [vmem:[#allocation29_spill] sm:$0xff] %v7261_v37  ;;  %v7267_v28 = vor.u32 %v6002_v33, %v5596_v24  ;;  %v7285_v21 = vor.u32 %v5994_v30, %v5564_v49  ;;  %v5986_v33 = vld [vmem:[#allocation8 + $0x10c] sm:$0xf]  ;;  %v5490_v24 = vld [vmem:[#allocation8 + $0xc0] sm:$0xf] }
 0x558   :  { %1931 = vmatpush.bf16.msra.mxu2 %v5288_v10  ;;  %v5973_v30 = vld [vmem:[#allocation8 + $0x9c] sm:$0xf0]  ;;  %v5969_v49 = vld [vmem:[#allocation8 + $0x84] sm:$0xf] }
 0x559   :  { %8884 = vst [vmem:[#allocation31_spill] sm:$0xff] %v7267_v28 }
 0x55a   :  { %1904 = vmatpush.bf16.msra.mxu0 %v5296_v58  ;;  %8888 = vst [vmem:[#allocation33_spill] sm:$0xff] %v7285_v21 }
 0x55b   :  { %1945 = vmatpush.bf16.msrb.mxu3 %v5276_v35 }
 0x55c   :  { %1932 = vmatpush.bf16.msra.mxu2 %v5272_v51 }
 0x55e   :  { %1905 = vmatpush.bf16.msra.mxu0 %v5280_v38 }
 0x560   :  { %2435 = vmatpush.bf16.msrb.mxu2 %v7241_v60 }
 0x562   :  { %1906 = vmatpush.bf16.msra.mxu0 %v5264_v7 }
 0x564   :  { %2436 = vmatpush.bf16.msrb.mxu2 %v7263_v19 }
 0x566   :  { %2409 = vmatpush.bf16.msrb.mxu0 %v7234_v56 }
 0x5cd   :  { %v1586_v11 = vpop.f32.mrf.mxu0  ;;  %v1599_v23 = vpop.f32.mrf.mxu1 }
 0x5ce   :  { %v1629_v41 = vadd.f32 %v1586_v11, %v392_v25  ;;  %v1630_v42 = vadd.f32 %v1599_v23, %v421_v39  ;;  %v8876_v39 = vld [vmem:[#allocation38_spill] sm:$0xff]  ;;  %v6009_v11 = vld [vmem:[#allocation8 + $0x1c4] sm:$0xf] }
 0x5cf   :  { %v450_v32 = vadd.f32 %v8876_v39, %v6960_v45  ;;  %v5620_v23 = vld [vmem:[#allocation8 + $0x1e0] sm:$0xf0]  ;;  %v5628_v45 = vld [vmem:[#allocation8 + $0x1e8] sm:$0xf0] }
 0x5d0   :  { %v5258_v13 = vmul.f32 -1.442695, %v1629_v41  ;;  %v5259_v5 = vmul.f32 -1.442695, %v1630_v42  ;;  %v7236_v42 = vor.u32 %v6009_v11, %v5620_v23 }
 0x5d2   :  { %6189 = vpow2.f32 %v5258_v13  ;;  %8878 = vst [vmem:[#allocation26_spill] sm:$0xff] %v7236_v42  ;;  %2422 = vmatpush.bf16.msrb.mxu1 %v7236_v42  ;;  %v7246_v13 = vor.u32 %v6010_v54, %v5628_v45 }
 0x5d3   :  { %6191 = vpow2.f32 %v5259_v5  ;;  %v6005_v5 = vld [vmem:[#allocation8 + $0x19c] sm:$0xf0] }
 0x5d4   :  { %v1612_v4 = vpop.f32.mrf.mxu2  ;;  %v1625_v48 = vpop.f32.mrf.mxu3  ;;  %8880 = vst [vmem:[#allocation28_spill] sm:$0xff] %v7246_v13  ;;  %2448 = vmatpush.bf16.msra.mxu3 %v7246_v13 }
 0x5d5   :  { %v1632_v29 = vadd.f32 %v1625_v48, %v479_v14  ;;  %v1588_v15 = vpop.f32.mrf.mxu0  ;;  %v1601_v55 = vpop.f32.mrf.mxu1  ;;  %v1631_v41 = vadd.f32 %v1612_v4, %v450_v32  ;;  %v7259_v14 = vor.u32 %v6005_v5, %v5586_v0 }
 0x5d6   :  { %2423 = vmatpush.bf16.msrb.mxu1 %v7261_v37  ;;  %v5562_v15 = vld [vmem:[#allocation8 + $0x148] sm:$0xf] }
 0x5d7   :  { %v5260_v17 = vmul.f32 -1.442695, %v1632_v29  ;;  %8881 = vst [vmem:[#allocation23_spill] sm:$0xff] %v7259_v14  ;;  %2410 = vmatpush.bf16.msrb.mxu0 %v7259_v14  ;;  %v5556_v29 = vld [vmem:[#allocation8 + $0x160] sm:$0xf0] }
 0x5d8   :  { %v6190_v26 = vpop.eup %6189  ;;  %v5998_v55 = vld [vmem:[#allocation8 + $0x164] sm:$0xf0]  ;;  %2449 = vmatpush.bf16.msra.mxu3 %v7267_v28  ;;  %v7279_v62 = vor.u32 %v5993_v2, %v5556_v29  ;;  %v5978_v29 = vld [vmem:[#allocation8 + $0xcc] sm:$0xf] }
 0x5d9   :  { %v6192_v44 = vpop.eup %6191  ;;  %v7226_v53 = vadd.f32 1.0, %v6190_v26  ;;  %6193 = vpow2.f32 %v5260_v17  ;;  %v7281_v3 = vor.u32 %v5998_v55, %v5562_v15  ;;  %v5500_v15 = vld [vmem:[#allocation8 + $0xe8] sm:$0xf0] }
 0x5da   :  { %v7228_v63 = vadd.f32 1.0, %v6192_v44  ;;  %8886 = vst [vmem:[#allocation32_spill] sm:$0xff] %v7279_v62  ;;  %2424 = vmatpush.bf16.msrb.mxu1 %v7279_v62  ;;  %v7323_v55 = vor.u32 %v5978_v29, %v5500_v15  ;;  %v5642_v29 = vld [vmem:[#allocation8 + $0x1d8] sm:$0xf] }
 0x5db   :  { %6195 = vrcp.f32 %v7226_v53  ;;  %v1646_v59 = vand.u32 2147483647, %v7226_v53  ;;  %v1648_v61 = vand.u32 2147483648, %v7226_v53  ;;  %8887 = vst [vmem:[#allocation18_spill] sm:$0xff] %v7281_v3  ;;  %vm1642_vm6 = vweird.f32 %v7226_v53  ;;  %2411 = vmatpush.bf16.msrb.mxu0 %v7273_v40  ;;  %2437 = vmatpush.bf16.msrb.mxu2 %v7281_v3  ;;  %v6016_v15 = vld [vmem:[#allocation8 + $0x1f4] sm:$0xf0] }
 0x5dc   :  { %6197 = vrcp.f32 %v7228_v63  ;;  %v1614_v25 = vpop.f32.mrf.mxu2  ;;  %v1627_v31 = vpop.f32.mrf.mxu3  ;;  %v1667_v48 = vand.u32 2147483648, %v7228_v63  ;;  %v1665_v10 = vand.u32 2147483647, %v7228_v63  ;;  %vm1661_vm7 = vweird.f32 %v7228_v63  ;;  %2450 = vmatpush.bf16.msra.mxu3 %v7285_v21  ;;  %8896 = vst [vmem:[#allocation37_spill] sm:$0xff] %v7323_v55 }
 0x5dd   :  { %v1649_v26 = vor.u32 1.1754944e-38, %v1648_v61  ;;  %vm1647_vm10 = vcmp.eq.f32.partialorder %v1646_v59, 8.507059e+37  ;;  %v7309_v59 = vor.u32 %v5990_v57, %v5530_v27  ;;  %v5954_v57 = vld [vmem:[#allocation8 + $0xc] sm:$0xf] }
 0x5de   :  { %v1668_v25 = vor.u32 1.1754944e-38, %v1667_v48  ;;  %vm1666_vm11 = vcmp.eq.f32.partialorder %v1665_v10, 8.507059e+37  ;;  %v5498_v48 = vld [vmem:[#allocation8 + $0xc8] sm:$0xf] }
 0x5df   :  { %v6194_v34 = vpop.eup %6193  ;;  %8891 = vst [vmem:[#allocation19_spill] sm:$0xff] %v7309_v59  ;;  %2438 = vmatpush.bf16.msrb.mxu2 %v7309_v59  ;;  %v5982_v10 = vld [vmem:[#allocation8 + $0xe4] sm:$0xf0] }
 0x5e0   :  { %v7238_v58 = vadd.f32 1.0, %v6194_v34 }
 0x5e1   :  { %v7243_v36 = vpop.eup %6195 }
 0x5e2   :  { %v7248_v18 = vpop.eup %6197  ;;  %v1638_v22 = vmul.f32 %v7243_v36, %v7226_v53  ;;  %6199 = vrcp.f32 %v7238_v58  ;;  %vm1643_vm4 = vweird.f32 %v7243_v36  ;;  %vm1681_vm13 = vweird.f32 %v7238_v58 }
 0x5e3   :  { %v1657_v38 = vmul.f32 %v7248_v18, %v7228_v63  ;;  %6201 = vtanh.f32 %v1631_v41  ;;  %vm1662_vm5 = vweird.f32 %v7248_v18  ;;  %vm1644_vm8 = vmor %vm1642_vm6, %vm1643_vm4  ;;  %v1687_v41 = vand.u32 2147483648, %v7238_v58 }
 0x5e4   :  { %v1639_v1 = vsub.f32 1.0, %v1638_v22  ;;  %vm1663_vm9 = vmor %vm1661_vm7, %vm1662_vm5  ;;  %v1685_v47 = vand.u32 2147483647, %v7238_v58  ;;  %v5524_v22 = vld [vmem:[#allocation8 + $0x120] sm:$0xf0] }
 0x5e5   :  { %v1658_v4 = vsub.f32 1.0, %v1657_v38  ;;  %v1688_v54 = vor.u32 1.1754944e-38, %v1687_v41  ;;  %v5532_v38 = vld [vmem:[#allocation8 + $0x128] sm:$0xf0] }
 0x5e6   :  { %v1640_v43 = vmul.f32 %v7243_v36, %v1639_v1  ;;  %vm1686_vm15 = vcmp.eq.f32.partialorder %v1685_v47, 8.507059e+37  ;;  %v7311_v61 = vor.u32 %v5986_v33, %v5532_v38  ;;  %v5981_v1 = vld [vmem:[#allocation8 + $0xdc] sm:$0xf0]  ;;  %v5962_v47 = vld [vmem:[#allocation8 + $0x4c] sm:$0xf] }
 0x5e7   :  { %v1659_v7 = vmul.f32 %v7248_v18, %v1658_v4  ;;  %v7316_v6 = vor.u32 %v5981_v1, %v5490_v24  ;;  %v5492_v4 = vld [vmem:[#allocation8 + $0xe0] sm:$0xf0]  ;;  %v5404_v33 = vld [vmem:[#allocation8 + $0x28] sm:$0xf0]  ;;  %v5634_v38 = vld [vmem:[#allocation8 + $0x1d0] sm:$0xf] }
 0x5e8   :  { %v6200_v51 = vpop.eup %6199  ;;  %v1641_v20 = vadd.f32 %v7243_v36, %v1640_v43  ;;  %8892 = vst [vmem:[#allocation35_spill] sm:$0xff] %v7311_v61  ;;  %2451 = vmatpush.bf16.msra.mxu3 %v7311_v61  ;;  %v7318_v2 = vor.u32 %v5977_v52, %v5492_v4  ;;  %v7320_v43 = vor.u32 %v5982_v10, %v5498_v48  ;;  %v6015_v1 = vld [vmem:[#allocation8 + $0x1ec] sm:$0xf0]  ;;  %v6011_v52 = vld [vmem:[#allocation8 + $0x1d4] sm:$0xf] }
 0x5e9   :  { %v6202_v17 = vpop.eup %6201  ;;  %v1660_v35 = vadd.f32 %v7248_v18, %v1659_v7  ;;  %v1677_v44 = vmul.f32 %v6200_v51, %v7238_v58  ;;  %vm1682_vm12 = vweird.f32 %v6200_v51  ;;  %v7306_v58 = vor.u32 %v5985_v16, %v5524_v22  ;;  %8893 = vst [vmem:[#allocation27_spill] sm:$0xff] %v7316_v6  ;;  %v5458_v7 = vld [vmem:[#allocation8 + $0x80] sm:$0xf]  ;;  %v5958_v16 = vld [vmem:[#allocation8 + $0x24] sm:$0xf0] }
 0x5ea   :  { %v1645_v31 = vsel %vm1644_vm8, %v7243_v36, %v1641_v20  ;;  %vm1683_vm14 = vmor %vm1681_vm13, %vm1682_vm12  ;;  %8894 = vst [vmem:[#allocation36_spill] sm:$0xff] %v7318_v2  ;;  %2439 = vmatpush.bf16.msrb.mxu2 %v7320_v43  ;;  %v5460_v20 = vld [vmem:[#allocation8 + $0xa0] sm:$0xf0]  ;;  %v7359_v24 = vor.u32 %v5954_v57, %v5404_v33  ;;  %v5636_v4 = vld [vmem:[#allocation8 + $0x1f0] sm:$0xf0]  ;;  %v7362_v48 = vor.u32 %v6015_v1, %v5634_v38 }
 0x5eb   :  { %v1650_v53 = vsel %vm1647_vm10, %v1649_v26, %v1645_v31  ;;  %v1664_v63 = vsel %vm1663_vm9, %v7248_v18, %v1660_v35  ;;  %v1678_v39 = vsub.f32 1.0, %v1677_v44  ;;  %8890 = vst [vmem:[#allocation34_spill] sm:$0xff] %v7306_v58  ;;  %2425 = vmatpush.bf16.msrb.mxu1 %v7306_v58  ;;  %v5974_v26 = vld [vmem:[#allocation8 + $0xa4] sm:$0xf0]  ;;  %v7330_v35 = vor.u32 %v5969_v49, %v5460_v20  ;;  %v5468_v31 = vld [vmem:[#allocation8 + $0xa8] sm:$0xf0] }
 0x5ec   :  { %v1669_v32 = vsel %vm1666_vm11, %v1668_v25, %v1664_v63  ;;  %v1692_v46 = vmul.f32 %v6202_v17, %v1650_v53  ;;  %8895 = vst [vmem:[#allocation22_spill] sm:$0xff] %v7320_v43  ;;  %2452 = vmatpush.bf16.msra.mxu3 %v7323_v55  ;;  %v5466_v17 = vld [vmem:[#allocation8 + $0x88] sm:$0xf]  ;;  %v5970_v25 = vld [vmem:[#allocation8 + $0x8c] sm:$0xf]  ;;  %v7364_v10 = vor.u32 %v6011_v52, %v5636_v4 }
 0x5ed   :  { %v1691_v12 = vmul.f32 %v1669_v32, %v7217_v8  ;;  %v1679_v11 = vmul.f32 %v6200_v51, %v1678_v39  ;;  %v5522_v8 = vld [vmem:[#allocation8 + $0x100] sm:$0xf]  ;;  %8898 = vst [vmem:[#allocation38_spill] sm:$0xff] %v7330_v35  ;;  %v7332_v44 = vor.u32 %v5974_v26, %v5466_v17  ;;  %v7335_v53 = vor.u32 %v5970_v25, %v5468_v31  ;;  %v5961_v32 = vld [vmem:[#allocation8 + $0x44] sm:$0xf] }
 0x5ee   :  { %v7304_v18 = vor.u32 %v5989_v9, %v5522_v8  ;;  %v5426_v63 = vld [vmem:[#allocation8 + $0x40] sm:$0xf]  ;;  %v5396_v8 = vld [vmem:[#allocation8 + $0x20] sm:$0xf0]  ;;  %v5402_v9 = vld [vmem:[#allocation8 + $0x8] sm:$0xf] }
 0x5ef   :  { %v1693_v23 = vadd.f32 %v1692_v46, %v1691_v12  ;;  %v1680_v34 = vadd.f32 %v6200_v51, %v1679_v11  ;;  %2426 = vmatpush.bf16.msrb.mxu1 %v7318_v2  ;;  %8899 = vst [vmem:[#allocation39_spill] sm:$0xff] %v7332_v44  ;;  %v5965_v39 = vld [vmem:[#allocation8 + $0x5c] sm:$0xf0]  ;;  %2440 = vmatpush.bf16.msrb.mxu2 %v7332_v44  ;;  %v5428_v12 = vld [vmem:[#allocation8 + $0x60] sm:$0xf0] }
 0x5f0   :  { %8889 = vst [vmem:[#allocation25_spill] sm:$0xff] %v7304_v18  ;;  %2412 = vmatpush.bf16.msrb.mxu0 %v7304_v18  ;;  %2453 = vmatpush.bf16.msra.mxu3 %v7335_v53  ;;  %v7340_v46 = vor.u32 %v5965_v39, %v5426_v63  ;;  %v5434_v11 = vld [vmem:[#allocation8 + $0x48] sm:$0xf]  ;;  %v7356_v27 = vor.u32 %v5958_v16, %v5402_v9  ;;  %v5644_v49 = vld [vmem:[#allocation8 + $0x1f8] sm:$0xf0] }
 0x5f1   :  { %6203 = vtanh.f32 %v1693_v23  ;;  %v1684_v50 = vsel %vm1683_vm14, %v6200_v51, %v1680_v34  ;;  %v7328_v51 = vor.u32 %v5973_v30, %v5458_v7  ;;  %8900 = vst [vmem:[#allocation40_spill] sm:$0xff] %v7335_v53  ;;  %v5966_v23 = vld [vmem:[#allocation8 + $0x64] sm:$0xf0]  ;;  %v7342_v34 = vor.u32 %v5961_v32, %v5428_v12  ;;  %v6012_v7 = vld [vmem:[#allocation8 + $0x1dc] sm:$0xf] }
 0x5f2   :  { %v1689_v0 = vsel %vm1686_vm15, %v1688_v54, %v1684_v50  ;;  %8901 = vst [vmem:[#allocation41_spill] sm:$0xff] %v7340_v46  ;;  %v7344_v41 = vor.u32 %v5966_v23, %v5434_v11  ;;  %v5436_v50 = vld [vmem:[#allocation8 + $0x68] sm:$0xf0]  ;;  %v7368_v30 = vor.u32 %v6016_v15, %v5642_v29  ;;  %v5602_v20 = vld [vmem:[#allocation8 + $0x190] sm:$0xf]  ;;  %v7372_v26 = vor.u32 %v6012_v7, %v5644_v49 }
 0x5f3   :  { %8897 = vst [vmem:[#allocation30_spill] sm:$0xff] %v7328_v51  ;;  %2427 = vmatpush.bf16.msrb.mxu1 %v7330_v35  ;;  %v7347_v54 = vor.u32 %v5962_v47, %v5436_v50  ;;  %v6007_v17 = vld [vmem:[#allocation8 + $0x1ac] sm:$0xf0]  ;;  %v6003_v31 = vld [vmem:[#allocation8 + $0x194] sm:$0xf] }
 0x5f4   :  { %2413 = vmatpush.bf16.msrb.mxu0 %v7316_v6  ;;  %8902 = vst [vmem:[#allocation42_spill] sm:$0xff] %v7342_v34  ;;  %2441 = vmatpush.bf16.msrb.mxu2 %v7344_v41  ;;  %v7374_v25 = vor.u32 %v6007_v17, %v5602_v20  ;;  %v5604_v63 = vld [vmem:[#allocation8 + $0x1b0] sm:$0xf0]  ;;  %v5610_v39 = vld [vmem:[#allocation8 + $0x198] sm:$0xf] }
 0x5f5   :  { %8903 = vst [vmem:[#allocation43_spill] sm:$0xff] %v7344_v41  ;;  %2454 = vmatpush.bf16.msra.mxu3 %v7347_v54  ;;  %v7377_v32 = vor.u32 %v6003_v31, %v5604_v63  ;;  %v6008_v12 = vld [vmem:[#allocation8 + $0x1b4] sm:$0xf0]  ;;  %v6004_v11 = vld [vmem:[#allocation8 + $0x19c] sm:$0xf] }
 0x5f6   :  { %8904 = vst [vmem:[#allocation44_spill] sm:$0xff] %v7347_v54  ;;  %v5612_v23 = vld [vmem:[#allocation8 + $0x1b8] sm:$0xf0]  ;;  %v7382_v47 = vld [vmem:[%s8635_s5] sm:$0xf]  ;;  %v7385_v50 = vor.u32 %v6008_v12, %v5610_v39 }
 0x5f7   :  { %v6204_v45 = vpop.eup %6203  ;;  %2428 = vmatpush.bf16.msrb.mxu1 %v7342_v34  ;;  %8907 = vst [vmem:[#allocation47_spill] sm:$0xff] %v7356_v27  ;;  %v5572_v16 = vld [vmem:[#allocation8 + $0x170] sm:$0xf0]  ;;  %v5578_v57 = vld [vmem:[#allocation8 + $0x158] sm:$0xf]  ;;  %v1731_v29 = vperm.slane %v7382_v47, 0 }
 0x5f8   :  { %v1695_v36 = vmul.f32 %v6204_v45, %v1689_v0  ;;  %2414 = vmatpush.bf16.msrb.mxu0 %v7328_v51  ;;  %v5394_v45 = vld [vmem:[#allocation8] sm:$0xf]  ;;  %8908 = vst [vmem:[#allocation48_spill] sm:$0xff] %v7359_v24  ;;  %2442 = vmatpush.bf16.msrb.mxu2 %v7356_v27  ;;  %v6000_v33 = vld [vmem:[#allocation8 + $0x174] sm:$0xf0]  ;;  %v1732_v15 = vperm.slane %v7382_v47, 1 }
 0x5f9   :  { %v5957_v0 = vld [vmem:[#allocation8 + $0x1c] sm:$0xf0]  ;;  %8909 = vst [vmem:[#allocation49_spill] sm:$0xff] %v7362_v48  ;;  %2455 = vmatpush.bf16.msra.mxu3 %v7359_v24  ;;  %v7396_v1 = vor.u32 %v6000_v33, %v5578_v57  ;;  %v5996_v52 = vld [vmem:[#allocation8 + $0x15c] sm:$0xf] }
 0x5fa   :  { %v1696_v5 = vpack.c.bf16 %v1695_v36, %v1695_v36  ;;  %v5953_v36 = vld [vmem:[#allocation8 + $0x4] sm:$0xf]  ;;  %8910 = vst [vmem:[#allocation50_spill] sm:$0xff] %v7364_v10  ;;  %v5580_v4 = vld [vmem:[#allocation8 + $0x178] sm:$0xf0] }
 0x5fb   :  { %v7354_v22 = vor.u32 %v5953_v36, %v5396_v8  ;;  %8911 = vst [vmem:[#allocation51_spill] sm:$0xff] %v7368_v30  ;;  %v5999_v36 = vld [vmem:[#allocation8 + $0x16c] sm:$0xf0]  ;;  %v5995_v8 = vld [vmem:[#allocation8 + $0x154] sm:$0xf]  ;;  %v7401_v7 = vor.u32 %v5996_v52, %v5580_v4 }
 0x5fc   :  { %1907 = vmatmul.bf16.vlgmr.msra.gmra.mxu0 %v1696_v5  ;;  %1920 = vmatmul.bf16.vlgmr.msra.gmra.mxu1 %v1696_v5  ;;  %8912 = vst [vmem:[#allocation52_spill] sm:$0xff] %v7372_v26  ;;  %v7394_v38 = vor.u32 %v5995_v8, %v5572_v16  ;;  %v5538_v49 = vld [vmem:[#allocation8 + $0x110] sm:$0xf]  ;;  %v5987_v17 = vld [vmem:[#allocation8 + $0x114] sm:$0xf] }
 0x5fd   :  { %1933 = vmatmul.bf16.vlgmr.msra.gmra.mxu2 %v1696_v5  ;;  %1946 = vmatmul.bf16.vlgmr.msrb.gmra.mxu3 %v1696_v5  ;;  %v7352_v5 = vor.u32 %v5957_v0, %v5394_v45  ;;  %8906 = vst [vmem:[#allocation46_spill] sm:$0xff] %v7354_v22  ;;  %v7387_v45 = vor.u32 %v6004_v11, %v5612_v23  ;;  %v5570_v0 = vld [vmem:[#allocation8 + $0x150] sm:$0xf]  ;;  %v5540_v63 = vld [vmem:[#allocation8 + $0x130] sm:$0xf0]  ;;  %v1734_v11 = vperm.slane %v7382_v47, 3 }
 0x5fe   :  { %2415 = vmatpush.bf16.msrb.mxu0 %v7340_v46  ;;  %2429 = vmatpush.bf16.msrb.mxu1 %v7354_v22  ;;  %8913 = vst [vmem:[#allocation53_spill] sm:$0xff] %v7374_v25  ;;  %v7391_v9 = vor.u32 %v5999_v36, %v5570_v0  ;;  %v5991_v20 = vld [vmem:[#allocation8 + $0x12c] sm:$0xf0]  ;;  %v5546_v39 = vld [vmem:[#allocation8 + $0x118] sm:$0xf]  ;;  %v7409_v23 = vor.u32 %v5987_v17, %v5540_v63 }
 0x5ff   :  { %8905 = vst [vmem:[#allocation45_spill] sm:$0xff] %v7352_v5  ;;  %2487 = vmatpush.bf16.msra.mxu2 %v7368_v30  ;;  %2500 = vmatpush.bf16.msrb.mxu3 %v7372_v26  ;;  %v7405_v31 = vor.u32 %v5991_v20, %v5538_v49  ;;  %v5992_v12 = vld [vmem:[#allocation8 + $0x134] sm:$0xf0]  ;;  %v5988_v36 = vld [vmem:[#allocation8 + $0x11c] sm:$0xf] }
 0x600   :  { %8914 = vst [vmem:[#allocation54_spill] sm:$0xff] %v7377_v32  ;;  %v7411_v0 = vor.u32 %v5992_v12, %v5546_v39  ;;  %v5548_v8 = vld [vmem:[#allocation8 + $0x138] sm:$0xf0]  ;;  %v5506_v57 = vld [vmem:[#allocation8 + $0xd0] sm:$0xf] }
 0x601   :  { %8915 = vst [vmem:[#allocation55_spill] sm:$0xff] %v7385_v50  ;;  %v7414_v16 = vor.u32 %v5988_v36, %v5548_v8  ;;  %v5983_v33 = vld [vmem:[#allocation8 + $0xec] sm:$0xf0]  ;;  %v5979_v52 = vld [vmem:[#allocation8 + $0xd4] sm:$0xf] }
 0x602   :  { %2416 = vmatpush.bf16.msrb.mxu0 %v7352_v5  ;;  %2474 = vmatpush.bf16.msra.mxu1 %v7364_v10  ;;  %8916 = vst [vmem:[#allocation56_spill] sm:$0xff] %v7387_v45  ;;  %v7416_v20 = vor.u32 %v5983_v33, %v5506_v57  ;;  %v5980_v12 = vld [vmem:[#allocation8 + $0xdc] sm:$0xf]  ;;  %v5474_v8 = vld [vmem:[#allocation8 + $0x90] sm:$0xf] }
 0x603   :  { %8917 = vst [vmem:[#allocation57_spill] sm:$0xff] %v7391_v9  ;;  %2488 = vmatpush.bf16.msra.mxu2 %v7385_v50  ;;  %2501 = vmatpush.bf16.msrb.mxu3 %v7387_v45  ;;  %v5516_v36 = vld [vmem:[#allocation8 + $0xf8] sm:$0xf0]  ;;  %v5975_v33 = vld [vmem:[#allocation8 + $0xac] sm:$0xf0] }
 0x604   :  { %8918 = vst [vmem:[#allocation58_spill] sm:$0xff] %v7394_v38  ;;  %v5476_v45 = vld [vmem:[#allocation8 + $0xb0] sm:$0xf0] }
 0x605   :  { %8919 = vst [vmem:[#allocation59_spill] sm:$0xff] %v7396_v1 }
 0x606   :  { %2461 = vmatpush.bf16.msra.mxu0 %v7362_v48  ;;  %2475 = vmatpush.bf16.msra.mxu1 %v7377_v32  ;;  %8920 = vst [vmem:[#allocation60_spill] sm:$0xff] %v7401_v7 }
 0x607   :  { %8921 = vst [vmem:[#allocation61_spill] sm:$0xff] %v7405_v31  ;;  %2489 = vmatpush.bf16.msra.mxu2 %v7396_v1  ;;  %2502 = vmatpush.bf16.msrb.mxu3 %v7401_v7  ;;  %v5984_v1 = vld [vmem:[#allocation8 + $0xf4] sm:$0xf0]  ;;  %v5971_v7 = vld [vmem:[#allocation8 + $0x94] sm:$0xf] }
 0x608   :  { %8922 = vst [vmem:[#allocation62_spill] sm:$0xff] %v7409_v23 }
 0x609   :  { %8923 = vst [vmem:[#allocation63_spill] sm:$0xff] %v7411_v0 }
 0x60a   :  { %2462 = vmatpush.bf16.msra.mxu0 %v7374_v25  ;;  %2476 = vmatpush.bf16.msra.mxu1 %v7394_v38  ;;  %8924 = vst [vmem:[#allocation64_spill] sm:$0xff] %v7414_v16  ;;  %v5508_v38 = vld [vmem:[#allocation8 + $0xf0] sm:$0xf0] }
 0x60b   :  { %8925 = vst [vmem:[#allocation65_spill] sm:$0xff] %v7416_v20  ;;  %v7424_v39 = vor.u32 %v5979_v52, %v5508_v38  ;;  %2490 = vmatpush.bf16.msra.mxu2 %v7411_v0  ;;  %2503 = vmatpush.bf16.msrb.mxu3 %v7414_v16  ;;  %v5482_v38 = vld [vmem:[#allocation8 + $0x98] sm:$0xf]  ;;  %v5444_v16 = vld [vmem:[#allocation8 + $0x70] sm:$0xf0] }
 0x60c   :  { %v5976_v52 = vld [vmem:[#allocation8 + $0xb4] sm:$0xf0] }
 0x60d   :  { %8928 = vst [vmem:[#allocation68_spill] sm:$0xff] %v7424_v39 }
 0x60e   :  { %2463 = vmatpush.bf16.msra.mxu0 %v7391_v9  ;;  %v5514_v9 = vld [vmem:[#allocation8 + $0xd8] sm:$0xf]  ;;  %2477 = vmatpush.bf16.msra.mxu1 %v7409_v23  ;;  %v5484_v23 = vld [vmem:[#allocation8 + $0xb8] sm:$0xf0] }
 0x60f   :  { %v7427_v57 = vor.u32 %v5984_v1, %v5514_v9  ;;  %v7436_v9 = vor.u32 %v5975_v33, %v5474_v8  ;;  %v7438_v1 = vor.u32 %v5971_v7, %v5476_v45  ;;  %v5968_v8 = vld [vmem:[#allocation8 + $0x74] sm:$0xf0] }
 0x611   :  { %8929 = vst [vmem:[#allocation69_spill] sm:$0xff] %v7427_v57  ;;  %2491 = vmatpush.bf16.msra.mxu2 %v7427_v57 }
 0x612   :  { %2464 = vmatpush.bf16.msra.mxu0 %v7405_v31  ;;  %2478 = vmatpush.bf16.msra.mxu1 %v7424_v39  ;;  %8931 = vst [vmem:[#allocation71_spill] sm:$0xff] %v7436_v9  ;;  %v5450_v39 = vld [vmem:[#allocation8 + $0x58] sm:$0xf] }
 0x613   :  { %8932 = vst [vmem:[#allocation72_spill] sm:$0xff] %v7438_v1 }
 0x616   :  { %2465 = vmatpush.bf16.msra.mxu0 %v7416_v20  ;;  %v5452_v20 = vld [vmem:[#allocation8 + $0x78] sm:$0xf0]  ;;  %2479 = vmatpush.bf16.msra.mxu1 %v7438_v1 }
 0x61a   :  { %2466 = vmatpush.bf16.msra.mxu0 %v7436_v9 }
 0x679   :  { %v1908_v4 = vpop.f32.mrf.mxu0  ;;  %v1921_v49 = vpop.f32.mrf.mxu1 }
 0x67a   :  { %v7418_v17 = vadd.f32 %v1908_v4, %v1731_v29  ;;  %v7420_v63 = vadd.f32 %v1921_v49, %v1732_v15  ;;  %v7432_v4 = vor.u32 %v5980_v12, %v5516_v36  ;;  %v5972_v49 = vld [vmem:[#allocation8 + $0x9c] sm:$0xf]  ;;  %v5967_v12 = vld [vmem:[#allocation8 + $0x6c] sm:$0xf0]  ;;  %v5963_v36 = vld [vmem:[#allocation8 + $0x54] sm:$0xf] }
 0x67c   :  { %8926 = vst [vmem:[#allocation66_spill] sm:$0xff] %v7418_v17  ;;  %v5389_v29 = vmul.f32 -1.442695, %v7418_v17  ;;  %v5390_v15 = vmul.f32 -1.442695, %v7420_v63  ;;  %2504 = vmatpush.bf16.msrb.mxu3 %v7432_v4 }
 0x67d   :  { %8927 = vst [vmem:[#allocation67_spill] sm:$0xff] %v7420_v63  ;;  %v5442_v17 = vld [vmem:[#allocation8 + $0x50] sm:$0xf]  ;;  %v7441_v63 = vor.u32 %v5976_v52, %v5482_v38  ;;  %v7452_v52 = vor.u32 %v5963_v36, %v5444_v16 }
 0x67e   :  { %8930 = vst [vmem:[#allocation70_spill] sm:$0xff] %v7432_v4  ;;  %6205 = vpow2.f32 %v5389_v29  ;;  %v7444_v29 = vor.u32 %v5972_v49, %v5484_v23  ;;  %v7450_v38 = vor.u32 %v5967_v12, %v5442_v17  ;;  %v7456_v23 = vor.u32 %v5968_v8, %v5450_v39  ;;  %v5410_v16 = vld [vmem:[#allocation8 + $0x10] sm:$0xf]  ;;  %v5955_v39 = vld [vmem:[#allocation8 + $0x14] sm:$0xf] }
 0x67f   :  { %6207 = vpow2.f32 %v5390_v15  ;;  %8933 = vst [vmem:[#allocation73_spill] sm:$0xff] %v7441_v63  ;;  %v5964_v15 = vld [vmem:[#allocation8 + $0x5c] sm:$0xf]  ;;  %2492 = vmatpush.bf16.msra.mxu2 %v7441_v63  ;;  %2480 = vmatpush.bf16.msra.mxu1 %v7452_v52  ;;  %v5959_v17 = vld [vmem:[#allocation8 + $0x2c] sm:$0xf0]  ;;  %v1733_v8 = vperm.slane %v7382_v47, 2 }
 0x680   :  { %v1934_v0 = vpop.f32.mrf.mxu2  ;;  %v1947_v31 = vpop.f32.mrf.mxu3  ;;  %8934 = vst [vmem:[#allocation74_spill] sm:$0xff] %v7444_v29  ;;  %2505 = vmatpush.bf16.msrb.mxu3 %v7444_v29  ;;  %2467 = vmatpush.bf16.msra.mxu0 %v7450_v38 }
 0x681   :  { %v7446_v33 = vadd.f32 %v1947_v31, %v1734_v11  ;;  %v1910_v45 = vpop.f32.mrf.mxu0  ;;  %v1923_v7 = vpop.f32.mrf.mxu1  ;;  %8936 = vst [vmem:[#allocation76_spill] sm:$0xff] %v7450_v38  ;;  %v7459_v11 = vor.u32 %v5964_v15, %v5452_v20  ;;  %v5412_v20 = vld [vmem:[#allocation8 + $0x30] sm:$0xf0]  ;;  %v5420_v38 = vld [vmem:[#allocation8 + $0x38] sm:$0xf0] }
 0x682   :  { %8937 = vst [vmem:[#allocation77_spill] sm:$0xff] %v7452_v52  ;;  %v7468_v15 = vor.u32 %v5955_v39, %v5412_v20  ;;  %v5956_v52 = vld [vmem:[#allocation8 + $0x1c] sm:$0xf] }
 0x683   :  { %8935 = vst [vmem:[#allocation75_spill] sm:$0xff] %v7446_v33  ;;  %v5391_v4 = vmul.f32 -1.442695, %v7446_v33  ;;  %2493 = vmatpush.bf16.msra.mxu2 %v7456_v23 }
 0x684   :  { %8938 = vst [vmem:[#allocation78_spill] sm:$0xff] %v7456_v23  ;;  %v6206_v31 = vpop.eup %6205  ;;  %2506 = vmatpush.bf16.msrb.mxu3 %v7459_v11  ;;  %2481 = vmatpush.bf16.msra.mxu1 %v7468_v15 }
 0x685   :  { %8939 = vst [vmem:[#allocation79_spill] sm:$0xff] %v7459_v11  ;;  %v6208_v49 = vpop.eup %6207  ;;  %v1964_v45 = vadd.f32 1.0, %v6206_v31  ;;  %6209 = vpow2.f32 %v5391_v4  ;;  %v7466_v4 = vor.u32 %v5959_v17, %v5410_v16  ;;  %v5418_v31 = vld [vmem:[#allocation8 + $0x18] sm:$0xf]  ;;  %v7477_v16 = vadd.f32 %v1934_v0, %v1733_v8 }
 0x686   :  { %v1983_v7 = vadd.f32 1.0, %v6208_v49  ;;  %8941 = vst [vmem:[#allocation81_spill] sm:$0xff] %v7468_v15  ;;  %v5960_v49 = vld [vmem:[#allocation8 + $0x34] sm:$0xf0] }
 0x687   :  { %6211 = vrcp.f32 %v1964_v45  ;;  %8940 = vst [vmem:[#allocation80_spill] sm:$0xff] %v7466_v4  ;;  %v7470_v33 = vor.u32 %v5960_v49, %v5418_v31  ;;  %2468 = vmatpush.bf16.msra.mxu0 %v7466_v4  ;;  %v1976_v11 = vand.u32 2147483648, %v1964_v45  ;;  %vm1970_vm2 = vweird.f32 %v1964_v45 }
 0x688   :  { %6213 = vrcp.f32 %v1983_v7  ;;  %v1936_v12 = vpop.f32.mrf.mxu2  ;;  %v1949_v36 = vpop.f32.mrf.mxu3  ;;  %8944 = vst [vmem:[#allocation84_spill] sm:$0xff] %v7477_v16  ;;  %v1995_v15 = vand.u32 2147483648, %v1983_v7  ;;  %vm1989_vm3 = vweird.f32 %v1983_v7 }
 0x689   :  { %8942 = vst [vmem:[#allocation82_spill] sm:$0xff] %v7470_v33  ;;  %v7474_v12 = vor.u32 %v5956_v52, %v5420_v38  ;;  %2494 = vmatpush.bf16.msra.mxu2 %v7470_v33  ;;  %v1974_v52 = vand.u32 2147483647, %v1964_v45  ;;  %v1993_v33 = vand.u32 2147483647, %v1983_v7 }
 0x68b   :  { %v6210_v23 = vpop.eup %6209  ;;  %8943 = vst [vmem:[#allocation83_spill] sm:$0xff] %v7474_v12  ;;  %2507 = vmatpush.bf16.msrb.mxu3 %v7474_v12  ;;  %v1977_v12 = vor.u32 1.1754944e-38, %v1976_v11  ;;  %vm1975_vm5 = vcmp.eq.f32.partialorder %v1974_v52, 8.507059e+37  ;;  %vm1994_vm7 = vcmp.eq.f32.partialorder %v1993_v33, 8.507059e+37  ;;  %v6047_v33 = vld [vmem:[#allocation11 + $0xec] sm:$0xf0] }
 0x68c   :  { %v2003_v36 = vadd.f32 1.0, %v6210_v23 }
 0x68d   :  { %v6212_v47 = vpop.eup %6211 }
 0x68e   :  { %v6214_v17 = vpop.eup %6213  ;;  %v1966_v39 = vmul.f32 %v6212_v47, %v1964_v45  ;;  %6215 = vrcp.f32 %v2003_v36  ;;  %vm1971_vm0 = vweird.f32 %v6212_v47  ;;  %v2015_v11 = vand.u32 2147483648, %v2003_v36 }
 0x68f   :  { %v1985_v20 = vmul.f32 %v6214_v17, %v1983_v7  ;;  %6217 = vtanh.f32 %v7477_v16  ;;  %vm1990_vm1 = vweird.f32 %v6214_v17  ;;  %vm1972_vm4 = vmor %vm1970_vm2, %vm1971_vm0  ;;  %vm2009_vm9 = vweird.f32 %v2003_v36 }
 0x690   :  { %v1967_v31 = vsub.f32 1.0, %v1966_v39  ;;  %vm1991_vm6 = vmor %vm1989_vm3, %vm1990_vm1  ;;  %v2013_v7 = vand.u32 2147483647, %v2003_v36 }
 0x691   :  { %v1986_v49 = vsub.f32 1.0, %v1985_v20  ;;  %v1996_v20 = vor.u32 1.1754944e-38, %v1995_v15 }
 0x692   :  { %v1968_v38 = vmul.f32 %v6212_v47, %v1967_v31  ;;  %vm2014_vm11 = vcmp.eq.f32.partialorder %v2013_v7, 8.507059e+37  ;;  %v6042_v7 = vld [vmem:[#allocation11 + $0xcc] sm:$0xf] }
 0x693   :  { %v1987_v23 = vmul.f32 %v6214_v17, %v1986_v49 }
 0x694   :  { %v6216_v0 = vpop.eup %6215  ;;  %v1969_v8 = vadd.f32 %v6212_v47, %v1968_v38 }
 0x695   :  { %v1988_v4 = vadd.f32 %v6214_v17, %v1987_v23  ;;  %v2005_v29 = vmul.f32 %v6216_v0, %v2003_v36  ;;  %v6218_v16 = vpop.eup %6217  ;;  %vm2010_vm8 = vweird.f32 %v6216_v0 }
 0x696   :  { %v1973_v39 = vsel %vm1972_vm4, %v6212_v47, %v1969_v8  ;;  %vm2011_vm10 = vmor %vm2009_vm9, %vm2010_vm8  ;;  %v2016_v47 = vor.u32 1.1754944e-38, %v2015_v11  ;;  %v6043_v8 = vld [vmem:[#allocation11 + $0xcc] sm:$0xf0]  ;;  %v6044_v11 = vld [vmem:[#allocation11 + $0xd4] sm:$0xf0] }
 0x697   :  { %v1978_v63 = vsel %vm1975_vm5, %v1977_v12, %v1973_v39  ;;  %v1992_v31 = vsel %vm1991_vm6, %v6214_v17, %v1988_v4  ;;  %v2006_v1 = vsub.f32 1.0, %v2005_v29  ;;  %v5762_v4 = vld [vmem:[#allocation11 + $0xe0] sm:$0xf]  ;;  %v6045_v12 = vld [vmem:[#allocation11 + $0xe4] sm:$0xf] }
 0x698   :  { %v2020_v49 = vmul.f32 %v6218_v16, %v1978_v63  ;;  %v1997_v9 = vsel %vm1994_vm7, %v1996_v20, %v1992_v31  ;;  %v6048_v16 = vld [vmem:[#allocation11 + $0xf4] sm:$0xf0]  ;;  %v5772_v17 = vld [vmem:[#allocation11 + $0xf8] sm:$0xf0]  ;;  %v7486_v23 = vor.u32 %v6047_v33, %v5762_v4  ;;  %v6041_v31 = vld [vmem:[#allocation11 + $0xc4] sm:$0xf] }
 0x699   :  { %v2007_v57 = vmul.f32 %v6216_v0, %v2006_v1  ;;  %v2019_v50 = vmul.f32 0.0, %v1997_v9  ;;  %v5764_v1 = vld [vmem:[#allocation11 + $0xf0] sm:$0xf0]  ;;  %v5770_v9 = vld [vmem:[#allocation11 + $0xe8] sm:$0xf] }
 0x69a   :  { %v7488_v36 = vor.u32 %v6045_v12, %v5764_v1  ;;  %v7490_v39 = vor.u32 %v6048_v16, %v5770_v9  ;;  %v5730_v33 = vld [vmem:[#allocation11 + $0xa0] sm:$0xf]  ;;  %v6037_v1 = vld [vmem:[#allocation11 + $0xa4] sm:$0xf]  ;;  %v5732_v9 = vld [vmem:[#allocation11 + $0xb0] sm:$0xf0] }
 0x69b   :  { %v7481_v38 = vadd.f32 %v2020_v49, %v2019_v50  ;;  %v2008_v45 = vadd.f32 %v6216_v0, %v2007_v57  ;;  %v6046_v57 = vld [vmem:[#allocation11 + $0xec] sm:$0xf]  ;;  %v5748_v49 = vld [vmem:[#allocation11 + $0xd0] sm:$0xf0]  ;;  %v6040_v16 = vld [vmem:[#allocation11 + $0xb4] sm:$0xf0] }
 0x69c   :  { %8945 = vst [vmem:[#allocation85_spill] sm:$0xff] %v7490_v39  ;;  %v7492_v20 = vor.u32 %v6046_v57, %v5772_v17  ;;  %v7502_v4 = vor.u32 %v6041_v31, %v5748_v49  ;;  %v6038_v57 = vld [vmem:[#allocation11 + $0xac] sm:$0xf]  ;;  %v5740_v17 = vld [vmem:[#allocation11 + $0xb8] sm:$0xf0] }
 0x69d   :  { %6219 = vtanh.f32 %v7481_v38  ;;  %v2012_v15 = vsel %vm2011_vm10, %v6216_v0, %v2008_v45  ;;  %v5746_v0 = vld [vmem:[#allocation11 + $0xc0] sm:$0xf]  ;;  %v5754_v45 = vld [vmem:[#allocation11 + $0xc8] sm:$0xf]  ;;  %v6035_v49 = vld [vmem:[#allocation11 + $0x8c] sm:$0xf0] }
 0x69e   :  { %v2017_v63 = vsel %vm2014_vm11, %v2016_v47, %v2012_v15  ;;  %8946 = vst [vmem:[#allocation86_spill] sm:$0xff] %v7492_v20  ;;  %v5756_v15 = vld [vmem:[#allocation11 + $0xd8] sm:$0xf0]  ;;  %v7500_v47 = vor.u32 %v6043_v8, %v5746_v0  ;;  %v7514_v8 = vor.u32 %v6037_v1, %v5732_v9  ;;  %v5714_v31 = vld [vmem:[#allocation11 + $0x80] sm:$0xf] }
 0x69f   :  { %8948 = vst [vmem:[#allocation88_spill] sm:$0xff] %v7502_v4  ;;  %v7508_v12 = vor.u32 %v6042_v7, %v5756_v15  ;;  %v6033_v7 = vld [vmem:[#allocation11 + $0x84] sm:$0xf]  ;;  %v5716_v15 = vld [vmem:[#allocation11 + $0x90] sm:$0xf0] }
 0x6a0   :  { %8947 = vst [vmem:[#allocation87_spill] sm:$0xff] %v7500_v47  ;;  %v5698_v1 = vld [vmem:[#allocation11 + $0x60] sm:$0xf]  ;;  %v6031_v9 = vld [vmem:[#allocation11 + $0x6c] sm:$0xf0] }
 0x6a1   :  { %8950 = vst [vmem:[#allocation90_spill] sm:$0xff] %v7508_v12 }
 0x6a2   :  { %8952 = vst [vmem:[#allocation92_spill] sm:$0xff] %v7514_v8 }
 0x6a3   :  { %v6220_v29 = vpop.eup %6219 }
 0x6a4   :  { %v2023_v50 = vmul.f32 %v6220_v29, %v2017_v63  ;;  %v6039_v29 = vld [vmem:[#allocation11 + $0xac] sm:$0xf0]  ;;  %v7506_v63 = vor.u32 %v6044_v11, %v5754_v45  ;;  %v7520_v11 = vor.u32 %v6038_v57, %v5740_v17  ;;  %v6029_v57 = vld [vmem:[#allocation11 + $0x64] sm:$0xf]  ;;  %v5700_v17 = vld [vmem:[#allocation11 + $0x70] sm:$0xf0] }
 0x6a5   :  { %v7512_v0 = vor.u32 %v6039_v29, %v5730_v33  ;;  %v7524_v33 = vor.u32 %v6035_v49, %v5714_v31  ;;  %v7526_v29 = vor.u32 %v6033_v7, %v5716_v15  ;;  %v7536_v31 = vor.u32 %v6031_v9, %v5698_v1  ;;  %v5682_v7 = vld [vmem:[#allocation11 + $0x40] sm:$0xf]  ;;  %v6027_v15 = vld [vmem:[#allocation11 + $0x4c] sm:$0xf0]  ;;  %v6028_v1 = vld [vmem:[#allocation11 + $0x54] sm:$0xf0] }
 0x6a6   :  { %v7484_v52 = vpack.c.bf16 %v2023_v50, %v2023_v50  ;;  %8949 = vst [vmem:[#allocation89_spill] sm:$0xff] %v7506_v63  ;;  %v5738_v50 = vld [vmem:[#allocation11 + $0xa8] sm:$0xf]  ;;  %v7538_v49 = vor.u32 %v6029_v57, %v5700_v17  ;;  %v6026_v9 = vld [vmem:[#allocation11 + $0x4c] sm:$0xf] }
 0x6a7   :  { %8951 = vst [vmem:[#allocation91_spill] sm:$0xff] %v7512_v0  ;;  %v7518_v45 = vor.u32 %v6040_v16, %v5738_v50  ;;  %v5692_v57 = vld [vmem:[#allocation11 + $0x58] sm:$0xf0] }
 0x6a8   :  { %2417 = vmatmul.bf16.vlgmr.msrb.gmra.mxu0 %v7484_v52  ;;  %2430 = vmatmul.bf16.vlgmr.msrb.gmra.mxu1 %v7484_v52  ;;  %8954 = vst [vmem:[#allocation94_spill] sm:$0xff] %v7520_v11 }
 0x6a9   :  { %2443 = vmatmul.bf16.vlgmr.msrb.gmra.mxu2 %v7484_v52  ;;  %2456 = vmatmul.bf16.vlgmr.msra.gmra.mxu3 %v7484_v52  ;;  %8953 = vst [vmem:[#allocation93_spill] sm:$0xff] %v7518_v45 }
 0x6aa   :  { %2713 = vmatpush.bf16.msrb.mxu0 %v7486_v23  ;;  %2726 = vmatpush.bf16.msrb.mxu1 %v7488_v36  ;;  %8955 = vst [vmem:[#allocation95_spill] sm:$0xff] %v7524_v33 }
 0x6ab   :  { %2739 = vmatpush.bf16.msrb.mxu2 %v7490_v39  ;;  %2752 = vmatpush.bf16.msra.mxu3 %v7492_v20  ;;  %v5722_v20 = vld [vmem:[#allocation11 + $0x88] sm:$0xf]  ;;  %v6034_v39 = vld [vmem:[#allocation11 + $0x8c] sm:$0xf]  ;;  %8956 = vst [vmem:[#allocation96_spill] sm:$0xff] %v7526_v29 }
 0x6ac   :  { %8959 = vst [vmem:[#allocation99_spill] sm:$0xff] %v7536_v31 }
 0x6ad   :  { %8960 = vst [vmem:[#allocation100_spill] sm:$0xff] %v7538_v49 }
 0x6ae   :  { %2714 = vmatpush.bf16.msrb.mxu0 %v7500_v47  ;;  %2727 = vmatpush.bf16.msrb.mxu1 %v7502_v4  ;;  %v6036_v47 = vld [vmem:[#allocation11 + $0x94] sm:$0xf0]  ;;  %v5724_v4 = vld [vmem:[#allocation11 + $0x98] sm:$0xf0] }
 0x6af   :  { %2740 = vmatpush.bf16.msrb.mxu2 %v7506_v63  ;;  %2753 = vmatpush.bf16.msra.mxu3 %v7508_v12  ;;  %v7530_v50 = vor.u32 %v6036_v47, %v5722_v20  ;;  %v7532_v16 = vor.u32 %v6034_v39, %v5724_v4  ;;  %v5706_v12 = vld [vmem:[#allocation11 + $0x68] sm:$0xf]  ;;  %v6030_v63 = vld [vmem:[#allocation11 + $0x6c] sm:$0xf]  ;;  %v6025_v47 = vld [vmem:[#allocation11 + $0x44] sm:$0xf] }
 0x6b0   :  { %v5684_v4 = vld [vmem:[#allocation11 + $0x50] sm:$0xf0] }
 0x6b1   :  { %8957 = vst [vmem:[#allocation97_spill] sm:$0xff] %v7530_v50 }
 0x6b2   :  { %2715 = vmatpush.bf16.msrb.mxu0 %v7512_v0  ;;  %2728 = vmatpush.bf16.msrb.mxu1 %v7514_v8  ;;  %8958 = vst [vmem:[#allocation98_spill] sm:$0xff] %v7532_v16  ;;  %v6032_v0 = vld [vmem:[#allocation11 + $0x74] sm:$0xf0]  ;;  %v5708_v8 = vld [vmem:[#allocation11 + $0x78] sm:$0xf0] }
 0x6b3   :  { %2741 = vmatpush.bf16.msrb.mxu2 %v7518_v45  ;;  %2754 = vmatpush.bf16.msra.mxu3 %v7520_v11  ;;  %v7542_v39 = vor.u32 %v6032_v0, %v5706_v12  ;;  %v7544_v20 = vor.u32 %v6030_v63, %v5708_v8  ;;  %v5690_v11 = vld [vmem:[#allocation11 + $0x48] sm:$0xf]  ;;  %v7552_v63 = vor.u32 %v6027_v15, %v5682_v7  ;;  %v5666_v0 = vld [vmem:[#allocation11 + $0x20] sm:$0xf]  ;;  %v6023_v8 = vld [vmem:[#allocation11 + $0x2c] sm:$0xf0] }
 0x6b4   :  { %v7554_v12 = vor.u32 %v6025_v47, %v5684_v4  ;;  %v7558_v17 = vor.u32 %v6028_v1, %v5690_v11  ;;  %v7564_v7 = vor.u32 %v6023_v8, %v5666_v0  ;;  %v5650_v47 = vld [vmem:[#allocation11] sm:$0xf]  ;;  %v6019_v4 = vld [vmem:[#allocation11 + $0xc] sm:$0xf0]  ;;  %v8975_v8 = vld [vmem:[#allocation60_spill] sm:$0xff] }
 0x6b5   :  { %8961 = vst [vmem:[#allocation101_spill] sm:$0xff] %v7542_v39 }
 0x6b6   :  { %2716 = vmatpush.bf16.msrb.mxu0 %v7524_v33  ;;  %2729 = vmatpush.bf16.msrb.mxu1 %v7526_v29  ;;  %8962 = vst [vmem:[#allocation102_spill] sm:$0xff] %v7544_v20  ;;  %v5674_v29 = vld [vmem:[#allocation11 + $0x28] sm:$0xf]  ;;  %v6022_v33 = vld [vmem:[#allocation11 + $0x2c] sm:$0xf] }
 0x6b7   :  { %2742 = vmatpush.bf16.msrb.mxu2 %v7530_v50  ;;  %2755 = vmatpush.bf16.msra.mxu3 %v7532_v16  ;;  %8963 = vst [vmem:[#allocation103_spill] sm:$0xff] %v7552_v63  ;;  %v7560_v16 = vor.u32 %v6026_v9, %v5692_v57  ;;  %v6021_v50 = vld [vmem:[#allocation11 + $0x24] sm:$0xf]  ;;  %v5652_v57 = vld [vmem:[#allocation11 + $0x10] sm:$0xf0] }
 0x6b8   :  { %2469 = vmatmul.bf16.vlgmr.msra.gmra.mxu0 %v7484_v52  ;;  %2482 = vmatmul.bf16.vlgmr.msra.gmra.mxu1 %v7484_v52  ;;  %8964 = vst [vmem:[#allocation104_spill] sm:$0xff] %v7554_v12  ;;  %v6017_v9 = vld [vmem:[#allocation11 + $0x4] sm:$0xf] }
 0x6b9   :  { %2495 = vmatmul.bf16.vlgmr.msra.gmra.mxu2 %v7484_v52  ;;  %2508 = vmatmul.bf16.vlgmr.msrb.gmra.mxu3 %v7484_v52  ;;  %v5668_v52 = vld [vmem:[#allocation11 + $0x30] sm:$0xf0]  ;;  %v7578_v0 = vor.u32 %v6017_v9, %v5652_v57  ;;  %v8979_v9 = vld [vmem:[#allocation64_spill] sm:$0xff]  ;;  %v8980_v57 = vld [vmem:[#allocation65_spill] sm:$0xff] }
 0x6ba   :  { %2717 = vmatpush.bf16.msrb.mxu0 %v7536_v31  ;;  %2730 = vmatpush.bf16.msrb.mxu1 %v7538_v49  ;;  %v6024_v31 = vld [vmem:[#allocation11 + $0x34] sm:$0xf0]  ;;  %v5676_v49 = vld [vmem:[#allocation11 + $0x38] sm:$0xf0]  ;;  %v7566_v15 = vor.u32 %v6021_v50, %v5668_v52  ;;  %v7576_v50 = vor.u32 %v6019_v4, %v5650_v47  ;;  %v8976_v52 = vld [vmem:[#allocation61_spill] sm:$0xff] }
 0x6bb   :  { %2743 = vmatpush.bf16.msrb.mxu2 %v7542_v39  ;;  %2756 = vmatpush.bf16.msra.mxu3 %v7544_v20  ;;  %v7570_v11 = vor.u32 %v6024_v31, %v5674_v29  ;;  %v7572_v1 = vor.u32 %v6022_v33, %v5676_v49  ;;  %v5658_v20 = vld [vmem:[#allocation11 + $0x8] sm:$0xf]  ;;  %v6018_v39 = vld [vmem:[#allocation11 + $0xc] sm:$0xf]  ;;  %8966 = vst [vmem:[#allocation106_spill] sm:$0xff] %v7578_v0  ;;  %v8969_v31 = vmov 0  }
 0x6bc   :  { %8965 = vst [vmem:[#allocation105_spill] sm:$0xff] %v7576_v50  ;;  %v8970_v49 = vld [vmem:[#allocation55_spill] sm:$0xff]  ;;  %v8977_v47 = vld [vmem:[#allocation62_spill] sm:$0xff] }
 0x6bd   :  { %v8978_v4 = vld [vmem:[#allocation63_spill] sm:$0xff] }
 0x6be   :  { %2718 = vmatpush.bf16.msrb.mxu0 %v7552_v63  ;;  %2731 = vmatpush.bf16.msrb.mxu1 %v7554_v12  ;;  %v6020_v63 = vld [vmem:[#allocation11 + $0x14] sm:$0xf0]  ;;  %v5660_v12 = vld [vmem:[#allocation11 + $0x18] sm:$0xf0] }
 0x6bf   :  { %2744 = vmatpush.bf16.msrb.mxu2 %v7558_v17  ;;  %2757 = vmatpush.bf16.msra.mxu3 %v7560_v16  ;;  %v7582_v33 = vor.u32 %v6020_v63, %v5658_v20  ;;  %v7584_v29 = vor.u32 %v6018_v39, %v5660_v12  ;;  %v8971_v39 = vld [vmem:[#allocation56_spill] sm:$0xff]  ;;  %v8972_v20 = vld [vmem:[#allocation57_spill] sm:$0xff]  ;;  %v8973_v63 = vld [vmem:[#allocation58_spill] sm:$0xff] }
 0x6c0   :  { %v8974_v12 = vld [vmem:[#allocation59_spill] sm:$0xff] }
 0x6c1   :  { %8967 = vst [vmem:[#allocation107_spill] sm:$0xff] %v7582_v33 }
 0x6c2   :  { %2719 = vmatpush.bf16.msrb.mxu0 %v7564_v7  ;;  %2732 = vmatpush.bf16.msrb.mxu1 %v7566_v15  ;;  %8968 = vst [vmem:[#allocation108_spill] sm:$0xff] %v7584_v29 }
 0x6c3   :  { %2745 = vmatpush.bf16.msrb.mxu2 %v7570_v11  ;;  %2758 = vmatpush.bf16.msra.mxu3 %v7572_v1 }
 0x6c6   :  { %2720 = vmatpush.bf16.msrb.mxu0 %v7576_v50  ;;  %2733 = vmatpush.bf16.msrb.mxu1 %v7578_v0 }
 0x6c7   :  { %2746 = vmatpush.bf16.msrb.mxu2 %v7582_v33  ;;  %2759 = vmatpush.bf16.msra.mxu3 %v7584_v29 }
 0x6c9   :  { %2721 = vmatmul.bf16.vlgmr.msrb.gmra.mxu0 %v8969_v31  ;;  %2734 = vmatmul.bf16.vlgmr.msrb.gmra.mxu1 %v8969_v31 }
 0x6ca   :  { %2896 = vmatpush.bf16.msra.mxu0 %v7234_v56  ;;  %2909 = vmatpush.bf16.msra.mxu1 %v7236_v42 }
 0x6cb   :  { %2747 = vmatmul.bf16.vlgmr.msrb.gmra.mxu2 %v8969_v31  ;;  %2760 = vmatmul.bf16.vlgmr.msra.gmra.mxu3 %v8969_v31  ;;  %v8981_v31 = vld [vmem:[#allocation68_spill] sm:$0xff] }
 0x6cc   :  { %2922 = vmatpush.bf16.msra.mxu2 %v7241_v60  ;;  %2935 = vmatpush.bf16.msrb.mxu3 %v7246_v13 }
 0x6ce   :  { %2897 = vmatpush.bf16.msra.mxu0 %v7259_v14  ;;  %2910 = vmatpush.bf16.msra.mxu1 %v7261_v37 }
 0x6d0   :  { %2923 = vmatpush.bf16.msra.mxu2 %v7263_v19  ;;  %2936 = vmatpush.bf16.msrb.mxu3 %v7267_v28 }
 0x6d2   :  { %2898 = vmatpush.bf16.msra.mxu0 %v7273_v40  ;;  %2911 = vmatpush.bf16.msra.mxu1 %v7279_v62 }
 0x6d4   :  { %2924 = vmatpush.bf16.msra.mxu2 %v7281_v3  ;;  %2937 = vmatpush.bf16.msrb.mxu3 %v7285_v21 }
 0x6d6   :  { %2899 = vmatpush.bf16.msra.mxu0 %v7304_v18  ;;  %2912 = vmatpush.bf16.msra.mxu1 %v7306_v58 }
 0x6d8   :  { %2925 = vmatpush.bf16.msra.mxu2 %v7309_v59  ;;  %2938 = vmatpush.bf16.msrb.mxu3 %v7311_v61 }
 0x6da   :  { %2900 = vmatpush.bf16.msra.mxu0 %v7316_v6  ;;  %2913 = vmatpush.bf16.msra.mxu1 %v7318_v2 }
 0x6dc   :  { %2926 = vmatpush.bf16.msra.mxu2 %v7320_v43  ;;  %2939 = vmatpush.bf16.msrb.mxu3 %v7323_v55 }
 0x6de   :  { %2901 = vmatpush.bf16.msra.mxu0 %v7328_v51  ;;  %2914 = vmatpush.bf16.msra.mxu1 %v7330_v35 }
 0x6e0   :  { %2927 = vmatpush.bf16.msra.mxu2 %v7332_v44  ;;  %2940 = vmatpush.bf16.msrb.mxu3 %v7335_v53 }
 0x6e2   :  { %2902 = vmatpush.bf16.msra.mxu0 %v7340_v46  ;;  %2915 = vmatpush.bf16.msra.mxu1 %v7342_v34 }
 0x6e4   :  { %2928 = vmatpush.bf16.msra.mxu2 %v7344_v41  ;;  %2941 = vmatpush.bf16.msrb.mxu3 %v7347_v54 }
 0x6e6   :  { %2903 = vmatpush.bf16.msra.mxu0 %v7352_v5  ;;  %2916 = vmatpush.bf16.msra.mxu1 %v7354_v22 }
 0x6e8   :  { %2929 = vmatpush.bf16.msra.mxu2 %v7356_v27  ;;  %2942 = vmatpush.bf16.msrb.mxu3 %v7359_v24 }
 0x6ea   :  { %2948 = vmatpush.bf16.msrb.mxu0 %v7362_v48  ;;  %2961 = vmatpush.bf16.msrb.mxu1 %v7364_v10 }
 0x6ec   :  { %2974 = vmatpush.bf16.msrb.mxu2 %v7368_v30  ;;  %2987 = vmatpush.bf16.msra.mxu3 %v7372_v26  ;;  %v8998_v26 = vld [vmem:[#allocation75_spill] sm:$0xff] }
 0x6ee   :  { %2949 = vmatpush.bf16.msrb.mxu0 %v7374_v25  ;;  %2962 = vmatpush.bf16.msrb.mxu1 %v7377_v32  ;;  %v8997_v32 = vld [vmem:[#allocation67_spill] sm:$0xff] }
 0x6f0   :  { %2975 = vmatpush.bf16.msrb.mxu2 %v8970_v49  ;;  %2988 = vmatpush.bf16.msra.mxu3 %v8971_v39  ;;  %v8982_v39 = vld [vmem:[#allocation69_spill] sm:$0xff]  ;;  %v8996_v49 = vld [vmem:[#allocation66_spill] sm:$0xff] }
 0x6f2   :  { %2950 = vmatpush.bf16.msrb.mxu0 %v8972_v20  ;;  %2963 = vmatpush.bf16.msrb.mxu1 %v8973_v63  ;;  %v8983_v20 = vld [vmem:[#allocation70_spill] sm:$0xff]  ;;  %v8984_v63 = vld [vmem:[#allocation71_spill] sm:$0xff] }
 0x6f4   :  { %2976 = vmatpush.bf16.msrb.mxu2 %v8974_v12  ;;  %2989 = vmatpush.bf16.msra.mxu3 %v8975_v8  ;;  %v8985_v12 = vld [vmem:[#allocation72_spill] sm:$0xff]  ;;  %v8986_v8 = vld [vmem:[#allocation73_spill] sm:$0xff] }
 0x6f6   :  { %2951 = vmatpush.bf16.msrb.mxu0 %v8976_v52  ;;  %2964 = vmatpush.bf16.msrb.mxu1 %v8977_v47  ;;  %v8987_v52 = vld [vmem:[#allocation74_spill] sm:$0xff]  ;;  %v8988_v47 = vld [vmem:[#allocation76_spill] sm:$0xff] }
 0x6f8   :  { %2977 = vmatpush.bf16.msrb.mxu2 %v8978_v4  ;;  %2990 = vmatpush.bf16.msra.mxu3 %v8979_v9  ;;  %v8989_v4 = vld [vmem:[#allocation77_spill] sm:$0xff]  ;;  %v8990_v9 = vld [vmem:[#allocation78_spill] sm:$0xff] }
 0x6fa   :  { %2952 = vmatpush.bf16.msrb.mxu0 %v8980_v57  ;;  %2965 = vmatpush.bf16.msrb.mxu1 %v8981_v31  ;;  %v8991_v57 = vld [vmem:[#allocation79_spill] sm:$0xff]  ;;  %v8992_v31 = vld [vmem:[#allocation80_spill] sm:$0xff] }
 0x6fc   :  { %2978 = vmatpush.bf16.msrb.mxu2 %v8982_v39  ;;  %2991 = vmatpush.bf16.msra.mxu3 %v8983_v20  ;;  %v8993_v39 = vld [vmem:[#allocation81_spill] sm:$0xff]  ;;  %v8994_v20 = vld [vmem:[#allocation82_spill] sm:$0xff] }
 0x6fe   :  { %2953 = vmatpush.bf16.msrb.mxu0 %v8984_v63  ;;  %2966 = vmatpush.bf16.msrb.mxu1 %v8985_v12  ;;  %v8995_v63 = vld [vmem:[#allocation83_spill] sm:$0xff] }
 0x700   :  { %2979 = vmatpush.bf16.msrb.mxu2 %v8986_v8  ;;  %2992 = vmatpush.bf16.msra.mxu3 %v8987_v52 }
 0x702   :  { %2954 = vmatpush.bf16.msrb.mxu0 %v8988_v47  ;;  %2967 = vmatpush.bf16.msrb.mxu1 %v8989_v4 }
 0x704   :  { %2980 = vmatpush.bf16.msrb.mxu2 %v8990_v9  ;;  %2993 = vmatpush.bf16.msra.mxu3 %v8991_v57 }
 0x706   :  { %2955 = vmatpush.bf16.msrb.mxu0 %v8992_v31  ;;  %2968 = vmatpush.bf16.msrb.mxu1 %v8993_v39 }
 0x708   :  { %2981 = vmatpush.bf16.msrb.mxu2 %v8994_v20  ;;  %2994 = vmatpush.bf16.msra.mxu3 %v8995_v63 }
 0x725   :  { %v2418_v12 = vpop.f32.mrf.mxu0  ;;  %v2431_v8 = vpop.f32.mrf.mxu1 }
 0x726   :  { %v2513_v52 = vadd.f32 %v2418_v12, %v8996_v49  ;;  %v2514_v47 = vadd.f32 %v2431_v8, %v8997_v32  ;;  %v8999_v49 = vld [vmem:[#allocation84_spill] sm:$0xff] }
 0x728   :  { %v5779_v25 = vmul.f32 -1.442695, %v2513_v52  ;;  %v5780_v4 = vmul.f32 -1.442695, %v2514_v47 }
 0x72a   :  { %6221 = vpow2.f32 %v5779_v25 }
 0x72b   :  { %6223 = vpow2.f32 %v5780_v4 }
 0x72c   :  { %v2444_v9 = vpop.f32.mrf.mxu2  ;;  %v2457_v57 = vpop.f32.mrf.mxu3 }
 0x72d   :  { %v2516_v31 = vadd.f32 %v2457_v57, %v8998_v26  ;;  %v2420_v30 = vpop.f32.mrf.mxu0  ;;  %v2433_v39 = vpop.f32.mrf.mxu1  ;;  %v2515_v57 = vadd.f32 %v2444_v9, %v8999_v49 }
 0x72f   :  { %v5781_v24 = vmul.f32 -1.442695, %v2516_v31 }
 0x730   :  { %v6222_v20 = vpop.eup %6221 }
 0x731   :  { %v6224_v27 = vpop.eup %6223  ;;  %v2835_v63 = vadd.f32 1.0, %v6222_v20  ;;  %6225 = vpow2.f32 %v5781_v24 }
 0x732   :  { %v2854_v10 = vadd.f32 1.0, %v6224_v27 }
 0x733   :  { %6227 = vrcp.f32 %v2835_v63  ;;  %v2845_v9 = vand.u32 2147483647, %v2835_v63  ;;  %vm2841_vm14 = vweird.f32 %v2835_v63 }
 0x734   :  { %6229 = vrcp.f32 %v2854_v10  ;;  %v2446_v12 = vpop.f32.mrf.mxu2  ;;  %v2459_v8 = vpop.f32.mrf.mxu3  ;;  %v2866_v22 = vand.u32 2147483648, %v2854_v10  ;;  %v2864_v54 = vand.u32 2147483647, %v2854_v10  ;;  %vm2860_vm15 = vweird.f32 %v2854_v10 }
 0x735   :  { %v2470_v52 = vpop.f32.mrf.mxu0  ;;  %v2483_v47 = vpop.f32.mrf.mxu1  ;;  %v2847_v12 = vand.u32 2147483648, %v2835_v63  ;;  %v7667_v8 = vld [vmem:[#allocation10] sm:$0xf]  ;;  %vm2846_vm2 = vcmp.eq.f32.partialorder %v2845_v9, 8.507059e+37 }
 0x736   :  { %vm2865_vm3 = vcmp.eq.f32.partialorder %v2864_v54, 8.507059e+37  ;;  %v7682_v54 = vperm.slane %v7667_v8, 3 }
 0x737   :  { %v6226_v25 = vpop.eup %6225 }
 0x738   :  { %v7661_v4 = vadd.f32 1.0, %v6226_v25 }
 0x739   :  { %v6228_v32 = vpop.eup %6227 }
 0x73a   :  { %v6230_v30 = vpop.eup %6229  ;;  %v2837_v39 = vmul.f32 %v6228_v32, %v2835_v63  ;;  %6231 = vrcp.f32 %v7661_v4  ;;  %vm2842_vm12 = vweird.f32 %v6228_v32  ;;  %vm2880_vm5 = vweird.f32 %v7661_v4 }
 0x73b   :  { %v2856_v31 = vmul.f32 %v6230_v30, %v2854_v10  ;;  %6233 = vtanh.f32 %v2515_v57  ;;  %vm2861_vm13 = vweird.f32 %v6230_v30  ;;  %vm2843_vm0 = vmor %vm2841_vm14, %vm2842_vm12 }
 0x73c   :  { %v2838_v20 = vsub.f32 1.0, %v2837_v39  ;;  %v7665_v24 = vpop.f32.mrf.mxu2  ;;  %v2509_v27 = vpop.f32.mrf.mxu3  ;;  %v7670_v39 = vperm.slane %v7667_v8, 0  ;;  %vm2862_vm1 = vmor %vm2860_vm15, %vm2861_vm13 }
 0x73d   :  { %v2857_v26 = vsub.f32 1.0, %v2856_v31  ;;  %v2472_v48 = vpop.f32.mrf.mxu0  ;;  %v2485_v25 = vpop.f32.mrf.mxu1  ;;  %v7673_v31 = vperm.slane %v7667_v8, 1 }
 0x73e   :  { %v2839_v5 = vmul.f32 %v6228_v32, %v2838_v20  ;;  %v2848_v48 = vor.u32 1.1754944e-38, %v2847_v12  ;;  %v2867_v25 = vor.u32 1.1754944e-38, %v2866_v22 }
 0x73f   :  { %v2858_v49 = vmul.f32 %v6230_v30, %v2857_v26  ;;  %v2518_v12 = vadd.f32 %v2483_v47, %v7673_v31 }
 0x740   :  { %v6232_v41 = vpop.eup %6231  ;;  %v2840_v34 = vadd.f32 %v6228_v32, %v2839_v5 }
 0x741   :  { %v2859_v57 = vadd.f32 %v6230_v30, %v2858_v49  ;;  %v2876_v20 = vmul.f32 %v6232_v41, %v7661_v4  ;;  %v6234_v46 = vpop.eup %6233  ;;  %v2517_v49 = vadd.f32 %v2470_v52, %v7670_v39  ;;  %vm2881_vm4 = vweird.f32 %v6232_v41 }
 0x742   :  { %v2844_v26 = vsel %vm2843_vm0, %v6228_v32, %v2840_v34  ;;  %vm2882_vm6 = vmor %vm2880_vm5, %vm2881_vm4 }
 0x743   :  { %v2849_v53 = vsel %vm2846_vm2, %v2848_v48, %v2844_v26  ;;  %v2863_v5 = vsel %vm2862_vm1, %v6230_v30, %v2859_v57  ;;  %v2877_v63 = vsub.f32 1.0, %v2876_v20 }
 0x744   :  { %v2868_v44 = vsel %vm2865_vm3, %v2867_v25, %v2863_v5  ;;  %v2891_v35 = vmul.f32 %v6234_v46, %v2849_v53  ;;  %v2498_v51 = vpop.f32.mrf.mxu2  ;;  %v2511_v55 = vpop.f32.mrf.mxu3  ;;  %v2884_v53 = vand.u32 2147483647, %v7661_v4 }
 0x745   :  { %v2890_v10 = vmul.f32 %v2868_v44, %v7481_v38  ;;  %v2878_v43 = vmul.f32 %v6232_v41, %v2877_v63  ;;  %v2886_v55 = vand.u32 2147483648, %v7661_v4 }
 0x746   :  { %v2722_v2 = vpop.f32.mrf.mxu0  ;;  %v2735_v22 = vpop.f32.mrf.mxu1  ;;  %vm2885_vm7 = vcmp.eq.f32.partialorder %v2884_v53, 8.507059e+37  ;;  %v9003_v53 = vld [vmem:[#allocation88_spill] sm:$0xff] }
 0x747   :  { %v7679_v34 = vadd.f32 %v2891_v35, %v2890_v10  ;;  %v2765_v32 = vadd.f32 %v2722_v2, %v2517_v49  ;;  %v2766_v9 = vadd.f32 %v2735_v22, %v2518_v12  ;;  %v2879_v30 = vadd.f32 %v6232_v41, %v2878_v43  ;;  %v9000_v22 = vld [vmem:[#allocation85_spill] sm:$0xff] }
 0x748   :  { %v2520_v2 = vadd.f32 %v2509_v27, %v7682_v54  ;;  %v2887_v43 = vor.u32 1.1754944e-38, %v2886_v55  ;;  %v7692_v27 = vperm.slane %v7667_v8, 2  ;;  %v9001_v8 = vld [vmem:[#allocation86_spill] sm:$0xff] }
 0x749   :  { %6235 = vtanh.f32 %v7679_v34  ;;  %v5776_v51 = vmul.f32 -1.442695, %v2765_v32  ;;  %v5777_v44 = vmul.f32 -1.442695, %v2766_v9  ;;  %v2883_v35 = vsel %vm2882_vm6, %v6232_v41, %v2879_v30 }
 0x74a   :  { %v2888_v20 = vsel %vm2885_vm7, %v2887_v43, %v2883_v35  ;;  %v2519_v9 = vadd.f32 %v7665_v24, %v7692_v27  ;;  %v9004_v43 = vld [vmem:[#allocation89_spill] sm:$0xff] }
 0x74b   :  { %6237 = vpow2.f32 %v5776_v51 }
 0x74c   :  { %6239 = vpow2.f32 %v5777_v44  ;;  %v9002_v44 = vld [vmem:[#allocation87_spill] sm:$0xff] }
 0x74e   :  { %v2748_v46 = vpop.f32.mrf.mxu2  ;;  %v2761_v38 = vpop.f32.mrf.mxu3 }
 0x74f   :  { %v2768_v52 = vadd.f32 %v2761_v38, %v2520_v2  ;;  %v2724_v47 = vpop.f32.mrf.mxu0  ;;  %v2737_v48 = vpop.f32.mrf.mxu1  ;;  %v2767_v51 = vadd.f32 %v2748_v46, %v2519_v9  ;;  %v9005_v38 = vld [vmem:[#allocation90_spill] sm:$0xff]  ;;  %v9007_v46 = vld [vmem:[#allocation92_spill] sm:$0xff] }
 0x750   :  { %v6236_v57 = vpop.eup %6235 }
 0x751   :  { %v2894_v25 = vmul.f32 %v6236_v57, %v2888_v20  ;;  %v5778_v26 = vmul.f32 -1.442695, %v2768_v52  ;;  %v6238_v5 = vpop.eup %6237  ;;  %v9006_v57 = vld [vmem:[#allocation91_spill] sm:$0xff] }
 0x752   :  { %v6240_v63 = vpop.eup %6239  ;;  %v2772_v10 = vadd.f32 1.0, %v6238_v5  ;;  %v9008_v5 = vld [vmem:[#allocation94_spill] sm:$0xff] }
 0x753   :  { %v7689_v4 = vpack.c.bf16 %v2894_v25, %v2894_v25  ;;  %6241 = vpow2.f32 %v5778_v26  ;;  %v2791_v41 = vadd.f32 1.0, %v6240_v63 }
 0x754   :  { %6243 = vrcp.f32 %v2772_v10  ;;  %v2784_v24 = vand.u32 2147483648, %v2772_v10  ;;  %v2782_v26 = vand.u32 2147483647, %v2772_v10  ;;  %vm2778_vm10 = vweird.f32 %v2772_v10 }
 0x755   :  { %2904 = vmatmul.bf16.vlgmr.msra.gmra.mxu0 %v7689_v4  ;;  %2917 = vmatmul.bf16.vlgmr.msra.gmra.mxu1 %v7689_v4  ;;  %6245 = vrcp.f32 %v2791_v41  ;;  %v2803_v20 = vand.u32 2147483648, %v2791_v41  ;;  %vm2797_vm11 = vweird.f32 %v2791_v41 }
 0x756   :  { %v2763_v49 = vpop.f32.mrf.mxu3  ;;  %2930 = vmatmul.bf16.vlgmr.msra.gmra.mxu2 %v7689_v4  ;;  %2943 = vmatmul.bf16.vlgmr.msrb.gmra.mxu3 %v7689_v4  ;;  %v2750_v12 = vpop.f32.mrf.mxu2  ;;  %v2785_v9 = vor.u32 1.1754944e-38, %v2784_v24  ;;  %vm2783_vm13 = vcmp.eq.f32.partialorder %v2782_v26, 8.507059e+37  ;;  %v9013_v26 = vld [vmem:[#allocation99_spill] sm:$0xff] }
 0x757   :  { %3009 = vmatpush.bf16.msra.mxu0 %v7486_v23  ;;  %3022 = vmatpush.bf16.msra.mxu1 %v7488_v36  ;;  %v2801_v49 = vand.u32 2147483647, %v2791_v41 }
 0x758   :  { %3035 = vmatpush.bf16.msra.mxu2 %v9000_v22  ;;  %3048 = vmatpush.bf16.msrb.mxu3 %v9001_v8 }
 0x759   :  { %v6242_v32 = vpop.eup %6241  ;;  %vm2802_vm15 = vcmp.eq.f32.partialorder %v2801_v49, 8.507059e+37 }
 0x75a   :  { %v7704_v30 = vadd.f32 1.0, %v6242_v32  ;;  %v6244_v55 = vpop.eup %6243 }
 0x75b   :  { %3010 = vmatpush.bf16.msra.mxu0 %v9002_v44  ;;  %3023 = vmatpush.bf16.msra.mxu1 %v9003_v53  ;;  %v6246_v35 = vpop.eup %6245  ;;  %v2774_v2 = vmul.f32 %v6244_v55, %v2772_v10  ;;  %vm2779_vm8 = vweird.f32 %v6244_v55 }
 0x75c   :  { %6247 = vrcp.f32 %v7704_v30  ;;  %3036 = vmatpush.bf16.msra.mxu2 %v9004_v43  ;;  %3049 = vmatpush.bf16.msrb.mxu3 %v9005_v38  ;;  %v2793_v52 = vmul.f32 %v6246_v35, %v2791_v41  ;;  %vm2798_vm9 = vweird.f32 %v6246_v35  ;;  %vm2780_vm12 = vmor %vm2778_vm10, %vm2779_vm8  ;;  %vm2817_vm1 = vweird.f32 %v7704_v30 }
 0x75d   :  { %v2775_v47 = vsub.f32 1.0, %v2774_v2  ;;  %6249 = vtanh.f32 %v2767_v51  ;;  %vm2799_vm14 = vmor %vm2797_vm11, %vm2798_vm9 }
 0x75e   :  { %v2794_v48 = vsub.f32 1.0, %v2793_v52  ;;  %v9009_v52 = vld [vmem:[#allocation95_spill] sm:$0xff] }
 0x75f   :  { %3011 = vmatpush.bf16.msra.mxu0 %v9006_v57  ;;  %3024 = vmatpush.bf16.msra.mxu1 %v9007_v46  ;;  %v2776_v25 = vmul.f32 %v6244_v55, %v2775_v47  ;;  %v9010_v47 = vld [vmem:[#allocation96_spill] sm:$0xff]  ;;  %v2804_v46 = vor.u32 1.1754944e-38, %v2803_v20 }
 0x760   :  { %3037 = vmatpush.bf16.msra.mxu2 %v7518_v45  ;;  %3050 = vmatpush.bf16.msrb.mxu3 %v9008_v5  ;;  %v2795_v63 = vmul.f32 %v6246_v35, %v2794_v48  ;;  %v9011_v48 = vld [vmem:[#allocation97_spill] sm:$0xff]  ;;  %v9012_v5 = vld [vmem:[#allocation98_spill] sm:$0xff] }
 0x761   :  { %v2777_v32 = vadd.f32 %v6244_v55, %v2776_v25 }
 0x762   :  { %v6248_v12 = vpop.eup %6247  ;;  %v2796_v51 = vadd.f32 %v6246_v35, %v2795_v63 }
 0x763   :  { %v2813_v2 = vmul.f32 %v6248_v12, %v7704_v30  ;;  %3012 = vmatpush.bf16.msra.mxu0 %v9009_v52  ;;  %3025 = vmatpush.bf16.msra.mxu1 %v9010_v47  ;;  %v2781_v45 = vsel %vm2780_vm12, %v6244_v55, %v2777_v32  ;;  %v6250_v10 = vpop.eup %6249  ;;  %v9014_v32 = vld [vmem:[#allocation100_spill] sm:$0xff]  ;;  %vm2818_vm0 = vweird.f32 %v6248_v12 }
 0x764   :  { %3038 = vmatpush.bf16.msra.mxu2 %v9011_v48  ;;  %3051 = vmatpush.bf16.msrb.mxu3 %v9012_v5  ;;  %v2786_v41 = vsel %vm2783_vm13, %v2785_v9, %v2781_v45  ;;  %v2800_v25 = vsel %vm2799_vm14, %v6246_v35, %v2796_v51  ;;  %v9015_v45 = vld [vmem:[#allocation101_spill] sm:$0xff]  ;;  %v9016_v35 = vld [vmem:[#allocation102_spill] sm:$0xff]  ;;  %v9017_v51 = vld [vmem:[#allocation103_spill] sm:$0xff] }
 0x765   :  { %v2814_v24 = vsub.f32 1.0, %v2813_v2  ;;  %2956 = vmatmul.bf16.vlgmr.msrb.gmra.mxu0 %v7689_v4  ;;  %2969 = vmatmul.bf16.vlgmr.msrb.gmra.mxu1 %v7689_v4  ;;  %v2805_v63 = vsel %vm2802_vm15, %v2804_v46, %v2800_v25  ;;  %v2828_v47 = vmul.f32 %v6250_v10, %v2786_v41  ;;  %v2823_v46 = vand.u32 2147483648, %v7704_v30  ;;  %vm2819_vm2 = vmor %vm2817_vm1, %vm2818_vm0 }
 0x766   :  { %2982 = vmatmul.bf16.vlgmr.msrb.gmra.mxu2 %v7689_v4  ;;  %2995 = vmatmul.bf16.vlgmr.msra.gmra.mxu3 %v7689_v4  ;;  %v2827_v55 = vmul.f32 0.0, %v2805_v63  ;;  %v9018_v4 = vld [vmem:[#allocation104_spill] sm:$0xff]  ;;  %v2821_v2 = vand.u32 2147483647, %v7704_v30  ;;  %v9021_v63 = vld [vmem:[#allocation22_spill] sm:$0xff] }
 0x767   :  { %v2815_v20 = vmul.f32 %v6248_v12, %v2814_v24  ;;  %3013 = vmatpush.bf16.msra.mxu0 %v9013_v26  ;;  %3026 = vmatpush.bf16.msra.mxu1 %v9014_v32  ;;  %v2824_v10 = vor.u32 1.1754944e-38, %v2823_v46  ;;  %v9025_v46 = vld [vmem:[#allocation39_spill] sm:$0xff] }
 0x768   :  { %3039 = vmatpush.bf16.msra.mxu2 %v9015_v45  ;;  %3052 = vmatpush.bf16.msrb.mxu3 %v9016_v35  ;;  %v7729_v49 = vadd.f32 %v2828_v47, %v2827_v55  ;;  %vm2822_vm3 = vcmp.eq.f32.partialorder %v2821_v2, 8.507059e+37  ;;  %v9022_v55 = vld [vmem:[#allocation37_spill] sm:$0xff]  ;;  %v9026_v2 = vld [vmem:[#allocation40_spill] sm:$0xff] }
 0x769   :  { %v2816_v9 = vadd.f32 %v6248_v12, %v2815_v20  ;;  %v9023_v20 = vld [vmem:[#allocation30_spill] sm:$0xff] }
 0x76a   :  { %6251 = vtanh.f32 %v7729_v49 }
 0x76b   :  { %3014 = vmatpush.bf16.msra.mxu0 %v9017_v51  ;;  %3027 = vmatpush.bf16.msra.mxu1 %v9018_v4  ;;  %v2820_v47 = vsel %vm2819_vm2, %v6248_v12, %v2816_v9  ;;  %v9020_v12 = vld [vmem:[#allocation36_spill] sm:$0xff]  ;;  %v9024_v9 = vld [vmem:[#allocation38_spill] sm:$0xff] }
 0x76c   :  { %3040 = vmatpush.bf16.msra.mxu2 %v7558_v17  ;;  %3053 = vmatpush.bf16.msrb.mxu3 %v7560_v16  ;;  %v2825_v25 = vsel %vm2822_vm3, %v2824_v10, %v2820_v47  ;;  %v9027_v47 = vld [vmem:[#allocation41_spill] sm:$0xff]  ;;  %v9028_v10 = vld [vmem:[#allocation42_spill] sm:$0xff] }
 0x76f   :  { %3015 = vmatpush.bf16.msra.mxu0 %v7564_v7  ;;  %3028 = vmatpush.bf16.msra.mxu1 %v7566_v15 }
 0x770   :  { %3041 = vmatpush.bf16.msra.mxu2 %v7570_v11  ;;  %3054 = vmatpush.bf16.msrb.mxu3 %v7572_v1  ;;  %v6252_v41 = vpop.eup %6251 }
 0x771   :  { %v7743_v24 = vmul.f32 %v6252_v41, %v2825_v25  ;;  %v9029_v41 = vld [vmem:[#allocation43_spill] sm:$0xff]  ;;  %v9030_v25 = vld [vmem:[#allocation44_spill] sm:$0xff] }
 0x773   :  { %9019 = vst [vmem:[#allocation85_spill] sm:$0xff] %v7743_v24  ;;  %3016 = vmatpush.bf16.msra.mxu0 %v7576_v50  ;;  %3029 = vmatpush.bf16.msra.mxu1 %v7578_v0  ;;  %v3008_v30 = vpack.c.bf16 %v7743_v24, %v7743_v24  ;;  %v9032_v24 = vld [vmem:[#allocation46_spill] sm:$0xff] }
 0x774   :  { %3042 = vmatpush.bf16.msra.mxu2 %v7582_v33  ;;  %3055 = vmatpush.bf16.msrb.mxu3 %v7584_v29 }
 0x776   :  { %3017 = vmatmul.bf16.vlgmr.msra.gmra.mxu0 %v3008_v30  ;;  %3030 = vmatmul.bf16.vlgmr.msra.gmra.mxu1 %v3008_v30 }
 0x777   :  { %3192 = vmatpush.bf16.msrb.mxu0 %v7234_v56  ;;  %3205 = vmatpush.bf16.msrb.mxu1 %v7236_v42 }
 0x778   :  { %3043 = vmatmul.bf16.vlgmr.msra.gmra.mxu2 %v3008_v30  ;;  %3056 = vmatmul.bf16.vlgmr.msrb.gmra.mxu3 %v3008_v30  ;;  %v9031_v30 = vld [vmem:[#allocation45_spill] sm:$0xff] }
 0x779   :  { %3218 = vmatpush.bf16.msrb.mxu2 %v7241_v60  ;;  %3231 = vmatpush.bf16.msra.mxu3 %v7246_v13 }
 0x77b   :  { %3193 = vmatpush.bf16.msrb.mxu0 %v7259_v14  ;;  %3206 = vmatpush.bf16.msrb.mxu1 %v7261_v37 }
 0x77d   :  { %3219 = vmatpush.bf16.msrb.mxu2 %v7263_v19  ;;  %3232 = vmatpush.bf16.msra.mxu3 %v7267_v28 }
 0x77f   :  { %3194 = vmatpush.bf16.msrb.mxu0 %v7273_v40  ;;  %3207 = vmatpush.bf16.msrb.mxu1 %v7279_v62 }
 0x781   :  { %3220 = vmatpush.bf16.msrb.mxu2 %v7281_v3  ;;  %3233 = vmatpush.bf16.msra.mxu3 %v7285_v21 }
 0x783   :  { %3195 = vmatpush.bf16.msrb.mxu0 %v7304_v18  ;;  %3208 = vmatpush.bf16.msrb.mxu1 %v7306_v58 }
 0x785   :  { %3221 = vmatpush.bf16.msrb.mxu2 %v7309_v59  ;;  %3234 = vmatpush.bf16.msra.mxu3 %v7311_v61  ;;  %v9069_v61 = vld [vmem:[#allocation75_spill] sm:$0xff] }
 0x787   :  { %3196 = vmatpush.bf16.msrb.mxu0 %v7316_v6  ;;  %3209 = vmatpush.bf16.msrb.mxu1 %v9020_v12  ;;  %v9068_v12 = vld [vmem:[#allocation67_spill] sm:$0xff] }
 0x789   :  { %3222 = vmatpush.bf16.msrb.mxu2 %v9021_v63  ;;  %3235 = vmatpush.bf16.msra.mxu3 %v9022_v55  ;;  %v9033_v55 = vld [vmem:[#allocation49_spill] sm:$0xff]  ;;  %v9067_v63 = vld [vmem:[#allocation66_spill] sm:$0xff] }
 0x78b   :  { %3197 = vmatpush.bf16.msrb.mxu0 %v9023_v20  ;;  %3210 = vmatpush.bf16.msrb.mxu1 %v9024_v9  ;;  %v9034_v20 = vld [vmem:[#allocation50_spill] sm:$0xff]  ;;  %v9035_v9 = vld [vmem:[#allocation47_spill] sm:$0xff] }
 0x78d   :  { %3223 = vmatpush.bf16.msrb.mxu2 %v9025_v46  ;;  %3236 = vmatpush.bf16.msra.mxu3 %v9026_v2  ;;  %v9036_v46 = vld [vmem:[#allocation48_spill] sm:$0xff]  ;;  %v9037_v2 = vld [vmem:[#allocation51_spill] sm:$0xff] }
 0x78f   :  { %3198 = vmatpush.bf16.msrb.mxu0 %v9027_v47  ;;  %3211 = vmatpush.bf16.msrb.mxu1 %v9028_v10  ;;  %v9038_v47 = vld [vmem:[#allocation52_spill] sm:$0xff]  ;;  %v9039_v10 = vld [vmem:[#allocation53_spill] sm:$0xff] }
 0x791   :  { %3224 = vmatpush.bf16.msrb.mxu2 %v9029_v41  ;;  %3237 = vmatpush.bf16.msra.mxu3 %v9030_v25  ;;  %v9040_v41 = vld [vmem:[#allocation54_spill] sm:$0xff]  ;;  %v9041_v25 = vld [vmem:[#allocation55_spill] sm:$0xff] }
 0x793   :  { %3199 = vmatpush.bf16.msrb.mxu0 %v9031_v30  ;;  %3212 = vmatpush.bf16.msrb.mxu1 %v9032_v24  ;;  %v9042_v30 = vld [vmem:[#allocation56_spill] sm:$0xff]  ;;  %v9043_v24 = vld [vmem:[#allocation57_spill] sm:$0xff] }
 0x795   :  { %3225 = vmatpush.bf16.msrb.mxu2 %v9035_v9  ;;  %3238 = vmatpush.bf16.msra.mxu3 %v9036_v46  ;;  %v9046_v9 = vld [vmem:[#allocation60_spill] sm:$0xff]  ;;  %v9047_v46 = vld [vmem:[#allocation61_spill] sm:$0xff] }
 0x797   :  { %3244 = vmatpush.bf16.msra.mxu0 %v9033_v55  ;;  %3257 = vmatpush.bf16.msra.mxu1 %v9034_v20  ;;  %v9044_v55 = vld [vmem:[#allocation58_spill] sm:$0xff]  ;;  %v9045_v20 = vld [vmem:[#allocation59_spill] sm:$0xff] }
 0x799   :  { %3270 = vmatpush.bf16.msra.mxu2 %v9037_v2  ;;  %3283 = vmatpush.bf16.msrb.mxu3 %v9038_v47  ;;  %v9048_v2 = vld [vmem:[#allocation62_spill] sm:$0xff]  ;;  %v9049_v47 = vld [vmem:[#allocation63_spill] sm:$0xff] }
 0x79b   :  { %3245 = vmatpush.bf16.msra.mxu0 %v9039_v10  ;;  %3258 = vmatpush.bf16.msra.mxu1 %v9040_v41  ;;  %v9050_v10 = vld [vmem:[#allocation64_spill] sm:$0xff]  ;;  %v9051_v41 = vld [vmem:[#allocation65_spill] sm:$0xff] }
 0x79d   :  { %3271 = vmatpush.bf16.msra.mxu2 %v9041_v25  ;;  %3284 = vmatpush.bf16.msrb.mxu3 %v9042_v30  ;;  %v9052_v25 = vld [vmem:[#allocation68_spill] sm:$0xff]  ;;  %v9053_v30 = vld [vmem:[#allocation69_spill] sm:$0xff] }
 0x79f   :  { %3246 = vmatpush.bf16.msra.mxu0 %v9043_v24  ;;  %3259 = vmatpush.bf16.msra.mxu1 %v9044_v55  ;;  %v9054_v24 = vld [vmem:[#allocation70_spill] sm:$0xff]  ;;  %v9055_v55 = vld [vmem:[#allocation71_spill] sm:$0xff] }
 0x7a1   :  { %3272 = vmatpush.bf16.msra.mxu2 %v9045_v20  ;;  %3285 = vmatpush.bf16.msrb.mxu3 %v9046_v9  ;;  %v9056_v20 = vld [vmem:[#allocation72_spill] sm:$0xff]  ;;  %v9057_v9 = vld [vmem:[#allocation73_spill] sm:$0xff] }
 0x7a3   :  { %3247 = vmatpush.bf16.msra.mxu0 %v9047_v46  ;;  %3260 = vmatpush.bf16.msra.mxu1 %v9048_v2  ;;  %v9058_v46 = vld [vmem:[#allocation74_spill] sm:$0xff]  ;;  %v9059_v2 = vld [vmem:[#allocation76_spill] sm:$0xff] }
 0x7a5   :  { %3273 = vmatpush.bf16.msra.mxu2 %v9049_v47  ;;  %3286 = vmatpush.bf16.msrb.mxu3 %v9050_v10  ;;  %v9060_v47 = vld [vmem:[#allocation77_spill] sm:$0xff]  ;;  %v9061_v10 = vld [vmem:[#allocation78_spill] sm:$0xff] }
 0x7a7   :  { %3248 = vmatpush.bf16.msra.mxu0 %v9051_v41  ;;  %3261 = vmatpush.bf16.msra.mxu1 %v9052_v25  ;;  %v9062_v41 = vld [vmem:[#allocation79_spill] sm:$0xff]  ;;  %v9063_v25 = vld [vmem:[#allocation80_spill] sm:$0xff] }
 0x7a9   :  { %3274 = vmatpush.bf16.msra.mxu2 %v9053_v30  ;;  %3287 = vmatpush.bf16.msrb.mxu3 %v9054_v24  ;;  %v9064_v30 = vld [vmem:[#allocation81_spill] sm:$0xff]  ;;  %v9065_v24 = vld [vmem:[#allocation82_spill] sm:$0xff] }
 0x7ab   :  { %3249 = vmatpush.bf16.msra.mxu0 %v9055_v55  ;;  %3262 = vmatpush.bf16.msra.mxu1 %v9056_v20  ;;  %v9066_v55 = vld [vmem:[#allocation83_spill] sm:$0xff] }
 0x7ad   :  { %3275 = vmatpush.bf16.msra.mxu2 %v9057_v9  ;;  %3288 = vmatpush.bf16.msrb.mxu3 %v9058_v46 }
 0x7af   :  { %3250 = vmatpush.bf16.msra.mxu0 %v9059_v2  ;;  %3263 = vmatpush.bf16.msra.mxu1 %v9060_v47 }
 0x7b1   :  { %3276 = vmatpush.bf16.msra.mxu2 %v9061_v10  ;;  %3289 = vmatpush.bf16.msrb.mxu3 %v9062_v41 }
 0x7b3   :  { %3251 = vmatpush.bf16.msra.mxu0 %v9063_v25  ;;  %3264 = vmatpush.bf16.msra.mxu1 %v9064_v30 }
 0x7b5   :  { %3277 = vmatpush.bf16.msra.mxu2 %v9065_v24  ;;  %3290 = vmatpush.bf16.msrb.mxu3 %v9066_v55 }
 0x7d2   :  { %v2905_v20 = vpop.f32.mrf.mxu0  ;;  %v2918_v9 = vpop.f32.mrf.mxu1 }
 0x7d3   :  { %v3000_v46 = vadd.f32 %v2905_v20, %v9067_v63  ;;  %v3001_v2 = vadd.f32 %v2918_v9, %v9068_v12  ;;  %v9070_v63 = vld [vmem:[#allocation84_spill] sm:$0xff] }
 0x7d5   :  { %v5785_v6 = vmul.f32 -1.442695, %v3000_v46  ;;  %v5786_v47 = vmul.f32 -1.442695, %v3001_v2 }
 0x7d7   :  { %6253 = vpow2.f32 %v5785_v6 }
 0x7d8   :  { %6255 = vpow2.f32 %v5786_v47 }
 0x7d9   :  { %v2931_v10 = vpop.f32.mrf.mxu2  ;;  %v2944_v41 = vpop.f32.mrf.mxu3 }
 0x7da   :  { %v3003_v25 = vadd.f32 %v2944_v41, %v9069_v61  ;;  %v2907_v59 = vpop.f32.mrf.mxu0  ;;  %v2920_v30 = vpop.f32.mrf.mxu1  ;;  %v3002_v41 = vadd.f32 %v2931_v10, %v9070_v63 }
 0x7dc   :  { %v5787_v58 = vmul.f32 -1.442695, %v3003_v25 }
 0x7dd   :  { %v6254_v24 = vpop.eup %6253 }
 0x7de   :  { %v6256_v18 = vpop.eup %6255  ;;  %v3131_v55 = vadd.f32 1.0, %v6254_v24  ;;  %6257 = vpow2.f32 %v5787_v58 }
 0x7df   :  { %v3150_v21 = vadd.f32 1.0, %v6256_v18 }
 0x7e0   :  { %6259 = vrcp.f32 %v3131_v55  ;;  %v3141_v40 = vand.u32 2147483647, %v3131_v55  ;;  %vm3137_vm6 = vweird.f32 %v3131_v55 }
 0x7e1   :  { %6261 = vrcp.f32 %v3150_v21  ;;  %v2933_v20 = vpop.f32.mrf.mxu2  ;;  %v2946_v9 = vpop.f32.mrf.mxu3  ;;  %v3162_v62 = vand.u32 2147483648, %v3150_v21  ;;  %v3160_v10 = vand.u32 2147483647, %v3150_v21  ;;  %vm3156_vm7 = vweird.f32 %v3150_v21 }
 0x7e2   :  { %v2957_v46 = vpop.f32.mrf.mxu0  ;;  %v2970_v2 = vpop.f32.mrf.mxu1  ;;  %v3143_v20 = vand.u32 2147483648, %v3131_v55  ;;  %vm3142_vm10 = vcmp.eq.f32.partialorder %v3141_v40, 8.507059e+37 }
 0x7e3   :  { %vm3161_vm11 = vcmp.eq.f32.partialorder %v3160_v10, 8.507059e+37 }
 0x7e4   :  { %v6258_v6 = vpop.eup %6257 }
 0x7e5   :  { %v7818_v47 = vadd.f32 1.0, %v6258_v6 }
 0x7e6   :  { %v6260_v12 = vpop.eup %6259 }
 0x7e7   :  { %v6262_v59 = vpop.eup %6261  ;;  %v3133_v30 = vmul.f32 %v6260_v12, %v3131_v55  ;;  %6263 = vrcp.f32 %v7818_v47  ;;  %vm3138_vm4 = vweird.f32 %v6260_v12  ;;  %vm3176_vm13 = vweird.f32 %v7818_v47 }
 0x7e8   :  { %v3152_v25 = vmul.f32 %v6262_v59, %v3150_v21  ;;  %6265 = vtanh.f32 %v3002_v41  ;;  %vm3157_vm5 = vweird.f32 %v6262_v59  ;;  %vm3139_vm8 = vmor %vm3137_vm6, %vm3138_vm4  ;;  %v3163_v41 = vor.u32 1.1754944e-38, %v3162_v62 }
 0x7e9   :  { %v3134_v24 = vsub.f32 1.0, %v3133_v30  ;;  %v7822_v58 = vpop.f32.mrf.mxu2  ;;  %v2996_v18 = vpop.f32.mrf.mxu3  ;;  %v3144_v30 = vor.u32 1.1754944e-38, %v3143_v20  ;;  %vm3158_vm9 = vmor %vm3156_vm7, %vm3157_vm5  ;;  %v3005_v20 = vadd.f32 %v2970_v2, %v7673_v31 }
 0x7ea   :  { %v3153_v61 = vsub.f32 1.0, %v3152_v25  ;;  %v2959_v9 = vpop.f32.mrf.mxu0  ;;  %v2972_v3 = vpop.f32.mrf.mxu1 }
 0x7eb   :  { %v3135_v6 = vmul.f32 %v6260_v12, %v3134_v24 }
 0x7ec   :  { %v3154_v28 = vmul.f32 %v6262_v59, %v3153_v61 }
 0x7ed   :  { %v6264_v63 = vpop.eup %6263  ;;  %v3136_v19 = vadd.f32 %v6260_v12, %v3135_v6 }
 0x7ee   :  { %v3155_v37 = vadd.f32 %v6262_v59, %v3154_v28  ;;  %v3172_v25 = vmul.f32 %v6264_v63, %v7818_v47  ;;  %v6266_v3 = vpop.eup %6265  ;;  %v3004_v28 = vadd.f32 %v2957_v46, %v7670_v39  ;;  %vm3177_vm12 = vweird.f32 %v6264_v63 }
 0x7ef   :  { %v3140_v9 = vsel %vm3139_vm8, %v6260_v12, %v3136_v19  ;;  %vm3178_vm14 = vmor %vm3176_vm13, %vm3177_vm12 }
 0x7f0   :  { %v3145_v24 = vsel %vm3142_vm10, %v3144_v30, %v3140_v9  ;;  %v3159_v14 = vsel %vm3158_vm9, %v6262_v59, %v3155_v37  ;;  %v3173_v61 = vsub.f32 1.0, %v3172_v25 }
 0x7f1   :  { %v3164_v13 = vsel %vm3161_vm11, %v3163_v41, %v3159_v14  ;;  %v3187_v60 = vmul.f32 %v6266_v3, %v3145_v24  ;;  %v2985_v42 = vpop.f32.mrf.mxu2  ;;  %v2998_v6 = vpop.f32.mrf.mxu3 }
 0x7f2   :  { %v3186_v21 = vmul.f32 %v3164_v13, %v7679_v34  ;;  %v3174_v55 = vmul.f32 %v6264_v63, %v3173_v61  ;;  %v3182_v42 = vand.u32 2147483648, %v7818_v47  ;;  %v3180_v13 = vand.u32 2147483647, %v7818_v47 }
 0x7f3   :  { %v3018_v56 = vpop.f32.mrf.mxu0  ;;  %v3031_v62 = vpop.f32.mrf.mxu1 }
 0x7f4   :  { %v7828_v19 = vadd.f32 %v3187_v60, %v3186_v21  ;;  %v3061_v40 = vadd.f32 %v3018_v56, %v3004_v28  ;;  %v3062_v12 = vadd.f32 %v3031_v62, %v3005_v20  ;;  %v3175_v37 = vadd.f32 %v6264_v63, %v3174_v55 }
 0x7f5   :  { %v3007_v60 = vadd.f32 %v2996_v18, %v7682_v54  ;;  %v3183_v56 = vor.u32 1.1754944e-38, %v3182_v42  ;;  %vm3181_vm15 = vcmp.eq.f32.partialorder %v3180_v13, 8.507059e+37  ;;  %v3006_v20 = vadd.f32 %v7822_v58, %v7692_v27 }
 0x7f6   :  { %6267 = vtanh.f32 %v7828_v19  ;;  %v5782_v14 = vmul.f32 -1.442695, %v3061_v40  ;;  %v5783_v59 = vmul.f32 -1.442695, %v3062_v12  ;;  %v3179_v34 = vsel %vm3178_vm14, %v6264_v63, %v3175_v37 }
 0x7f7   :  { %v3184_v9 = vsel %vm3181_vm15, %v3183_v56, %v3179_v34  ;;  %v9071_v34 = vld [vmem:[#allocation92_spill] sm:$0xff] }
 0x7f8   :  { %6269 = vpow2.f32 %v5782_v14 }
 0x7f9   :  { %6271 = vpow2.f32 %v5783_v59 }
 0x7fb   :  { %v3044_v46 = vpop.f32.mrf.mxu2  ;;  %v3057_v2 = vpop.f32.mrf.mxu3 }
 0x7fc   :  { %v3064_v10 = vadd.f32 %v3057_v2, %v3007_v60  ;;  %v3020_v30 = vpop.f32.mrf.mxu0  ;;  %v3033_v25 = vpop.f32.mrf.mxu1  ;;  %v3063_v12 = vadd.f32 %v3044_v46, %v3006_v20  ;;  %v9072_v2 = vld [vmem:[#allocation93_spill] sm:$0xff] }
 0x7fd   :  { %v6268_v41 = vpop.eup %6267 }
 0x7fe   :  { %v3190_v3 = vmul.f32 %v6268_v41, %v3184_v9  ;;  %v5784_v24 = vmul.f32 -1.442695, %v3064_v10  ;;  %v6270_v61 = vpop.eup %6269  ;;  %v9073_v10 = vld [vmem:[#allocation94_spill] sm:$0xff] }
 0x7ff   :  { %v6272_v6 = vpop.eup %6271  ;;  %v3068_v21 = vadd.f32 1.0, %v6270_v61 }
 0x800   :  { %v7835_v47 = vpack.c.bf16 %v3190_v3, %v3190_v3  ;;  %6273 = vpow2.f32 %v5784_v24  ;;  %v3087_v63 = vadd.f32 1.0, %v6272_v6  ;;  %v9074_v6 = vld [vmem:[#allocation96_spill] sm:$0xff] }
 0x801   :  { %6275 = vrcp.f32 %v3068_v21  ;;  %v3080_v58 = vand.u32 2147483648, %v3068_v21  ;;  %v3078_v46 = vand.u32 2147483647, %v3068_v21  ;;  %vm3074_vm2 = vweird.f32 %v3068_v21 }
 0x802   :  { %3200 = vmatmul.bf16.vlgmr.msrb.gmra.mxu0 %v7835_v47  ;;  %3213 = vmatmul.bf16.vlgmr.msrb.gmra.mxu1 %v7835_v47  ;;  %6277 = vrcp.f32 %v3087_v63  ;;  %v3099_v60 = vand.u32 2147483648, %v3087_v63  ;;  %v3097_v25 = vand.u32 2147483647, %v3087_v63  ;;  %vm3093_vm3 = vweird.f32 %v3087_v63 }
 0x803   :  { %v3046_v18 = vpop.f32.mrf.mxu2  ;;  %v3059_v55 = vpop.f32.mrf.mxu3  ;;  %3226 = vmatmul.bf16.vlgmr.msrb.gmra.mxu2 %v7835_v47  ;;  %3239 = vmatmul.bf16.vlgmr.msra.gmra.mxu3 %v7835_v47  ;;  %v3081_v3 = vor.u32 1.1754944e-38, %v3080_v58  ;;  %vm3079_vm6 = vcmp.eq.f32.partialorder %v3078_v46, 8.507059e+37 }
 0x804   :  { %3305 = vmatpush.bf16.msrb.mxu0 %v7486_v23  ;;  %3318 = vmatpush.bf16.msrb.mxu1 %v7488_v36  ;;  %v3100_v18 = vor.u32 1.1754944e-38, %v3099_v60  ;;  %vm3098_vm7 = vcmp.eq.f32.partialorder %v3097_v25, 8.507059e+37  ;;  %v9077_v25 = vld [vmem:[#allocation26_spill] sm:$0xff] }
 0x805   :  { %3331 = vmatpush.bf16.msrb.mxu2 %v9000_v22  ;;  %3344 = vmatpush.bf16.msra.mxu3 %v9001_v8 }
 0x806   :  { %v6274_v28 = vpop.eup %6273 }
 0x807   :  { %v7847_v62 = vadd.f32 1.0, %v6274_v28  ;;  %v6276_v40 = vpop.eup %6275 }
 0x808   :  { %3306 = vmatpush.bf16.msrb.mxu0 %v9002_v44  ;;  %3319 = vmatpush.bf16.msrb.mxu1 %v9003_v53  ;;  %v6278_v37 = vpop.eup %6277  ;;  %v3070_v42 = vmul.f32 %v6276_v40, %v3068_v21  ;;  %vm3075_vm0 = vweird.f32 %v6276_v40 }
 0x809   :  { %6279 = vrcp.f32 %v7847_v62  ;;  %3332 = vmatpush.bf16.msrb.mxu2 %v9004_v43  ;;  %3345 = vmatpush.bf16.msra.mxu3 %v9005_v38  ;;  %v3089_v14 = vmul.f32 %v6278_v37, %v3087_v63  ;;  %vm3094_vm1 = vweird.f32 %v6278_v37  ;;  %vm3076_vm4 = vmor %vm3074_vm2, %vm3075_vm0  ;;  %vm3113_vm9 = vweird.f32 %v7847_v62 }
 0x80a   :  { %v3071_v59 = vsub.f32 1.0, %v3070_v42  ;;  %6281 = vtanh.f32 %v3063_v12  ;;  %vm3095_vm5 = vmor %vm3093_vm3, %vm3094_vm1 }
 0x80b   :  { %v3090_v13 = vsub.f32 1.0, %v3089_v14 }
 0x80c   :  { %3307 = vmatpush.bf16.msrb.mxu0 %v9006_v57  ;;  %3320 = vmatpush.bf16.msrb.mxu1 %v9071_v34  ;;  %v3072_v56 = vmul.f32 %v6276_v40, %v3071_v59 }
 0x80d   :  { %3333 = vmatpush.bf16.msrb.mxu2 %v9072_v2  ;;  %3346 = vmatpush.bf16.msra.mxu3 %v9073_v10  ;;  %v3091_v30 = vmul.f32 %v6278_v37, %v3090_v13  ;;  %v3119_v13 = vand.u32 2147483648, %v7847_v62 }
 0x80e   :  { %v3073_v9 = vadd.f32 %v6276_v40, %v3072_v56 }
 0x80f   :  { %v6280_v41 = vpop.eup %6279  ;;  %v3092_v24 = vadd.f32 %v6278_v37, %v3091_v30  ;;  %v3120_v58 = vor.u32 1.1754944e-38, %v3119_v13  ;;  %v9076_v30 = vld [vmem:[#allocation20_spill] sm:$0xff]  ;;  %v9094_v13 = vld [vmem:[#allocation22_spill] sm:$0xff] }
 0x810   :  { %v3109_v61 = vmul.f32 %v6280_v41, %v7847_v62  ;;  %3308 = vmatpush.bf16.msrb.mxu0 %v9009_v52  ;;  %3321 = vmatpush.bf16.msrb.mxu1 %v9074_v6  ;;  %v3077_v55 = vsel %vm3076_vm4, %v6276_v40, %v3073_v9  ;;  %v6282_v28 = vpop.eup %6281  ;;  %vm3114_vm8 = vweird.f32 %v6280_v41  ;;  %v9079_v9 = vld [vmem:[#allocation28_spill] sm:$0xff] }
 0x811   :  { %3334 = vmatpush.bf16.msrb.mxu2 %v9011_v48  ;;  %3347 = vmatpush.bf16.msra.mxu3 %v9012_v5  ;;  %v3082_v21 = vsel %vm3079_vm6, %v3081_v3, %v3077_v55  ;;  %v3096_v63 = vsel %vm3095_vm5, %v6278_v37, %v3092_v24  ;;  %vm3115_vm10 = vmor %vm3113_vm9, %vm3114_vm8  ;;  %v9080_v3 = vld [vmem:[#allocation23_spill] sm:$0xff]  ;;  %v9081_v24 = vld [vmem:[#allocation29_spill] sm:$0xff] }
 0x812   :  { %v3110_v20 = vsub.f32 1.0, %v3109_v61  ;;  %3252 = vmatmul.bf16.vlgmr.msra.gmra.mxu0 %v7835_v47  ;;  %3265 = vmatmul.bf16.vlgmr.msra.gmra.mxu1 %v7835_v47  ;;  %v3101_v12 = vsel %vm3098_vm7, %v3100_v18, %v3096_v63  ;;  %v3124_v42 = vmul.f32 %v6282_v28, %v3082_v21  ;;  %v9082_v61 = vld [vmem:[#allocation17_spill] sm:$0xff]  ;;  %v9083_v18 = vld [vmem:[#allocation31_spill] sm:$0xff]  ;;  %v9084_v55 = vld [vmem:[#allocation24_spill] sm:$0xff] }
 0x813   :  { %3278 = vmatmul.bf16.vlgmr.msra.gmra.mxu2 %v7835_v47  ;;  %3291 = vmatmul.bf16.vlgmr.msrb.gmra.mxu3 %v7835_v47  ;;  %v3123_v40 = vmul.f32 %v3101_v12, %v7729_v49  ;;  %v3117_v49 = vand.u32 2147483647, %v7847_v62  ;;  %v9085_v28 = vld [vmem:[#allocation32_spill] sm:$0xff]  ;;  %v9086_v21 = vld [vmem:[#allocation18_spill] sm:$0xff]  ;;  %v9087_v63 = vld [vmem:[#allocation33_spill] sm:$0xff] }
 0x814   :  { %v3111_v14 = vmul.f32 %v6280_v41, %v3110_v20  ;;  %3309 = vmatpush.bf16.msrb.mxu0 %v9013_v26  ;;  %3322 = vmatpush.bf16.msrb.mxu1 %v9014_v32  ;;  %v9088_v20 = vld [vmem:[#allocation25_spill] sm:$0xff]  ;;  %v9089_v12 = vld [vmem:[#allocation34_spill] sm:$0xff] }
 0x815   :  { %3335 = vmatpush.bf16.msrb.mxu2 %v9015_v45  ;;  %3348 = vmatpush.bf16.msra.mxu3 %v9016_v35  ;;  %v7872_v37 = vadd.f32 %v3124_v42, %v3123_v40  ;;  %vm3118_vm11 = vcmp.eq.f32.partialorder %v3117_v49, 8.507059e+37  ;;  %v9090_v42 = vld [vmem:[#allocation19_spill] sm:$0xff]  ;;  %v9095_v49 = vld [vmem:[#allocation37_spill] sm:$0xff] }
 0x816   :  { %v3112_v59 = vadd.f32 %v6280_v41, %v3111_v14  ;;  %v9091_v40 = vld [vmem:[#allocation35_spill] sm:$0xff] }
 0x817   :  { %6283 = vtanh.f32 %v7872_v37  ;;  %v9092_v14 = vld [vmem:[#allocation27_spill] sm:$0xff] }
 0x818   :  { %3310 = vmatpush.bf16.msrb.mxu0 %v9017_v51  ;;  %3323 = vmatpush.bf16.msrb.mxu1 %v9018_v4  ;;  %v3116_v47 = vsel %vm3115_vm10, %v6280_v41, %v3112_v59  ;;  %v9078_v41 = vld [vmem:[#allocation21_spill] sm:$0xff]  ;;  %v9093_v59 = vld [vmem:[#allocation36_spill] sm:$0xff] }
 0x819   :  { %3336 = vmatpush.bf16.msrb.mxu2 %v7558_v17  ;;  %3349 = vmatpush.bf16.msra.mxu3 %v7560_v16  ;;  %v3121_v56 = vsel %vm3118_vm11, %v3120_v58, %v3116_v47  ;;  %v9096_v47 = vld [vmem:[#allocation30_spill] sm:$0xff] }
 0x81a   :  { %v9097_v58 = vld [vmem:[#allocation38_spill] sm:$0xff] }
 0x81c   :  { %3311 = vmatpush.bf16.msrb.mxu0 %v7564_v7  ;;  %3324 = vmatpush.bf16.msrb.mxu1 %v7566_v15 }
 0x81d   :  { %3337 = vmatpush.bf16.msrb.mxu2 %v7570_v11  ;;  %3350 = vmatpush.bf16.msra.mxu3 %v7572_v1  ;;  %v6284_v60 = vpop.eup %6283 }
 0x81e   :  { %v7886_v46 = vmul.f32 %v6284_v60, %v3121_v56  ;;  %v9098_v60 = vld [vmem:[#allocation39_spill] sm:$0xff]  ;;  %v9099_v56 = vld [vmem:[#allocation40_spill] sm:$0xff] }
 0x820   :  { %9075 = vst [vmem:[#allocation86_spill] sm:$0xff] %v7886_v46  ;;  %3312 = vmatpush.bf16.msrb.mxu0 %v7576_v50  ;;  %3325 = vmatpush.bf16.msrb.mxu1 %v7578_v0  ;;  %v3304_v62 = vpack.c.bf16 %v7886_v46, %v7886_v46  ;;  %v9101_v46 = vld [vmem:[#allocation42_spill] sm:$0xff] }
 0x821   :  { %3338 = vmatpush.bf16.msrb.mxu2 %v7582_v33  ;;  %3351 = vmatpush.bf16.msra.mxu3 %v7584_v29 }
 0x823   :  { %3313 = vmatmul.bf16.vlgmr.msrb.gmra.mxu0 %v3304_v62  ;;  %3326 = vmatmul.bf16.vlgmr.msrb.gmra.mxu1 %v3304_v62 }
 0x824   :  { %3488 = vmatpush.bf16.msra.mxu0 %v9076_v30  ;;  %3501 = vmatpush.bf16.msra.mxu1 %v9077_v25 }
 0x825   :  { %3339 = vmatmul.bf16.vlgmr.msrb.gmra.mxu2 %v3304_v62  ;;  %3352 = vmatmul.bf16.vlgmr.msra.gmra.mxu3 %v3304_v62  ;;  %v9100_v62 = vld [vmem:[#allocation41_spill] sm:$0xff] }
 0x826   :  { %3514 = vmatpush.bf16.msra.mxu2 %v9078_v41  ;;  %3527 = vmatpush.bf16.msrb.mxu3 %v9079_v9 }
 0x828   :  { %3489 = vmatpush.bf16.msra.mxu0 %v9080_v3  ;;  %3502 = vmatpush.bf16.msra.mxu1 %v9081_v24 }
 0x82a   :  { %3515 = vmatpush.bf16.msra.mxu2 %v9082_v61  ;;  %3528 = vmatpush.bf16.msrb.mxu3 %v9083_v18 }
 0x82c   :  { %3490 = vmatpush.bf16.msra.mxu0 %v9084_v55  ;;  %3503 = vmatpush.bf16.msra.mxu1 %v9085_v28 }
 0x82e   :  { %3516 = vmatpush.bf16.msra.mxu2 %v9086_v21  ;;  %3529 = vmatpush.bf16.msrb.mxu3 %v9087_v63  ;;  %v9142_v63 = vld [vmem:[#allocation75_spill] sm:$0xff] }
 0x830   :  { %3491 = vmatpush.bf16.msra.mxu0 %v9088_v20  ;;  %3504 = vmatpush.bf16.msra.mxu1 %v9089_v12  ;;  %v9141_v12 = vld [vmem:[#allocation67_spill] sm:$0xff] }
 0x832   :  { %3517 = vmatpush.bf16.msra.mxu2 %v9090_v42  ;;  %3530 = vmatpush.bf16.msrb.mxu3 %v9091_v40  ;;  %v9102_v40 = vld [vmem:[#allocation43_spill] sm:$0xff]  ;;  %v9140_v42 = vld [vmem:[#allocation66_spill] sm:$0xff] }
 0x834   :  { %3492 = vmatpush.bf16.msra.mxu0 %v9092_v14  ;;  %3505 = vmatpush.bf16.msra.mxu1 %v9093_v59  ;;  %v9103_v14 = vld [vmem:[#allocation44_spill] sm:$0xff]  ;;  %v9104_v59 = vld [vmem:[#allocation45_spill] sm:$0xff] }
 0x836   :  { %3518 = vmatpush.bf16.msra.mxu2 %v9094_v13  ;;  %3531 = vmatpush.bf16.msrb.mxu3 %v9095_v49  ;;  %v9105_v13 = vld [vmem:[#allocation46_spill] sm:$0xff]  ;;  %v9106_v49 = vld [vmem:[#allocation49_spill] sm:$0xff] }
 0x838   :  { %3493 = vmatpush.bf16.msra.mxu0 %v9096_v47  ;;  %3506 = vmatpush.bf16.msra.mxu1 %v9097_v58  ;;  %v9107_v47 = vld [vmem:[#allocation50_spill] sm:$0xff]  ;;  %v9108_v58 = vld [vmem:[#allocation47_spill] sm:$0xff] }
 0x83a   :  { %3519 = vmatpush.bf16.msra.mxu2 %v9098_v60  ;;  %3532 = vmatpush.bf16.msrb.mxu3 %v9099_v56  ;;  %v9109_v60 = vld [vmem:[#allocation48_spill] sm:$0xff]  ;;  %v9110_v56 = vld [vmem:[#allocation51_spill] sm:$0xff] }
 0x83c   :  { %3494 = vmatpush.bf16.msra.mxu0 %v9100_v62  ;;  %3507 = vmatpush.bf16.msra.mxu1 %v9101_v46  ;;  %v9111_v62 = vld [vmem:[#allocation52_spill] sm:$0xff]  ;;  %v9112_v46 = vld [vmem:[#allocation53_spill] sm:$0xff] }
 0x83e   :  { %3520 = vmatpush.bf16.msra.mxu2 %v9102_v40  ;;  %3533 = vmatpush.bf16.msrb.mxu3 %v9103_v14  ;;  %v9113_v40 = vld [vmem:[#allocation54_spill] sm:$0xff]  ;;  %v9114_v14 = vld [vmem:[#allocation55_spill] sm:$0xff] }
 0x840   :  { %3495 = vmatpush.bf16.msra.mxu0 %v9104_v59  ;;  %3508 = vmatpush.bf16.msra.mxu1 %v9105_v13  ;;  %v9115_v59 = vld [vmem:[#allocation56_spill] sm:$0xff]  ;;  %v9116_v13 = vld [vmem:[#allocation57_spill] sm:$0xff] }
 0x842   :  { %3521 = vmatpush.bf16.msra.mxu2 %v9108_v58  ;;  %3534 = vmatpush.bf16.msrb.mxu3 %v9109_v60  ;;  %v9119_v58 = vld [vmem:[#allocation60_spill] sm:$0xff]  ;;  %v9120_v60 = vld [vmem:[#allocation61_spill] sm:$0xff] }
 0x844   :  { %3540 = vmatpush.bf16.msrb.mxu0 %v9106_v49  ;;  %3553 = vmatpush.bf16.msrb.mxu1 %v9107_v47  ;;  %v9117_v49 = vld [vmem:[#allocation58_spill] sm:$0xff]  ;;  %v9118_v47 = vld [vmem:[#allocation59_spill] sm:$0xff] }
 0x846   :  { %3566 = vmatpush.bf16.msrb.mxu2 %v9110_v56  ;;  %3579 = vmatpush.bf16.msra.mxu3 %v9111_v62  ;;  %v9121_v56 = vld [vmem:[#allocation62_spill] sm:$0xff]  ;;  %v9122_v62 = vld [vmem:[#allocation63_spill] sm:$0xff] }
 0x848   :  { %3541 = vmatpush.bf16.msrb.mxu0 %v9112_v46  ;;  %3554 = vmatpush.bf16.msrb.mxu1 %v9113_v40  ;;  %v9123_v46 = vld [vmem:[#allocation64_spill] sm:$0xff]  ;;  %v9124_v40 = vld [vmem:[#allocation65_spill] sm:$0xff] }
 0x84a   :  { %3567 = vmatpush.bf16.msrb.mxu2 %v9114_v14  ;;  %3580 = vmatpush.bf16.msra.mxu3 %v9115_v59  ;;  %v9125_v14 = vld [vmem:[#allocation68_spill] sm:$0xff]  ;;  %v9126_v59 = vld [vmem:[#allocation69_spill] sm:$0xff] }
 0x84c   :  { %3542 = vmatpush.bf16.msrb.mxu0 %v9116_v13  ;;  %3555 = vmatpush.bf16.msrb.mxu1 %v9117_v49  ;;  %v9127_v13 = vld [vmem:[#allocation70_spill] sm:$0xff]  ;;  %v9128_v49 = vld [vmem:[#allocation71_spill] sm:$0xff] }
 0x84e   :  { %3568 = vmatpush.bf16.msrb.mxu2 %v9118_v47  ;;  %3581 = vmatpush.bf16.msra.mxu3 %v9119_v58  ;;  %v9129_v47 = vld [vmem:[#allocation72_spill] sm:$0xff]  ;;  %v9130_v58 = vld [vmem:[#allocation73_spill] sm:$0xff] }
 0x850   :  { %3543 = vmatpush.bf16.msrb.mxu0 %v9120_v60  ;;  %3556 = vmatpush.bf16.msrb.mxu1 %v9121_v56  ;;  %v9131_v60 = vld [vmem:[#allocation74_spill] sm:$0xff]  ;;  %v9132_v56 = vld [vmem:[#allocation76_spill] sm:$0xff] }
 0x852   :  { %3569 = vmatpush.bf16.msrb.mxu2 %v9122_v62  ;;  %3582 = vmatpush.bf16.msra.mxu3 %v9123_v46  ;;  %v9133_v62 = vld [vmem:[#allocation77_spill] sm:$0xff]  ;;  %v9134_v46 = vld [vmem:[#allocation78_spill] sm:$0xff] }
 0x854   :  { %3544 = vmatpush.bf16.msrb.mxu0 %v9124_v40  ;;  %3557 = vmatpush.bf16.msrb.mxu1 %v9125_v14  ;;  %v9135_v40 = vld [vmem:[#allocation79_spill] sm:$0xff]  ;;  %v9136_v14 = vld [vmem:[#allocation80_spill] sm:$0xff] }
 0x856   :  { %3570 = vmatpush.bf16.msrb.mxu2 %v9126_v59  ;;  %3583 = vmatpush.bf16.msra.mxu3 %v9127_v13  ;;  %v9137_v59 = vld [vmem:[#allocation81_spill] sm:$0xff]  ;;  %v9138_v13 = vld [vmem:[#allocation82_spill] sm:$0xff] }
 0x858   :  { %3545 = vmatpush.bf16.msrb.mxu0 %v9128_v49  ;;  %3558 = vmatpush.bf16.msrb.mxu1 %v9129_v47  ;;  %v9139_v49 = vld [vmem:[#allocation83_spill] sm:$0xff] }
 0x85a   :  { %3571 = vmatpush.bf16.msrb.mxu2 %v9130_v58  ;;  %3584 = vmatpush.bf16.msra.mxu3 %v9131_v60 }
 0x85c   :  { %3546 = vmatpush.bf16.msrb.mxu0 %v9132_v56  ;;  %3559 = vmatpush.bf16.msrb.mxu1 %v9133_v62 }
 0x85e   :  { %3572 = vmatpush.bf16.msrb.mxu2 %v9134_v46  ;;  %3585 = vmatpush.bf16.msra.mxu3 %v9135_v40 }
 0x860   :  { %3547 = vmatpush.bf16.msrb.mxu0 %v9136_v14  ;;  %3560 = vmatpush.bf16.msrb.mxu1 %v9137_v59 }
 0x862   :  { %3573 = vmatpush.bf16.msrb.mxu2 %v9138_v13  ;;  %3586 = vmatpush.bf16.msra.mxu3 %v9139_v49 }
 0x87f   :  { %v3201_v47 = vpop.f32.mrf.mxu0  ;;  %v3214_v58 = vpop.f32.mrf.mxu1 }
 0x880   :  { %v3296_v60 = vadd.f32 %v3201_v47, %v9140_v42  ;;  %v3297_v56 = vadd.f32 %v3214_v58, %v9141_v12  ;;  %v9143_v42 = vld [vmem:[#allocation84_spill] sm:$0xff] }
 0x882   :  { %v5791_v20 = vmul.f32 -1.442695, %v3296_v60  ;;  %v5792_v62 = vmul.f32 -1.442695, %v3297_v56 }
 0x884   :  { %6285 = vpow2.f32 %v5791_v20 }
 0x885   :  { %6287 = vpow2.f32 %v5792_v62 }
 0x886   :  { %v3227_v46 = vpop.f32.mrf.mxu2  ;;  %v3240_v40 = vpop.f32.mrf.mxu3 }
 0x887   :  { %v3299_v14 = vadd.f32 %v3240_v40, %v9142_v63  ;;  %v3203_v21 = vpop.f32.mrf.mxu0  ;;  %v3216_v59 = vpop.f32.mrf.mxu1  ;;  %v3298_v40 = vadd.f32 %v3227_v46, %v9143_v42 }
 0x889   :  { %v5793_v28 = vmul.f32 -1.442695, %v3299_v14 }
 0x88a   :  { %v6286_v13 = vpop.eup %6285 }
 0x88b   :  { %v6288_v55 = vpop.eup %6287  ;;  %v3427_v49 = vadd.f32 1.0, %v6286_v13  ;;  %6289 = vpow2.f32 %v5793_v28 }
 0x88c   :  { %v3446_v18 = vadd.f32 1.0, %v6288_v55 }
 0x88d   :  { %6291 = vrcp.f32 %v3427_v49  ;;  %v3437_v3 = vand.u32 2147483647, %v3427_v49  ;;  %vm3433_vm14 = vweird.f32 %v3427_v49 }
 0x88e   :  { %6293 = vrcp.f32 %v3446_v18  ;;  %v3229_v47 = vpop.f32.mrf.mxu2  ;;  %v3242_v58 = vpop.f32.mrf.mxu3  ;;  %v3458_v24 = vand.u32 2147483648, %v3446_v18  ;;  %v3456_v46 = vand.u32 2147483647, %v3446_v18  ;;  %vm3452_vm15 = vweird.f32 %v3446_v18 }
 0x88f   :  { %v3253_v60 = vpop.f32.mrf.mxu0  ;;  %v3266_v56 = vpop.f32.mrf.mxu1  ;;  %v3439_v47 = vand.u32 2147483648, %v3427_v49  ;;  %vm3438_vm2 = vcmp.eq.f32.partialorder %v3437_v3, 8.507059e+37 }
 0x890   :  { %vm3457_vm3 = vcmp.eq.f32.partialorder %v3456_v46, 8.507059e+37 }
 0x891   :  { %v6290_v20 = vpop.eup %6289 }
 0x892   :  { %v7961_v62 = vadd.f32 1.0, %v6290_v20 }
 0x893   :  { %v6292_v12 = vpop.eup %6291 }
 0x894   :  { %v6294_v21 = vpop.eup %6293  ;;  %v3429_v59 = vmul.f32 %v6292_v12, %v3427_v49  ;;  %6295 = vrcp.f32 %v7961_v62  ;;  %vm3434_vm12 = vweird.f32 %v6292_v12  ;;  %vm3472_vm5 = vweird.f32 %v7961_v62 }
 0x895   :  { %v3448_v14 = vmul.f32 %v6294_v21, %v3446_v18  ;;  %6297 = vtanh.f32 %v3298_v40  ;;  %vm3453_vm13 = vweird.f32 %v6294_v21  ;;  %vm3435_vm0 = vmor %vm3433_vm14, %vm3434_vm12  ;;  %v3459_v40 = vor.u32 1.1754944e-38, %v3458_v24 }
 0x896   :  { %v3430_v13 = vsub.f32 1.0, %v3429_v59  ;;  %v7965_v28 = vpop.f32.mrf.mxu2  ;;  %v3292_v55 = vpop.f32.mrf.mxu3  ;;  %v3440_v59 = vor.u32 1.1754944e-38, %v3439_v47  ;;  %vm3454_vm1 = vmor %vm3452_vm15, %vm3453_vm13  ;;  %v3301_v47 = vadd.f32 %v3266_v56, %v7673_v31 }
 0x897   :  { %v3449_v63 = vsub.f32 1.0, %v3448_v14  ;;  %v3255_v58 = vpop.f32.mrf.mxu0  ;;  %v3268_v61 = vpop.f32.mrf.mxu1 }
 0x898   :  { %v3431_v20 = vmul.f32 %v6292_v12, %v3430_v13 }
 0x899   :  { %v3450_v9 = vmul.f32 %v6294_v21, %v3449_v63 }
 0x89a   :  { %v6296_v42 = vpop.eup %6295  ;;  %v3432_v41 = vadd.f32 %v6292_v12, %v3431_v20 }
 0x89b   :  { %v3451_v25 = vadd.f32 %v6294_v21, %v3450_v9  ;;  %v3468_v14 = vmul.f32 %v6296_v42, %v7961_v62  ;;  %v6298_v61 = vpop.eup %6297  ;;  %v3300_v9 = vadd.f32 %v3253_v60, %v7670_v39  ;;  %vm3473_vm4 = vweird.f32 %v6296_v42 }
 0x89c   :  { %v3436_v58 = vsel %vm3435_vm0, %v6292_v12, %v3432_v41  ;;  %vm3474_vm6 = vmor %vm3472_vm5, %vm3473_vm4 }
 0x89d   :  { %v3441_v13 = vsel %vm3438_vm2, %v3440_v59, %v3436_v58  ;;  %v3455_v30 = vsel %vm3454_vm1, %v6294_v21, %v3451_v25  ;;  %v3469_v63 = vsub.f32 1.0, %v3468_v14 }
 0x89e   :  { %v3460_v29 = vsel %vm3457_vm3, %v3459_v40, %v3455_v30  ;;  %v3483_v33 = vmul.f32 %v6298_v61, %v3441_v13  ;;  %v3281_v0 = vpop.f32.mrf.mxu2  ;;  %v3294_v20 = vpop.f32.mrf.mxu3 }
 0x89f   :  { %v3482_v18 = vmul.f32 %v3460_v29, %v7828_v19  ;;  %v3470_v49 = vmul.f32 %v6296_v42, %v3469_v63  ;;  %v3478_v0 = vand.u32 2147483648, %v7961_v62  ;;  %v3476_v29 = vand.u32 2147483647, %v7961_v62 }
 0x8a0   :  { %v3314_v50 = vpop.f32.mrf.mxu0  ;;  %v3327_v24 = vpop.f32.mrf.mxu1 }
 0x8a1   :  { %v7971_v41 = vadd.f32 %v3483_v33, %v3482_v18  ;;  %v3357_v3 = vadd.f32 %v3314_v50, %v3300_v9  ;;  %v3358_v12 = vadd.f32 %v3327_v24, %v3301_v47  ;;  %v3471_v25 = vadd.f32 %v6296_v42, %v3470_v49 }
 0x8a2   :  { %v3303_v33 = vadd.f32 %v3292_v55, %v7682_v54  ;;  %v3479_v50 = vor.u32 1.1754944e-38, %v3478_v0  ;;  %vm3477_vm7 = vcmp.eq.f32.partialorder %v3476_v29, 8.507059e+37  ;;  %v3302_v47 = vadd.f32 %v7965_v28, %v7692_v27 }
 0x8a3   :  { %6299 = vtanh.f32 %v7971_v41  ;;  %v5788_v30 = vmul.f32 -1.442695, %v3357_v3  ;;  %v5789_v21 = vmul.f32 -1.442695, %v3358_v12  ;;  %v3475_v19 = vsel %vm3474_vm6, %v6296_v42, %v3471_v25 }
 0x8a4   :  { %v3480_v58 = vsel %vm3477_vm7, %v3479_v50, %v3475_v19 }
 0x8a5   :  { %6301 = vpow2.f32 %v5788_v30 }
 0x8a6   :  { %6303 = vpow2.f32 %v5789_v21 }
 0x8a8   :  { %v3340_v60 = vpop.f32.mrf.mxu2  ;;  %v3353_v56 = vpop.f32.mrf.mxu3 }
 0x8a9   :  { %v3360_v46 = vadd.f32 %v3353_v56, %v3303_v33  ;;  %v3316_v59 = vpop.f32.mrf.mxu0  ;;  %v3329_v14 = vpop.f32.mrf.mxu1  ;;  %v3359_v12 = vadd.f32 %v3340_v60, %v3302_v47 }
 0x8aa   :  { %v6300_v40 = vpop.eup %6299 }
 0x8ab   :  { %v3486_v61 = vmul.f32 %v6300_v40, %v3480_v58  ;;  %v5790_v13 = vmul.f32 -1.442695, %v3360_v46  ;;  %v6302_v63 = vpop.eup %6301 }
 0x8ac   :  { %v6304_v20 = vpop.eup %6303  ;;  %v3364_v18 = vadd.f32 1.0, %v6302_v63 }
 0x8ad   :  { %v7978_v62 = vpack.c.bf16 %v3486_v61, %v3486_v61  ;;  %6305 = vpow2.f32 %v5790_v13  ;;  %v3383_v42 = vadd.f32 1.0, %v6304_v20 }
 0x8ae   :  { %6307 = vrcp.f32 %v3364_v18  ;;  %v3376_v28 = vand.u32 2147483648, %v3364_v18  ;;  %v3374_v50 = vand.u32 2147483647, %v3364_v18  ;;  %vm3370_vm10 = vweird.f32 %v3364_v18 }
 0x8af   :  { %3496 = vmatmul.bf16.vlgmr.msra.gmra.mxu0 %v7978_v62  ;;  %3509 = vmatmul.bf16.vlgmr.msra.gmra.mxu1 %v7978_v62  ;;  %6309 = vrcp.f32 %v3383_v42  ;;  %v3395_v19 = vand.u32 2147483648, %v3383_v42  ;;  %v3393_v56 = vand.u32 2147483647, %v3383_v42  ;;  %vm3389_vm11 = vweird.f32 %v3383_v42 }
 0x8b0   :  { %v3342_v55 = vpop.f32.mrf.mxu2  ;;  %v3355_v49 = vpop.f32.mrf.mxu3  ;;  %3522 = vmatmul.bf16.vlgmr.msra.gmra.mxu2 %v7978_v62  ;;  %3535 = vmatmul.bf16.vlgmr.msrb.gmra.mxu3 %v7978_v62  ;;  %v3377_v14 = vor.u32 1.1754944e-38, %v3376_v28  ;;  %vm3375_vm14 = vcmp.eq.f32.partialorder %v3374_v50, 8.507059e+37  ;;  %v9146_v28 = vld [vmem:[#allocation106_spill] sm:$0xff] }
 0x8b1   :  { %3601 = vmatpush.bf16.msra.mxu0 %v7486_v23  ;;  %3614 = vmatpush.bf16.msra.mxu1 %v7488_v36  ;;  %v3396_v61 = vor.u32 1.1754944e-38, %v3395_v19  ;;  %vm3394_vm15 = vcmp.eq.f32.partialorder %v3393_v56, 8.507059e+37  ;;  %v9147_v19 = vld [vmem:[#allocation107_spill] sm:$0xff]  ;;  %v9150_v56 = vld [vmem:[#allocation26_spill] sm:$0xff] }
 0x8b2   :  { %3627 = vmatpush.bf16.msra.mxu2 %v9000_v22  ;;  %3640 = vmatpush.bf16.msrb.mxu3 %v9001_v8 }
 0x8b3   :  { %v6306_v9 = vpop.eup %6305 }
 0x8b4   :  { %v7990_v24 = vadd.f32 1.0, %v6306_v9  ;;  %v6308_v3 = vpop.eup %6307 }
 0x8b5   :  { %3602 = vmatpush.bf16.msra.mxu0 %v9002_v44  ;;  %3615 = vmatpush.bf16.msra.mxu1 %v9003_v53  ;;  %v6310_v25 = vpop.eup %6309  ;;  %v3366_v0 = vmul.f32 %v6308_v3, %v3364_v18  ;;  %vm3371_vm8 = vweird.f32 %v6308_v3 }
 0x8b6   :  { %6311 = vrcp.f32 %v7990_v24  ;;  %3628 = vmatpush.bf16.msra.mxu2 %v9004_v43  ;;  %3641 = vmatpush.bf16.msrb.mxu3 %v9005_v38  ;;  %v3385_v30 = vmul.f32 %v6310_v25, %v3383_v42  ;;  %vm3390_vm9 = vweird.f32 %v6310_v25  ;;  %vm3372_vm12 = vmor %vm3370_vm10, %vm3371_vm8  ;;  %vm3409_vm1 = vweird.f32 %v7990_v24 }
 0x8b7   :  { %v3367_v21 = vsub.f32 1.0, %v3366_v0  ;;  %6313 = vtanh.f32 %v3359_v12  ;;  %vm3391_vm13 = vmor %vm3389_vm11, %vm3390_vm9 }
 0x8b8   :  { %v3386_v29 = vsub.f32 1.0, %v3385_v30 }
 0x8b9   :  { %3603 = vmatpush.bf16.msra.mxu0 %v9006_v57  ;;  %3616 = vmatpush.bf16.msra.mxu1 %v9071_v34  ;;  %v3368_v33 = vmul.f32 %v6308_v3, %v3367_v21 }
 0x8ba   :  { %3629 = vmatpush.bf16.msra.mxu2 %v9072_v2  ;;  %3642 = vmatpush.bf16.msrb.mxu3 %v9073_v10  ;;  %v3387_v60 = vmul.f32 %v6310_v25, %v3386_v29 }
 0x8bb   :  { %v3369_v59 = vadd.f32 %v6308_v3, %v3368_v33  ;;  %v9148_v33 = vld [vmem:[#allocation108_spill] sm:$0xff] }
 0x8bc   :  { %v6312_v46 = vpop.eup %6311  ;;  %v3388_v40 = vadd.f32 %v6310_v25, %v3387_v60  ;;  %v9149_v60 = vld [vmem:[#allocation20_spill] sm:$0xff] }
 0x8bd   :  { %v3405_v58 = vmul.f32 %v6312_v46, %v7990_v24  ;;  %3604 = vmatpush.bf16.msra.mxu0 %v9009_v52  ;;  %3617 = vmatpush.bf16.msra.mxu1 %v9074_v6  ;;  %v3373_v13 = vsel %vm3372_vm12, %v6308_v3, %v3369_v59  ;;  %v6314_v63 = vpop.eup %6313  ;;  %vm3410_vm0 = vweird.f32 %v6312_v46  ;;  %v9152_v59 = vld [vmem:[#allocation28_spill] sm:$0xff] }
 0x8be   :  { %3630 = vmatpush.bf16.msra.mxu2 %v9011_v48  ;;  %3643 = vmatpush.bf16.msrb.mxu3 %v9012_v5  ;;  %v3378_v20 = vsel %vm3375_vm14, %v3377_v14, %v3373_v13  ;;  %v3392_v18 = vsel %vm3391_vm13, %v6310_v25, %v3388_v40  ;;  %v3415_v25 = vand.u32 2147483648, %v7990_v24  ;;  %vm3411_vm2 = vmor %vm3409_vm1, %vm3410_vm0  ;;  %v9153_v14 = vld [vmem:[#allocation23_spill] sm:$0xff]  ;;  %v9154_v40 = vld [vmem:[#allocation29_spill] sm:$0xff] }
 0x8bf   :  { %v3406_v42 = vsub.f32 1.0, %v3405_v58  ;;  %3548 = vmatmul.bf16.vlgmr.msrb.gmra.mxu0 %v7978_v62  ;;  %3561 = vmatmul.bf16.vlgmr.msrb.gmra.mxu1 %v7978_v62  ;;  %v3397_v55 = vsel %vm3394_vm15, %v3396_v61, %v3392_v18  ;;  %v3420_v49 = vmul.f32 %v6314_v63, %v3378_v20  ;;  %v9155_v58 = vld [vmem:[#allocation17_spill] sm:$0xff]  ;;  %v9156_v61 = vld [vmem:[#allocation31_spill] sm:$0xff]  ;;  %v9157_v13 = vld [vmem:[#allocation24_spill] sm:$0xff] }
 0x8c0   :  { %3574 = vmatmul.bf16.vlgmr.msrb.gmra.mxu2 %v7978_v62  ;;  %3587 = vmatmul.bf16.vlgmr.msra.gmra.mxu3 %v7978_v62  ;;  %v3419_v9 = vmul.f32 %v3397_v55, %v7872_v37  ;;  %v3413_v37 = vand.u32 2147483647, %v7990_v24  ;;  %v3416_v0 = vor.u32 1.1754944e-38, %v3415_v25  ;;  %v9145_v24 = vld [vmem:[#allocation105_spill] sm:$0xff]  ;;  %v9158_v63 = vld [vmem:[#allocation32_spill] sm:$0xff]  ;;  %v9159_v20 = vld [vmem:[#allocation18_spill] sm:$0xff] }
 0x8c1   :  { %v3407_v47 = vmul.f32 %v6312_v46, %v3406_v42  ;;  %3605 = vmatpush.bf16.msra.mxu0 %v9013_v26  ;;  %3618 = vmatpush.bf16.msra.mxu1 %v9014_v32  ;;  %v9160_v18 = vld [vmem:[#allocation33_spill] sm:$0xff]  ;;  %v9162_v55 = vld [vmem:[#allocation34_spill] sm:$0xff] }
 0x8c2   :  { %3631 = vmatpush.bf16.msra.mxu2 %v9015_v45  ;;  %3644 = vmatpush.bf16.msrb.mxu3 %v9016_v35  ;;  %v8015_v3 = vadd.f32 %v3420_v49, %v3419_v9  ;;  %vm3414_vm3 = vcmp.eq.f32.partialorder %v3413_v37, 8.507059e+37  ;;  %v9161_v42 = vld [vmem:[#allocation25_spill] sm:$0xff]  ;;  %v9163_v49 = vld [vmem:[#allocation19_spill] sm:$0xff]  ;;  %v9167_v25 = vld [vmem:[#allocation22_spill] sm:$0xff] }
 0x8c3   :  { %v3408_v12 = vadd.f32 %v6312_v46, %v3407_v47  ;;  %v9164_v9 = vld [vmem:[#allocation35_spill] sm:$0xff]  ;;  %v9168_v37 = vld [vmem:[#allocation37_spill] sm:$0xff] }
 0x8c4   :  { %6315 = vtanh.f32 %v8015_v3  ;;  %v9165_v47 = vld [vmem:[#allocation27_spill] sm:$0xff] }
 0x8c5   :  { %3606 = vmatpush.bf16.msra.mxu0 %v9017_v51  ;;  %3619 = vmatpush.bf16.msra.mxu1 %v9018_v4  ;;  %v3412_v62 = vsel %vm3411_vm2, %v6312_v46, %v3408_v12  ;;  %v9151_v46 = vld [vmem:[#allocation21_spill] sm:$0xff]  ;;  %v9166_v12 = vld [vmem:[#allocation36_spill] sm:$0xff] }
 0x8c6   :  { %3632 = vmatpush.bf16.msra.mxu2 %v7558_v17  ;;  %3645 = vmatpush.bf16.msrb.mxu3 %v7560_v16  ;;  %v3417_v21 = vsel %vm3414_vm3, %v3416_v0, %v3412_v62  ;;  %v9169_v62 = vld [vmem:[#allocation30_spill] sm:$0xff] }
 0x8c7   :  { %v9170_v0 = vld [vmem:[#allocation38_spill] sm:$0xff] }
 0x8c9   :  { %3607 = vmatpush.bf16.msra.mxu0 %v7564_v7  ;;  %3620 = vmatpush.bf16.msra.mxu1 %v7566_v15 }
 0x8ca   :  { %3633 = vmatpush.bf16.msra.mxu2 %v7570_v11  ;;  %3646 = vmatpush.bf16.msrb.mxu3 %v7572_v1  ;;  %v6316_v30 = vpop.eup %6315 }
 0x8cb   :  { %v8029_v29 = vmul.f32 %v6316_v30, %v3417_v21  ;;  %v9171_v30 = vld [vmem:[#allocation39_spill] sm:$0xff]  ;;  %v9172_v21 = vld [vmem:[#allocation40_spill] sm:$0xff] }
 0x8cd   :  { %9144 = vst [vmem:[#allocation87_spill] sm:$0xff] %v8029_v29  ;;  %3608 = vmatpush.bf16.msra.mxu0 %v9145_v24  ;;  %3621 = vmatpush.bf16.msra.mxu1 %v9146_v28  ;;  %v3600_v50 = vpack.c.bf16 %v8029_v29, %v8029_v29  ;;  %v9174_v29 = vld [vmem:[#allocation42_spill] sm:$0xff] }
 0x8ce   :  { %3634 = vmatpush.bf16.msra.mxu2 %v9147_v19  ;;  %3647 = vmatpush.bf16.msrb.mxu3 %v9148_v33 }
 0x8d0   :  { %3609 = vmatmul.bf16.vlgmr.msra.gmra.mxu0 %v3600_v50  ;;  %3622 = vmatmul.bf16.vlgmr.msra.gmra.mxu1 %v3600_v50 }
 0x8d1   :  { %3784 = vmatpush.bf16.msrb.mxu0 %v9149_v60  ;;  %3797 = vmatpush.bf16.msrb.mxu1 %v9150_v56 }
 0x8d2   :  { %3635 = vmatmul.bf16.vlgmr.msra.gmra.mxu2 %v3600_v50  ;;  %3648 = vmatmul.bf16.vlgmr.msrb.gmra.mxu3 %v3600_v50  ;;  %v9173_v50 = vld [vmem:[#allocation41_spill] sm:$0xff] }
 0x8d3   :  { %3810 = vmatpush.bf16.msrb.mxu2 %v9151_v46  ;;  %3823 = vmatpush.bf16.msra.mxu3 %v9152_v59 }
 0x8d5   :  { %3785 = vmatpush.bf16.msrb.mxu0 %v9153_v14  ;;  %3798 = vmatpush.bf16.msrb.mxu1 %v9154_v40 }
 0x8d7   :  { %3811 = vmatpush.bf16.msrb.mxu2 %v9155_v58  ;;  %3824 = vmatpush.bf16.msra.mxu3 %v9156_v61 }
 0x8d9   :  { %3786 = vmatpush.bf16.msrb.mxu0 %v9157_v13  ;;  %3799 = vmatpush.bf16.msrb.mxu1 %v9158_v63 }
 0x8db   :  { %3812 = vmatpush.bf16.msrb.mxu2 %v9159_v20  ;;  %3825 = vmatpush.bf16.msra.mxu3 %v9160_v18  ;;  %v9215_v18 = vld [vmem:[#allocation75_spill] sm:$0xff] }
 0x8dd   :  { %3787 = vmatpush.bf16.msrb.mxu0 %v9161_v42  ;;  %3800 = vmatpush.bf16.msrb.mxu1 %v9162_v55  ;;  %v9214_v55 = vld [vmem:[#allocation67_spill] sm:$0xff] }
 0x8df   :  { %3813 = vmatpush.bf16.msrb.mxu2 %v9163_v49  ;;  %3826 = vmatpush.bf16.msra.mxu3 %v9164_v9  ;;  %v9175_v9 = vld [vmem:[#allocation43_spill] sm:$0xff]  ;;  %v9213_v49 = vld [vmem:[#allocation66_spill] sm:$0xff] }
 0x8e1   :  { %3788 = vmatpush.bf16.msrb.mxu0 %v9165_v47  ;;  %3801 = vmatpush.bf16.msrb.mxu1 %v9166_v12  ;;  %v9176_v47 = vld [vmem:[#allocation44_spill] sm:$0xff]  ;;  %v9177_v12 = vld [vmem:[#allocation45_spill] sm:$0xff] }
 0x8e3   :  { %3814 = vmatpush.bf16.msrb.mxu2 %v9167_v25  ;;  %3827 = vmatpush.bf16.msra.mxu3 %v9168_v37  ;;  %v9178_v25 = vld [vmem:[#allocation46_spill] sm:$0xff]  ;;  %v9179_v37 = vld [vmem:[#allocation49_spill] sm:$0xff] }
 0x8e5   :  { %3789 = vmatpush.bf16.msrb.mxu0 %v9169_v62  ;;  %3802 = vmatpush.bf16.msrb.mxu1 %v9170_v0  ;;  %v9180_v62 = vld [vmem:[#allocation50_spill] sm:$0xff]  ;;  %v9181_v0 = vld [vmem:[#allocation47_spill] sm:$0xff] }
 0x8e7   :  { %3815 = vmatpush.bf16.msrb.mxu2 %v9171_v30  ;;  %3828 = vmatpush.bf16.msra.mxu3 %v9172_v21  ;;  %v9182_v30 = vld [vmem:[#allocation48_spill] sm:$0xff]  ;;  %v9183_v21 = vld [vmem:[#allocation51_spill] sm:$0xff] }
 0x8e9   :  { %3790 = vmatpush.bf16.msrb.mxu0 %v9173_v50  ;;  %3803 = vmatpush.bf16.msrb.mxu1 %v9174_v29  ;;  %v9184_v50 = vld [vmem:[#allocation52_spill] sm:$0xff]  ;;  %v9185_v29 = vld [vmem:[#allocation53_spill] sm:$0xff] }
 0x8eb   :  { %3816 = vmatpush.bf16.msrb.mxu2 %v9175_v9  ;;  %3829 = vmatpush.bf16.msra.mxu3 %v9176_v47  ;;  %v9186_v9 = vld [vmem:[#allocation54_spill] sm:$0xff]  ;;  %v9187_v47 = vld [vmem:[#allocation55_spill] sm:$0xff] }
 0x8ed   :  { %3791 = vmatpush.bf16.msrb.mxu0 %v9177_v12  ;;  %3804 = vmatpush.bf16.msrb.mxu1 %v9178_v25  ;;  %v9188_v12 = vld [vmem:[#allocation56_spill] sm:$0xff]  ;;  %v9189_v25 = vld [vmem:[#allocation57_spill] sm:$0xff] }
 0x8ef   :  { %3817 = vmatpush.bf16.msrb.mxu2 %v9181_v0  ;;  %3830 = vmatpush.bf16.msra.mxu3 %v9182_v30  ;;  %v9192_v0 = vld [vmem:[#allocation60_spill] sm:$0xff]  ;;  %v9193_v30 = vld [vmem:[#allocation61_spill] sm:$0xff] }
 0x8f1   :  { %3836 = vmatpush.bf16.msra.mxu0 %v9179_v37  ;;  %3849 = vmatpush.bf16.msra.mxu1 %v9180_v62  ;;  %v9190_v37 = vld [vmem:[#allocation58_spill] sm:$0xff]  ;;  %v9191_v62 = vld [vmem:[#allocation59_spill] sm:$0xff] }
 0x8f3   :  { %3862 = vmatpush.bf16.msra.mxu2 %v9183_v21  ;;  %3875 = vmatpush.bf16.msrb.mxu3 %v9184_v50  ;;  %v9194_v21 = vld [vmem:[#allocation62_spill] sm:$0xff]  ;;  %v9195_v50 = vld [vmem:[#allocation63_spill] sm:$0xff] }
 0x8f5   :  { %3837 = vmatpush.bf16.msra.mxu0 %v9185_v29  ;;  %3850 = vmatpush.bf16.msra.mxu1 %v9186_v9  ;;  %v9196_v29 = vld [vmem:[#allocation64_spill] sm:$0xff]  ;;  %v9197_v9 = vld [vmem:[#allocation65_spill] sm:$0xff] }
 0x8f7   :  { %3863 = vmatpush.bf16.msra.mxu2 %v9187_v47  ;;  %3876 = vmatpush.bf16.msrb.mxu3 %v9188_v12  ;;  %v9198_v47 = vld [vmem:[#allocation68_spill] sm:$0xff]  ;;  %v9199_v12 = vld [vmem:[#allocation69_spill] sm:$0xff] }
 0x8f9   :  { %3838 = vmatpush.bf16.msra.mxu0 %v9189_v25  ;;  %3851 = vmatpush.bf16.msra.mxu1 %v9190_v37  ;;  %v9200_v25 = vld [vmem:[#allocation70_spill] sm:$0xff]  ;;  %v9201_v37 = vld [vmem:[#allocation71_spill] sm:$0xff] }
 0x8fb   :  { %3864 = vmatpush.bf16.msra.mxu2 %v9191_v62  ;;  %3877 = vmatpush.bf16.msrb.mxu3 %v9192_v0  ;;  %v9202_v62 = vld [vmem:[#allocation72_spill] sm:$0xff]  ;;  %v9203_v0 = vld [vmem:[#allocation73_spill] sm:$0xff] }
 0x8fd   :  { %3839 = vmatpush.bf16.msra.mxu0 %v9193_v30  ;;  %3852 = vmatpush.bf16.msra.mxu1 %v9194_v21  ;;  %v9204_v30 = vld [vmem:[#allocation74_spill] sm:$0xff]  ;;  %v9205_v21 = vld [vmem:[#allocation76_spill] sm:$0xff] }
 0x8ff   :  { %3865 = vmatpush.bf16.msra.mxu2 %v9195_v50  ;;  %3878 = vmatpush.bf16.msrb.mxu3 %v9196_v29  ;;  %v9206_v50 = vld [vmem:[#allocation77_spill] sm:$0xff]  ;;  %v9207_v29 = vld [vmem:[#allocation78_spill] sm:$0xff] }
 0x901   :  { %3840 = vmatpush.bf16.msra.mxu0 %v9197_v9  ;;  %3853 = vmatpush.bf16.msra.mxu1 %v9198_v47  ;;  %v9208_v9 = vld [vmem:[#allocation79_spill] sm:$0xff]  ;;  %v9209_v47 = vld [vmem:[#allocation80_spill] sm:$0xff] }
 0x903   :  { %3866 = vmatpush.bf16.msra.mxu2 %v9199_v12  ;;  %3879 = vmatpush.bf16.msrb.mxu3 %v9200_v25  ;;  %v9210_v12 = vld [vmem:[#allocation81_spill] sm:$0xff]  ;;  %v9211_v25 = vld [vmem:[#allocation82_spill] sm:$0xff] }
 0x905   :  { %3841 = vmatpush.bf16.msra.mxu0 %v9201_v37  ;;  %3854 = vmatpush.bf16.msra.mxu1 %v9202_v62  ;;  %v9212_v37 = vld [vmem:[#allocation83_spill] sm:$0xff] }
 0x907   :  { %3867 = vmatpush.bf16.msra.mxu2 %v9203_v0  ;;  %3880 = vmatpush.bf16.msrb.mxu3 %v9204_v30 }
 0x909   :  { %3842 = vmatpush.bf16.msra.mxu0 %v9205_v21  ;;  %3855 = vmatpush.bf16.msra.mxu1 %v9206_v50 }
 0x90b   :  { %3868 = vmatpush.bf16.msra.mxu2 %v9207_v29  ;;  %3881 = vmatpush.bf16.msrb.mxu3 %v9208_v9 }
 0x90d   :  { %3843 = vmatpush.bf16.msra.mxu0 %v9209_v47  ;;  %3856 = vmatpush.bf16.msra.mxu1 %v9210_v12 }
 0x90f   :  { %3869 = vmatpush.bf16.msra.mxu2 %v9211_v25  ;;  %3882 = vmatpush.bf16.msrb.mxu3 %v9212_v37 }
 0x92c   :  { %v3497_v62 = vpop.f32.mrf.mxu0  ;;  %v3510_v0 = vpop.f32.mrf.mxu1 }
 0x92d   :  { %v3592_v30 = vadd.f32 %v3497_v62, %v9213_v49  ;;  %v3593_v21 = vadd.f32 %v3510_v0, %v9214_v55  ;;  %v9216_v49 = vld [vmem:[#allocation84_spill] sm:$0xff] }
 0x92f   :  { %v5797_v42 = vmul.f32 -1.442695, %v3592_v30  ;;  %v5798_v50 = vmul.f32 -1.442695, %v3593_v21 }
 0x931   :  { %6317 = vpow2.f32 %v5797_v42 }
 0x932   :  { %6319 = vpow2.f32 %v5798_v50 }
 0x933   :  { %v3523_v29 = vpop.f32.mrf.mxu2  ;;  %v3536_v9 = vpop.f32.mrf.mxu3 }
 0x934   :  { %v3595_v47 = vadd.f32 %v3536_v9, %v9215_v18  ;;  %v3499_v20 = vpop.f32.mrf.mxu0  ;;  %v3512_v12 = vpop.f32.mrf.mxu1  ;;  %v3594_v9 = vadd.f32 %v3523_v29, %v9216_v49 }
 0x936   :  { %v5799_v63 = vmul.f32 -1.442695, %v3595_v47 }
 0x937   :  { %v6318_v25 = vpop.eup %6317 }
 0x938   :  { %v6320_v13 = vpop.eup %6319  ;;  %v3723_v37 = vadd.f32 1.0, %v6318_v25  ;;  %6321 = vpow2.f32 %v5799_v63 }
 0x939   :  { %v3742_v61 = vadd.f32 1.0, %v6320_v13 }
 0x93a   :  { %6323 = vrcp.f32 %v3723_v37  ;;  %v3733_v14 = vand.u32 2147483647, %v3723_v37  ;;  %vm3729_vm6 = vweird.f32 %v3723_v37 }
 0x93b   :  { %6325 = vrcp.f32 %v3742_v61  ;;  %v3525_v62 = vpop.f32.mrf.mxu2  ;;  %v3538_v0 = vpop.f32.mrf.mxu3  ;;  %v3754_v40 = vand.u32 2147483648, %v3742_v61  ;;  %v3752_v29 = vand.u32 2147483647, %v3742_v61  ;;  %vm3748_vm7 = vweird.f32 %v3742_v61 }
 0x93c   :  { %v3549_v30 = vpop.f32.mrf.mxu0  ;;  %v3562_v21 = vpop.f32.mrf.mxu1  ;;  %v3735_v62 = vand.u32 2147483648, %v3723_v37  ;;  %vm3734_vm10 = vcmp.eq.f32.partialorder %v3733_v14, 8.507059e+37 }
 0x93d   :  { %vm3753_vm11 = vcmp.eq.f32.partialorder %v3752_v29, 8.507059e+37 }
 0x93e   :  { %v6322_v42 = vpop.eup %6321 }
 0x93f   :  { %v8104_v50 = vadd.f32 1.0, %v6322_v42 }
 0x940   :  { %v6324_v55 = vpop.eup %6323 }
 0x941   :  { %v6326_v20 = vpop.eup %6325  ;;  %v3725_v12 = vmul.f32 %v6324_v55, %v3723_v37  ;;  %6327 = vrcp.f32 %v8104_v50  ;;  %vm3730_vm4 = vweird.f32 %v6324_v55  ;;  %vm3768_vm13 = vweird.f32 %v8104_v50 }
 0x942   :  { %v3744_v47 = vmul.f32 %v6326_v20, %v3742_v61  ;;  %6329 = vtanh.f32 %v3594_v9  ;;  %vm3749_vm5 = vweird.f32 %v6326_v20  ;;  %vm3731_vm8 = vmor %vm3729_vm6, %vm3730_vm4  ;;  %v3755_v9 = vor.u32 1.1754944e-38, %v3754_v40 }
 0x943   :  { %v3726_v25 = vsub.f32 1.0, %v3725_v12  ;;  %v8108_v63 = vpop.f32.mrf.mxu2  ;;  %v3588_v13 = vpop.f32.mrf.mxu3  ;;  %v3736_v12 = vor.u32 1.1754944e-38, %v3735_v62  ;;  %vm3750_vm9 = vmor %vm3748_vm7, %vm3749_vm5  ;;  %v3597_v62 = vadd.f32 %v3562_v21, %v7673_v31 }
 0x944   :  { %v3745_v18 = vsub.f32 1.0, %v3744_v47  ;;  %v3551_v0 = vpop.f32.mrf.mxu0  ;;  %v3564_v58 = vpop.f32.mrf.mxu1 }
 0x945   :  { %v3727_v42 = vmul.f32 %v6324_v55, %v3726_v25 }
 0x946   :  { %v3746_v59 = vmul.f32 %v6326_v20, %v3745_v18 }
 0x947   :  { %v6328_v49 = vpop.eup %6327  ;;  %v3728_v46 = vadd.f32 %v6324_v55, %v3727_v42 }
 0x948   :  { %v3747_v56 = vadd.f32 %v6326_v20, %v3746_v59  ;;  %v3764_v47 = vmul.f32 %v6328_v49, %v8104_v50  ;;  %v6330_v58 = vpop.eup %6329  ;;  %v3596_v59 = vadd.f32 %v3549_v30, %v7670_v39  ;;  %vm3769_vm12 = vweird.f32 %v6328_v49 }
 0x949   :  { %v3732_v0 = vsel %vm3731_vm8, %v6324_v55, %v3728_v46  ;;  %vm3770_vm14 = vmor %vm3768_vm13, %vm3769_vm12 }
 0x94a   :  { %v3737_v25 = vsel %vm3734_vm10, %v3736_v12, %v3732_v0  ;;  %v3751_v60 = vsel %vm3750_vm9, %v6326_v20, %v3747_v56  ;;  %v3765_v18 = vsub.f32 1.0, %v3764_v47 }
 0x94b   :  { %v3756_v33 = vsel %vm3753_vm11, %v3755_v9, %v3751_v60  ;;  %v3779_v19 = vmul.f32 %v6330_v58, %v3737_v25  ;;  %v3577_v28 = vpop.f32.mrf.mxu2  ;;  %v3590_v42 = vpop.f32.mrf.mxu3 }
 0x94c   :  { %v3778_v61 = vmul.f32 %v3756_v33, %v7971_v41  ;;  %v3766_v37 = vmul.f32 %v6328_v49, %v3765_v18  ;;  %v3774_v28 = vand.u32 2147483648, %v8104_v50  ;;  %v3772_v41 = vand.u32 2147483647, %v8104_v50 }
 0x94d   :  { %v3610_v24 = vpop.f32.mrf.mxu0  ;;  %v3623_v40 = vpop.f32.mrf.mxu1 }
 0x94e   :  { %v8114_v46 = vadd.f32 %v3779_v19, %v3778_v61  ;;  %v3653_v14 = vadd.f32 %v3610_v24, %v3596_v59  ;;  %v3654_v55 = vadd.f32 %v3623_v40, %v3597_v62  ;;  %v3767_v56 = vadd.f32 %v6328_v49, %v3766_v37 }
 0x94f   :  { %v3599_v19 = vadd.f32 %v3588_v13, %v7682_v54  ;;  %v3775_v24 = vor.u32 1.1754944e-38, %v3774_v28  ;;  %vm3773_vm15 = vcmp.eq.f32.partialorder %v3772_v41, 8.507059e+37  ;;  %v3598_v62 = vadd.f32 %v8108_v63, %v7692_v27 }
 0x950   :  { %6331 = vtanh.f32 %v8114_v46  ;;  %v5794_v60 = vmul.f32 -1.442695, %v3653_v14  ;;  %v5795_v20 = vmul.f32 -1.442695, %v3654_v55  ;;  %v3771_v33 = vsel %vm3770_vm14, %v6328_v49, %v3767_v56 }
 0x951   :  { %v3776_v0 = vsel %vm3773_vm15, %v3775_v24, %v3771_v33 }
 0x952   :  { %6333 = vpow2.f32 %v5794_v60 }
 0x953   :  { %6335 = vpow2.f32 %v5795_v20 }
 0x955   :  { %v3636_v30 = vpop.f32.mrf.mxu2  ;;  %v3649_v21 = vpop.f32.mrf.mxu3 }
 0x956   :  { %v3656_v29 = vadd.f32 %v3649_v21, %v3599_v19  ;;  %v3612_v12 = vpop.f32.mrf.mxu0  ;;  %v3625_v47 = vpop.f32.mrf.mxu1  ;;  %v3655_v55 = vadd.f32 %v3636_v30, %v3598_v62 }
 0x957   :  { %v6332_v9 = vpop.eup %6331 }
 0x958   :  { %v3782_v58 = vmul.f32 %v6332_v9, %v3776_v0  ;;  %v5796_v25 = vmul.f32 -1.442695, %v3656_v29  ;;  %v6334_v18 = vpop.eup %6333 }
 0x959   :  { %v6336_v42 = vpop.eup %6335  ;;  %v3660_v61 = vadd.f32 1.0, %v6334_v18 }
 0x95a   :  { %v8121_v50 = vpack.c.bf16 %v3782_v58, %v3782_v58  ;;  %6337 = vpow2.f32 %v5796_v25  ;;  %v3679_v49 = vadd.f32 1.0, %v6336_v42 }
 0x95b   :  { %6339 = vrcp.f32 %v3660_v61  ;;  %v3672_v63 = vand.u32 2147483648, %v3660_v61  ;;  %v3670_v24 = vand.u32 2147483647, %v3660_v61  ;;  %vm3666_vm2 = vweird.f32 %v3660_v61 }
 0x95c   :  { %3792 = vmatmul.bf16.vlgmr.msrb.gmra.mxu0 %v8121_v50  ;;  %3805 = vmatmul.bf16.vlgmr.msrb.gmra.mxu1 %v8121_v50  ;;  %6341 = vrcp.f32 %v3679_v49  ;;  %v3691_v33 = vand.u32 2147483648, %v3679_v49  ;;  %v3689_v21 = vand.u32 2147483647, %v3679_v49  ;;  %vm3685_vm3 = vweird.f32 %v3679_v49 }
 0x95d   :  { %v3638_v13 = vpop.f32.mrf.mxu2  ;;  %v3651_v37 = vpop.f32.mrf.mxu3  ;;  %3818 = vmatmul.bf16.vlgmr.msrb.gmra.mxu2 %v8121_v50  ;;  %3831 = vmatmul.bf16.vlgmr.msra.gmra.mxu3 %v8121_v50  ;;  %v3673_v47 = vor.u32 1.1754944e-38, %v3672_v63  ;;  %vm3671_vm6 = vcmp.eq.f32.partialorder %v3670_v24, 8.507059e+37  ;;  %v9219_v63 = vld [vmem:[#allocation106_spill] sm:$0xff] }
 0x95e   :  { %3897 = vmatpush.bf16.msrb.mxu0 %v7486_v23  ;;  %3910 = vmatpush.bf16.msrb.mxu1 %v7488_v36  ;;  %v3692_v58 = vor.u32 1.1754944e-38, %v3691_v33  ;;  %vm3690_vm7 = vcmp.eq.f32.partialorder %v3689_v21, 8.507059e+37  ;;  %v9220_v33 = vld [vmem:[#allocation107_spill] sm:$0xff]  ;;  %v9223_v21 = vld [vmem:[#allocation26_spill] sm:$0xff] }
 0x95f   :  { %3923 = vmatpush.bf16.msrb.mxu2 %v9000_v22  ;;  %3936 = vmatpush.bf16.msra.mxu3 %v9001_v8 }
 0x960   :  { %v6338_v59 = vpop.eup %6337 }
 0x961   :  { %v8133_v40 = vadd.f32 1.0, %v6338_v59  ;;  %v6340_v14 = vpop.eup %6339 }
 0x962   :  { %3898 = vmatpush.bf16.msrb.mxu0 %v9002_v44  ;;  %3911 = vmatpush.bf16.msrb.mxu1 %v9003_v53  ;;  %v6342_v56 = vpop.eup %6341  ;;  %v3662_v28 = vmul.f32 %v6340_v14, %v3660_v61  ;;  %vm3667_vm0 = vweird.f32 %v6340_v14 }
 0x963   :  { %6343 = vrcp.f32 %v8133_v40  ;;  %3924 = vmatpush.bf16.msrb.mxu2 %v9004_v43  ;;  %3937 = vmatpush.bf16.msra.mxu3 %v9005_v38  ;;  %v3681_v60 = vmul.f32 %v6342_v56, %v3679_v49  ;;  %vm3686_vm1 = vweird.f32 %v6342_v56  ;;  %vm3668_vm4 = vmor %vm3666_vm2, %vm3667_vm0  ;;  %vm3705_vm9 = vweird.f32 %v8133_v40 }
 0x964   :  { %v3663_v20 = vsub.f32 1.0, %v3662_v28  ;;  %6345 = vtanh.f32 %v3655_v55  ;;  %vm3687_vm5 = vmor %vm3685_vm3, %vm3686_vm1 }
 0x965   :  { %v3682_v41 = vsub.f32 1.0, %v3681_v60 }
 0x966   :  { %3899 = vmatpush.bf16.msrb.mxu0 %v9006_v57  ;;  %3912 = vmatpush.bf16.msrb.mxu1 %v9071_v34  ;;  %v3664_v19 = vmul.f32 %v6340_v14, %v3663_v20 }
 0x967   :  { %3925 = vmatpush.bf16.msrb.mxu2 %v9072_v2  ;;  %3938 = vmatpush.bf16.msra.mxu3 %v9073_v10  ;;  %v3683_v30 = vmul.f32 %v6342_v56, %v3682_v41 }
 0x968   :  { %v3665_v12 = vadd.f32 %v6340_v14, %v3664_v19  ;;  %v9221_v19 = vld [vmem:[#allocation108_spill] sm:$0xff] }
 0x969   :  { %v6344_v29 = vpop.eup %6343  ;;  %v3684_v9 = vadd.f32 %v6342_v56, %v3683_v30  ;;  %v9222_v30 = vld [vmem:[#allocation20_spill] sm:$0xff] }
 0x96a   :  { %v3701_v0 = vmul.f32 %v6344_v29, %v8133_v40  ;;  %3900 = vmatpush.bf16.msrb.mxu0 %v9009_v52  ;;  %3913 = vmatpush.bf16.msrb.mxu1 %v9074_v6  ;;  %v3669_v25 = vsel %vm3668_vm4, %v6340_v14, %v3665_v12  ;;  %v6346_v18 = vpop.eup %6345  ;;  %vm3706_vm8 = vweird.f32 %v6344_v29  ;;  %v9225_v12 = vld [vmem:[#allocation28_spill] sm:$0xff] }
 0x96b   :  { %3926 = vmatpush.bf16.msrb.mxu2 %v9011_v48  ;;  %3939 = vmatpush.bf16.msra.mxu3 %v9012_v5  ;;  %v3674_v42 = vsel %vm3671_vm6, %v3673_v47, %v3669_v25  ;;  %v3688_v61 = vsel %vm3687_vm5, %v6342_v56, %v3684_v9  ;;  %v3711_v56 = vand.u32 2147483648, %v8133_v40  ;;  %vm3707_vm10 = vmor %vm3705_vm9, %vm3706_vm8  ;;  %v9226_v47 = vld [vmem:[#allocation23_spill] sm:$0xff]  ;;  %v9227_v9 = vld [vmem:[#allocation29_spill] sm:$0xff] }
 0x96c   :  { %v3702_v49 = vsub.f32 1.0, %v3701_v0  ;;  %3844 = vmatmul.bf16.vlgmr.msra.gmra.mxu0 %v8121_v50  ;;  %3857 = vmatmul.bf16.vlgmr.msra.gmra.mxu1 %v8121_v50  ;;  %v3693_v13 = vsel %vm3690_vm7, %v3692_v58, %v3688_v61  ;;  %v3716_v37 = vmul.f32 %v6346_v18, %v3674_v42  ;;  %v9228_v0 = vld [vmem:[#allocation17_spill] sm:$0xff]  ;;  %v9229_v58 = vld [vmem:[#allocation31_spill] sm:$0xff]  ;;  %v9230_v25 = vld [vmem:[#allocation24_spill] sm:$0xff] }
 0x96d   :  { %3870 = vmatmul.bf16.vlgmr.msra.gmra.mxu2 %v8121_v50  ;;  %3883 = vmatmul.bf16.vlgmr.msrb.gmra.mxu3 %v8121_v50  ;;  %v3715_v59 = vmul.f32 %v3693_v13, %v8015_v3  ;;  %v3709_v3 = vand.u32 2147483647, %v8133_v40  ;;  %v3712_v28 = vor.u32 1.1754944e-38, %v3711_v56  ;;  %v9218_v40 = vld [vmem:[#allocation105_spill] sm:$0xff]  ;;  %v9231_v18 = vld [vmem:[#allocation32_spill] sm:$0xff]  ;;  %v9232_v42 = vld [vmem:[#allocation18_spill] sm:$0xff] }
 0x96e   :  { %v3703_v62 = vmul.f32 %v6344_v29, %v3702_v49  ;;  %3901 = vmatpush.bf16.msrb.mxu0 %v9013_v26  ;;  %3914 = vmatpush.bf16.msrb.mxu1 %v9014_v32  ;;  %v9233_v61 = vld [vmem:[#allocation33_spill] sm:$0xff]  ;;  %v9235_v13 = vld [vmem:[#allocation34_spill] sm:$0xff] }
 0x96f   :  { %3927 = vmatpush.bf16.msrb.mxu2 %v9015_v45  ;;  %3940 = vmatpush.bf16.msra.mxu3 %v9016_v35  ;;  %v8158_v14 = vadd.f32 %v3716_v37, %v3715_v59  ;;  %vm3710_vm11 = vcmp.eq.f32.partialorder %v3709_v3, 8.507059e+37  ;;  %v9234_v49 = vld [vmem:[#allocation25_spill] sm:$0xff]  ;;  %v9236_v37 = vld [vmem:[#allocation19_spill] sm:$0xff]  ;;  %v9240_v56 = vld [vmem:[#allocation22_spill] sm:$0xff] }
 0x970   :  { %v3704_v55 = vadd.f32 %v6344_v29, %v3703_v62  ;;  %v9237_v59 = vld [vmem:[#allocation35_spill] sm:$0xff]  ;;  %v9241_v3 = vld [vmem:[#allocation37_spill] sm:$0xff] }
 0x971   :  { %6347 = vtanh.f32 %v8158_v14  ;;  %v9238_v62 = vld [vmem:[#allocation27_spill] sm:$0xff] }
 0x972   :  { %3902 = vmatpush.bf16.msrb.mxu0 %v9017_v51  ;;  %3915 = vmatpush.bf16.msrb.mxu1 %v9018_v4  ;;  %v3708_v50 = vsel %vm3707_vm10, %v6344_v29, %v3704_v55  ;;  %v9224_v29 = vld [vmem:[#allocation21_spill] sm:$0xff]  ;;  %v9239_v55 = vld [vmem:[#allocation36_spill] sm:$0xff] }
 0x973   :  { %3928 = vmatpush.bf16.msrb.mxu2 %v7558_v17  ;;  %3941 = vmatpush.bf16.msra.mxu3 %v7560_v16  ;;  %v3713_v20 = vsel %vm3710_vm11, %v3712_v28, %v3708_v50  ;;  %v9242_v50 = vld [vmem:[#allocation30_spill] sm:$0xff] }
 0x974   :  { %v9243_v28 = vld [vmem:[#allocation38_spill] sm:$0xff] }
 0x976   :  { %3903 = vmatpush.bf16.msrb.mxu0 %v7564_v7  ;;  %3916 = vmatpush.bf16.msrb.mxu1 %v7566_v15 }
 0x977   :  { %3929 = vmatpush.bf16.msrb.mxu2 %v7570_v11  ;;  %3942 = vmatpush.bf16.msra.mxu3 %v7572_v1  ;;  %v6348_v60 = vpop.eup %6347 }
 0x978   :  { %v8172_v41 = vmul.f32 %v6348_v60, %v3713_v20  ;;  %v9244_v60 = vld [vmem:[#allocation39_spill] sm:$0xff]  ;;  %v9245_v20 = vld [vmem:[#allocation40_spill] sm:$0xff] }
 0x97a   :  { %9217 = vst [vmem:[#allocation88_spill] sm:$0xff] %v8172_v41  ;;  %3904 = vmatpush.bf16.msrb.mxu0 %v9218_v40  ;;  %3917 = vmatpush.bf16.msrb.mxu1 %v9219_v63  ;;  %v3896_v24 = vpack.c.bf16 %v8172_v41, %v8172_v41  ;;  %v9247_v41 = vld [vmem:[#allocation42_spill] sm:$0xff] }
 0x97b   :  { %3930 = vmatpush.bf16.msrb.mxu2 %v9220_v33  ;;  %3943 = vmatpush.bf16.msra.mxu3 %v9221_v19 }
 0x97d   :  { %3905 = vmatmul.bf16.vlgmr.msrb.gmra.mxu0 %v3896_v24  ;;  %3918 = vmatmul.bf16.vlgmr.msrb.gmra.mxu1 %v3896_v24 }
 0x97e   :  { %4080 = vmatpush.bf16.msra.mxu0 %v9222_v30  ;;  %4093 = vmatpush.bf16.msra.mxu1 %v9223_v21 }
 0x97f   :  { %3931 = vmatmul.bf16.vlgmr.msrb.gmra.mxu2 %v3896_v24  ;;  %3944 = vmatmul.bf16.vlgmr.msra.gmra.mxu3 %v3896_v24  ;;  %v9246_v24 = vld [vmem:[#allocation41_spill] sm:$0xff] }
 0x980   :  { %4106 = vmatpush.bf16.msra.mxu2 %v9224_v29  ;;  %4119 = vmatpush.bf16.msrb.mxu3 %v9225_v12 }
 0x982   :  { %4081 = vmatpush.bf16.msra.mxu0 %v9226_v47  ;;  %4094 = vmatpush.bf16.msra.mxu1 %v9227_v9 }
 0x984   :  { %4107 = vmatpush.bf16.msra.mxu2 %v9228_v0  ;;  %4120 = vmatpush.bf16.msrb.mxu3 %v9229_v58 }
 0x986   :  { %4082 = vmatpush.bf16.msra.mxu0 %v9230_v25  ;;  %4095 = vmatpush.bf16.msra.mxu1 %v9231_v18 }
 0x988   :  { %4108 = vmatpush.bf16.msra.mxu2 %v9232_v42  ;;  %4121 = vmatpush.bf16.msrb.mxu3 %v9233_v61  ;;  %v9288_v61 = vld [vmem:[#allocation75_spill] sm:$0xff] }
 0x98a   :  { %4083 = vmatpush.bf16.msra.mxu0 %v9234_v49  ;;  %4096 = vmatpush.bf16.msra.mxu1 %v9235_v13  ;;  %v9287_v13 = vld [vmem:[#allocation67_spill] sm:$0xff] }
 0x98c   :  { %4109 = vmatpush.bf16.msra.mxu2 %v9236_v37  ;;  %4122 = vmatpush.bf16.msrb.mxu3 %v9237_v59  ;;  %v9248_v59 = vld [vmem:[#allocation43_spill] sm:$0xff]  ;;  %v9286_v37 = vld [vmem:[#allocation66_spill] sm:$0xff] }
 0x98e   :  { %4084 = vmatpush.bf16.msra.mxu0 %v9238_v62  ;;  %4097 = vmatpush.bf16.msra.mxu1 %v9239_v55  ;;  %v9249_v62 = vld [vmem:[#allocation44_spill] sm:$0xff]  ;;  %v9250_v55 = vld [vmem:[#allocation45_spill] sm:$0xff] }
 0x990   :  { %4110 = vmatpush.bf16.msra.mxu2 %v9240_v56  ;;  %4123 = vmatpush.bf16.msrb.mxu3 %v9241_v3  ;;  %v9251_v56 = vld [vmem:[#allocation46_spill] sm:$0xff]  ;;  %v9252_v3 = vld [vmem:[#allocation49_spill] sm:$0xff] }
 0x992   :  { %4085 = vmatpush.bf16.msra.mxu0 %v9242_v50  ;;  %4098 = vmatpush.bf16.msra.mxu1 %v9243_v28  ;;  %v9253_v50 = vld [vmem:[#allocation50_spill] sm:$0xff]  ;;  %v9254_v28 = vld [vmem:[#allocation47_spill] sm:$0xff] }
 0x994   :  { %4111 = vmatpush.bf16.msra.mxu2 %v9244_v60  ;;  %4124 = vmatpush.bf16.msrb.mxu3 %v9245_v20  ;;  %v9255_v60 = vld [vmem:[#allocation48_spill] sm:$0xff]  ;;  %v9256_v20 = vld [vmem:[#allocation51_spill] sm:$0xff] }
 0x996   :  { %4086 = vmatpush.bf16.msra.mxu0 %v9246_v24  ;;  %4099 = vmatpush.bf16.msra.mxu1 %v9247_v41  ;;  %v9257_v24 = vld [vmem:[#allocation52_spill] sm:$0xff]  ;;  %v9258_v41 = vld [vmem:[#allocation53_spill] sm:$0xff] }
 0x998   :  { %4112 = vmatpush.bf16.msra.mxu2 %v9248_v59  ;;  %4125 = vmatpush.bf16.msrb.mxu3 %v9249_v62  ;;  %v9259_v59 = vld [vmem:[#allocation54_spill] sm:$0xff]  ;;  %v9260_v62 = vld [vmem:[#allocation55_spill] sm:$0xff] }
 0x99a   :  { %4087 = vmatpush.bf16.msra.mxu0 %v9250_v55  ;;  %4100 = vmatpush.bf16.msra.mxu1 %v9251_v56  ;;  %v9261_v55 = vld [vmem:[#allocation56_spill] sm:$0xff]  ;;  %v9262_v56 = vld [vmem:[#allocation57_spill] sm:$0xff] }
 0x99c   :  { %4113 = vmatpush.bf16.msra.mxu2 %v9254_v28  ;;  %4126 = vmatpush.bf16.msrb.mxu3 %v9255_v60  ;;  %v9265_v28 = vld [vmem:[#allocation60_spill] sm:$0xff]  ;;  %v9266_v60 = vld [vmem:[#allocation61_spill] sm:$0xff] }
 0x99e   :  { %4132 = vmatpush.bf16.msrb.mxu0 %v9252_v3  ;;  %4145 = vmatpush.bf16.msrb.mxu1 %v9253_v50  ;;  %v9263_v3 = vld [vmem:[#allocation58_spill] sm:$0xff]  ;;  %v9264_v50 = vld [vmem:[#allocation59_spill] sm:$0xff] }
 0x9a0   :  { %4158 = vmatpush.bf16.msrb.mxu2 %v9256_v20  ;;  %4171 = vmatpush.bf16.msra.mxu3 %v9257_v24  ;;  %v9267_v20 = vld [vmem:[#allocation62_spill] sm:$0xff]  ;;  %v9268_v24 = vld [vmem:[#allocation63_spill] sm:$0xff] }
 0x9a2   :  { %4133 = vmatpush.bf16.msrb.mxu0 %v9258_v41  ;;  %4146 = vmatpush.bf16.msrb.mxu1 %v9259_v59  ;;  %v9269_v41 = vld [vmem:[#allocation64_spill] sm:$0xff]  ;;  %v9270_v59 = vld [vmem:[#allocation65_spill] sm:$0xff] }
 0x9a4   :  { %4159 = vmatpush.bf16.msrb.mxu2 %v9260_v62  ;;  %4172 = vmatpush.bf16.msra.mxu3 %v9261_v55  ;;  %v9271_v62 = vld [vmem:[#allocation68_spill] sm:$0xff]  ;;  %v9272_v55 = vld [vmem:[#allocation69_spill] sm:$0xff] }
 0x9a6   :  { %4134 = vmatpush.bf16.msrb.mxu0 %v9262_v56  ;;  %4147 = vmatpush.bf16.msrb.mxu1 %v9263_v3  ;;  %v9273_v56 = vld [vmem:[#allocation70_spill] sm:$0xff]  ;;  %v9274_v3 = vld [vmem:[#allocation71_spill] sm:$0xff] }
 0x9a8   :  { %4160 = vmatpush.bf16.msrb.mxu2 %v9264_v50  ;;  %4173 = vmatpush.bf16.msra.mxu3 %v9265_v28  ;;  %v9275_v50 = vld [vmem:[#allocation72_spill] sm:$0xff]  ;;  %v9276_v28 = vld [vmem:[#allocation73_spill] sm:$0xff] }
 0x9aa   :  { %4135 = vmatpush.bf16.msrb.mxu0 %v9266_v60  ;;  %4148 = vmatpush.bf16.msrb.mxu1 %v9267_v20  ;;  %v9277_v60 = vld [vmem:[#allocation74_spill] sm:$0xff]  ;;  %v9278_v20 = vld [vmem:[#allocation76_spill] sm:$0xff] }
 0x9ac   :  { %4161 = vmatpush.bf16.msrb.mxu2 %v9268_v24  ;;  %4174 = vmatpush.bf16.msra.mxu3 %v9269_v41  ;;  %v9279_v24 = vld [vmem:[#allocation77_spill] sm:$0xff]  ;;  %v9280_v41 = vld [vmem:[#allocation78_spill] sm:$0xff] }
 0x9ae   :  { %4136 = vmatpush.bf16.msrb.mxu0 %v9270_v59  ;;  %4149 = vmatpush.bf16.msrb.mxu1 %v9271_v62  ;;  %v9281_v59 = vld [vmem:[#allocation79_spill] sm:$0xff]  ;;  %v9282_v62 = vld [vmem:[#allocation80_spill] sm:$0xff] }
 0x9b0   :  { %4162 = vmatpush.bf16.msrb.mxu2 %v9272_v55  ;;  %4175 = vmatpush.bf16.msra.mxu3 %v9273_v56  ;;  %v9283_v55 = vld [vmem:[#allocation81_spill] sm:$0xff]  ;;  %v9284_v56 = vld [vmem:[#allocation82_spill] sm:$0xff] }
 0x9b2   :  { %4137 = vmatpush.bf16.msrb.mxu0 %v9274_v3  ;;  %4150 = vmatpush.bf16.msrb.mxu1 %v9275_v50  ;;  %v9285_v3 = vld [vmem:[#allocation83_spill] sm:$0xff] }
 0x9b4   :  { %4163 = vmatpush.bf16.msrb.mxu2 %v9276_v28  ;;  %4176 = vmatpush.bf16.msra.mxu3 %v9277_v60 }
 0x9b6   :  { %4138 = vmatpush.bf16.msrb.mxu0 %v9278_v20  ;;  %4151 = vmatpush.bf16.msrb.mxu1 %v9279_v24 }
 0x9b8   :  { %4164 = vmatpush.bf16.msrb.mxu2 %v9280_v41  ;;  %4177 = vmatpush.bf16.msra.mxu3 %v9281_v59 }
 0x9ba   :  { %4139 = vmatpush.bf16.msrb.mxu0 %v9282_v62  ;;  %4152 = vmatpush.bf16.msrb.mxu1 %v9283_v55 }
 0x9bc   :  { %4165 = vmatpush.bf16.msrb.mxu2 %v9284_v56  ;;  %4178 = vmatpush.bf16.msra.mxu3 %v9285_v3 }
 0x9d9   :  { %v3793_v50 = vpop.f32.mrf.mxu0  ;;  %v3806_v28 = vpop.f32.mrf.mxu1 }
 0x9da   :  { %v3888_v60 = vadd.f32 %v3793_v50, %v9286_v37  ;;  %v3889_v20 = vadd.f32 %v3806_v28, %v9287_v13  ;;  %v9289_v37 = vld [vmem:[#allocation84_spill] sm:$0xff] }
 0x9dc   :  { %v5803_v49 = vmul.f32 -1.442695, %v3888_v60  ;;  %v5804_v24 = vmul.f32 -1.442695, %v3889_v20 }
 0x9de   :  { %6349 = vpow2.f32 %v5803_v49 }
 0x9df   :  { %6351 = vpow2.f32 %v5804_v24 }
 0x9e0   :  { %v3819_v41 = vpop.f32.mrf.mxu2  ;;  %v3832_v59 = vpop.f32.mrf.mxu3 }
 0x9e1   :  { %v3891_v62 = vadd.f32 %v3832_v59, %v9288_v61  ;;  %v3795_v42 = vpop.f32.mrf.mxu0  ;;  %v3808_v55 = vpop.f32.mrf.mxu1  ;;  %v3890_v59 = vadd.f32 %v3819_v41, %v9289_v37 }
 0x9e3   :  { %v5805_v18 = vmul.f32 -1.442695, %v3891_v62 }
 0x9e4   :  { %v6350_v56 = vpop.eup %6349 }
 0x9e5   :  { %v6352_v25 = vpop.eup %6351  ;;  %v4019_v3 = vadd.f32 1.0, %v6350_v56  ;;  %6353 = vpow2.f32 %v5805_v18 }
 0x9e6   :  { %v4038_v58 = vadd.f32 1.0, %v6352_v25 }
 0x9e7   :  { %6355 = vrcp.f32 %v4019_v3  ;;  %v4029_v47 = vand.u32 2147483647, %v4019_v3  ;;  %vm4025_vm14 = vweird.f32 %v4019_v3 }
 0x9e8   :  { %6357 = vrcp.f32 %v4038_v58  ;;  %v3821_v50 = vpop.f32.mrf.mxu2  ;;  %v3834_v28 = vpop.f32.mrf.mxu3  ;;  %v4050_v9 = vand.u32 2147483648, %v4038_v58  ;;  %v4048_v41 = vand.u32 2147483647, %v4038_v58  ;;  %vm4044_vm15 = vweird.f32 %v4038_v58 }
 0x9e9   :  { %v3845_v60 = vpop.f32.mrf.mxu0  ;;  %v3858_v20 = vpop.f32.mrf.mxu1  ;;  %v4031_v50 = vand.u32 2147483648, %v4019_v3  ;;  %vm4030_vm2 = vcmp.eq.f32.partialorder %v4029_v47, 8.507059e+37 }
 0x9ea   :  { %vm4049_vm3 = vcmp.eq.f32.partialorder %v4048_v41, 8.507059e+37 }
 0x9eb   :  { %v6354_v49 = vpop.eup %6353 }
 0x9ec   :  { %v8247_v24 = vadd.f32 1.0, %v6354_v49 }
 0x9ed   :  { %v6356_v13 = vpop.eup %6355 }
 0x9ee   :  { %v6358_v42 = vpop.eup %6357  ;;  %v4021_v55 = vmul.f32 %v6356_v13, %v4019_v3  ;;  %6359 = vrcp.f32 %v8247_v24  ;;  %vm4026_vm12 = vweird.f32 %v6356_v13  ;;  %vm4064_vm5 = vweird.f32 %v8247_v24 }
 0x9ef   :  { %v4040_v62 = vmul.f32 %v6358_v42, %v4038_v58  ;;  %6361 = vtanh.f32 %v3890_v59  ;;  %vm4045_vm13 = vweird.f32 %v6358_v42  ;;  %vm4027_vm0 = vmor %vm4025_vm14, %vm4026_vm12  ;;  %v4051_v59 = vor.u32 1.1754944e-38, %v4050_v9 }
 0x9f0   :  { %v4022_v56 = vsub.f32 1.0, %v4021_v55  ;;  %v8251_v18 = vpop.f32.mrf.mxu2  ;;  %v3884_v25 = vpop.f32.mrf.mxu3  ;;  %v4032_v55 = vor.u32 1.1754944e-38, %v4031_v50  ;;  %vm4046_vm1 = vmor %vm4044_vm15, %vm4045_vm13  ;;  %v3893_v50 = vadd.f32 %v3858_v20, %v7673_v31 }
 0x9f1   :  { %v4041_v61 = vsub.f32 1.0, %v4040_v62  ;;  %v3847_v28 = vpop.f32.mrf.mxu0  ;;  %v3860_v0 = vpop.f32.mrf.mxu1 }
 0x9f2   :  { %v4023_v49 = vmul.f32 %v6356_v13, %v4022_v56 }
 0x9f3   :  { %v4042_v12 = vmul.f32 %v6358_v42, %v4041_v61 }
 0x9f4   :  { %v6360_v37 = vpop.eup %6359  ;;  %v4024_v29 = vadd.f32 %v6356_v13, %v4023_v49 }
 0x9f5   :  { %v4043_v21 = vadd.f32 %v6358_v42, %v4042_v12  ;;  %v4060_v62 = vmul.f32 %v6360_v37, %v8247_v24  ;;  %v6362_v0 = vpop.eup %6361  ;;  %v3892_v12 = vadd.f32 %v3845_v60, %v7670_v39  ;;  %vm4065_vm4 = vweird.f32 %v6360_v37 }
 0x9f6   :  { %v4028_v28 = vsel %vm4027_vm0, %v6356_v13, %v4024_v29  ;;  %vm4066_vm6 = vmor %vm4064_vm5, %vm4065_vm4 }
 0x9f7   :  { %v4033_v56 = vsel %vm4030_vm2, %v4032_v55, %v4028_v28  ;;  %v4047_v30 = vsel %vm4046_vm1, %v6358_v42, %v4043_v21  ;;  %v4061_v61 = vsub.f32 1.0, %v4060_v62 }
 0x9f8   :  { %v4052_v19 = vsel %vm4049_vm3, %v4051_v59, %v4047_v30  ;;  %v4075_v33 = vmul.f32 %v6362_v0, %v4033_v56  ;;  %v3873_v63 = vpop.f32.mrf.mxu2  ;;  %v3886_v49 = vpop.f32.mrf.mxu3 }
 0x9f9   :  { %v4074_v58 = vmul.f32 %v4052_v19, %v8114_v46  ;;  %v4062_v3 = vmul.f32 %v6360_v37, %v4061_v61  ;;  %v4070_v63 = vand.u32 2147483648, %v8247_v24  ;;  %v4068_v46 = vand.u32 2147483647, %v8247_v24 }
 0x9fa   :  { %v3906_v40 = vpop.f32.mrf.mxu0  ;;  %v3919_v9 = vpop.f32.mrf.mxu1 }
 0x9fb   :  { %v8257_v29 = vadd.f32 %v4075_v33, %v4074_v58  ;;  %v3949_v47 = vadd.f32 %v3906_v40, %v3892_v12  ;;  %v3950_v13 = vadd.f32 %v3919_v9, %v3893_v50  ;;  %v4063_v21 = vadd.f32 %v6360_v37, %v4062_v3 }
 0x9fc   :  { %v3895_v33 = vadd.f32 %v3884_v25, %v7682_v54  ;;  %v4071_v40 = vor.u32 1.1754944e-38, %v4070_v63  ;;  %vm4069_vm7 = vcmp.eq.f32.partialorder %v4068_v46, 8.507059e+37  ;;  %v3894_v50 = vadd.f32 %v8251_v18, %v7692_v27 }
 0x9fd   :  { %6363 = vtanh.f32 %v8257_v29  ;;  %v5800_v30 = vmul.f32 -1.442695, %v3949_v47  ;;  %v5801_v42 = vmul.f32 -1.442695, %v3950_v13  ;;  %v4067_v19 = vsel %vm4066_vm6, %v6360_v37, %v4063_v21 }
 0x9fe   :  { %v4072_v28 = vsel %vm4069_vm7, %v4071_v40, %v4067_v19 }
 0x9ff   :  { %6365 = vpow2.f32 %v5800_v30 }
 0xa00   :  { %6367 = vpow2.f32 %v5801_v42 }
 0xa02   :  { %v3932_v60 = vpop.f32.mrf.mxu2  ;;  %v3945_v20 = vpop.f32.mrf.mxu3 }
 0xa03   :  { %v3952_v41 = vadd.f32 %v3945_v20, %v3895_v33  ;;  %v3908_v55 = vpop.f32.mrf.mxu0  ;;  %v3921_v62 = vpop.f32.mrf.mxu1  ;;  %v3951_v13 = vadd.f32 %v3932_v60, %v3894_v50 }
 0xa04   :  { %v6364_v59 = vpop.eup %6363 }
 0xa05   :  { %v4078_v0 = vmul.f32 %v6364_v59, %v4072_v28  ;;  %v5802_v56 = vmul.f32 -1.442695, %v3952_v41  ;;  %v6366_v61 = vpop.eup %6365 }
 0xa06   :  { %v6368_v49 = vpop.eup %6367  ;;  %v3956_v58 = vadd.f32 1.0, %v6366_v61 }
 0xa07   :  { %v8264_v24 = vpack.c.bf16 %v4078_v0, %v4078_v0  ;;  %6369 = vpow2.f32 %v5802_v56  ;;  %v3975_v37 = vadd.f32 1.0, %v6368_v49 }
 0xa08   :  { %6371 = vrcp.f32 %v3956_v58  ;;  %v3968_v18 = vand.u32 2147483648, %v3956_v58  ;;  %v3966_v40 = vand.u32 2147483647, %v3956_v58  ;;  %vm3962_vm10 = vweird.f32 %v3956_v58 }
 0xa09   :  { %4088 = vmatmul.bf16.vlgmr.msra.gmra.mxu0 %v8264_v24  ;;  %4101 = vmatmul.bf16.vlgmr.msra.gmra.mxu1 %v8264_v24  ;;  %6373 = vrcp.f32 %v3975_v37  ;;  %v3987_v19 = vand.u32 2147483648, %v3975_v37  ;;  %v3985_v20 = vand.u32 2147483647, %v3975_v37  ;;  %vm3981_vm11 = vweird.f32 %v3975_v37 }
 0xa0a   :  { %v3934_v25 = vpop.f32.mrf.mxu2  ;;  %v3947_v3 = vpop.f32.mrf.mxu3  ;;  %4114 = vmatmul.bf16.vlgmr.msra.gmra.mxu2 %v8264_v24  ;;  %4127 = vmatmul.bf16.vlgmr.msrb.gmra.mxu3 %v8264_v24  ;;  %v3969_v62 = vor.u32 1.1754944e-38, %v3968_v18  ;;  %vm3967_vm14 = vcmp.eq.f32.partialorder %v3966_v40, 8.507059e+37  ;;  %v9292_v18 = vld [vmem:[#allocation106_spill] sm:$0xff] }
 0xa0b   :  { %4193 = vmatpush.bf16.msra.mxu0 %v7486_v23  ;;  %4206 = vmatpush.bf16.msra.mxu1 %v7488_v36  ;;  %v3988_v0 = vor.u32 1.1754944e-38, %v3987_v19  ;;  %vm3986_vm15 = vcmp.eq.f32.partialorder %v3985_v20, 8.507059e+37  ;;  %v9293_v19 = vld [vmem:[#allocation107_spill] sm:$0xff]  ;;  %v9296_v20 = vld [vmem:[#allocation26_spill] sm:$0xff] }
 0xa0c   :  { %4219 = vmatpush.bf16.msra.mxu2 %v9000_v22  ;;  %4232 = vmatpush.bf16.msrb.mxu3 %v9001_v8 }
 0xa0d   :  { %v6370_v12 = vpop.eup %6369 }
 0xa0e   :  { %v8276_v9 = vadd.f32 1.0, %v6370_v12  ;;  %v6372_v47 = vpop.eup %6371 }
 0xa0f   :  { %4194 = vmatpush.bf16.msra.mxu0 %v9002_v44  ;;  %4207 = vmatpush.bf16.msra.mxu1 %v9003_v53  ;;  %v6374_v21 = vpop.eup %6373  ;;  %v3958_v63 = vmul.f32 %v6372_v47, %v3956_v58  ;;  %vm3963_vm8 = vweird.f32 %v6372_v47 }
 0xa10   :  { %6375 = vrcp.f32 %v8276_v9  ;;  %4220 = vmatpush.bf16.msra.mxu2 %v9004_v43  ;;  %4233 = vmatpush.bf16.msrb.mxu3 %v9005_v38  ;;  %v3977_v30 = vmul.f32 %v6374_v21, %v3975_v37  ;;  %vm3982_vm9 = vweird.f32 %v6374_v21  ;;  %vm3964_vm12 = vmor %vm3962_vm10, %vm3963_vm8  ;;  %vm4001_vm1 = vweird.f32 %v8276_v9 }
 0xa11   :  { %v3959_v42 = vsub.f32 1.0, %v3958_v63  ;;  %6377 = vtanh.f32 %v3951_v13  ;;  %vm3983_vm13 = vmor %vm3981_vm11, %vm3982_vm9 }
 0xa12   :  { %v3978_v46 = vsub.f32 1.0, %v3977_v30 }
 0xa13   :  { %4195 = vmatpush.bf16.msra.mxu0 %v9006_v57  ;;  %4208 = vmatpush.bf16.msra.mxu1 %v9071_v34  ;;  %v3960_v33 = vmul.f32 %v6372_v47, %v3959_v42 }
 0xa14   :  { %4221 = vmatpush.bf16.msra.mxu2 %v9072_v2  ;;  %4234 = vmatpush.bf16.msrb.mxu3 %v9073_v10  ;;  %v3979_v60 = vmul.f32 %v6374_v21, %v3978_v46 }
 0xa15   :  { %v3961_v55 = vadd.f32 %v6372_v47, %v3960_v33  ;;  %v9294_v33 = vld [vmem:[#allocation108_spill] sm:$0xff] }
 0xa16   :  { %v6376_v41 = vpop.eup %6375  ;;  %v3980_v59 = vadd.f32 %v6374_v21, %v3979_v60  ;;  %v9295_v60 = vld [vmem:[#allocation20_spill] sm:$0xff] }
 0xa17   :  { %v3997_v28 = vmul.f32 %v6376_v41, %v8276_v9  ;;  %4196 = vmatpush.bf16.msra.mxu0 %v9009_v52  ;;  %4209 = vmatpush.bf16.msra.mxu1 %v9074_v6  ;;  %v3965_v56 = vsel %vm3964_vm12, %v6372_v47, %v3961_v55  ;;  %v6378_v61 = vpop.eup %6377  ;;  %vm4002_vm0 = vweird.f32 %v6376_v41  ;;  %v9298_v55 = vld [vmem:[#allocation28_spill] sm:$0xff] }
 0xa18   :  { %4222 = vmatpush.bf16.msra.mxu2 %v9011_v48  ;;  %4235 = vmatpush.bf16.msrb.mxu3 %v9012_v5  ;;  %v3970_v49 = vsel %vm3967_vm14, %v3969_v62, %v3965_v56  ;;  %v3984_v58 = vsel %vm3983_vm13, %v6374_v21, %v3980_v59  ;;  %v4007_v21 = vand.u32 2147483648, %v8276_v9  ;;  %vm4003_vm2 = vmor %vm4001_vm1, %vm4002_vm0  ;;  %v9299_v62 = vld [vmem:[#allocation23_spill] sm:$0xff]  ;;  %v9300_v59 = vld [vmem:[#allocation29_spill] sm:$0xff] }
 0xa19   :  { %v3998_v37 = vsub.f32 1.0, %v3997_v28  ;;  %4140 = vmatmul.bf16.vlgmr.msrb.gmra.mxu0 %v8264_v24  ;;  %4153 = vmatmul.bf16.vlgmr.msrb.gmra.mxu1 %v8264_v24  ;;  %v3989_v25 = vsel %vm3986_vm15, %v3988_v0, %v3984_v58  ;;  %v4012_v3 = vmul.f32 %v6378_v61, %v3970_v49  ;;  %v9301_v28 = vld [vmem:[#allocation17_spill] sm:$0xff]  ;;  %v9302_v0 = vld [vmem:[#allocation31_spill] sm:$0xff]  ;;  %v9303_v56 = vld [vmem:[#allocation24_spill] sm:$0xff] }
 0xa1a   :  { %4166 = vmatmul.bf16.vlgmr.msrb.gmra.mxu2 %v8264_v24  ;;  %4179 = vmatmul.bf16.vlgmr.msra.gmra.mxu3 %v8264_v24  ;;  %v4011_v12 = vmul.f32 %v3989_v25, %v8158_v14  ;;  %v4005_v14 = vand.u32 2147483647, %v8276_v9  ;;  %v4008_v63 = vor.u32 1.1754944e-38, %v4007_v21  ;;  %v9291_v9 = vld [vmem:[#allocation105_spill] sm:$0xff]  ;;  %v9304_v61 = vld [vmem:[#allocation32_spill] sm:$0xff]  ;;  %v9305_v49 = vld [vmem:[#allocation18_spill] sm:$0xff] }
 0xa1b   :  { %v3999_v50 = vmul.f32 %v6376_v41, %v3998_v37  ;;  %4197 = vmatpush.bf16.msra.mxu0 %v9013_v26  ;;  %4210 = vmatpush.bf16.msra.mxu1 %v9014_v32  ;;  %v9306_v58 = vld [vmem:[#allocation33_spill] sm:$0xff]  ;;  %v9308_v25 = vld [vmem:[#allocation34_spill] sm:$0xff] }
 0xa1c   :  { %4223 = vmatpush.bf16.msra.mxu2 %v9015_v45  ;;  %4236 = vmatpush.bf16.msrb.mxu3 %v9016_v35  ;;  %v8301_v47 = vadd.f32 %v4012_v3, %v4011_v12  ;;  %vm4006_vm3 = vcmp.eq.f32.partialorder %v4005_v14, 8.507059e+37  ;;  %v9307_v37 = vld [vmem:[#allocation25_spill] sm:$0xff]  ;;  %v9309_v3 = vld [vmem:[#allocation19_spill] sm:$0xff]  ;;  %v9313_v21 = vld [vmem:[#allocation22_spill] sm:$0xff] }
 0xa1d   :  { %v4000_v13 = vadd.f32 %v6376_v41, %v3999_v50  ;;  %v9310_v12 = vld [vmem:[#allocation35_spill] sm:$0xff]  ;;  %v9314_v14 = vld [vmem:[#allocation37_spill] sm:$0xff] }
 0xa1e   :  { %6379 = vtanh.f32 %v8301_v47  ;;  %v9311_v50 = vld [vmem:[#allocation27_spill] sm:$0xff] }
 0xa1f   :  { %4198 = vmatpush.bf16.msra.mxu0 %v9017_v51  ;;  %4211 = vmatpush.bf16.msra.mxu1 %v9018_v4  ;;  %v4004_v24 = vsel %vm4003_vm2, %v6376_v41, %v4000_v13  ;;  %v9297_v41 = vld [vmem:[#allocation21_spill] sm:$0xff]  ;;  %v9312_v13 = vld [vmem:[#allocation36_spill] sm:$0xff] }
 0xa20   :  { %4224 = vmatpush.bf16.msra.mxu2 %v7558_v17  ;;  %4237 = vmatpush.bf16.msrb.mxu3 %v7560_v16  ;;  %v4009_v42 = vsel %vm4006_vm3, %v4008_v63, %v4004_v24  ;;  %v9315_v24 = vld [vmem:[#allocation30_spill] sm:$0xff] }
 0xa21   :  { %v9316_v63 = vld [vmem:[#allocation38_spill] sm:$0xff] }
 0xa23   :  { %4199 = vmatpush.bf16.msra.mxu0 %v7564_v7  ;;  %4212 = vmatpush.bf16.msra.mxu1 %v7566_v15 }
 0xa24   :  { %4225 = vmatpush.bf16.msra.mxu2 %v7570_v11  ;;  %4238 = vmatpush.bf16.msrb.mxu3 %v7572_v1  ;;  %v6380_v30 = vpop.eup %6379 }
 0xa25   :  { %v8315_v46 = vmul.f32 %v6380_v30, %v4009_v42  ;;  %v9317_v30 = vld [vmem:[#allocation39_spill] sm:$0xff]  ;;  %v9318_v42 = vld [vmem:[#allocation40_spill] sm:$0xff] }
 0xa27   :  { %9290 = vst [vmem:[#allocation89_spill] sm:$0xff] %v8315_v46  ;;  %4200 = vmatpush.bf16.msra.mxu0 %v9291_v9  ;;  %4213 = vmatpush.bf16.msra.mxu1 %v9292_v18  ;;  %v4192_v40 = vpack.c.bf16 %v8315_v46, %v8315_v46  ;;  %v9352_v46 = vld [vmem:[#allocation77_spill] sm:$0xff] }
 0xa28   :  { %4226 = vmatpush.bf16.msra.mxu2 %v9293_v19  ;;  %4239 = vmatpush.bf16.msrb.mxu3 %v9294_v33 }
 0xa2a   :  { %4201 = vmatmul.bf16.vlgmr.msra.gmra.mxu0 %v4192_v40  ;;  %4214 = vmatmul.bf16.vlgmr.msra.gmra.mxu1 %v4192_v40 }
 0xa2b   :  { %4376 = vmatpush.bf16.msrb.mxu0 %v9295_v60  ;;  %4389 = vmatpush.bf16.msrb.mxu1 %v9296_v20  ;;  %v9320_v60 = vld [vmem:[#allocation42_spill] sm:$0xff]  ;;  %v9321_v20 = vld [vmem:[#allocation43_spill] sm:$0xff] }
 0xa2c   :  { %4227 = vmatmul.bf16.vlgmr.msra.gmra.mxu2 %v4192_v40  ;;  %4240 = vmatmul.bf16.vlgmr.msrb.gmra.mxu3 %v4192_v40  ;;  %v9319_v40 = vld [vmem:[#allocation41_spill] sm:$0xff] }
 0xa2d   :  { %4402 = vmatpush.bf16.msrb.mxu2 %v9297_v41  ;;  %4415 = vmatpush.bf16.msra.mxu3 %v9298_v55  ;;  %v9322_v41 = vld [vmem:[#allocation44_spill] sm:$0xff]  ;;  %v9323_v55 = vld [vmem:[#allocation45_spill] sm:$0xff] }
 0xa2f   :  { %4377 = vmatpush.bf16.msrb.mxu0 %v9299_v62  ;;  %4390 = vmatpush.bf16.msrb.mxu1 %v9300_v59  ;;  %v9324_v62 = vld [vmem:[#allocation46_spill] sm:$0xff]  ;;  %v9325_v59 = vld [vmem:[#allocation49_spill] sm:$0xff] }
 0xa31   :  { %4403 = vmatpush.bf16.msrb.mxu2 %v9301_v28  ;;  %4416 = vmatpush.bf16.msra.mxu3 %v9302_v0  ;;  %v9326_v28 = vld [vmem:[#allocation50_spill] sm:$0xff]  ;;  %v9327_v0 = vld [vmem:[#allocation47_spill] sm:$0xff] }
 0xa33   :  { %4378 = vmatpush.bf16.msrb.mxu0 %v9303_v56  ;;  %4391 = vmatpush.bf16.msrb.mxu1 %v9304_v61  ;;  %v9328_v56 = vld [vmem:[#allocation48_spill] sm:$0xff]  ;;  %v9329_v61 = vld [vmem:[#allocation51_spill] sm:$0xff] }
 0xa35   :  { %4404 = vmatpush.bf16.msrb.mxu2 %v9305_v49  ;;  %4417 = vmatpush.bf16.msra.mxu3 %v9306_v58  ;;  %v9330_v49 = vld [vmem:[#allocation52_spill] sm:$0xff]  ;;  %v9331_v58 = vld [vmem:[#allocation53_spill] sm:$0xff] }
 0xa37   :  { %4379 = vmatpush.bf16.msrb.mxu0 %v9307_v37  ;;  %4392 = vmatpush.bf16.msrb.mxu1 %v9308_v25  ;;  %v9332_v37 = vld [vmem:[#allocation54_spill] sm:$0xff]  ;;  %v9333_v25 = vld [vmem:[#allocation55_spill] sm:$0xff] }
 0xa39   :  { %4405 = vmatpush.bf16.msrb.mxu2 %v9309_v3  ;;  %4418 = vmatpush.bf16.msra.mxu3 %v9310_v12  ;;  %v9334_v3 = vld [vmem:[#allocation56_spill] sm:$0xff]  ;;  %v9335_v12 = vld [vmem:[#allocation57_spill] sm:$0xff] }
 0xa3b   :  { %4380 = vmatpush.bf16.msrb.mxu0 %v9311_v50  ;;  %4393 = vmatpush.bf16.msrb.mxu1 %v9312_v13  ;;  %v9336_v50 = vld [vmem:[#allocation58_spill] sm:$0xff]  ;;  %v9337_v13 = vld [vmem:[#allocation59_spill] sm:$0xff] }
 0xa3d   :  { %4406 = vmatpush.bf16.msrb.mxu2 %v9313_v21  ;;  %4419 = vmatpush.bf16.msra.mxu3 %v9314_v14  ;;  %v9338_v21 = vld [vmem:[#allocation60_spill] sm:$0xff]  ;;  %v9339_v14 = vld [vmem:[#allocation61_spill] sm:$0xff] }
 0xa3f   :  { %4381 = vmatpush.bf16.msrb.mxu0 %v9315_v24  ;;  %4394 = vmatpush.bf16.msrb.mxu1 %v9316_v63  ;;  %v9340_v24 = vld [vmem:[#allocation62_spill] sm:$0xff]  ;;  %v9341_v63 = vld [vmem:[#allocation63_spill] sm:$0xff] }
 0xa41   :  { %4407 = vmatpush.bf16.msrb.mxu2 %v9317_v30  ;;  %4420 = vmatpush.bf16.msra.mxu3 %v9318_v42  ;;  %v9342_v30 = vld [vmem:[#allocation64_spill] sm:$0xff]  ;;  %v9343_v42 = vld [vmem:[#allocation65_spill] sm:$0xff] }
 0xa43   :  { %4382 = vmatpush.bf16.msrb.mxu0 %v9319_v40  ;;  %4395 = vmatpush.bf16.msrb.mxu1 %v9320_v60  ;;  %v9344_v40 = vld [vmem:[#allocation68_spill] sm:$0xff]  ;;  %v9345_v60 = vld [vmem:[#allocation69_spill] sm:$0xff] }
 0xa45   :  { %4408 = vmatpush.bf16.msrb.mxu2 %v9321_v20  ;;  %4421 = vmatpush.bf16.msra.mxu3 %v9322_v41  ;;  %v9346_v20 = vld [vmem:[#allocation70_spill] sm:$0xff]  ;;  %v9347_v41 = vld [vmem:[#allocation71_spill] sm:$0xff] }
 0xa47   :  { %4383 = vmatpush.bf16.msrb.mxu0 %v9323_v55  ;;  %4396 = vmatpush.bf16.msrb.mxu1 %v9324_v62  ;;  %v9348_v55 = vld [vmem:[#allocation72_spill] sm:$0xff]  ;;  %v9349_v62 = vld [vmem:[#allocation73_spill] sm:$0xff] }
 0xa49   :  { %4409 = vmatpush.bf16.msrb.mxu2 %v9327_v0  ;;  %4422 = vmatpush.bf16.msra.mxu3 %v9328_v56  ;;  %v9350_v0 = vld [vmem:[#allocation74_spill] sm:$0xff]  ;;  %v9351_v56 = vld [vmem:[#allocation76_spill] sm:$0xff] }
 0xa4b   :  { %4428 = vmatpush.bf16.msra.mxu0 %v9325_v59  ;;  %4441 = vmatpush.bf16.msra.mxu1 %v9326_v28 }
 0xa4d   :  { %4454 = vmatpush.bf16.msra.mxu2 %v9329_v61  ;;  %4467 = vmatpush.bf16.msrb.mxu3 %v9330_v49 }
 0xa4f   :  { %4429 = vmatpush.bf16.msra.mxu0 %v9331_v58  ;;  %4442 = vmatpush.bf16.msra.mxu1 %v9332_v37 }
 0xa51   :  { %4455 = vmatpush.bf16.msra.mxu2 %v9333_v25  ;;  %4468 = vmatpush.bf16.msrb.mxu3 %v9334_v3 }
 0xa53   :  { %4430 = vmatpush.bf16.msra.mxu0 %v9335_v12  ;;  %4443 = vmatpush.bf16.msra.mxu1 %v9336_v50 }
 0xa55   :  { %4456 = vmatpush.bf16.msra.mxu2 %v9337_v13  ;;  %4469 = vmatpush.bf16.msrb.mxu3 %v9338_v21  ;;  %v9361_v21 = vld [vmem:[#allocation75_spill] sm:$0xff] }
 0xa57   :  { %4431 = vmatpush.bf16.msra.mxu0 %v9339_v14  ;;  %4444 = vmatpush.bf16.msra.mxu1 %v9340_v24  ;;  %v9360_v24 = vld [vmem:[#allocation67_spill] sm:$0xff] }
 0xa59   :  { %4457 = vmatpush.bf16.msra.mxu2 %v9341_v63  ;;  %4470 = vmatpush.bf16.msrb.mxu3 %v9342_v30  ;;  %v9353_v30 = vld [vmem:[#allocation78_spill] sm:$0xff] }
 0xa5a   :  { %v9359_v63 = vld [vmem:[#allocation66_spill] sm:$0xff] }
 0xa5b   :  { %4432 = vmatpush.bf16.msra.mxu0 %v9343_v42  ;;  %4445 = vmatpush.bf16.msra.mxu1 %v9344_v40  ;;  %v9354_v42 = vld [vmem:[#allocation79_spill] sm:$0xff]  ;;  %v9355_v40 = vld [vmem:[#allocation80_spill] sm:$0xff] }
 0xa5d   :  { %4458 = vmatpush.bf16.msra.mxu2 %v9345_v60  ;;  %4471 = vmatpush.bf16.msrb.mxu3 %v9346_v20  ;;  %v9356_v60 = vld [vmem:[#allocation81_spill] sm:$0xff]  ;;  %v9357_v20 = vld [vmem:[#allocation82_spill] sm:$0xff] }
 0xa5f   :  { %4433 = vmatpush.bf16.msra.mxu0 %v9347_v41  ;;  %4446 = vmatpush.bf16.msra.mxu1 %v9348_v55  ;;  %v9358_v41 = vld [vmem:[#allocation83_spill] sm:$0xff] }
 0xa61   :  { %4459 = vmatpush.bf16.msra.mxu2 %v9349_v62  ;;  %4472 = vmatpush.bf16.msrb.mxu3 %v9350_v0 }
 0xa63   :  { %4434 = vmatpush.bf16.msra.mxu0 %v9351_v56  ;;  %4447 = vmatpush.bf16.msra.mxu1 %v9352_v46 }
 0xa65   :  { %4460 = vmatpush.bf16.msra.mxu2 %v9353_v30  ;;  %4473 = vmatpush.bf16.msrb.mxu3 %v9354_v42 }
 0xa67   :  { %4435 = vmatpush.bf16.msra.mxu0 %v9355_v40  ;;  %4448 = vmatpush.bf16.msra.mxu1 %v9356_v60 }
 0xa69   :  { %4461 = vmatpush.bf16.msra.mxu2 %v9357_v20  ;;  %4474 = vmatpush.bf16.msrb.mxu3 %v9358_v41 }
 0xa86   :  { %v4089_v55 = vpop.f32.mrf.mxu0  ;;  %v4102_v62 = vpop.f32.mrf.mxu1 }
 0xa87   :  { %v4184_v0 = vadd.f32 %v4089_v55, %v9359_v63  ;;  %v4185_v56 = vadd.f32 %v4102_v62, %v9360_v24  ;;  %v9362_v63 = vld [vmem:[#allocation84_spill] sm:$0xff] }
 0xa89   :  { %v5809_v14 = vmul.f32 -1.442695, %v4184_v0  ;;  %v5810_v46 = vmul.f32 -1.442695, %v4185_v56 }
 0xa8b   :  { %6381 = vpow2.f32 %v5809_v14 }
 0xa8c   :  { %6383 = vpow2.f32 %v5810_v46 }
 0xa8d   :  { %v4115_v30 = vpop.f32.mrf.mxu2  ;;  %v4128_v42 = vpop.f32.mrf.mxu3 }
 0xa8e   :  { %v4187_v40 = vadd.f32 %v4128_v42, %v9361_v21  ;;  %v4091_v13 = vpop.f32.mrf.mxu0  ;;  %v4104_v60 = vpop.f32.mrf.mxu1  ;;  %v4186_v42 = vadd.f32 %v4115_v30, %v9362_v63 }
 0xa90   :  { %v5811_v50 = vmul.f32 -1.442695, %v4187_v40 }
 0xa91   :  { %v6382_v20 = vpop.eup %6381 }
 0xa92   :  { %v6384_v12 = vpop.eup %6383  ;;  %v4315_v41 = vadd.f32 1.0, %v6382_v20  ;;  %6385 = vpow2.f32 %v5811_v50 }
 0xa93   :  { %v4334_v3 = vadd.f32 1.0, %v6384_v12 }
 0xa94   :  { %6387 = vrcp.f32 %v4315_v41  ;;  %v4325_v58 = vand.u32 2147483647, %v4315_v41  ;;  %vm4321_vm6 = vweird.f32 %v4315_v41 }
 0xa95   :  { %6389 = vrcp.f32 %v4334_v3  ;;  %v4117_v55 = vpop.f32.mrf.mxu2  ;;  %v4130_v62 = vpop.f32.mrf.mxu3  ;;  %v4346_v37 = vand.u32 2147483648, %v4334_v3  ;;  %v4344_v30 = vand.u32 2147483647, %v4334_v3  ;;  %vm4340_vm7 = vweird.f32 %v4334_v3 }
 0xa96   :  { %v4141_v0 = vpop.f32.mrf.mxu0  ;;  %v4154_v56 = vpop.f32.mrf.mxu1  ;;  %v4327_v55 = vand.u32 2147483648, %v4315_v41  ;;  %vm4326_vm10 = vcmp.eq.f32.partialorder %v4325_v58, 8.507059e+37 }
 0xa97   :  { %vm4345_vm11 = vcmp.eq.f32.partialorder %v4344_v30, 8.507059e+37 }
 0xa98   :  { %v6386_v14 = vpop.eup %6385 }
 0xa99   :  { %v8390_v46 = vadd.f32 1.0, %v6386_v14 }
 0xa9a   :  { %v6388_v24 = vpop.eup %6387 }
 0xa9b   :  { %v6390_v13 = vpop.eup %6389  ;;  %v4317_v60 = vmul.f32 %v6388_v24, %v4315_v41  ;;  %6391 = vrcp.f32 %v8390_v46  ;;  %vm4322_vm4 = vweird.f32 %v6388_v24  ;;  %vm4360_vm13 = vweird.f32 %v8390_v46 }
 0xa9c   :  { %v4336_v40 = vmul.f32 %v6390_v13, %v4334_v3  ;;  %6393 = vtanh.f32 %v4186_v42  ;;  %vm4341_vm5 = vweird.f32 %v6390_v13  ;;  %vm4323_vm8 = vmor %vm4321_vm6, %vm4322_vm4  ;;  %v4347_v42 = vor.u32 1.1754944e-38, %v4346_v37 }
 0xa9d   :  { %v4318_v20 = vsub.f32 1.0, %v4317_v60  ;;  %v8394_v50 = vpop.f32.mrf.mxu2  ;;  %v4180_v12 = vpop.f32.mrf.mxu3  ;;  %v4328_v60 = vor.u32 1.1754944e-38, %v4327_v55  ;;  %vm4342_vm9 = vmor %vm4340_vm7, %vm4341_vm5  ;;  %v4189_v55 = vadd.f32 %v4154_v56, %v7673_v31 }
 0xa9e   :  { %v4337_v21 = vsub.f32 1.0, %v4336_v40  ;;  %v4143_v62 = vpop.f32.mrf.mxu0  ;;  %v4156_v25 = vpop.f32.mrf.mxu1 }
 0xa9f   :  { %v4319_v14 = vmul.f32 %v6388_v24, %v4318_v20 }
 0xaa0   :  { %v4338_v49 = vmul.f32 %v6390_v13, %v4337_v21 }
 0xaa1   :  { %v6392_v63 = vpop.eup %6391  ;;  %v4320_v61 = vadd.f32 %v6388_v24, %v4319_v14 }
 0xaa2   :  { %v4339_v28 = vadd.f32 %v6390_v13, %v4338_v49  ;;  %v4356_v40 = vmul.f32 %v6392_v63, %v8390_v46  ;;  %v6394_v25 = vpop.eup %6393  ;;  %v4188_v49 = vadd.f32 %v4141_v0, %v7670_v39  ;;  %vm4361_vm12 = vweird.f32 %v6392_v63 }
 0xaa3   :  { %v4324_v62 = vsel %vm4323_vm8, %v6388_v24, %v4320_v61  ;;  %vm4362_vm14 = vmor %vm4360_vm13, %vm4361_vm12 }
 0xaa4   :  { %v4329_v20 = vsel %vm4326_vm10, %v4328_v60, %v4324_v62  ;;  %v4343_v59 = vsel %vm4342_vm9, %v6390_v13, %v4339_v28  ;;  %v4357_v21 = vsub.f32 1.0, %v4356_v40 }
 0xaa5   :  { %v4348_v33 = vsel %vm4345_vm11, %v4347_v42, %v4343_v59  ;;  %v4371_v19 = vmul.f32 %v6394_v25, %v4329_v20  ;;  %v4169_v18 = vpop.f32.mrf.mxu2  ;;  %v4182_v14 = vpop.f32.mrf.mxu3 }
 0xaa6   :  { %v4370_v3 = vmul.f32 %v4348_v33, %v8257_v29  ;;  %v4358_v41 = vmul.f32 %v6392_v63, %v4357_v21  ;;  %v4366_v18 = vand.u32 2147483648, %v8390_v46  ;;  %v4364_v29 = vand.u32 2147483647, %v8390_v46 }
 0xaa7   :  { %v4202_v9 = vpop.f32.mrf.mxu0  ;;  %v4215_v37 = vpop.f32.mrf.mxu1 }
 0xaa8   :  { %v8400_v61 = vadd.f32 %v4371_v19, %v4370_v3  ;;  %v4245_v58 = vadd.f32 %v4202_v9, %v4188_v49  ;;  %v4246_v24 = vadd.f32 %v4215_v37, %v4189_v55  ;;  %v4359_v28 = vadd.f32 %v6392_v63, %v4358_v41 }
 0xaa9   :  { %v4191_v19 = vadd.f32 %v4180_v12, %v7682_v54  ;;  %v4367_v9 = vor.u32 1.1754944e-38, %v4366_v18  ;;  %vm4365_vm15 = vcmp.eq.f32.partialorder %v4364_v29, 8.507059e+37  ;;  %v4190_v55 = vadd.f32 %v8394_v50, %v7692_v27 }
 0xaaa   :  { %6395 = vtanh.f32 %v8400_v61  ;;  %v5806_v59 = vmul.f32 -1.442695, %v4245_v58  ;;  %v5807_v13 = vmul.f32 -1.442695, %v4246_v24  ;;  %v4363_v33 = vsel %vm4362_vm14, %v6392_v63, %v4359_v28 }
 0xaab   :  { %v4368_v62 = vsel %vm4365_vm15, %v4367_v9, %v4363_v33 }
 0xaac   :  { %6397 = vpow2.f32 %v5806_v59 }
 0xaad   :  { %6399 = vpow2.f32 %v5807_v13 }
 0xaaf   :  { %v4228_v0 = vpop.f32.mrf.mxu2  ;;  %v4241_v56 = vpop.f32.mrf.mxu3 }
 0xab0   :  { %v4248_v30 = vadd.f32 %v4241_v56, %v4191_v19  ;;  %v4204_v60 = vpop.f32.mrf.mxu0  ;;  %v4217_v40 = vpop.f32.mrf.mxu1  ;;  %v4247_v24 = vadd.f32 %v4228_v0, %v4190_v55 }
 0xab1   :  { %v6396_v42 = vpop.eup %6395 }
 0xab2   :  { %v4374_v25 = vmul.f32 %v6396_v42, %v4368_v62  ;;  %v5808_v20 = vmul.f32 -1.442695, %v4248_v30  ;;  %v6398_v21 = vpop.eup %6397 }
 0xab3   :  { %v6400_v14 = vpop.eup %6399  ;;  %v4252_v3 = vadd.f32 1.0, %v6398_v21 }
 0xab4   :  { %v8407_v46 = vpack.c.bf16 %v4374_v25, %v4374_v25  ;;  %6401 = vpow2.f32 %v5808_v20  ;;  %v4271_v63 = vadd.f32 1.0, %v6400_v14 }
 0xab5   :  { %6403 = vrcp.f32 %v4252_v3  ;;  %v4264_v50 = vand.u32 2147483648, %v4252_v3  ;;  %v4262_v9 = vand.u32 2147483647, %v4252_v3  ;;  %vm4258_vm2 = vweird.f32 %v4252_v3 }
 0xab6   :  { %4384 = vmatmul.bf16.vlgmr.msrb.gmra.mxu0 %v8407_v46  ;;  %4397 = vmatmul.bf16.vlgmr.msrb.gmra.mxu1 %v8407_v46  ;;  %6405 = vrcp.f32 %v4271_v63  ;;  %v4283_v33 = vand.u32 2147483648, %v4271_v63  ;;  %v4281_v56 = vand.u32 2147483647, %v4271_v63  ;;  %vm4277_vm3 = vweird.f32 %v4271_v63 }
 0xab7   :  { %v4230_v12 = vpop.f32.mrf.mxu2  ;;  %v4243_v41 = vpop.f32.mrf.mxu3  ;;  %4410 = vmatmul.bf16.vlgmr.msrb.gmra.mxu2 %v8407_v46  ;;  %4423 = vmatmul.bf16.vlgmr.msra.gmra.mxu3 %v8407_v46  ;;  %v4265_v40 = vor.u32 1.1754944e-38, %v4264_v50  ;;  %vm4263_vm6 = vcmp.eq.f32.partialorder %v4262_v9, 8.507059e+37  ;;  %v9364_v50 = vld [vmem:[#allocation106_spill] sm:$0xff] }
 0xab8   :  { %4489 = vmatpush.bf16.msrb.mxu0 %v7486_v23  ;;  %4502 = vmatpush.bf16.msrb.mxu1 %v7488_v36  ;;  %v4284_v25 = vor.u32 1.1754944e-38, %v4283_v33  ;;  %vm4282_vm7 = vcmp.eq.f32.partialorder %v4281_v56, 8.507059e+37  ;;  %v9365_v33 = vld [vmem:[#allocation107_spill] sm:$0xff]  ;;  %v9368_v56 = vld [vmem:[#allocation50_spill] sm:$0xff] }
 0xab9   :  { %4515 = vmatpush.bf16.msrb.mxu2 %v9000_v22  ;;  %4528 = vmatpush.bf16.msra.mxu3 %v9001_v8 }
 0xaba   :  { %v6402_v49 = vpop.eup %6401 }
 0xabb   :  { %v8419_v37 = vadd.f32 1.0, %v6402_v49  ;;  %v6404_v58 = vpop.eup %6403 }
 0xabc   :  { %4490 = vmatpush.bf16.msrb.mxu0 %v9002_v44  ;;  %4503 = vmatpush.bf16.msrb.mxu1 %v9003_v53  ;;  %v6406_v28 = vpop.eup %6405  ;;  %v4254_v18 = vmul.f32 %v6404_v58, %v4252_v3  ;;  %vm4259_vm0 = vweird.f32 %v6404_v58 }
 0xabd   :  { %6407 = vrcp.f32 %v8419_v37  ;;  %4516 = vmatpush.bf16.msrb.mxu2 %v9004_v43  ;;  %4529 = vmatpush.bf16.msra.mxu3 %v9005_v38  ;;  %v4273_v59 = vmul.f32 %v6406_v28, %v4271_v63  ;;  %vm4278_vm1 = vweird.f32 %v6406_v28  ;;  %vm4260_vm4 = vmor %vm4258_vm2, %vm4259_vm0  ;;  %vm4297_vm9 = vweird.f32 %v8419_v37 }
 0xabe   :  { %v4255_v13 = vsub.f32 1.0, %v4254_v18  ;;  %6409 = vtanh.f32 %v4247_v24  ;;  %vm4279_vm5 = vmor %vm4277_vm3, %vm4278_vm1 }
 0xabf   :  { %v4274_v29 = vsub.f32 1.0, %v4273_v59 }
 0xac0   :  { %4491 = vmatpush.bf16.msrb.mxu0 %v9006_v57  ;;  %4504 = vmatpush.bf16.msrb.mxu1 %v9071_v34  ;;  %v4256_v19 = vmul.f32 %v6404_v58, %v4255_v13 }
 0xac1   :  { %4517 = vmatpush.bf16.msrb.mxu2 %v9072_v2  ;;  %4530 = vmatpush.bf16.msra.mxu3 %v9073_v10  ;;  %v4275_v0 = vmul.f32 %v6406_v28, %v4274_v29 }
 0xac2   :  { %v4257_v60 = vadd.f32 %v6404_v58, %v4256_v19  ;;  %v9366_v19 = vld [vmem:[#allocation108_spill] sm:$0xff] }
 0xac3   :  { %v6408_v30 = vpop.eup %6407  ;;  %v4276_v42 = vadd.f32 %v6406_v28, %v4275_v0  ;;  %v9367_v0 = vld [vmem:[#allocation49_spill] sm:$0xff] }
 0xac4   :  { %v4293_v62 = vmul.f32 %v6408_v30, %v8419_v37  ;;  %4492 = vmatpush.bf16.msrb.mxu0 %v9009_v52  ;;  %4505 = vmatpush.bf16.msrb.mxu1 %v9074_v6  ;;  %v4261_v20 = vsel %vm4260_vm4, %v6404_v58, %v4257_v60  ;;  %v6410_v21 = vpop.eup %6409  ;;  %vm4298_vm8 = vweird.f32 %v6408_v30  ;;  %v9370_v60 = vld [vmem:[#allocation52_spill] sm:$0xff] }
 0xac5   :  { %4518 = vmatpush.bf16.msrb.mxu2 %v9011_v48  ;;  %4531 = vmatpush.bf16.msra.mxu3 %v9012_v5  ;;  %v4266_v14 = vsel %vm4263_vm6, %v4265_v40, %v4261_v20  ;;  %v4280_v3 = vsel %vm4279_vm5, %v6406_v28, %v4276_v42  ;;  %v4303_v28 = vand.u32 2147483648, %v8419_v37  ;;  %vm4299_vm10 = vmor %vm4297_vm9, %vm4298_vm8  ;;  %v9371_v40 = vld [vmem:[#allocation53_spill] sm:$0xff]  ;;  %v9372_v42 = vld [vmem:[#allocation54_spill] sm:$0xff] }
 0xac6   :  { %v4294_v63 = vsub.f32 1.0, %v4293_v62  ;;  %4436 = vmatmul.bf16.vlgmr.msra.gmra.mxu0 %v8407_v46  ;;  %4449 = vmatmul.bf16.vlgmr.msra.gmra.mxu1 %v8407_v46  ;;  %v4285_v12 = vsel %vm4282_vm7, %v4284_v25, %v4280_v3  ;;  %v4308_v41 = vmul.f32 %v6410_v21, %v4266_v14  ;;  %v9373_v62 = vld [vmem:[#allocation55_spill] sm:$0xff]  ;;  %v9374_v25 = vld [vmem:[#allocation56_spill] sm:$0xff]  ;;  %v9375_v20 = vld [vmem:[#allocation57_spill] sm:$0xff] }
 0xac7   :  { %4462 = vmatmul.bf16.vlgmr.msra.gmra.mxu2 %v8407_v46  ;;  %4475 = vmatmul.bf16.vlgmr.msrb.gmra.mxu3 %v8407_v46  ;;  %v4307_v49 = vmul.f32 %v4285_v12, %v8301_v47  ;;  %v4301_v47 = vand.u32 2147483647, %v8419_v37  ;;  %v4304_v18 = vor.u32 1.1754944e-38, %v4303_v28  ;;  %v9363_v37 = vld [vmem:[#allocation105_spill] sm:$0xff]  ;;  %v9376_v21 = vld [vmem:[#allocation58_spill] sm:$0xff]  ;;  %v9377_v14 = vld [vmem:[#allocation59_spill] sm:$0xff] }
 0xac8   :  { %v4295_v55 = vmul.f32 %v6408_v30, %v4294_v63  ;;  %4493 = vmatpush.bf16.msrb.mxu0 %v9013_v26  ;;  %4506 = vmatpush.bf16.msrb.mxu1 %v9014_v32  ;;  %v9378_v3 = vld [vmem:[#allocation60_spill] sm:$0xff]  ;;  %v9379_v63 = vld [vmem:[#allocation61_spill] sm:$0xff]  ;;  %v9380_v12 = vld [vmem:[#allocation62_spill] sm:$0xff] }
 0xac9   :  { %4519 = vmatpush.bf16.msrb.mxu2 %v9015_v45  ;;  %4532 = vmatpush.bf16.msra.mxu3 %v9016_v35  ;;  %v8444_v58 = vadd.f32 %v4308_v41, %v4307_v49  ;;  %vm4302_vm11 = vcmp.eq.f32.partialorder %v4301_v47, 8.507059e+37  ;;  %v9381_v41 = vld [vmem:[#allocation63_spill] sm:$0xff]  ;;  %v9382_v49 = vld [vmem:[#allocation64_spill] sm:$0xff]  ;;  %v9385_v28 = vld [vmem:[#allocation69_spill] sm:$0xff] }
 0xaca   :  { %v4296_v24 = vadd.f32 %v6408_v30, %v4295_v55  ;;  %v9383_v55 = vld [vmem:[#allocation65_spill] sm:$0xff]  ;;  %v9386_v47 = vld [vmem:[#allocation70_spill] sm:$0xff] }
 0xacb   :  { %6411 = vtanh.f32 %v8444_v58 }
 0xacc   :  { %4494 = vmatpush.bf16.msrb.mxu0 %v9017_v51  ;;  %4507 = vmatpush.bf16.msrb.mxu1 %v9018_v4  ;;  %v4300_v46 = vsel %vm4299_vm10, %v6408_v30, %v4296_v24  ;;  %v9369_v30 = vld [vmem:[#allocation51_spill] sm:$0xff]  ;;  %v9384_v24 = vld [vmem:[#allocation68_spill] sm:$0xff] }
 0xacd   :  { %4520 = vmatpush.bf16.msrb.mxu2 %v7558_v17  ;;  %4533 = vmatpush.bf16.msra.mxu3 %v7560_v16  ;;  %v4305_v13 = vsel %vm4302_vm11, %v4304_v18, %v4300_v46  ;;  %v9387_v46 = vld [vmem:[#allocation71_spill] sm:$0xff]  ;;  %v9388_v18 = vld [vmem:[#allocation72_spill] sm:$0xff] }
 0xad0   :  { %4495 = vmatpush.bf16.msrb.mxu0 %v7564_v7  ;;  %4508 = vmatpush.bf16.msrb.mxu1 %v7566_v15 }
 0xad1   :  { %4521 = vmatpush.bf16.msrb.mxu2 %v7570_v11  ;;  %4534 = vmatpush.bf16.msra.mxu3 %v7572_v1  ;;  %v6412_v59 = vpop.eup %6411 }
 0xad2   :  { %v8458_v29 = vmul.f32 %v6412_v59, %v4305_v13  ;;  %v9389_v59 = vld [vmem:[#allocation73_spill] sm:$0xff]  ;;  %v9390_v13 = vld [vmem:[#allocation74_spill] sm:$0xff] }
 0xad4   :  { %4496 = vmatpush.bf16.msrb.mxu0 %v9363_v37  ;;  %4509 = vmatpush.bf16.msrb.mxu1 %v9364_v50  ;;  %v4488_v9 = vpack.c.bf16 %v8458_v29, %v8458_v29 }
 0xad5   :  { %4522 = vmatpush.bf16.msrb.mxu2 %v9365_v33  ;;  %4535 = vmatpush.bf16.msra.mxu3 %v9366_v19 }
 0xad7   :  { %4497 = vmatmul.bf16.vlgmr.msrb.gmra.mxu0 %v4488_v9  ;;  %4510 = vmatmul.bf16.vlgmr.msrb.gmra.mxu1 %v4488_v9 }
 0xad8   :  { %4672 = vmatpush.bf16.msra.mxu0 %v9367_v0  ;;  %4685 = vmatpush.bf16.msra.mxu1 %v9368_v56  ;;  %v9392_v0 = vld [vmem:[#allocation77_spill] sm:$0xff]  ;;  %v9393_v56 = vld [vmem:[#allocation78_spill] sm:$0xff] }
 0xad9   :  { %4523 = vmatmul.bf16.vlgmr.msrb.gmra.mxu2 %v4488_v9  ;;  %4536 = vmatmul.bf16.vlgmr.msra.gmra.mxu3 %v4488_v9  ;;  %v9391_v9 = vld [vmem:[#allocation76_spill] sm:$0xff] }
 0xada   :  { %4698 = vmatpush.bf16.msra.mxu2 %v9369_v30  ;;  %4711 = vmatpush.bf16.msrb.mxu3 %v9370_v60  ;;  %v9394_v30 = vld [vmem:[#allocation79_spill] sm:$0xff]  ;;  %v9395_v60 = vld [vmem:[#allocation80_spill] sm:$0xff] }
 0xadc   :  { %4673 = vmatpush.bf16.msra.mxu0 %v9371_v40  ;;  %4686 = vmatpush.bf16.msra.mxu1 %v9372_v42  ;;  %v9396_v40 = vld [vmem:[#allocation81_spill] sm:$0xff]  ;;  %v9397_v42 = vld [vmem:[#allocation82_spill] sm:$0xff] }
 0xade   :  { %4699 = vmatpush.bf16.msra.mxu2 %v9373_v62  ;;  %4712 = vmatpush.bf16.msrb.mxu3 %v9374_v25  ;;  %v9398_v62 = vld [vmem:[#allocation83_spill] sm:$0xff] }
 0xae0   :  { %4674 = vmatpush.bf16.msra.mxu0 %v9375_v20  ;;  %4687 = vmatpush.bf16.msra.mxu1 %v9376_v21 }
 0xae2   :  { %4700 = vmatpush.bf16.msra.mxu2 %v9377_v14  ;;  %4713 = vmatpush.bf16.msrb.mxu3 %v9378_v3 }
 0xae4   :  { %4675 = vmatpush.bf16.msra.mxu0 %v9379_v63  ;;  %4688 = vmatpush.bf16.msra.mxu1 %v9380_v12 }
 0xae6   :  { %4701 = vmatpush.bf16.msra.mxu2 %v9381_v41  ;;  %4714 = vmatpush.bf16.msrb.mxu3 %v9382_v49 }
 0xae8   :  { %4676 = vmatpush.bf16.msra.mxu0 %v9383_v55  ;;  %4689 = vmatpush.bf16.msra.mxu1 %v9384_v24 }
 0xaea   :  { %4702 = vmatpush.bf16.msra.mxu2 %v9385_v28  ;;  %4715 = vmatpush.bf16.msrb.mxu3 %v9386_v47 }
 0xaec   :  { %4677 = vmatpush.bf16.msra.mxu0 %v9387_v46  ;;  %4690 = vmatpush.bf16.msra.mxu1 %v9388_v18 }
 0xaee   :  { %4703 = vmatpush.bf16.msra.mxu2 %v9389_v59  ;;  %4716 = vmatpush.bf16.msrb.mxu3 %v9390_v13 }
 0xaf0   :  { %4678 = vmatpush.bf16.msra.mxu0 %v9391_v9  ;;  %4691 = vmatpush.bf16.msra.mxu1 %v9392_v0 }
 0xaf2   :  { %4704 = vmatpush.bf16.msra.mxu2 %v9393_v56  ;;  %4717 = vmatpush.bf16.msrb.mxu3 %v9394_v30 }
 0xaf4   :  { %4679 = vmatpush.bf16.msra.mxu0 %v9395_v60  ;;  %4692 = vmatpush.bf16.msra.mxu1 %v9396_v40 }
 0xaf6   :  { %4705 = vmatpush.bf16.msra.mxu2 %v9397_v42  ;;  %4718 = vmatpush.bf16.msrb.mxu3 %v9398_v62 }
 0xaf8   :  { %4729 = vmatpush.bf16.msrb.mxu0 %v7486_v23  ;;  %4742 = vmatpush.bf16.msrb.mxu1 %v7488_v36 }
 0xafa   :  { %4755 = vmatpush.bf16.msrb.mxu2 %v9000_v22  ;;  %4768 = vmatpush.bf16.msra.mxu3 %v9001_v8  ;;  %v9400_v22 = vld [vmem:[#allocation67_spill] sm:$0xff] }
 0xafc   :  { %4730 = vmatpush.bf16.msrb.mxu0 %v9002_v44  ;;  %4743 = vmatpush.bf16.msrb.mxu1 %v9003_v53  ;;  %v9401_v44 = vld [vmem:[#allocation75_spill] sm:$0xff] }
 0xafe   :  { %4756 = vmatpush.bf16.msrb.mxu2 %v9004_v43  ;;  %4769 = vmatpush.bf16.msra.mxu3 %v9005_v38 }
 0xb00   :  { %4731 = vmatpush.bf16.msrb.mxu0 %v9006_v57  ;;  %4744 = vmatpush.bf16.msrb.mxu1 %v9071_v34 }
 0xb02   :  { %4757 = vmatpush.bf16.msrb.mxu2 %v9072_v2  ;;  %4770 = vmatpush.bf16.msra.mxu3 %v9073_v10  ;;  %v9402_v10 = vld [vmem:[#allocation84_spill] sm:$0xff] }
 0xb04   :  { %4732 = vmatpush.bf16.msrb.mxu0 %v9009_v52  ;;  %4745 = vmatpush.bf16.msrb.mxu1 %v9074_v6 }
 0xb06   :  { %4758 = vmatpush.bf16.msrb.mxu2 %v9011_v48  ;;  %4771 = vmatpush.bf16.msra.mxu3 %v9012_v5 }
 0xb08   :  { %4733 = vmatpush.bf16.msrb.mxu0 %v9013_v26  ;;  %4746 = vmatpush.bf16.msrb.mxu1 %v9014_v32 }
 0xb0a   :  { %4759 = vmatpush.bf16.msrb.mxu2 %v9015_v45  ;;  %4772 = vmatpush.bf16.msra.mxu3 %v9016_v35 }
 0xb0c   :  { %4734 = vmatpush.bf16.msrb.mxu0 %v9017_v51  ;;  %4747 = vmatpush.bf16.msrb.mxu1 %v9018_v4 }
 0xb0e   :  { %4760 = vmatpush.bf16.msrb.mxu2 %v7558_v17  ;;  %4773 = vmatpush.bf16.msra.mxu3 %v7560_v16  ;;  %v9399_v17 = vld [vmem:[#allocation66_spill] sm:$0xff] }
 0xb10   :  { %4735 = vmatpush.bf16.msrb.mxu0 %v7564_v7  ;;  %4748 = vmatpush.bf16.msrb.mxu1 %v7566_v15 }
 0xb12   :  { %4761 = vmatpush.bf16.msrb.mxu2 %v7570_v11  ;;  %4774 = vmatpush.bf16.msra.mxu3 %v7572_v1 }
 0xb14   :  { %4736 = vmatpush.bf16.msrb.mxu0 %v9363_v37  ;;  %4749 = vmatpush.bf16.msrb.mxu1 %v9364_v50 }
 0xb16   :  { %4762 = vmatpush.bf16.msrb.mxu2 %v9365_v33  ;;  %4775 = vmatpush.bf16.msra.mxu3 %v9366_v19 }
 0xb33   :  { %v4385_v23 = vpop.f32.mrf.mxu0  ;;  %v4398_v36 = vpop.f32.mrf.mxu1 }
 0xb34   :  { %v4480_v16 = vadd.f32 %v4385_v23, %v9399_v17  ;;  %v4481_v7 = vadd.f32 %v4398_v36, %v9400_v22 }
 0xb36   :  { %v5815_v8 = vmul.f32 -1.442695, %v4480_v16  ;;  %v5816_v15 = vmul.f32 -1.442695, %v4481_v7 }
 0xb38   :  { %6413 = vpow2.f32 %v5815_v8 }
 0xb39   :  { %6415 = vpow2.f32 %v5816_v15 }
 0xb3a   :  { %v4411_v11 = vpop.f32.mrf.mxu2  ;;  %v4424_v1 = vpop.f32.mrf.mxu3 }
 0xb3b   :  { %v4483_v53 = vadd.f32 %v4424_v1, %v9401_v44  ;;  %v4387_v43 = vpop.f32.mrf.mxu0  ;;  %v4400_v38 = vpop.f32.mrf.mxu1  ;;  %v4482_v6 = vadd.f32 %v4411_v11, %v9402_v10 }
 0xb3d   :  { %v5817_v57 = vmul.f32 -1.442695, %v4483_v53 }
 0xb3e   :  { %v6414_v5 = vpop.eup %6413 }
 0xb3f   :  { %v6416_v52 = vpop.eup %6415  ;;  %v4611_v48 = vadd.f32 1.0, %v6414_v5  ;;  %6417 = vpow2.f32 %v5817_v57 }
 0xb40   :  { %v4630_v26 = vadd.f32 1.0, %v6416_v52 }
 0xb41   :  { %6419 = vrcp.f32 %v4611_v48  ;;  %v4623_v14 = vand.u32 2147483648, %v4611_v48  ;;  %v4621_v49 = vand.u32 2147483647, %v4611_v48  ;;  %vm4617_vm14 = vweird.f32 %v4611_v48 }
 0xb42   :  { %6421 = vrcp.f32 %v4630_v26  ;;  %v4413_v32 = vpop.f32.mrf.mxu2  ;;  %v4426_v45 = vpop.f32.mrf.mxu3  ;;  %v4642_v12 = vand.u32 2147483648, %v4630_v26  ;;  %v4640_v24 = vand.u32 2147483647, %v4630_v26  ;;  %vm4636_vm15 = vweird.f32 %v4630_v26 }
 0xb43   :  { %v4437_v35 = vpop.f32.mrf.mxu0  ;;  %v4450_v51 = vpop.f32.mrf.mxu1  ;;  %v4624_v46 = vor.u32 1.1754944e-38, %v4623_v14  ;;  %vm4622_vm2 = vcmp.eq.f32.partialorder %v4621_v49, 8.507059e+37  ;;  %v6055_v14 = vld [vmem:[%s8639_s9 + $0x30] sm:$0xff] }
 0xb44   :  { %v4643_v13 = vor.u32 1.1754944e-38, %v4642_v12  ;;  %vm4641_vm3 = vcmp.eq.f32.partialorder %v4640_v24, 8.507059e+37  ;;  %v4484_v16 = vadd.f32 %v4437_v35, %v7670_v39  ;;  %v4485_v22 = vadd.f32 %v4450_v51, %v7673_v31 }
 0xb45   :  { %v6418_v4 = vpop.eup %6417 }
 0xb46   :  { %v8533_v34 = vadd.f32 1.0, %v6418_v4 }
 0xb47   :  { %v6420_v2 = vpop.eup %6419 }
 0xb48   :  { %v6422_v37 = vpop.eup %6421  ;;  %v4613_v50 = vmul.f32 %v6420_v2, %v4611_v48  ;;  %6423 = vrcp.f32 %v8533_v34  ;;  %vm4618_vm12 = vweird.f32 %v6420_v2  ;;  %v4662_v53 = vand.u32 2147483648, %v8533_v34 }
 0xb49   :  { %v4632_v33 = vmul.f32 %v6422_v37, %v4630_v26  ;;  %6425 = vtanh.f32 %v4482_v6  ;;  %vm4637_vm13 = vweird.f32 %v6422_v37  ;;  %vm4619_vm0 = vmor %vm4617_vm14, %vm4618_vm12  ;;  %vm4656_vm5 = vweird.f32 %v8533_v34 }
 0xb4a   :  { %v4614_v19 = vsub.f32 1.0, %v4613_v50  ;;  %v8537_v25 = vpop.f32.mrf.mxu2  ;;  %v4476_v20 = vpop.f32.mrf.mxu3  ;;  %vm4638_vm1 = vmor %vm4636_vm15, %vm4637_vm13  ;;  %v4663_v52 = vor.u32 1.1754944e-38, %v4662_v53 }
 0xb4b   :  { %v4633_v21 = vsub.f32 1.0, %v4632_v33  ;;  %v4439_v3 = vpop.f32.mrf.mxu0  ;;  %v4452_v63 = vpop.f32.mrf.mxu1  ;;  %v4487_v57 = vadd.f32 %v4476_v20, %v7682_v54  ;;  %v6056_v33 = vld [vmem:[%s8639_s9 + $0x38] sm:$0xff] }
 0xb4c   :  { %v4615_v41 = vmul.f32 %v6420_v2, %v4614_v19  ;;  %v4486_v63 = vadd.f32 %v8537_v25, %v7692_v27  ;;  %v6053_v25 = vld [vmem:[%s8639_s9 + $0x20] sm:$0xff] }
 0xb4d   :  { %v4634_v55 = vmul.f32 %v6422_v37, %v4633_v21 }
 0xb4e   :  { %v6424_v28 = vpop.eup %6423  ;;  %v4616_v47 = vadd.f32 %v6420_v2, %v4615_v41 }
 0xb4f   :  { %v4635_v18 = vadd.f32 %v6422_v37, %v4634_v55  ;;  %v4652_v59 = vmul.f32 %v6424_v28, %v8533_v34  ;;  %v6426_v0 = vpop.eup %6425  ;;  %vm4657_vm4 = vweird.f32 %v6424_v28  ;;  %v6054_v55 = vld [vmem:[%s8639_s9 + $0x28] sm:$0xff] }
 0xb50   :  { %v4620_v9 = vsel %vm4619_vm0, %v6420_v2, %v4616_v47  ;;  %vm4658_vm6 = vmor %vm4656_vm5, %vm4657_vm4 }
 0xb51   :  { %v4625_v56 = vsel %vm4622_vm2, %v4624_v46, %v4620_v9  ;;  %v4639_v30 = vsel %vm4638_vm1, %v6422_v37, %v4635_v18  ;;  %v4653_v60 = vsub.f32 1.0, %v4652_v59 }
 0xb52   :  { %v4644_v40 = vsel %vm4641_vm3, %v4643_v13, %v4639_v30  ;;  %v4667_v42 = vmul.f32 %v6426_v0, %v4625_v56  ;;  %v4465_v62 = vpop.f32.mrf.mxu2  ;;  %v4478_v23 = vpop.f32.mrf.mxu3 }
 0xb53   :  { %v4666_v36 = vmul.f32 %v4644_v40, %v8400_v61  ;;  %v4654_v17 = vmul.f32 %v6424_v28, %v4653_v60  ;;  %v4660_v61 = vand.u32 2147483647, %v8533_v34 }
 0xb54   :  { %v4498_v7 = vpop.f32.mrf.mxu0  ;;  %v4511_v8 = vpop.f32.mrf.mxu1 }
 0xb55   :  { %v4668_v15 = vadd.f32 %v4667_v42, %v4666_v36  ;;  %v4541_v11 = vadd.f32 %v4498_v7, %v4484_v16  ;;  %v4542_v1 = vadd.f32 %v4511_v8, %v4485_v22  ;;  %v4655_v44 = vadd.f32 %v6424_v28, %v4654_v17  ;;  %v6052_v36 = vld [vmem:[%s8639_s9 + $0x18] sm:$0xff] }
 0xb56   :  { %vm4661_vm7 = vcmp.eq.f32.partialorder %v4660_v61, 8.507059e+37 }
 0xb57   :  { %6427 = vtanh.f32 %v4668_v15  ;;  %v5812_v43 = vmul.f32 -1.442695, %v4541_v11  ;;  %v5813_v38 = vmul.f32 -1.442695, %v4542_v1  ;;  %v4659_v5 = vsel %vm4658_vm6, %v6424_v28, %v4655_v44 }
 0xb58   :  { %v4664_v4 = vsel %vm4661_vm7, %v4663_v52, %v4659_v5  ;;  %v6050_v5 = vld [vmem:[%s8639_s9 + $0x8] sm:$0xff] }
 0xb59   :  { %6429 = vpow2.f32 %v5812_v43  ;;  %v6051_v43 = vld [vmem:[%s8639_s9 + $0x10] sm:$0xff] }
 0xb5a   :  { %6431 = vpow2.f32 %v5813_v38 }
 0xb5c   :  { %v4524_v48 = vpop.f32.mrf.mxu2  ;;  %v4537_v26 = vpop.f32.mrf.mxu3 }
 0xb5d   :  { %v4544_v32 = vadd.f32 %v4537_v26, %v4487_v57  ;;  %v4500_v45 = vpop.f32.mrf.mxu0  ;;  %v4513_v35 = vpop.f32.mrf.mxu1  ;;  %v4543_v49 = vadd.f32 %v4524_v48, %v4486_v63  ;;  %v6049_v26 = vld [vmem:[%s8639_s9] sm:$0xff] }
 0xb5e   :  { %v6428_v51 = vpop.eup %6427 }
 0xb5f   :  { %v5814_v2 = vmul.f32 -1.442695, %v4544_v32  ;;  %v4670_v10 = vmul.f32 %v6428_v51, %v4664_v4  ;;  %v6430_v6 = vpop.eup %6429  ;;  %v9403_v4 = vld [vmem:[#allocation85_spill] sm:$0xff] }
 0xb60   :  { %v6432_v37 = vpop.eup %6431  ;;  %v4548_v34 = vadd.f32 1.0, %v6430_v6  ;;  %v9405_v6 = vld [vmem:[#allocation87_spill] sm:$0xff] }
 0xb61   :  { %6433 = vpow2.f32 %v5814_v2  ;;  %v4671_v50 = vpack.c.bf16 %v4670_v10, %v4670_v10  ;;  %v4567_v19 = vadd.f32 1.0, %v6432_v37  ;;  %v9404_v2 = vld [vmem:[#allocation86_spill] sm:$0xff]  ;;  %v9406_v37 = vld [vmem:[#allocation88_spill] sm:$0xff] }
 0xb62   :  { %6435 = vrcp.f32 %v4548_v34  ;;  %v4560_v59 = vand.u32 2147483648, %v4548_v34  ;;  %v4558_v0 = vand.u32 2147483647, %v4548_v34  ;;  %vm4554_vm10 = vweird.f32 %v4548_v34 }
 0xb63   :  { %4680 = vmatmul.bf16.vlgmr.msra.gmra.mxu0 %v4671_v50  ;;  %4693 = vmatmul.bf16.vlgmr.msra.gmra.mxu1 %v4671_v50  ;;  %6437 = vrcp.f32 %v4567_v19  ;;  %v4579_v13 = vand.u32 2147483648, %v4567_v19  ;;  %v4577_v30 = vand.u32 2147483647, %v4567_v19  ;;  %vm4573_vm11 = vweird.f32 %v4567_v19 }
 0xb64   :  { %v4526_v20 = vpop.f32.mrf.mxu2  ;;  %v4539_v21 = vpop.f32.mrf.mxu3  ;;  %4706 = vmatmul.bf16.vlgmr.msra.gmra.mxu2 %v4671_v50  ;;  %4719 = vmatmul.bf16.vlgmr.msrb.gmra.mxu3 %v4671_v50  ;;  %v4561_v42 = vor.u32 1.1754944e-38, %v4560_v59  ;;  %vm4559_vm14 = vcmp.eq.f32.partialorder %v4558_v0, 8.507059e+37  ;;  %v4848_v10 = vpack.c.bf16 %v9404_v2, %v9403_v4  ;;  %v9407_v50 = vld [vmem:[#allocation89_spill] sm:$0xff] }
 0xb65   :  { %4920 = vmatpush.bf16.msra.mxu0 %v6056_v33  ;;  %v4580_v17 = vor.u32 1.1754944e-38, %v4579_v13  ;;  %vm4578_vm15 = vcmp.eq.f32.partialorder %v4577_v30, 8.507059e+37  ;;  %v4850_v33 = vpack.c.bf16 %v8458_v29, %v9407_v50 }
 0xb67   :  { %v6434_v3 = vpop.eup %6433 }
 0xb68   :  { %v4587_v12 = vadd.f32 1.0, %v6434_v3  ;;  %v6436_v41 = vpop.eup %6435 }
 0xb69   :  { %4921 = vmatpush.bf16.msra.mxu0 %v6055_v14  ;;  %v6438_v24 = vpop.eup %6437  ;;  %v4550_v28 = vmul.f32 %v6436_v41, %v4548_v34  ;;  %vm4555_vm8 = vweird.f32 %v6436_v41  ;;  %v4849_v34 = vpack.c.bf16 %v9406_v37, %v9405_v6 }
 0xb6a   :  { %6439 = vrcp.f32 %v4587_v12  ;;  %v4569_v47 = vmul.f32 %v6438_v24, %v4567_v19  ;;  %vm4574_vm9 = vweird.f32 %v6438_v24  ;;  %vm4556_vm12 = vmor %vm4554_vm10, %vm4555_vm8  ;;  %v4599_v57 = vand.u32 2147483648, %v4587_v12 }
 0xb6b   :  { %v4551_v46 = vsub.f32 1.0, %v4550_v28  ;;  %6441 = vtanh.f32 %v4543_v49  ;;  %vm4575_vm13 = vmor %vm4573_vm11, %vm4574_vm9  ;;  %vm4593_vm1 = vweird.f32 %v4587_v12 }
 0xb6c   :  { %v4570_v18 = vsub.f32 1.0, %v4569_v47  ;;  %v4600_v48 = vor.u32 1.1754944e-38, %v4599_v57 }
 0xb6d   :  { %4922 = vmatpush.bf16.msra.mxu0 %v6054_v55  ;;  %v4552_v9 = vmul.f32 %v6436_v41, %v4551_v46 }
 0xb6e   :  { %v4571_v56 = vmul.f32 %v6438_v24, %v4570_v18 }
 0xb6f   :  { %v4553_v40 = vadd.f32 %v6436_v41, %v4552_v9 }
 0xb70   :  { %v6440_v60 = vpop.eup %6439  ;;  %v4572_v62 = vadd.f32 %v6438_v24, %v4571_v56 }
 0xb71   :  { %v4589_v23 = vmul.f32 %v6440_v60, %v4587_v12  ;;  %4923 = vmatpush.bf16.msra.mxu0 %v6053_v25  ;;  %v4557_v16 = vsel %vm4556_vm12, %v6436_v41, %v4553_v40  ;;  %v6442_v22 = vpop.eup %6441  ;;  %vm4594_vm0 = vweird.f32 %v6440_v60 }
 0xb72   :  { %v4562_v7 = vsel %vm4559_vm14, %v4561_v42, %v4557_v16  ;;  %v4576_v8 = vsel %vm4575_vm13, %v6438_v24, %v4572_v62  ;;  %vm4595_vm2 = vmor %vm4593_vm1, %vm4594_vm0  ;;  %v8593_v42 = vld [vmem:[%s8640_s10] ss:$0 sm:$0xff] }
 0xb73   :  { %v4590_v15 = vsub.f32 1.0, %v4589_v23  ;;  %v4581_v11 = vsel %vm4578_vm15, %v4580_v17, %v4576_v8  ;;  %v4604_v1 = vmul.f32 %v6442_v22, %v4562_v7 }
 0xb74   :  { %v4603_v44 = vmul.f32 %v4581_v11, %v8444_v58  ;;  %v4597_v58 = vand.u32 2147483647, %v4587_v12 }
 0xb75   :  { %v4591_v53 = vmul.f32 %v6440_v60, %v4590_v15  ;;  %4924 = vmatpush.bf16.msra.mxu0 %v6052_v36 }
 0xb76   :  { %v8568_v38 = vadd.f32 %v4604_v1, %v4603_v44  ;;  %vm4598_vm3 = vcmp.eq.f32.partialorder %v4597_v58, 8.507059e+37 }
 0xb77   :  { %v4592_v61 = vadd.f32 %v6440_v60, %v4591_v53 }
 0xb78   :  { %6443 = vtanh.f32 %v8568_v38 }
 0xb79   :  { %4925 = vmatpush.bf16.msra.mxu0 %v6051_v43  ;;  %v4596_v52 = vsel %vm4595_vm2, %v6440_v60, %v4592_v61 }
 0xb7a   :  { %v4601_v45 = vsel %vm4598_vm3, %v4600_v48, %v4596_v52 }
 0xb7d   :  { %4926 = vmatpush.bf16.msra.mxu0 %v6050_v5 }
 0xb7e   :  { %v6444_v32 = vpop.eup %6443 }
 0xb7f   :  { %v8577_v35 = vmul.f32 %v6444_v32, %v4601_v45 }
 0xb81   :  { %4927 = vmatpush.bf16.msra.mxu0 %v6049_v26  ;;  %v4728_v51 = vpack.c.bf16 %v8577_v35, %v8577_v35 }
 0xb83   :  { %4737 = vmatmul.bf16.vlgmr.msrb.gmra.mxu0 %v4728_v51  ;;  %4750 = vmatmul.bf16.vlgmr.msrb.gmra.mxu1 %v4728_v51 }
 0xb84   :  { %4763 = vmatmul.bf16.vlgmr.msrb.gmra.mxu2 %v4728_v51  ;;  %4776 = vmatmul.bf16.vlgmr.msra.gmra.mxu3 %v4728_v51 }
 0xb93   :  { %4928 = vmatmul.bf16.vlgmr.msra.gmra.mxu0 %v4848_v10 }
 0xba3   :  { %4933 = vmatmul.bf16.gmra.mxu0 %v4849_v34 }
 0xbb3   :  { %4938 = vmatmul.bf16.gmra.mxu0 %v4850_v33 }
 0xbe0   :  { %v4681_v19 = vpop.f32.mrf.mxu0  ;;  %v4694_v20 = vpop.f32.mrf.mxu1 }
 0xbe1   :  { %v4724_v49 = vadd.f32 %v4681_v19, %v7670_v39  ;;  %v4725_v55 = vadd.f32 %v4694_v20, %v7673_v31 }
 0xbe7   :  { %v4707_v21 = vpop.f32.mrf.mxu2  ;;  %v4720_v14 = vpop.f32.mrf.mxu3 }
 0xbe8   :  { %v4683_v3 = vpop.f32.mrf.mxu0  ;;  %v4696_v63 = vpop.f32.mrf.mxu1  ;;  %v4727_v29 = vadd.f32 %v4720_v14, %v7682_v54  ;;  %v4726_v16 = vadd.f32 %v4707_v21, %v7692_v27 }
 0xbef   :  { %v4709_v12 = vpop.f32.mrf.mxu2  ;;  %v4722_v41 = vpop.f32.mrf.mxu3 }
 0xc00   :  { %v4738_v24 = vpop.f32.mrf.mxu0  ;;  %v4751_v28 = vpop.f32.mrf.mxu1 }
 0xc01   :  { %v4781_v47 = vadd.f32 %v4738_v24, %v4724_v49  ;;  %v4782_v46 = vadd.f32 %v4751_v28, %v4725_v55 }
 0xc03   :  { %v5818_v18 = vmul.f32 -1.442695, %v4781_v47  ;;  %v5819_v59 = vmul.f32 -1.442695, %v4782_v46 }
 0xc05   :  { %6445 = vpow2.f32 %v5818_v18 }
 0xc06   :  { %6447 = vpow2.f32 %v5819_v59 }
 0xc07   :  { %v4764_v25 = vpop.f32.mrf.mxu2  ;;  %v4777_v13 = vpop.f32.mrf.mxu3 }
 0xc08   :  { %v4784_v9 = vadd.f32 %v4777_v13, %v4727_v29  ;;  %v4740_v0 = vpop.f32.mrf.mxu0  ;;  %v4753_v56 = vpop.f32.mrf.mxu1  ;;  %v4783_v8 = vadd.f32 %v4764_v25, %v4726_v16 }
 0xc0a   :  { %v5820_v30 = vmul.f32 -1.442695, %v4784_v9 }
 0xc0b   :  { %v6446_v60 = vpop.eup %6445 }
 0xc0c   :  { %v6448_v39 = vpop.eup %6447  ;;  %v4788_v40 = vadd.f32 1.0, %v6446_v60  ;;  %6449 = vpow2.f32 %v5820_v30 }
 0xc0d   :  { %v4807_v31 = vadd.f32 1.0, %v6448_v39 }
 0xc0e   :  { %6451 = vrcp.f32 %v4788_v40  ;;  %v4798_v43 = vand.u32 2147483647, %v4788_v40  ;;  %v4800_v61 = vand.u32 2147483648, %v4788_v40  ;;  %vm4794_vm6 = vweird.f32 %v4788_v40 }
 0xc0f   :  { %6453 = vrcp.f32 %v4807_v31  ;;  %v4766_v54 = vpop.f32.mrf.mxu2  ;;  %v4779_v62 = vpop.f32.mrf.mxu3  ;;  %v4819_v5 = vand.u32 2147483648, %v4807_v31  ;;  %v4817_v48 = vand.u32 2147483647, %v4807_v31  ;;  %vm4813_vm7 = vweird.f32 %v4807_v31 }
 0xc10   :  { %v4929_v23 = vpop.f32.mrf.mxu0  ;;  %v4801_v45 = vor.u32 1.1754944e-38, %v4800_v61  ;;  %vm4799_vm10 = vcmp.eq.f32.partialorder %v4798_v43, 8.507059e+37 }
 0xc11   :  { %v4930_v36 = vadd.f32 %v8593_v42, %v4929_v23  ;;  %v4820_v2 = vor.u32 1.1754944e-38, %v4819_v5  ;;  %vm4818_vm11 = vcmp.eq.f32.partialorder %v4817_v48, 8.507059e+37 }
 0xc12   :  { %v6450_v17 = vpop.eup %6449 }
 0xc13   :  { %v4827_v22 = vadd.f32 1.0, %v6450_v17  ;;  %4949 = vst [vmem:[%s8641_s11] sm:$0xff] %v4930_v36 }
 0xc14   :  { %v6452_v7 = vpop.eup %6451 }
 0xc15   :  { %v6454_v15 = vpop.eup %6453  ;;  %v4790_v11 = vmul.f32 %v6452_v7, %v4788_v40  ;;  %6455 = vrcp.f32 %v4827_v22  ;;  %vm4795_vm4 = vweird.f32 %v6452_v7  ;;  %v4839_v41 = vand.u32 2147483648, %v4827_v22 }
 0xc16   :  { %v4809_v1 = vmul.f32 %v6454_v15, %v4807_v31  ;;  %6457 = vtanh.f32 %v4783_v8  ;;  %vm4814_vm5 = vweird.f32 %v6454_v15  ;;  %vm4796_vm8 = vmor %vm4794_vm6, %vm4795_vm4  ;;  %vm4833_vm13 = vweird.f32 %v4827_v22 }
 0xc17   :  { %v4791_v44 = vsub.f32 1.0, %v4790_v11  ;;  %vm4815_vm9 = vmor %vm4813_vm7, %vm4814_vm5  ;;  %v4837_v49 = vand.u32 2147483647, %v4827_v22  ;;  %v4840_v28 = vor.u32 1.1754944e-38, %v4839_v41 }
 0xc18   :  { %v4810_v53 = vsub.f32 1.0, %v4809_v1  ;;  %v4931_v57 = vpop.f32.mrf.mxu0 }
 0xc19   :  { %v4792_v58 = vmul.f32 %v6452_v7, %v4791_v44  ;;  %v4932_v27 = vadd.f32 %v8593_v42, %v4931_v57  ;;  %vm4838_vm15 = vcmp.eq.f32.partialorder %v4837_v49, 8.507059e+37 }
 0xc1a   :  { %v4811_v52 = vmul.f32 %v6454_v15, %v4810_v53 }
 0xc1b   :  { %v6456_v26 = vpop.eup %6455  ;;  %v4793_v32 = vadd.f32 %v6452_v7, %v4792_v58  ;;  %4950 = vst [vmem:[%s8641_s11 + $0x8] sm:$0xff] %v4932_v27 }
 0xc1c   :  { %v4812_v51 = vadd.f32 %v6454_v15, %v4811_v52  ;;  %v4829_v4 = vmul.f32 %v6456_v26, %v4827_v22  ;;  %v6458_v6 = vpop.eup %6457  ;;  %vm4834_vm12 = vweird.f32 %v6456_v26 }
 0xc1d   :  { %v4797_v10 = vsel %vm4796_vm8, %v6452_v7, %v4793_v32  ;;  %vm4835_vm14 = vmor %vm4833_vm13, %vm4834_vm12 }
 0xc1e   :  { %v4802_v37 = vsel %vm4799_vm10, %v4801_v45, %v4797_v10  ;;  %v4816_v34 = vsel %vm4815_vm9, %v6454_v15, %v4812_v51  ;;  %v4830_v50 = vsub.f32 1.0, %v4829_v4 }
 0xc1f   :  { %v4821_v33 = vsel %vm4818_vm11, %v4820_v2, %v4816_v34  ;;  %v4844_v19 = vmul.f32 %v6458_v6, %v4802_v37 }
 0xc20   :  { %v4843_v20 = vmul.f32 %v4821_v33, %v8568_v38  ;;  %v4934_v21 = vpop.f32.mrf.mxu0  ;;  %v4831_v14 = vmul.f32 %v6456_v26, %v4830_v50 }
 0xc21   :  { %v4935_v3 = vadd.f32 %v8593_v42, %v4934_v21 }
 0xc22   :  { %v4845_v63 = vadd.f32 %v4844_v19, %v4843_v20  ;;  %v4832_v12 = vadd.f32 %v6456_v26, %v4831_v14 }
 0xc23   :  { %4951 = vst [vmem:[%s8641_s11 + $0x10] sm:$0xff] %v4935_v3 }
 0xc24   :  { %6459 = vtanh.f32 %v4845_v63  ;;  %v4836_v55 = vsel %vm4835_vm14, %v6456_v26, %v4832_v12 }
 0xc25   :  { %v4841_v46 = vsel %vm4838_vm15, %v4840_v28, %v4836_v55 }
 0xc28   :  { %v4936_v24 = vpop.f32.mrf.mxu0 }
 0xc29   :  { %v4937_v38 = vadd.f32 %v8593_v42, %v4936_v24 }
 0xc2a   :  { %v6460_v47 = vpop.eup %6459 }
 0xc2b   :  { %4952 = vst [vmem:[%s8641_s11 + $0x18] sm:$0xff] %v4937_v38  ;;  %v4847_v18 = vmul.f32 %v6460_v47, %v4841_v46 }
 0xc2d   :  { %v4851_v59 = vpack.c.bf16 %v4847_v18, %v8577_v35 }
 0xc2f   :  { %4943 = vmatmul.bf16.gmra.mxu0 %v4851_v59 }
 0xc30   :  { %v4939_v29 = vpop.f32.mrf.mxu0 }
 0xc31   :  { %v4940_v25 = vadd.f32 %v8593_v42, %v4939_v29 }
 0xc33   :  { %4953 = vst [vmem:[%s8641_s11 + $0x20] sm:$0xff] %v4940_v25 }
 0xc38   :  { %v4941_v13 = vpop.f32.mrf.mxu0 }
 0xc39   :  { %v4942_v9 = vadd.f32 %v8593_v42, %v4941_v13 }
 0xc3b   :  { %4954 = vst [vmem:[%s8641_s11 + $0x28] sm:$0xff] %v4942_v9 }
 0xcac   :  { %v4944_v0 = vpop.f32.mrf.mxu0 }
 0xcad   :  { %v4945_v56 = vadd.f32 %v8593_v42, %v4944_v0 }
 0xcaf   :  { %4955 = vst [vmem:[%s8641_s11 + $0x30] sm:$0xff] %v4945_v56 }
 0xcb4   :  { %v4946_v35 = vpop.f32.mrf.mxu0 }
 0xcb5   :  { %v4947_v30 = vadd.f32 %v8593_v42, %v4946_v35 }
 0xcb7   :  { %4956 = vst [vmem:[%s8641_s11 + $0x38] sm:$0xff] %v4947_v30 }
 0xcb8   :  { %4961 = vsyncpa [#allocation4], 1 }
 0xcb9   :  { %4962 = vsyncpa [#allocation6], 1 }
 0xcba   :  { %4963 = vsyncpa [#allocation9], 1 }
 0xcbb   :  { %4964 = vsyncpa [#allocation12], 1 }

</bundles_post_ra>
